<compile_context>
chip_gen: v7x
topology: tpu7x:2x2x1
jax: 0.10.0
libtpu: 0.0.40
codegen_flags: <defaults>
</compile_context>

<pallas_src>
import functools

import jax
import jax.numpy as jnp
from jax.experimental import pallas as pl
from jax.experimental.pallas import tpu as pltpu

BN_EPS = 1e-5
STAGE_CFG = [(64, 64, 1), (64, 128, 2), (128, 256, 2), (256, 512, 2)]  # resnet18


def _round_up(x, m):
    return (x + m - 1) // m * m


def _pick_tile(padded_dim, candidates):
    """Largest candidate tile that evenly divides the padded dimension."""
    for t in candidates:
        if padded_dim % t == 0:
            return t
    return candidates[-1]


# ---------------------------------------------------------------------------
# Pallas kernels
# ---------------------------------------------------------------------------
def _mm_bn_kernel(a_ref, b_ref, scale_ref, bias_ref, o_ref, acc_ref, *, apply_relu):
    """out = relu?((A @ B) * scale + bias); K accumulated over innermost grid axis."""
    k = pl.program_id(2)

    @pl.when(k == 0)
    def _():
        acc_ref[...] = jnp.zeros_like(acc_ref)

    acc_ref[...] += jnp.dot(a_ref[...], b_ref[...],
                            preferred_element_type=jnp.float32)

    @pl.when(k == pl.num_programs(2) - 1)
    def _():
        y = acc_ref[...] * scale_ref[...] + bias_ref[...]
        if apply_relu:
            y = jnp.maximum(y, 0.0)
        o_ref[...] = y.astype(o_ref.dtype)


def _mm_bn_res_kernel(a_ref, b_ref, scale_ref, bias_ref, res_ref, o_ref, acc_ref,
                      *, apply_relu):
    """out = relu?((A @ B) * scale + bias + residual)."""
    k = pl.program_id(2)

    @pl.when(k == 0)
    def _():
        acc_ref[...] = jnp.zeros_like(acc_ref)

    acc_ref[...] += jnp.dot(a_ref[...], b_ref[...],
                            preferred_element_type=jnp.float32)

    @pl.when(k == pl.num_programs(2) - 1)
    def _():
        y = (acc_ref[...] * scale_ref[...] + bias_ref[...]
             + res_ref[...].astype(jnp.float32))
        if apply_relu:
            y = jnp.maximum(y, 0.0)
        o_ref[...] = y.astype(o_ref.dtype)


def _maxpool_kernel(win_ref, o_ref):
    """max over the leading window axis: (KH*KW, tm, C) -> (tm, C)."""
    y = win_ref[0]
    for i in range(1, win_ref.shape[0]):
        y = jnp.maximum(y, win_ref[i])
    o_ref[...] = y


def _avgpool_kernel(x_ref, o_ref):
    """global average pool: (N, H*W, C) -> (N, C) in f32."""
    o_ref[...] = jnp.mean(x_ref[...].astype(jnp.float32), axis=1)


def _l2norm_kernel(x_ref, o_ref):
    """F.normalize(x, p=2, dim=1): x / max(||x||_2, 1e-12)."""
    x = x_ref[...].astype(jnp.float32)
    nrm = jnp.sqrt(jnp.sum(x * x, axis=1, keepdims=True))
    o_ref[...] = x / jnp.maximum(nrm, 1e-12)


# ---------------------------------------------------------------------------
# Pallas wrappers
# ---------------------------------------------------------------------------
def fused_matmul_bn(a, b, scale, bias, residual=None, relu=False,
                    out_dtype=jnp.bfloat16):
    """(M,K) @ (K,N) in bf16 with f32 accumulation, fused per-column scale/bias,
    optional residual add and relu.  Tiled over (M, N, K)."""
    M, K = a.shape
    _, N = b.shape

    padN = _round_up(N, 128)
    tn = _pick_tile(padN, (512, 256, 128))
    padK = _round_up(K, 128)
    tk = _pick_tile(padK, (1024, 512, 256, 128))
    padM0 = _round_up(M, 16)
    tm = min(512, padM0)
    padM = _round_up(M, tm)

    a_p = jnp.pad(a.astype(jnp.bfloat16), ((0, padM - M), (0, padK - K)))
    b_p = jnp.pad(b.astype(jnp.bfloat16), ((0, padK - K), (0, padN - N)))
    s_p = jnp.pad(scale.astype(jnp.float32), (0, padN - N)).reshape(1, padN)
    z_p = jnp.pad(bias.astype(jnp.float32), (0, padN - N)).reshape(1, padN)

    in_specs = [
        pl.BlockSpec((tm, tk), lambda i, j, k: (i, k)),   # A
        pl.BlockSpec((tk, tn), lambda i, j, k: (k, j)),   # B
        pl.BlockSpec((1, tn), lambda i, j, k: (0, j)),    # scale
        pl.BlockSpec((1, tn), lambda i, j, k: (0, j)),    # bias
    ]
    operands = [a_p, b_p, s_p, z_p]
    if residual is None:
        kernel = functools.partial(_mm_bn_kernel, apply_relu=relu)
    else:
        r_p = jnp.pad(residual.astype(jnp.bfloat16),
                      ((0, padM - M), (0, padN - N)))
        in_specs.append(pl.BlockSpec((tm, tn), lambda i, j, k: (i, j)))
        operands.append(r_p)
        kernel = functools.partial(_mm_bn_res_kernel, apply_relu=relu)

    grid = (padM // tm, padN // tn, padK // tk)
    out = pl.pallas_call(
        kernel,
        out_shape=jax.ShapeDtypeStruct((padM, padN), out_dtype),
        grid_spec=pltpu.PrefetchScalarGridSpec(
            num_scalar_prefetch=0,
            grid=grid,
            in_specs=in_specs,
            out_specs=pl.BlockSpec((tm, tn), lambda i, j, k: (i, j)),
            scratch_shapes=[pltpu.VMEM((tm, tn), jnp.float32)],
        ),
        compiler_params=pltpu.CompilerParams(
            dimension_semantics=("parallel", "parallel", "arbitrary")),
    )(*operands)
    return out[:M, :N]


def _im2col(x, kh, kw, stride, pad):
    n, h, w, c = x.shape
    xp = jnp.pad(x, ((0, 0), (pad, pad), (pad, pad), (0, 0)))
    ho = (h + 2 * pad - kh) // stride + 1
    wo = (w + 2 * pad - kw) // stride + 1
    cols = []
    for i in range(kh):
        for j in range(kw):
            cols.append(xp[:, i:i + stride * (ho - 1) + 1:stride,
                           j:j + stride * (wo - 1) + 1:stride, :])
    patches = jnp.stack(cols, axis=3)                 # (n, ho, wo, kh*kw, c)
    return patches.reshape(n, ho, wo, kh * kw * c), ho, wo


def conv_bn(x, w, bn_scale, bn_bias, *, stride, pad, relu, residual=None):
    """conv2d (no bias) + folded BatchNorm2d + optional residual + optional relu."""
    n = x.shape[0]
    kh, kw, cin, cout = w.shape
    patches, ho, wo = _im2col(x.astype(jnp.bfloat16), kh, kw, stride, pad)
    a = patches.reshape(n * ho * wo, kh * kw * cin)
    b = w.reshape(kh * kw * cin, cout)
    res = None if residual is None else residual.reshape(n * ho * wo, cout)
    y = fused_matmul_bn(a, b, bn_scale, bn_bias, residual=res, relu=relu)
    return y.reshape(n, ho, wo, cout)


def maxpool_3x3_s2(x):
    n, h, w, c = x.shape
    k, stride, pad = 3, 2, 1
    xp = jnp.pad(x, ((0, 0), (pad, pad), (pad, pad), (0, 0)),
                 constant_values=-jnp.inf)
    ho = (h + 2 * pad - k) // stride + 1
    wo = (w + 2 * pad - k) // stride + 1
    wins = []
    for i in range(k):
        for j in range(k):
            wins.append(xp[:, i:i + stride * (ho - 1) + 1:stride,
                           j:j + stride * (wo - 1) + 1:stride, :])
    wins = jnp.stack(wins, axis=0).reshape(k * k, n * ho * wo, c)

    M = n * ho * wo
    tm = min(512, _round_up(M, 16))
    padM = _round_up(M, tm)
    wins = jnp.pad(wins, ((0, 0), (0, padM - M), (0, 0)))

    out = pl.pallas_call(
        _maxpool_kernel,
        out_shape=jax.ShapeDtypeStruct((padM, c), x.dtype),
        grid=(padM // tm,),
        in_specs=[pl.BlockSpec((k * k, tm, c), lambda i: (0, i, 0))],
        out_specs=pl.BlockSpec((tm, c), lambda i: (i, 0)),
        compiler_params=pltpu.CompilerParams(
            dimension_semantics=("parallel",)),
    )(wins)
    return out[:M].reshape(n, ho, wo, c)


def global_avgpool(x):
    n, h, w, c = x.shape
    x3 = x.reshape(n, h * w, c)
    return pl.pallas_call(
        _avgpool_kernel,
        out_shape=jax.ShapeDtypeStruct((n, c), jnp.float32),
    )(x3)


def l2_normalize(x):
    return pl.pallas_call(
        _l2norm_kernel,
        out_shape=jax.ShapeDtypeStruct(x.shape, jnp.float32),
    )(x)


# ---------------------------------------------------------------------------
# Parameter init (deterministic, synthetic)
# ---------------------------------------------------------------------------
def _bn_fold(gamma, beta, mean, var):
    scale = gamma / jnp.sqrt(var + BN_EPS)
    bias = beta - mean * scale
    return scale, bias


def init_params(key, embedding_dim=128, num_classes=4000):
    keys = iter(jax.random.split(key, 256))

    def conv_w(cout, cin, kh, kw):
        w = 0.05 * jax.random.normal(next(keys), (kh, kw, cin, cout), jnp.float32)
        return w.astype(jnp.bfloat16)

    def bn(c):
        gamma = 1.0 + 0.1 * jax.random.normal(next(keys), (c,), jnp.float32)
        beta = 0.1 * jax.random.normal(next(keys), (c,), jnp.float32)
        mean = 0.1 * jax.random.normal(next(keys), (c,), jnp.float32)
        var = 0.5 + jnp.abs(jax.random.normal(next(keys), (c,), jnp.float32))
        return _bn_fold(gamma, beta, mean, var)

    p = {'conv1_w': conv_w(64, 3, 7, 7), 'bn1': bn(64)}

    layers = []
    for in_c, out_c, stride in STAGE_CFG:
        blocks = []
        for b in range(2):
            s = stride if b == 0 else 1
            cin = in_c if b == 0 else out_c
            blk = {
                'conv1_w': conv_w(out_c, cin, 3, 3), 'bn1': bn(out_c),
                'conv2_w': conv_w(out_c, out_c, 3, 3), 'bn2': bn(out_c),
            }
            if s != 1 or cin != out_c:
                blk['down_w'] = conv_w(out_c, cin, 1, 1)
                blk['down_bn'] = bn(out_c)
            blocks.append(blk)
        layers.append(blocks)
    p['layers'] = layers

    # replaced fc: Linear(512 -> embedding_dim)
    p['fc_w'] = (0.05 * jax.random.normal(next(keys), (512, embedding_dim),
                                          jnp.float32)).astype(jnp.bfloat16)
    p['fc_b'] = 0.05 * jax.random.normal(next(keys), (embedding_dim,), jnp.float32)
    # BatchNorm1d(embedding_dim)
    p['bn_emb'] = bn(embedding_dim)
    # logits head (only used if classify=True)
    p['logits_w'] = (0.05 * jax.random.normal(next(keys), (embedding_dim, num_classes),
                                              jnp.float32)).astype(jnp.bfloat16)
    p['logits_b'] = 0.05 * jax.random.normal(next(keys), (num_classes,), jnp.float32)
    return p


# ---------------------------------------------------------------------------
# Forward pass
# ---------------------------------------------------------------------------
def basic_block(x, blk, stride):
    if 'down_w' in blk:
        identity = conv_bn(x, blk['down_w'], *blk['down_bn'],
                           stride=stride, pad=0, relu=False)
    else:
        identity = x
    out = conv_bn(x, blk['conv1_w'], *blk['bn1'], stride=stride, pad=1, relu=True)
    out = conv_bn(out, blk['conv2_w'], *blk['bn2'], stride=1, pad=1, relu=True,
                  residual=identity)   # relu(bn2(conv2(.)) + identity)
    return out


def base_resnet18_forward(x_nchw, params, classify=False):
    x = jnp.transpose(x_nchw, (0, 2, 3, 1)).astype(jnp.bfloat16)   # NCHW -> NHWC
    x = conv_bn(x, params['conv1_w'], *params['bn1'], stride=2, pad=3, relu=True)
    x = maxpool_3x3_s2(x)
    for stage_idx, (_, _, stride) in enumerate(STAGE_CFG):
        for b, blk in enumerate(params['layers'][stage_idx]):
            x = basic_block(x, blk, stride if b == 0 else 1)
    x = global_avgpool(x)                                          # (N, 512) f32

    # fc (Linear 512 -> 128) with BatchNorm1d folded into the matmul epilogue
    bn_scale, bn_bias = params['bn_emb']
    emb = fused_matmul_bn(x, params['fc_w'], bn_scale,
                          params['fc_b'] * bn_scale + bn_bias, relu=False,
                          out_dtype=jnp.float32)
    if classify:
        ones = jnp.ones((params['logits_w'].shape[1],), jnp.float32)
        return fused_matmul_bn(emb, params['logits_w'], ones,
                               params['logits_b'], relu=False,
                               out_dtype=jnp.float32)
    return l2_normalize(emb)


if __name__ == "__main__":
    key = jax.random.PRNGKey(0)
    pkey, xkey = jax.random.split(key)
    params = init_params(pkey, embedding_dim=128, num_classes=4000)
    x = jax.random.normal(xkey, (2, 3, 32, 32), jnp.float32)   # NCHW like PyTorch
    fwd = jax.jit(functools.partial(base_resnet18_forward, classify=False))
    out = jax.block_until_ready(fwd(x, params))
    assert out.shape == (2, 128) and out.dtype == jnp.float32
    assert bool(jnp.all(jnp.isfinite(out)))
    print("KERNEL_OK")
</pallas_src>

<mosaic_0001>
module attributes {stable_mosaic.version = 11 : i64} {
  func.func @_mm_bn_kernel(%arg0: i32, %arg1: i32, %arg2: i32, %arg3: memref<512x256xbf16, #tpu.memory_space<vmem>>, %arg4: memref<256x128xbf16, #tpu.memory_space<vmem>>, %arg5: memref<1x128xf32, #tpu.memory_space<vmem>>, %arg6: memref<1x128xf32, #tpu.memory_space<vmem>>, %arg7: memref<512x128xbf16, #tpu.memory_space<vmem>>, %arg8: memref<512x128xf32, #tpu.memory_space<vmem>>) attributes {dimension_semantics = [#tpu.dimension_semantics<parallel>, #tpu.dimension_semantics<parallel>, #tpu.dimension_semantics<arbitrary>], iteration_bounds = array<i64: 1, 1, 1>, scalar_prefetch = 0 : i64, scratch_operands = 1 : i64, tpu.core_type = #tpu.core_type<tc>, window_params = [{transform_indices = @transform_0, window_bounds = array<i64: 512, 256>}, {transform_indices = @transform_1, window_bounds = array<i64: 256, 128>}, {transform_indices = @transform_2, window_bounds = array<i64: 1, 128>}, {transform_indices = @transform_3, window_bounds = array<i64: 1, 128>}, {transform_indices = @transform_4, window_bounds = array<i64: 512, 128>}]} {
    %c0_i32 = arith.constant 0 : i32
    %0 = arith.cmpi eq, %arg2, %c0_i32 : i32
    %1 = arith.extui %0 : i1 to i32
    %c0_i32_0 = arith.constant 0 : i32
    %2 = arith.cmpi ne, %1, %c0_i32_0 : i32
    scf.if %2 {
      %cst_10 = arith.constant 0.000000e+00 : f32
      %12 = vector.broadcast %cst_10 : f32 to vector<512x128xf32>
      %c0_11 = arith.constant 0 : index
      %c0_12 = arith.constant 0 : index
      %13 = vector.load %arg8[%c0_11, %c0_12] : memref<512x128xf32, #tpu.memory_space<vmem>>, vector<512x128xf32>
      tpu.vector_store %arg8[%c0_11, %c0_12], %12 {strides = array<i32>} : memref<512x128xf32, #tpu.memory_space<vmem>>, vector<512x128xf32>,
    } else {
    }
    %c0 = arith.constant 0 : index
    %c0_1 = arith.constant 0 : index
    %3 = vector.load %arg8[%c0, %c0_1] : memref<512x128xf32, #tpu.memory_space<vmem>>, vector<512x128xf32>
    %c0_2 = arith.constant 0 : index
    %c0_3 = arith.constant 0 : index
    %4 = vector.load %arg3[%c0_2, %c0_3] : memref<512x256xbf16, #tpu.memory_space<vmem>>, vector<512x256xbf16>
    %c0_4 = arith.constant 0 : index
    %c0_5 = arith.constant 0 : index
    %5 = vector.load %arg4[%c0_4, %c0_5] : memref<256x128xbf16, #tpu.memory_space<vmem>>, vector<256x128xbf16>
    %cst = arith.constant dense<0.000000e+00> : vector<512x128xf32>
    %6 = tpu.matmul %4, %5, %cst {dimension_numbers = #tpu.dot_dimension_numbers<[1], [0], [0], [1], [0, 0, 1, 1], [], []>} : vector<512x256xbf16>, vector<256x128xbf16>, vector<512x128xf32> -> vector<512x128xf32>
    %7 = arith.addf %3, %6 : vector<512x128xf32>
    %c0_6 = arith.constant 0 : index
    %c0_7 = arith.constant 0 : index
    %8 = vector.load %arg8[%c0_6, %c0_7] : memref<512x128xf32, #tpu.memory_space<vmem>>, vector<512x128xf32>
    tpu.vector_store %arg8[%c0_6, %c0_7], %7 {strides = array<i32>} : memref<512x128xf32, #tpu.memory_space<vmem>>, vector<512x128xf32>,
    %c0_i32_8 = arith.constant 0 : i32
    %9 = arith.cmpi eq, %arg2, %c0_i32_8 : i32
    %10 = arith.extui %9 : i1 to i32
    %c0_i32_9 = arith.constant 0 : i32
    %11 = arith.cmpi ne, %10, %c0_i32_9 : i32
    scf.if %11 {
      %c0_10 = arith.constant 0 : index
      %c0_11 = arith.constant 0 : index
      %12 = vector.load %arg8[%c0_10, %c0_11] : memref<512x128xf32, #tpu.memory_space<vmem>>, vector<512x128xf32>
      %c0_12 = arith.constant 0 : index
      %c0_13 = arith.constant 0 : index
      %13 = vector.load %arg5[%c0_12, %c0_13] : memref<1x128xf32, #tpu.memory_space<vmem>>, vector<1x128xf32>
      %14 = vector.broadcast %13 : vector<1x128xf32> to vector<512x128xf32>
      %15 = arith.mulf %12, %14 : vector<512x128xf32>
      %c0_14 = arith.constant 0 : index
      %c0_15 = arith.constant 0 : index
      %16 = vector.load %arg6[%c0_14, %c0_15] : memref<1x128xf32, #tpu.memory_space<vmem>>, vector<1x128xf32>
      %17 = vector.broadcast %16 : vector<1x128xf32> to vector<512x128xf32>
      %18 = arith.addf %15, %17 : vector<512x128xf32>
      %cst_16 = arith.constant 0.000000e+00 : f32
      %19 = vector.broadcast %cst_16 : f32 to vector<512x128xf32>
      %20 = arith.maximumf %18, %19 : vector<512x128xf32>
      %21 = arith.truncf %20 : vector<512x128xf32> to vector<512x128xbf16>
      %c0_17 = arith.constant 0 : index
      %c0_18 = arith.constant 0 : index
      %22 = vector.load %arg7[%c0_17, %c0_18] : memref<512x128xbf16, #tpu.memory_space<vmem>>, vector<512x128xbf16>
      tpu.vector_store %arg7[%c0_17, %c0_18], %21 {strides = array<i32>} : memref<512x128xbf16, #tpu.memory_space<vmem>>, vector<512x128xbf16>,
    } else {
    }
    return
  }
  func.func @transform_0(%arg0: i32, %arg1: i32, %arg2: i32) -> (i32, i32) {
    %c0_i32 = arith.constant 0 : i32
    return %arg0, %arg2 : i32, i32
  }
  func.func @transform_1(%arg0: i32, %arg1: i32, %arg2: i32) -> (i32, i32) {
    %c0_i32 = arith.constant 0 : i32
    return %arg2, %arg1 : i32, i32
  }
  func.func @transform_2(%arg0: i32, %arg1: i32, %arg2: i32) -> (i32, i32) {
    %c0_i32 = arith.constant 0 : i32
    %c0_i32_0 = arith.constant 0 : i32
    return %c0_i32, %arg1 : i32, i32
  }
  func.func @transform_3(%arg0: i32, %arg1: i32, %arg2: i32) -> (i32, i32) {
    %c0_i32 = arith.constant 0 : i32
    %c0_i32_0 = arith.constant 0 : i32
    return %c0_i32, %arg1 : i32, i32
  }
  func.func @transform_4(%arg0: i32, %arg1: i32, %arg2: i32) -> (i32, i32) {
    %c0_i32 = arith.constant 0 : i32
    return %arg0, %arg1 : i32, i32
  }
}

module attributes {stable_mosaic.version = 11 : i64} {
  func.func @_maxpool_kernel(%arg0: i32, %arg1: memref<9x128x64xbf16, #tpu.memory_space<vmem>>, %arg2: memref<128x64xbf16, #tpu.memory_space<vmem>>) attributes {dimension_semantics = [#tpu.dimension_semantics<parallel>], iteration_bounds = array<i64: 1>, scalar_prefetch = 0 : i64, scratch_operands = 0 : i64, tpu.core_type = #tpu.core_type<tc>, window_params = [{transform_indices = @transform_0, window_bounds = array<i64: 9, 128, 64>}, {transform_indices = @transform_1, window_bounds = array<i64: 128, 64>}]} {
    %c0 = arith.constant 0 : index
    %c0_0 = arith.constant 0 : index
    %c0_1 = arith.constant 0 : index
    %0 = vector.load %arg1[%c0, %c0_0, %c0_1] : memref<9x128x64xbf16, #tpu.memory_space<vmem>>, vector<1x128x64xbf16>
    %1 = vector.shape_cast %0 : vector<1x128x64xbf16> to vector<128x64xbf16>
    %c1 = arith.constant 1 : index
    %c0_2 = arith.constant 0 : index
    %c0_3 = arith.constant 0 : index
    %2 = vector.load %arg1[%c1, %c0_2, %c0_3] : memref<9x128x64xbf16, #tpu.memory_space<vmem>>, vector<1x128x64xbf16>
    %3 = vector.shape_cast %2 : vector<1x128x64xbf16> to vector<128x64xbf16>
    %4 = arith.maximumf %1, %3 : vector<128x64xbf16>
    %c2 = arith.constant 2 : index
    %c0_4 = arith.constant 0 : index
    %c0_5 = arith.constant 0 : index
    %5 = vector.load %arg1[%c2, %c0_4, %c0_5] : memref<9x128x64xbf16, #tpu.memory_space<vmem>>, vector<1x128x64xbf16>
    %6 = vector.shape_cast %5 : vector<1x128x64xbf16> to vector<128x64xbf16>
    %7 = arith.maximumf %4, %6 : vector<128x64xbf16>
    %c3 = arith.constant 3 : index
    %c0_6 = arith.constant 0 : index
    %c0_7 = arith.constant 0 : index
    %8 = vector.load %arg1[%c3, %c0_6, %c0_7] : memref<9x128x64xbf16, #tpu.memory_space<vmem>>, vector<1x128x64xbf16>
    %9 = vector.shape_cast %8 : vector<1x128x64xbf16> to vector<128x64xbf16>
    %10 = arith.maximumf %7, %9 : vector<128x64xbf16>
    %c4 = arith.constant 4 : index
    %c0_8 = arith.constant 0 : index
    %c0_9 = arith.constant 0 : index
    %11 = vector.load %arg1[%c4, %c0_8, %c0_9] : memref<9x128x64xbf16, #tpu.memory_space<vmem>>, vector<1x128x64xbf16>
    %12 = vector.shape_cast %11 : vector<1x128x64xbf16> to vector<128x64xbf16>
    %13 = arith.maximumf %10, %12 : vector<128x64xbf16>
    %c5 = arith.constant 5 : index
    %c0_10 = arith.constant 0 : index
    %c0_11 = arith.constant 0 : index
    %14 = vector.load %arg1[%c5, %c0_10, %c0_11] : memref<9x128x64xbf16, #tpu.memory_space<vmem>>, vector<1x128x64xbf16>
    %15 = vector.shape_cast %14 : vector<1x128x64xbf16> to vector<128x64xbf16>
    %16 = arith.maximumf %13, %15 : vector<128x64xbf16>
    %c6 = arith.constant 6 : index
    %c0_12 = arith.constant 0 : index
    %c0_13 = arith.constant 0 : index
    %17 = vector.load %arg1[%c6, %c0_12, %c0_13] : memref<9x128x64xbf16, #tpu.memory_space<vmem>>, vector<1x128x64xbf16>
    %18 = vector.shape_cast %17 : vector<1x128x64xbf16> to vector<128x64xbf16>
    %19 = arith.maximumf %16, %18 : vector<128x64xbf16>
    %c7 = arith.constant 7 : index
    %c0_14 = arith.constant 0 : index
    %c0_15 = arith.constant 0 : index
    %20 = vector.load %arg1[%c7, %c0_14, %c0_15] : memref<9x128x64xbf16, #tpu.memory_space<vmem>>, vector<1x128x64xbf16>
    %21 = vector.shape_cast %20 : vector<1x128x64xbf16> to vector<128x64xbf16>
    %22 = arith.maximumf %19, %21 : vector<128x64xbf16>
    %c8 = arith.constant 8 : index
    %c0_16 = arith.constant 0 : index
    %c0_17 = arith.constant 0 : index
    %23 = vector.load %arg1[%c8, %c0_16, %c0_17] : memref<9x128x64xbf16, #tpu.memory_space<vmem>>, vector<1x128x64xbf16>
    %24 = vector.shape_cast %23 : vector<1x128x64xbf16> to vector<128x64xbf16>
    %25 = arith.maximumf %22, %24 : vector<128x64xbf16>
    %c0_18 = arith.constant 0 : index
    %c0_19 = arith.constant 0 : index
    %26 = vector.load %arg2[%c0_18, %c0_19] : memref<128x64xbf16, #tpu.memory_space<vmem>>, vector<128x64xbf16>
    tpu.vector_store %arg2[%c0_18, %c0_19], %25 {strides = array<i32>} : memref<128x64xbf16, #tpu.memory_space<vmem>>, vector<128x64xbf16>,
    return
  }
  func.func @transform_0(%arg0: i32) -> (i32, i32, i32) {
    %c0_i32 = arith.constant 0 : i32
    %c0_i32_0 = arith.constant 0 : i32
    %c0_i32_1 = arith.constant 0 : i32
    return %c0_i32, %arg0, %c0_i32_0 : i32, i32, i32
  }
  func.func @transform_1(%arg0: i32) -> (i32, i32) {
    %c0_i32 = arith.constant 0 : i32
    %c0_i32_0 = arith.constant 0 : i32
    return %arg0, %c0_i32 : i32, i32
  }
}

module attributes {stable_mosaic.version = 11 : i64} {
  func.func @_mm_bn_kernel(%arg0: i32, %arg1: i32, %arg2: i32, %arg3: memref<128x128xbf16, #tpu.memory_space<vmem>>, %arg4: memref<128x128xbf16, #tpu.memory_space<vmem>>, %arg5: memref<1x128xf32, #tpu.memory_space<vmem>>, %arg6: memref<1x128xf32, #tpu.memory_space<vmem>>, %arg7: memref<128x128xbf16, #tpu.memory_space<vmem>>, %arg8: memref<128x128xf32, #tpu.memory_space<vmem>>) attributes {dimension_semantics = [#tpu.dimension_semantics<parallel>, #tpu.dimension_semantics<parallel>, #tpu.dimension_semantics<arbitrary>], iteration_bounds = array<i64: 1, 1, 5>, scalar_prefetch = 0 : i64, scratch_operands = 1 : i64, tpu.core_type = #tpu.core_type<tc>, window_params = [{transform_indices = @transform_0, window_bounds = array<i64: 128, 128>}, {transform_indices = @transform_1, window_bounds = array<i64: 128, 128>}, {transform_indices = @transform_2, window_bounds = array<i64: 1, 128>}, {transform_indices = @transform_3, window_bounds = array<i64: 1, 128>}, {transform_indices = @transform_4, window_bounds = array<i64: 128, 128>}]} {
    %c0_i32 = arith.constant 0 : i32
    %0 = arith.cmpi eq, %arg2, %c0_i32 : i32
    %1 = arith.extui %0 : i1 to i32
    %c0_i32_0 = arith.constant 0 : i32
    %2 = arith.cmpi ne, %1, %c0_i32_0 : i32
    scf.if %2 {
      %cst_9 = arith.constant 0.000000e+00 : f32
      %12 = vector.broadcast %cst_9 : f32 to vector<128x128xf32>
      %c0_10 = arith.constant 0 : index
      %c0_11 = arith.constant 0 : index
      %13 = vector.load %arg8[%c0_10, %c0_11] : memref<128x128xf32, #tpu.memory_space<vmem>>, vector<128x128xf32>
      tpu.vector_store %arg8[%c0_10, %c0_11], %12 {strides = array<i32>} : memref<128x128xf32, #tpu.memory_space<vmem>>, vector<128x128xf32>,
    } else {
    }
    %c0 = arith.constant 0 : index
    %c0_1 = arith.constant 0 : index
    %3 = vector.load %arg8[%c0, %c0_1] : memref<128x128xf32, #tpu.memory_space<vmem>>, vector<128x128xf32>
    %c0_2 = arith.constant 0 : index
    %c0_3 = arith.constant 0 : index
    %4 = vector.load %arg3[%c0_2, %c0_3] : memref<128x128xbf16, #tpu.memory_space<vmem>>, vector<128x128xbf16>
    %c0_4 = arith.constant 0 : index
    %c0_5 = arith.constant 0 : index
    %5 = vector.load %arg4[%c0_4, %c0_5] : memref<128x128xbf16, #tpu.memory_space<vmem>>, vector<128x128xbf16>
    %cst = arith.constant dense<0.000000e+00> : vector<128x128xf32>
    %6 = tpu.matmul %4, %5, %cst {dimension_numbers = #tpu.dot_dimension_numbers<[1], [0], [0], [1], [0, 0, 1, 1], [], []>} : vector<128x128xbf16>, vector<128x128xbf16>, vector<128x128xf32> -> vector<128x128xf32>
    %7 = arith.addf %3, %6 : vector<128x128xf32>
    %c0_6 = arith.constant 0 : index
    %c0_7 = arith.constant 0 : index
    %8 = vector.load %arg8[%c0_6, %c0_7] : memref<128x128xf32, #tpu.memory_space<vmem>>, vector<128x128xf32>
    tpu.vector_store %arg8[%c0_6, %c0_7], %7 {strides = array<i32>} : memref<128x128xf32, #tpu.memory_space<vmem>>, vector<128x128xf32>,
    %c4_i32 = arith.constant 4 : i32
    %9 = arith.cmpi eq, %arg2, %c4_i32 : i32
    %10 = arith.extui %9 : i1 to i32
    %c0_i32_8 = arith.constant 0 : i32
    %11 = arith.cmpi ne, %10, %c0_i32_8 : i32
    scf.if %11 {
      %c0_9 = arith.constant 0 : index
      %c0_10 = arith.constant 0 : index
      %12 = vector.load %arg8[%c0_9, %c0_10] : memref<128x128xf32, #tpu.memory_space<vmem>>, vector<128x128xf32>
      %c0_11 = arith.constant 0 : index
      %c0_12 = arith.constant 0 : index
      %13 = vector.load %arg5[%c0_11, %c0_12] : memref<1x128xf32, #tpu.memory_space<vmem>>, vector<1x128xf32>
      %14 = vector.broadcast %13 : vector<1x128xf32> to vector<128x128xf32>
      %15 = arith.mulf %12, %14 : vector<128x128xf32>
      %c0_13 = arith.constant 0 : index
      %c0_14 = arith.constant 0 : index
      %16 = vector.load %arg6[%c0_13, %c0_14] : memref<1x128xf32, #tpu.memory_space<vmem>>, vector<1x128xf32>
      %17 = vector.broadcast %16 : vector<1x128xf32> to vector<128x128xf32>
      %18 = arith.addf %15, %17 : vector<128x128xf32>
      %cst_15 = arith.constant 0.000000e+00 : f32
      %19 = vector.broadcast %cst_15 : f32 to vector<128x128xf32>
      %20 = arith.maximumf %18, %19 : vector<128x128xf32>
      %21 = arith.truncf %20 : vector<128x128xf32> to vector<128x128xbf16>
      %c0_16 = arith.constant 0 : index
      %c0_17 = arith.constant 0 : index
      %22 = vector.load %arg7[%c0_16, %c0_17] : memref<128x128xbf16, #tpu.memory_space<vmem>>, vector<128x128xbf16>
      tpu.vector_store %arg7[%c0_16, %c0_17], %21 {strides = array<i32>} : memref<128x128xbf16, #tpu.memory_space<vmem>>, vector<128x128xbf16>,
    } else {
    }
    return
  }
  func.func @transform_0(%arg0: i32, %arg1: i32, %arg2: i32) -> (i32, i32) {
    %c0_i32 = arith.constant 0 : i32
    return %arg0, %arg2 : i32, i32
  }
  func.func @transform_1(%arg0: i32, %arg1: i32, %arg2: i32) -> (i32, i32) {
    %c0_i32 = arith.constant 0 : i32
    return %arg2, %arg1 : i32, i32
  }
  func.func @transform_2(%arg0: i32, %arg1: i32, %arg2: i32) -> (i32, i32) {
    %c0_i32 = arith.constant 0 : i32
    %c0_i32_0 = arith.constant 0 : i32
    return %c0_i32, %arg1 : i32, i32
  }
  func.func @transform_3(%arg0: i32, %arg1: i32, %arg2: i32) -> (i32, i32) {
    %c0_i32 = arith.constant 0 : i32
    %c0_i32_0 = arith.constant 0 : i32
    return %c0_i32, %arg1 : i32, i32
  }
  func.func @transform_4(%arg0: i32, %arg1: i32, %arg2: i32) -> (i32, i32) {
    %c0_i32 = arith.constant 0 : i32
    return %arg0, %arg1 : i32, i32
  }
}

module attributes {stable_mosaic.version = 11 : i64} {
  func.func @_mm_bn_res_kernel(%arg0: i32, %arg1: i32, %arg2: i32, %arg3: memref<128x128xbf16, #tpu.memory_space<vmem>>, %arg4: memref<128x128xbf16, #tpu.memory_space<vmem>>, %arg5: memref<1x128xf32, #tpu.memory_space<vmem>>, %arg6: memref<1x128xf32, #tpu.memory_space<vmem>>, %arg7: memref<128x128xbf16, #tpu.memory_space<vmem>>, %arg8: memref<128x128xbf16, #tpu.memory_space<vmem>>, %arg9: memref<128x128xf32, #tpu.memory_space<vmem>>) attributes {dimension_semantics = [#tpu.dimension_semantics<parallel>, #tpu.dimension_semantics<parallel>, #tpu.dimension_semantics<arbitrary>], iteration_bounds = array<i64: 1, 1, 5>, scalar_prefetch = 0 : i64, scratch_operands = 1 : i64, tpu.core_type = #tpu.core_type<tc>, window_params = [{transform_indices = @transform_0, window_bounds = array<i64: 128, 128>}, {transform_indices = @transform_1, window_bounds = array<i64: 128, 128>}, {transform_indices = @transform_2, window_bounds = array<i64: 1, 128>}, {transform_indices = @transform_3, window_bounds = array<i64: 1, 128>}, {transform_indices = @transform_4, window_bounds = array<i64: 128, 128>}, {transform_indices = @transform_5, window_bounds = array<i64: 128, 128>}]} {
    %c0_i32 = arith.constant 0 : i32
    %0 = arith.cmpi eq, %arg2, %c0_i32 : i32
    %1 = arith.extui %0 : i1 to i32
    %c0_i32_0 = arith.constant 0 : i32
    %2 = arith.cmpi ne, %1, %c0_i32_0 : i32
    scf.if %2 {
      %cst_9 = arith.constant 0.000000e+00 : f32
      %12 = vector.broadcast %cst_9 : f32 to vector<128x128xf32>
      %c0_10 = arith.constant 0 : index
      %c0_11 = arith.constant 0 : index
      %13 = vector.load %arg9[%c0_10, %c0_11] : memref<128x128xf32, #tpu.memory_space<vmem>>, vector<128x128xf32>
      tpu.vector_store %arg9[%c0_10, %c0_11], %12 {strides = array<i32>} : memref<128x128xf32, #tpu.memory_space<vmem>>, vector<128x128xf32>,
    } else {
    }
    %c0 = arith.constant 0 : index
    %c0_1 = arith.constant 0 : index
    %3 = vector.load %arg9[%c0, %c0_1] : memref<128x128xf32, #tpu.memory_space<vmem>>, vector<128x128xf32>
    %c0_2 = arith.constant 0 : index
    %c0_3 = arith.constant 0 : index
    %4 = vector.load %arg3[%c0_2, %c0_3] : memref<128x128xbf16, #tpu.memory_space<vmem>>, vector<128x128xbf16>
    %c0_4 = arith.constant 0 : index
    %c0_5 = arith.constant 0 : index
    %5 = vector.load %arg4[%c0_4, %c0_5] : memref<128x128xbf16, #tpu.memory_space<vmem>>, vector<128x128xbf16>
    %cst = arith.constant dense<0.000000e+00> : vector<128x128xf32>
    %6 = tpu.matmul %4, %5, %cst {dimension_numbers = #tpu.dot_dimension_numbers<[1], [0], [0], [1], [0, 0, 1, 1], [], []>} : vector<128x128xbf16>, vector<128x128xbf16>, vector<128x128xf32> -> vector<128x128xf32>
    %7 = arith.addf %3, %6 : vector<128x128xf32>
    %c0_6 = arith.constant 0 : index
    %c0_7 = arith.constant 0 : index
    %8 = vector.load %arg9[%c0_6, %c0_7] : memref<128x128xf32, #tpu.memory_space<vmem>>, vector<128x128xf32>
    tpu.vector_store %arg9[%c0_6, %c0_7], %7 {strides = array<i32>} : memref<128x128xf32, #tpu.memory_space<vmem>>, vector<128x128xf32>,
    %c4_i32 = arith.constant 4 : i32
    %9 = arith.cmpi eq, %arg2, %c4_i32 : i32
    %10 = arith.extui %9 : i1 to i32
    %c0_i32_8 = arith.constant 0 : i32
    %11 = arith.cmpi ne, %10, %c0_i32_8 : i32
    scf.if %11 {
      %c0_9 = arith.constant 0 : index
      %c0_10 = arith.constant 0 : index
      %12 = vector.load %arg9[%c0_9, %c0_10] : memref<128x128xf32, #tpu.memory_space<vmem>>, vector<128x128xf32>
      %c0_11 = arith.constant 0 : index
      %c0_12 = arith.constant 0 : index
      %13 = vector.load %arg5[%c0_11, %c0_12] : memref<1x128xf32, #tpu.memory_space<vmem>>, vector<1x128xf32>
      %14 = vector.broadcast %13 : vector<1x128xf32> to vector<128x128xf32>
      %15 = arith.mulf %12, %14 : vector<128x128xf32>
      %c0_13 = arith.constant 0 : index
      %c0_14 = arith.constant 0 : index
      %16 = vector.load %arg6[%c0_13, %c0_14] : memref<1x128xf32, #tpu.memory_space<vmem>>, vector<1x128xf32>
      %17 = vector.broadcast %16 : vector<1x128xf32> to vector<128x128xf32>
      %18 = arith.addf %15, %17 : vector<128x128xf32>
      %c0_15 = arith.constant 0 : index
      %c0_16 = arith.constant 0 : index
      %19 = vector.load %arg7[%c0_15, %c0_16] : memref<128x128xbf16, #tpu.memory_space<vmem>>, vector<128x128xbf16>
      %20 = arith.extf %19 : vector<128x128xbf16> to vector<128x128xf32>
      %21 = arith.addf %18, %20 : vector<128x128xf32>
      %cst_17 = arith.constant 0.000000e+00 : f32
      %22 = vector.broadcast %cst_17 : f32 to vector<128x128xf32>
      %23 = arith.maximumf %21, %22 : vector<128x128xf32>
      %24 = arith.truncf %23 : vector<128x128xf32> to vector<128x128xbf16>
      %c0_18 = arith.constant 0 : index
      %c0_19 = arith.constant 0 : index
      %25 = vector.load %arg8[%c0_18, %c0_19] : memref<128x128xbf16, #tpu.memory_space<vmem>>, vector<128x128xbf16>
      tpu.vector_store %arg8[%c0_18, %c0_19], %24 {strides = array<i32>} : memref<128x128xbf16, #tpu.memory_space<vmem>>, vector<128x128xbf16>,
    } else {
    }
    return
  }
  func.func @transform_0(%arg0: i32, %arg1: i32, %arg2: i32) -> (i32, i32) {
    %c0_i32 = arith.constant 0 : i32
    return %arg0, %arg2 : i32, i32
  }
  func.func @transform_1(%arg0: i32, %arg1: i32, %arg2: i32) -> (i32, i32) {
    %c0_i32 = arith.constant 0 : i32
    return %arg2, %arg1 : i32, i32
  }
  func.func @transform_2(%arg0: i32, %arg1: i32, %arg2: i32) -> (i32, i32) {
    %c0_i32 = arith.constant 0 : i32
    %c0_i32_0 = arith.constant 0 : i32
    return %c0_i32, %arg1 : i32, i32
  }
  func.func @transform_3(%arg0: i32, %arg1: i32, %arg2: i32) -> (i32, i32) {
    %c0_i32 = arith.constant 0 : i32
    %c0_i32_0 = arith.constant 0 : i32
    return %c0_i32, %arg1 : i32, i32
  }
  func.func @transform_4(%arg0: i32, %arg1: i32, %arg2: i32) -> (i32, i32) {
    %c0_i32 = arith.constant 0 : i32
    return %arg0, %arg1 : i32, i32
  }
  func.func @transform_5(%arg0: i32, %arg1: i32, %arg2: i32) -> (i32, i32) {
    %c0_i32 = arith.constant 0 : i32
    return %arg0, %arg1 : i32, i32
  }
}

module attributes {stable_mosaic.version = 11 : i64} {
  func.func @_mm_bn_kernel(%arg0: i32, %arg1: i32, %arg2: i32, %arg3: memref<32x128xbf16, #tpu.memory_space<vmem>>, %arg4: memref<128x128xbf16, #tpu.memory_space<vmem>>, %arg5: memref<1x128xf32, #tpu.memory_space<vmem>>, %arg6: memref<1x128xf32, #tpu.memory_space<vmem>>, %arg7: memref<32x128xbf16, #tpu.memory_space<vmem>>, %arg8: memref<32x128xf32, #tpu.memory_space<vmem>>) attributes {dimension_semantics = [#tpu.dimension_semantics<parallel>, #tpu.dimension_semantics<parallel>, #tpu.dimension_semantics<arbitrary>], iteration_bounds = array<i64: 1, 1, 5>, scalar_prefetch = 0 : i64, scratch_operands = 1 : i64, tpu.core_type = #tpu.core_type<tc>, window_params = [{transform_indices = @transform_0, window_bounds = array<i64: 32, 128>}, {transform_indices = @transform_1, window_bounds = array<i64: 128, 128>}, {transform_indices = @transform_2, window_bounds = array<i64: 1, 128>}, {transform_indices = @transform_3, window_bounds = array<i64: 1, 128>}, {transform_indices = @transform_4, window_bounds = array<i64: 32, 128>}]} {
    %c0_i32 = arith.constant 0 : i32
    %0 = arith.cmpi eq, %arg2, %c0_i32 : i32
    %1 = arith.extui %0 : i1 to i32
    %c0_i32_0 = arith.constant 0 : i32
    %2 = arith.cmpi ne, %1, %c0_i32_0 : i32
    scf.if %2 {
      %cst_9 = arith.constant 0.000000e+00 : f32
      %12 = vector.broadcast %cst_9 : f32 to vector<32x128xf32>
      %c0_10 = arith.constant 0 : index
      %c0_11 = arith.constant 0 : index
      %13 = vector.load %arg8[%c0_10, %c0_11] : memref<32x128xf32, #tpu.memory_space<vmem>>, vector<32x128xf32>
      tpu.vector_store %arg8[%c0_10, %c0_11], %12 {strides = array<i32>} : memref<32x128xf32, #tpu.memory_space<vmem>>, vector<32x128xf32>,
    } else {
    }
    %c0 = arith.constant 0 : index
    %c0_1 = arith.constant 0 : index
    %3 = vector.load %arg8[%c0, %c0_1] : memref<32x128xf32, #tpu.memory_space<vmem>>, vector<32x128xf32>
    %c0_2 = arith.constant 0 : index
    %c0_3 = arith.constant 0 : index
    %4 = vector.load %arg3[%c0_2, %c0_3] : memref<32x128xbf16, #tpu.memory_space<vmem>>, vector<32x128xbf16>
    %c0_4 = arith.constant 0 : index
    %c0_5 = arith.constant 0 : index
    %5 = vector.load %arg4[%c0_4, %c0_5] : memref<128x128xbf16, #tpu.memory_space<vmem>>, vector<128x128xbf16>
    %cst = arith.constant dense<0.000000e+00> : vector<32x128xf32>
    %6 = tpu.matmul %4, %5, %cst {dimension_numbers = #tpu.dot_dimension_numbers<[1], [0], [0], [1], [0, 0, 1, 1], [], []>} : vector<32x128xbf16>, vector<128x128xbf16>, vector<32x128xf32> -> vector<32x128xf32>
    %7 = arith.addf %3, %6 : vector<32x128xf32>
    %c0_6 = arith.constant 0 : index
    %c0_7 = arith.constant 0 : index
    %8 = vector.load %arg8[%c0_6, %c0_7] : memref<32x128xf32, #tpu.memory_space<vmem>>, vector<32x128xf32>
    tpu.vector_store %arg8[%c0_6, %c0_7], %7 {strides = array<i32>} : memref<32x128xf32, #tpu.memory_space<vmem>>, vector<32x128xf32>,
    %c4_i32 = arith.constant 4 : i32
    %9 = arith.cmpi eq, %arg2, %c4_i32 : i32
    %10 = arith.extui %9 : i1 to i32
    %c0_i32_8 = arith.constant 0 : i32
    %11 = arith.cmpi ne, %10, %c0_i32_8 : i32
    scf.if %11 {
      %c0_9 = arith.constant 0 : index
      %c0_10 = arith.constant 0 : index
      %12 = vector.load %arg8[%c0_9, %c0_10] : memref<32x128xf32, #tpu.memory_space<vmem>>, vector<32x128xf32>
      %c0_11 = arith.constant 0 : index
      %c0_12 = arith.constant 0 : index
      %13 = vector.load %arg5[%c0_11, %c0_12] : memref<1x128xf32, #tpu.memory_space<vmem>>, vector<1x128xf32>
      %14 = vector.broadcast %13 : vector<1x128xf32> to vector<32x128xf32>
      %15 = arith.mulf %12, %14 : vector<32x128xf32>
      %c0_13 = arith.constant 0 : index
      %c0_14 = arith.constant 0 : index
      %16 = vector.load %arg6[%c0_13, %c0_14] : memref<1x128xf32, #tpu.memory_space<vmem>>, vector<1x128xf32>
      %17 = vector.broadcast %16 : vector<1x128xf32> to vector<32x128xf32>
      %18 = arith.addf %15, %17 : vector<32x128xf32>
      %cst_15 = arith.constant 0.000000e+00 : f32
      %19 = vector.broadcast %cst_15 : f32 to vector<32x128xf32>
      %20 = arith.maximumf %18, %19 : vector<32x128xf32>
      %21 = arith.truncf %20 : vector<32x128xf32> to vector<32x128xbf16>
      %c0_16 = arith.constant 0 : index
      %c0_17 = arith.constant 0 : index
      %22 = vector.load %arg7[%c0_16, %c0_17] : memref<32x128xbf16, #tpu.memory_space<vmem>>, vector<32x128xbf16>
      tpu.vector_store %arg7[%c0_16, %c0_17], %21 {strides = array<i32>} : memref<32x128xbf16, #tpu.memory_space<vmem>>, vector<32x128xbf16>,
    } else {
    }
    return
  }
  func.func @transform_0(%arg0: i32, %arg1: i32, %arg2: i32) -> (i32, i32) {
    %c0_i32 = arith.constant 0 : i32
    return %arg0, %arg2 : i32, i32
  }
  func.func @transform_1(%arg0: i32, %arg1: i32, %arg2: i32) -> (i32, i32) {
    %c0_i32 = arith.constant 0 : i32
    return %arg2, %arg1 : i32, i32
  }
  func.func @transform_2(%arg0: i32, %arg1: i32, %arg2: i32) -> (i32, i32) {
    %c0_i32 = arith.constant 0 : i32
    %c0_i32_0 = arith.constant 0 : i32
    return %c0_i32, %arg1 : i32, i32
  }
  func.func @transform_3(%arg0: i32, %arg1: i32, %arg2: i32) -> (i32, i32) {
    %c0_i32 = arith.constant 0 : i32
    %c0_i32_0 = arith.constant 0 : i32
    return %c0_i32, %arg1 : i32, i32
  }
  func.func @transform_4(%arg0: i32, %arg1: i32, %arg2: i32) -> (i32, i32) {
    %c0_i32 = arith.constant 0 : i32
    return %arg0, %arg1 : i32, i32
  }
}

module attributes {stable_mosaic.version = 11 : i64} {
  func.func @_mm_bn_kernel(%arg0: i32, %arg1: i32, %arg2: i32, %arg3: memref<32x128xbf16, #tpu.memory_space<vmem>>, %arg4: memref<128x128xbf16, #tpu.memory_space<vmem>>, %arg5: memref<1x128xf32, #tpu.memory_space<vmem>>, %arg6: memref<1x128xf32, #tpu.memory_space<vmem>>, %arg7: memref<32x128xbf16, #tpu.memory_space<vmem>>, %arg8: memref<32x128xf32, #tpu.memory_space<vmem>>) attributes {dimension_semantics = [#tpu.dimension_semantics<parallel>, #tpu.dimension_semantics<parallel>, #tpu.dimension_semantics<arbitrary>], iteration_bounds = array<i64: 1, 1, 1>, scalar_prefetch = 0 : i64, scratch_operands = 1 : i64, tpu.core_type = #tpu.core_type<tc>, window_params = [{transform_indices = @transform_0, window_bounds = array<i64: 32, 128>}, {transform_indices = @transform_1, window_bounds = array<i64: 128, 128>}, {transform_indices = @transform_2, window_bounds = array<i64: 1, 128>}, {transform_indices = @transform_3, window_bounds = array<i64: 1, 128>}, {transform_indices = @transform_4, window_bounds = array<i64: 32, 128>}]} {
    %c0_i32 = arith.constant 0 : i32
    %0 = arith.cmpi eq, %arg2, %c0_i32 : i32
    %1 = arith.extui %0 : i1 to i32
    %c0_i32_0 = arith.constant 0 : i32
    %2 = arith.cmpi ne, %1, %c0_i32_0 : i32
    scf.if %2 {
      %cst_10 = arith.constant 0.000000e+00 : f32
      %12 = vector.broadcast %cst_10 : f32 to vector<32x128xf32>
      %c0_11 = arith.constant 0 : index
      %c0_12 = arith.constant 0 : index
      %13 = vector.load %arg8[%c0_11, %c0_12] : memref<32x128xf32, #tpu.memory_space<vmem>>, vector<32x128xf32>
      tpu.vector_store %arg8[%c0_11, %c0_12], %12 {strides = array<i32>} : memref<32x128xf32, #tpu.memory_space<vmem>>, vector<32x128xf32>,
    } else {
    }
    %c0 = arith.constant 0 : index
    %c0_1 = arith.constant 0 : index
    %3 = vector.load %arg8[%c0, %c0_1] : memref<32x128xf32, #tpu.memory_space<vmem>>, vector<32x128xf32>
    %c0_2 = arith.constant 0 : index
    %c0_3 = arith.constant 0 : index
    %4 = vector.load %arg3[%c0_2, %c0_3] : memref<32x128xbf16, #tpu.memory_space<vmem>>, vector<32x128xbf16>
    %c0_4 = arith.constant 0 : index
    %c0_5 = arith.constant 0 : index
    %5 = vector.load %arg4[%c0_4, %c0_5] : memref<128x128xbf16, #tpu.memory_space<vmem>>, vector<128x128xbf16>
    %cst = arith.constant dense<0.000000e+00> : vector<32x128xf32>
    %6 = tpu.matmul %4, %5, %cst {dimension_numbers = #tpu.dot_dimension_numbers<[1], [0], [0], [1], [0, 0, 1, 1], [], []>} : vector<32x128xbf16>, vector<128x128xbf16>, vector<32x128xf32> -> vector<32x128xf32>
    %7 = arith.addf %3, %6 : vector<32x128xf32>
    %c0_6 = arith.constant 0 : index
    %c0_7 = arith.constant 0 : index
    %8 = vector.load %arg8[%c0_6, %c0_7] : memref<32x128xf32, #tpu.memory_space<vmem>>, vector<32x128xf32>
    tpu.vector_store %arg8[%c0_6, %c0_7], %7 {strides = array<i32>} : memref<32x128xf32, #tpu.memory_space<vmem>>, vector<32x128xf32>,
    %c0_i32_8 = arith.constant 0 : i32
    %9 = arith.cmpi eq, %arg2, %c0_i32_8 : i32
    %10 = arith.extui %9 : i1 to i32
    %c0_i32_9 = arith.constant 0 : i32
    %11 = arith.cmpi ne, %10, %c0_i32_9 : i32
    scf.if %11 {
      %c0_10 = arith.constant 0 : index
      %c0_11 = arith.constant 0 : index
      %12 = vector.load %arg8[%c0_10, %c0_11] : memref<32x128xf32, #tpu.memory_space<vmem>>, vector<32x128xf32>
      %c0_12 = arith.constant 0 : index
      %c0_13 = arith.constant 0 : index
      %13 = vector.load %arg5[%c0_12, %c0_13] : memref<1x128xf32, #tpu.memory_space<vmem>>, vector<1x128xf32>
      %14 = vector.broadcast %13 : vector<1x128xf32> to vector<32x128xf32>
      %15 = arith.mulf %12, %14 : vector<32x128xf32>
      %c0_14 = arith.constant 0 : index
      %c0_15 = arith.constant 0 : index
      %16 = vector.load %arg6[%c0_14, %c0_15] : memref<1x128xf32, #tpu.memory_space<vmem>>, vector<1x128xf32>
      %17 = vector.broadcast %16 : vector<1x128xf32> to vector<32x128xf32>
      %18 = arith.addf %15, %17 : vector<32x128xf32>
      %19 = arith.truncf %18 : vector<32x128xf32> to vector<32x128xbf16>
      %c0_16 = arith.constant 0 : index
      %c0_17 = arith.constant 0 : index
      %20 = vector.load %arg7[%c0_16, %c0_17] : memref<32x128xbf16, #tpu.memory_space<vmem>>, vector<32x128xbf16>
      tpu.vector_store %arg7[%c0_16, %c0_17], %19 {strides = array<i32>} : memref<32x128xbf16, #tpu.memory_space<vmem>>, vector<32x128xbf16>,
    } else {
    }
    return
  }
  func.func @transform_0(%arg0: i32, %arg1: i32, %arg2: i32) -> (i32, i32) {
    %c0_i32 = arith.constant 0 : i32
    return %arg0, %arg2 : i32, i32
  }
  func.func @transform_1(%arg0: i32, %arg1: i32, %arg2: i32) -> (i32, i32) {
    %c0_i32 = arith.constant 0 : i32
    return %arg2, %arg1 : i32, i32
  }
  func.func @transform_2(%arg0: i32, %arg1: i32, %arg2: i32) -> (i32, i32) {
    %c0_i32 = arith.constant 0 : i32
    %c0_i32_0 = arith.constant 0 : i32
    return %c0_i32, %arg1 : i32, i32
  }
  func.func @transform_3(%arg0: i32, %arg1: i32, %arg2: i32) -> (i32, i32) {
    %c0_i32 = arith.constant 0 : i32
    %c0_i32_0 = arith.constant 0 : i32
    return %c0_i32, %arg1 : i32, i32
  }
  func.func @transform_4(%arg0: i32, %arg1: i32, %arg2: i32) -> (i32, i32) {
    %c0_i32 = arith.constant 0 : i32
    return %arg0, %arg1 : i32, i32
  }
}

module attributes {stable_mosaic.version = 11 : i64} {
  func.func @_mm_bn_res_kernel(%arg0: i32, %arg1: i32, %arg2: i32, %arg3: memref<32x128xbf16, #tpu.memory_space<vmem>>, %arg4: memref<128x128xbf16, #tpu.memory_space<vmem>>, %arg5: memref<1x128xf32, #tpu.memory_space<vmem>>, %arg6: memref<1x128xf32, #tpu.memory_space<vmem>>, %arg7: memref<32x128xbf16, #tpu.memory_space<vmem>>, %arg8: memref<32x128xbf16, #tpu.memory_space<vmem>>, %arg9: memref<32x128xf32, #tpu.memory_space<vmem>>) attributes {dimension_semantics = [#tpu.dimension_semantics<parallel>, #tpu.dimension_semantics<parallel>, #tpu.dimension_semantics<arbitrary>], iteration_bounds = array<i64: 1, 1, 9>, scalar_prefetch = 0 : i64, scratch_operands = 1 : i64, tpu.core_type = #tpu.core_type<tc>, window_params = [{transform_indices = @transform_0, window_bounds = array<i64: 32, 128>}, {transform_indices = @transform_1, window_bounds = array<i64: 128, 128>}, {transform_indices = @transform_2, window_bounds = array<i64: 1, 128>}, {transform_indices = @transform_3, window_bounds = array<i64: 1, 128>}, {transform_indices = @transform_4, window_bounds = array<i64: 32, 128>}, {transform_indices = @transform_5, window_bounds = array<i64: 32, 128>}]} {
    %c0_i32 = arith.constant 0 : i32
    %0 = arith.cmpi eq, %arg2, %c0_i32 : i32
    %1 = arith.extui %0 : i1 to i32
    %c0_i32_0 = arith.constant 0 : i32
    %2 = arith.cmpi ne, %1, %c0_i32_0 : i32
    scf.if %2 {
      %cst_9 = arith.constant 0.000000e+00 : f32
      %12 = vector.broadcast %cst_9 : f32 to vector<32x128xf32>
      %c0_10 = arith.constant 0 : index
      %c0_11 = arith.constant 0 : index
      %13 = vector.load %arg9[%c0_10, %c0_11] : memref<32x128xf32, #tpu.memory_space<vmem>>, vector<32x128xf32>
      tpu.vector_store %arg9[%c0_10, %c0_11], %12 {strides = array<i32>} : memref<32x128xf32, #tpu.memory_space<vmem>>, vector<32x128xf32>,
    } else {
    }
    %c0 = arith.constant 0 : index
    %c0_1 = arith.constant 0 : index
    %3 = vector.load %arg9[%c0, %c0_1] : memref<32x128xf32, #tpu.memory_space<vmem>>, vector<32x128xf32>
    %c0_2 = arith.constant 0 : index
    %c0_3 = arith.constant 0 : index
    %4 = vector.load %arg3[%c0_2, %c0_3] : memref<32x128xbf16, #tpu.memory_space<vmem>>, vector<32x128xbf16>
    %c0_4 = arith.constant 0 : index
    %c0_5 = arith.constant 0 : index
    %5 = vector.load %arg4[%c0_4, %c0_5] : memref<128x128xbf16, #tpu.memory_space<vmem>>, vector<128x128xbf16>
    %cst = arith.constant dense<0.000000e+00> : vector<32x128xf32>
    %6 = tpu.matmul %4, %5, %cst {dimension_numbers = #tpu.dot_dimension_numbers<[1], [0], [0], [1], [0, 0, 1, 1], [], []>} : vector<32x128xbf16>, vector<128x128xbf16>, vector<32x128xf32> -> vector<32x128xf32>
    %7 = arith.addf %3, %6 : vector<32x128xf32>
    %c0_6 = arith.constant 0 : index
    %c0_7 = arith.constant 0 : index
    %8 = vector.load %arg9[%c0_6, %c0_7] : memref<32x128xf32, #tpu.memory_space<vmem>>, vector<32x128xf32>
    tpu.vector_store %arg9[%c0_6, %c0_7], %7 {strides = array<i32>} : memref<32x128xf32, #tpu.memory_space<vmem>>, vector<32x128xf32>,
    %c8_i32 = arith.constant 8 : i32
    %9 = arith.cmpi eq, %arg2, %c8_i32 : i32
    %10 = arith.extui %9 : i1 to i32
    %c0_i32_8 = arith.constant 0 : i32
    %11 = arith.cmpi ne, %10, %c0_i32_8 : i32
    scf.if %11 {
      %c0_9 = arith.constant 0 : index
      %c0_10 = arith.constant 0 : index
      %12 = vector.load %arg9[%c0_9, %c0_10] : memref<32x128xf32, #tpu.memory_space<vmem>>, vector<32x128xf32>
      %c0_11 = arith.constant 0 : index
      %c0_12 = arith.constant 0 : index
      %13 = vector.load %arg5[%c0_11, %c0_12] : memref<1x128xf32, #tpu.memory_space<vmem>>, vector<1x128xf32>
      %14 = vector.broadcast %13 : vector<1x128xf32> to vector<32x128xf32>
      %15 = arith.mulf %12, %14 : vector<32x128xf32>
      %c0_13 = arith.constant 0 : index
      %c0_14 = arith.constant 0 : index
      %16 = vector.load %arg6[%c0_13, %c0_14] : memref<1x128xf32, #tpu.memory_space<vmem>>, vector<1x128xf32>
      %17 = vector.broadcast %16 : vector<1x128xf32> to vector<32x128xf32>
      %18 = arith.addf %15, %17 : vector<32x128xf32>
      %c0_15 = arith.constant 0 : index
      %c0_16 = arith.constant 0 : index
      %19 = vector.load %arg7[%c0_15, %c0_16] : memref<32x128xbf16, #tpu.memory_space<vmem>>, vector<32x128xbf16>
      %20 = arith.extf %19 : vector<32x128xbf16> to vector<32x128xf32>
      %21 = arith.addf %18, %20 : vector<32x128xf32>
      %cst_17 = arith.constant 0.000000e+00 : f32
      %22 = vector.broadcast %cst_17 : f32 to vector<32x128xf32>
      %23 = arith.maximumf %21, %22 : vector<32x128xf32>
      %24 = arith.truncf %23 : vector<32x128xf32> to vector<32x128xbf16>
      %c0_18 = arith.constant 0 : index
      %c0_19 = arith.constant 0 : index
      %25 = vector.load %arg8[%c0_18, %c0_19] : memref<32x128xbf16, #tpu.memory_space<vmem>>, vector<32x128xbf16>
      tpu.vector_store %arg8[%c0_18, %c0_19], %24 {strides = array<i32>} : memref<32x128xbf16, #tpu.memory_space<vmem>>, vector<32x128xbf16>,
    } else {
    }
    return
  }
  func.func @transform_0(%arg0: i32, %arg1: i32, %arg2: i32) -> (i32, i32) {
    %c0_i32 = arith.constant 0 : i32
    return %arg0, %arg2 : i32, i32
  }
  func.func @transform_1(%arg0: i32, %arg1: i32, %arg2: i32) -> (i32, i32) {
    %c0_i32 = arith.constant 0 : i32
    return %arg2, %arg1 : i32, i32
  }
  func.func @transform_2(%arg0: i32, %arg1: i32, %arg2: i32) -> (i32, i32) {
    %c0_i32 = arith.constant 0 : i32
    %c0_i32_0 = arith.constant 0 : i32
    return %c0_i32, %arg1 : i32, i32
  }
  func.func @transform_3(%arg0: i32, %arg1: i32, %arg2: i32) -> (i32, i32) {
    %c0_i32 = arith.constant 0 : i32
    %c0_i32_0 = arith.constant 0 : i32
    return %c0_i32, %arg1 : i32, i32
  }
  func.func @transform_4(%arg0: i32, %arg1: i32, %arg2: i32) -> (i32, i32) {
    %c0_i32 = arith.constant 0 : i32
    return %arg0, %arg1 : i32, i32
  }
  func.func @transform_5(%arg0: i32, %arg1: i32, %arg2: i32) -> (i32, i32) {
    %c0_i32 = arith.constant 0 : i32
    return %arg0, %arg1 : i32, i32
  }
}

module attributes {stable_mosaic.version = 11 : i64} {
  func.func @_mm_bn_kernel(%arg0: i32, %arg1: i32, %arg2: i32, %arg3: memref<32x128xbf16, #tpu.memory_space<vmem>>, %arg4: memref<128x128xbf16, #tpu.memory_space<vmem>>, %arg5: memref<1x128xf32, #tpu.memory_space<vmem>>, %arg6: memref<1x128xf32, #tpu.memory_space<vmem>>, %arg7: memref<32x128xbf16, #tpu.memory_space<vmem>>, %arg8: memref<32x128xf32, #tpu.memory_space<vmem>>) attributes {dimension_semantics = [#tpu.dimension_semantics<parallel>, #tpu.dimension_semantics<parallel>, #tpu.dimension_semantics<arbitrary>], iteration_bounds = array<i64: 1, 1, 9>, scalar_prefetch = 0 : i64, scratch_operands = 1 : i64, tpu.core_type = #tpu.core_type<tc>, window_params = [{transform_indices = @transform_0, window_bounds = array<i64: 32, 128>}, {transform_indices = @transform_1, window_bounds = array<i64: 128, 128>}, {transform_indices = @transform_2, window_bounds = array<i64: 1, 128>}, {transform_indices = @transform_3, window_bounds = array<i64: 1, 128>}, {transform_indices = @transform_4, window_bounds = array<i64: 32, 128>}]} {
    %c0_i32 = arith.constant 0 : i32
    %0 = arith.cmpi eq, %arg2, %c0_i32 : i32
    %1 = arith.extui %0 : i1 to i32
    %c0_i32_0 = arith.constant 0 : i32
    %2 = arith.cmpi ne, %1, %c0_i32_0 : i32
    scf.if %2 {
      %cst_9 = arith.constant 0.000000e+00 : f32
      %12 = vector.broadcast %cst_9 : f32 to vector<32x128xf32>
      %c0_10 = arith.constant 0 : index
      %c0_11 = arith.constant 0 : index
      %13 = vector.load %arg8[%c0_10, %c0_11] : memref<32x128xf32, #tpu.memory_space<vmem>>, vector<32x128xf32>
      tpu.vector_store %arg8[%c0_10, %c0_11], %12 {strides = array<i32>} : memref<32x128xf32, #tpu.memory_space<vmem>>, vector<32x128xf32>,
    } else {
    }
    %c0 = arith.constant 0 : index
    %c0_1 = arith.constant 0 : index
    %3 = vector.load %arg8[%c0, %c0_1] : memref<32x128xf32, #tpu.memory_space<vmem>>, vector<32x128xf32>
    %c0_2 = arith.constant 0 : index
    %c0_3 = arith.constant 0 : index
    %4 = vector.load %arg3[%c0_2, %c0_3] : memref<32x128xbf16, #tpu.memory_space<vmem>>, vector<32x128xbf16>
    %c0_4 = arith.constant 0 : index
    %c0_5 = arith.constant 0 : index
    %5 = vector.load %arg4[%c0_4, %c0_5] : memref<128x128xbf16, #tpu.memory_space<vmem>>, vector<128x128xbf16>
    %cst = arith.constant dense<0.000000e+00> : vector<32x128xf32>
    %6 = tpu.matmul %4, %5, %cst {dimension_numbers = #tpu.dot_dimension_numbers<[1], [0], [0], [1], [0, 0, 1, 1], [], []>} : vector<32x128xbf16>, vector<128x128xbf16>, vector<32x128xf32> -> vector<32x128xf32>
    %7 = arith.addf %3, %6 : vector<32x128xf32>
    %c0_6 = arith.constant 0 : index
    %c0_7 = arith.constant 0 : index
    %8 = vector.load %arg8[%c0_6, %c0_7] : memref<32x128xf32, #tpu.memory_space<vmem>>, vector<32x128xf32>
    tpu.vector_store %arg8[%c0_6, %c0_7], %7 {strides = array<i32>} : memref<32x128xf32, #tpu.memory_space<vmem>>, vector<32x128xf32>,
    %c8_i32 = arith.constant 8 : i32
    %9 = arith.cmpi eq, %arg2, %c8_i32 : i32
    %10 = arith.extui %9 : i1 to i32
    %c0_i32_8 = arith.constant 0 : i32
    %11 = arith.cmpi ne, %10, %c0_i32_8 : i32
    scf.if %11 {
      %c0_9 = arith.constant 0 : index
      %c0_10 = arith.constant 0 : index
      %12 = vector.load %arg8[%c0_9, %c0_10] : memref<32x128xf32, #tpu.memory_space<vmem>>, vector<32x128xf32>
      %c0_11 = arith.constant 0 : index
      %c0_12 = arith.constant 0 : index
      %13 = vector.load %arg5[%c0_11, %c0_12] : memref<1x128xf32, #tpu.memory_space<vmem>>, vector<1x128xf32>
      %14 = vector.broadcast %13 : vector<1x128xf32> to vector<32x128xf32>
      %15 = arith.mulf %12, %14 : vector<32x128xf32>
      %c0_13 = arith.constant 0 : index
      %c0_14 = arith.constant 0 : index
      %16 = vector.load %arg6[%c0_13, %c0_14] : memref<1x128xf32, #tpu.memory_space<vmem>>, vector<1x128xf32>
      %17 = vector.broadcast %16 : vector<1x128xf32> to vector<32x128xf32>
      %18 = arith.addf %15, %17 : vector<32x128xf32>
      %cst_15 = arith.constant 0.000000e+00 : f32
      %19 = vector.broadcast %cst_15 : f32 to vector<32x128xf32>
      %20 = arith.maximumf %18, %19 : vector<32x128xf32>
      %21 = arith.truncf %20 : vector<32x128xf32> to vector<32x128xbf16>
      %c0_16 = arith.constant 0 : index
      %c0_17 = arith.constant 0 : index
      %22 = vector.load %arg7[%c0_16, %c0_17] : memref<32x128xbf16, #tpu.memory_space<vmem>>, vector<32x128xbf16>
      tpu.vector_store %arg7[%c0_16, %c0_17], %21 {strides = array<i32>} : memref<32x128xbf16, #tpu.memory_space<vmem>>, vector<32x128xbf16>,
    } else {
    }
    return
  }
  func.func @transform_0(%arg0: i32, %arg1: i32, %arg2: i32) -> (i32, i32) {
    %c0_i32 = arith.constant 0 : i32
    return %arg0, %arg2 : i32, i32
  }
  func.func @transform_1(%arg0: i32, %arg1: i32, %arg2: i32) -> (i32, i32) {
    %c0_i32 = arith.constant 0 : i32
    return %arg2, %arg1 : i32, i32
  }
  func.func @transform_2(%arg0: i32, %arg1: i32, %arg2: i32) -> (i32, i32) {
    %c0_i32 = arith.constant 0 : i32
    %c0_i32_0 = arith.constant 0 : i32
    return %c0_i32, %arg1 : i32, i32
  }
  func.func @transform_3(%arg0: i32, %arg1: i32, %arg2: i32) -> (i32, i32) {
    %c0_i32 = arith.constant 0 : i32
    %c0_i32_0 = arith.constant 0 : i32
    return %c0_i32, %arg1 : i32, i32
  }
  func.func @transform_4(%arg0: i32, %arg1: i32, %arg2: i32) -> (i32, i32) {
    %c0_i32 = arith.constant 0 : i32
    return %arg0, %arg1 : i32, i32
  }
}

module attributes {stable_mosaic.version = 11 : i64} {
  func.func @_mm_bn_kernel(%arg0: i32, %arg1: i32, %arg2: i32, %arg3: memref<16x128xbf16, #tpu.memory_space<vmem>>, %arg4: memref<128x256xbf16, #tpu.memory_space<vmem>>, %arg5: memref<1x256xf32, #tpu.memory_space<vmem>>, %arg6: memref<1x256xf32, #tpu.memory_space<vmem>>, %arg7: memref<16x256xbf16, #tpu.memory_space<vmem>>, %arg8: memref<16x256xf32, #tpu.memory_space<vmem>>) attributes {dimension_semantics = [#tpu.dimension_semantics<parallel>, #tpu.dimension_semantics<parallel>, #tpu.dimension_semantics<arbitrary>], iteration_bounds = array<i64: 1, 1, 9>, scalar_prefetch = 0 : i64, scratch_operands = 1 : i64, tpu.core_type = #tpu.core_type<tc>, window_params = [{transform_indices = @transform_0, window_bounds = array<i64: 16, 128>}, {transform_indices = @transform_1, window_bounds = array<i64: 128, 256>}, {transform_indices = @transform_2, window_bounds = array<i64: 1, 256>}, {transform_indices = @transform_3, window_bounds = array<i64: 1, 256>}, {transform_indices = @transform_4, window_bounds = array<i64: 16, 256>}]} {
    %c0_i32 = arith.constant 0 : i32
    %0 = arith.cmpi eq, %arg2, %c0_i32 : i32
    %1 = arith.extui %0 : i1 to i32
    %c0_i32_0 = arith.constant 0 : i32
    %2 = arith.cmpi ne, %1, %c0_i32_0 : i32
    scf.if %2 {
      %cst_9 = arith.constant 0.000000e+00 : f32
      %12 = vector.broadcast %cst_9 : f32 to vector<16x256xf32>
      %c0_10 = arith.constant 0 : index
      %c0_11 = arith.constant 0 : index
      %13 = vector.load %arg8[%c0_10, %c0_11] : memref<16x256xf32, #tpu.memory_space<vmem>>, vector<16x256xf32>
      tpu.vector_store %arg8[%c0_10, %c0_11], %12 {strides = array<i32>} : memref<16x256xf32, #tpu.memory_space<vmem>>, vector<16x256xf32>,
    } else {
    }
    %c0 = arith.constant 0 : index
    %c0_1 = arith.constant 0 : index
    %3 = vector.load %arg8[%c0, %c0_1] : memref<16x256xf32, #tpu.memory_space<vmem>>, vector<16x256xf32>
    %c0_2 = arith.constant 0 : index
    %c0_3 = arith.constant 0 : index
    %4 = vector.load %arg3[%c0_2, %c0_3] : memref<16x128xbf16, #tpu.memory_space<vmem>>, vector<16x128xbf16>
    %c0_4 = arith.constant 0 : index
    %c0_5 = arith.constant 0 : index
    %5 = vector.load %arg4[%c0_4, %c0_5] : memref<128x256xbf16, #tpu.memory_space<vmem>>, vector<128x256xbf16>
    %cst = arith.constant dense<0.000000e+00> : vector<16x256xf32>
    %6 = tpu.matmul %4, %5, %cst {dimension_numbers = #tpu.dot_dimension_numbers<[1], [0], [0], [1], [0, 0, 1, 1], [], []>} : vector<16x128xbf16>, vector<128x256xbf16>, vector<16x256xf32> -> vector<16x256xf32>
    %7 = arith.addf %3, %6 : vector<16x256xf32>
    %c0_6 = arith.constant 0 : index
    %c0_7 = arith.constant 0 : index
    %8 = vector.load %arg8[%c0_6, %c0_7] : memref<16x256xf32, #tpu.memory_space<vmem>>, vector<16x256xf32>
    tpu.vector_store %arg8[%c0_6, %c0_7], %7 {strides = array<i32>} : memref<16x256xf32, #tpu.memory_space<vmem>>, vector<16x256xf32>,
    %c8_i32 = arith.constant 8 : i32
    %9 = arith.cmpi eq, %arg2, %c8_i32 : i32
    %10 = arith.extui %9 : i1 to i32
    %c0_i32_8 = arith.constant 0 : i32
    %11 = arith.cmpi ne, %10, %c0_i32_8 : i32
    scf.if %11 {
      %c0_9 = arith.constant 0 : index
      %c0_10 = arith.constant 0 : index
      %12 = vector.load %arg8[%c0_9, %c0_10] : memref<16x256xf32, #tpu.memory_space<vmem>>, vector<16x256xf32>
      %c0_11 = arith.constant 0 : index
      %c0_12 = arith.constant 0 : index
      %13 = vector.load %arg5[%c0_11, %c0_12] : memref<1x256xf32, #tpu.memory_space<vmem>>, vector<1x256xf32>
      %14 = vector.broadcast %13 : vector<1x256xf32> to vector<16x256xf32>
      %15 = arith.mulf %12, %14 : vector<16x256xf32>
      %c0_13 = arith.constant 0 : index
      %c0_14 = arith.constant 0 : index
      %16 = vector.load %arg6[%c0_13, %c0_14] : memref<1x256xf32, #tpu.memory_space<vmem>>, vector<1x256xf32>
      %17 = vector.broadcast %16 : vector<1x256xf32> to vector<16x256xf32>
      %18 = arith.addf %15, %17 : vector<16x256xf32>
      %cst_15 = arith.constant 0.000000e+00 : f32
      %19 = vector.broadcast %cst_15 : f32 to vector<16x256xf32>
      %20 = arith.maximumf %18, %19 : vector<16x256xf32>
      %21 = arith.truncf %20 : vector<16x256xf32> to vector<16x256xbf16>
      %c0_16 = arith.constant 0 : index
      %c0_17 = arith.constant 0 : index
      %22 = vector.load %arg7[%c0_16, %c0_17] : memref<16x256xbf16, #tpu.memory_space<vmem>>, vector<16x256xbf16>
      tpu.vector_store %arg7[%c0_16, %c0_17], %21 {strides = array<i32>} : memref<16x256xbf16, #tpu.memory_space<vmem>>, vector<16x256xbf16>,
    } else {
    }
    return
  }
  func.func @transform_0(%arg0: i32, %arg1: i32, %arg2: i32) -> (i32, i32) {
    %c0_i32 = arith.constant 0 : i32
    return %arg0, %arg2 : i32, i32
  }
  func.func @transform_1(%arg0: i32, %arg1: i32, %arg2: i32) -> (i32, i32) {
    %c0_i32 = arith.constant 0 : i32
    return %arg2, %arg1 : i32, i32
  }
  func.func @transform_2(%arg0: i32, %arg1: i32, %arg2: i32) -> (i32, i32) {
    %c0_i32 = arith.constant 0 : i32
    %c0_i32_0 = arith.constant 0 : i32
    return %c0_i32, %arg1 : i32, i32
  }
  func.func @transform_3(%arg0: i32, %arg1: i32, %arg2: i32) -> (i32, i32) {
    %c0_i32 = arith.constant 0 : i32
    %c0_i32_0 = arith.constant 0 : i32
    return %c0_i32, %arg1 : i32, i32
  }
  func.func @transform_4(%arg0: i32, %arg1: i32, %arg2: i32) -> (i32, i32) {
    %c0_i32 = arith.constant 0 : i32
    return %arg0, %arg1 : i32, i32
  }
}

module attributes {stable_mosaic.version = 11 : i64} {
  func.func @_mm_bn_kernel(%arg0: i32, %arg1: i32, %arg2: i32, %arg3: memref<16x256xbf16, #tpu.memory_space<vmem>>, %arg4: memref<256x256xbf16, #tpu.memory_space<vmem>>, %arg5: memref<1x256xf32, #tpu.memory_space<vmem>>, %arg6: memref<1x256xf32, #tpu.memory_space<vmem>>, %arg7: memref<16x256xbf16, #tpu.memory_space<vmem>>, %arg8: memref<16x256xf32, #tpu.memory_space<vmem>>) attributes {dimension_semantics = [#tpu.dimension_semantics<parallel>, #tpu.dimension_semantics<parallel>, #tpu.dimension_semantics<arbitrary>], iteration_bounds = array<i64: 1, 1, 9>, scalar_prefetch = 0 : i64, scratch_operands = 1 : i64, tpu.core_type = #tpu.core_type<tc>, window_params = [{transform_indices = @transform_0, window_bounds = array<i64: 16, 256>}, {transform_indices = @transform_1, window_bounds = array<i64: 256, 256>}, {transform_indices = @transform_2, window_bounds = array<i64: 1, 256>}, {transform_indices = @transform_3, window_bounds = array<i64: 1, 256>}, {transform_indices = @transform_4, window_bounds = array<i64: 16, 256>}]} {
    %c0_i32 = arith.constant 0 : i32
    %0 = arith.cmpi eq, %arg2, %c0_i32 : i32
    %1 = arith.extui %0 : i1 to i32
    %c0_i32_0 = arith.constant 0 : i32
    %2 = arith.cmpi ne, %1, %c0_i32_0 : i32
    scf.if %2 {
      %cst_9 = arith.constant 0.000000e+00 : f32
      %12 = vector.broadcast %cst_9 : f32 to vector<16x256xf32>
      %c0_10 = arith.constant 0 : index
      %c0_11 = arith.constant 0 : index
      %13 = vector.load %arg8[%c0_10, %c0_11] : memref<16x256xf32, #tpu.memory_space<vmem>>, vector<16x256xf32>
      tpu.vector_store %arg8[%c0_10, %c0_11], %12 {strides = array<i32>} : memref<16x256xf32, #tpu.memory_space<vmem>>, vector<16x256xf32>,
    } else {
    }
    %c0 = arith.constant 0 : index
    %c0_1 = arith.constant 0 : index
    %3 = vector.load %arg8[%c0, %c0_1] : memref<16x256xf32, #tpu.memory_space<vmem>>, vector<16x256xf32>
    %c0_2 = arith.constant 0 : index
    %c0_3 = arith.constant 0 : index
    %4 = vector.load %arg3[%c0_2, %c0_3] : memref<16x256xbf16, #tpu.memory_space<vmem>>, vector<16x256xbf16>
    %c0_4 = arith.constant 0 : index
    %c0_5 = arith.constant 0 : index
    %5 = vector.load %arg4[%c0_4, %c0_5] : memref<256x256xbf16, #tpu.memory_space<vmem>>, vector<256x256xbf16>
    %cst = arith.constant dense<0.000000e+00> : vector<16x256xf32>
    %6 = tpu.matmul %4, %5, %cst {dimension_numbers = #tpu.dot_dimension_numbers<[1], [0], [0], [1], [0, 0, 1, 1], [], []>} : vector<16x256xbf16>, vector<256x256xbf16>, vector<16x256xf32> -> vector<16x256xf32>
    %7 = arith.addf %3, %6 : vector<16x256xf32>
    %c0_6 = arith.constant 0 : index
    %c0_7 = arith.constant 0 : index
    %8 = vector.load %arg8[%c0_6, %c0_7] : memref<16x256xf32, #tpu.memory_space<vmem>>, vector<16x256xf32>
    tpu.vector_store %arg8[%c0_6, %c0_7], %7 {strides = array<i32>} : memref<16x256xf32, #tpu.memory_space<vmem>>, vector<16x256xf32>,
    %c8_i32 = arith.constant 8 : i32
    %9 = arith.cmpi eq, %arg2, %c8_i32 : i32
    %10 = arith.extui %9 : i1 to i32
    %c0_i32_8 = arith.constant 0 : i32
    %11 = arith.cmpi ne, %10, %c0_i32_8 : i32
    scf.if %11 {
      %c0_9 = arith.constant 0 : index
      %c0_10 = arith.constant 0 : index
      %12 = vector.load %arg8[%c0_9, %c0_10] : memref<16x256xf32, #tpu.memory_space<vmem>>, vector<16x256xf32>
      %c0_11 = arith.constant 0 : index
      %c0_12 = arith.constant 0 : index
      %13 = vector.load %arg5[%c0_11, %c0_12] : memref<1x256xf32, #tpu.memory_space<vmem>>, vector<1x256xf32>
      %14 = vector.broadcast %13 : vector<1x256xf32> to vector<16x256xf32>
      %15 = arith.mulf %12, %14 : vector<16x256xf32>
      %c0_13 = arith.constant 0 : index
      %c0_14 = arith.constant 0 : index
      %16 = vector.load %arg6[%c0_13, %c0_14] : memref<1x256xf32, #tpu.memory_space<vmem>>, vector<1x256xf32>
      %17 = vector.broadcast %16 : vector<1x256xf32> to vector<16x256xf32>
      %18 = arith.addf %15, %17 : vector<16x256xf32>
      %cst_15 = arith.constant 0.000000e+00 : f32
      %19 = vector.broadcast %cst_15 : f32 to vector<16x256xf32>
      %20 = arith.maximumf %18, %19 : vector<16x256xf32>
      %21 = arith.truncf %20 : vector<16x256xf32> to vector<16x256xbf16>
      %c0_16 = arith.constant 0 : index
      %c0_17 = arith.constant 0 : index
      %22 = vector.load %arg7[%c0_16, %c0_17] : memref<16x256xbf16, #tpu.memory_space<vmem>>, vector<16x256xbf16>
      tpu.vector_store %arg7[%c0_16, %c0_17], %21 {strides = array<i32>} : memref<16x256xbf16, #tpu.memory_space<vmem>>, vector<16x256xbf16>,
    } else {
    }
    return
  }
  func.func @transform_0(%arg0: i32, %arg1: i32, %arg2: i32) -> (i32, i32) {
    %c0_i32 = arith.constant 0 : i32
    return %arg0, %arg2 : i32, i32
  }
  func.func @transform_1(%arg0: i32, %arg1: i32, %arg2: i32) -> (i32, i32) {
    %c0_i32 = arith.constant 0 : i32
    return %arg2, %arg1 : i32, i32
  }
  func.func @transform_2(%arg0: i32, %arg1: i32, %arg2: i32) -> (i32, i32) {
    %c0_i32 = arith.constant 0 : i32
    %c0_i32_0 = arith.constant 0 : i32
    return %c0_i32, %arg1 : i32, i32
  }
  func.func @transform_3(%arg0: i32, %arg1: i32, %arg2: i32) -> (i32, i32) {
    %c0_i32 = arith.constant 0 : i32
    %c0_i32_0 = arith.constant 0 : i32
    return %c0_i32, %arg1 : i32, i32
  }
  func.func @transform_4(%arg0: i32, %arg1: i32, %arg2: i32) -> (i32, i32) {
    %c0_i32 = arith.constant 0 : i32
    return %arg0, %arg1 : i32, i32
  }
}

module attributes {stable_mosaic.version = 11 : i64} {
  func.func @_mm_bn_kernel(%arg0: i32, %arg1: i32, %arg2: i32, %arg3: memref<16x128xbf16, #tpu.memory_space<vmem>>, %arg4: memref<128x256xbf16, #tpu.memory_space<vmem>>, %arg5: memref<1x256xf32, #tpu.memory_space<vmem>>, %arg6: memref<1x256xf32, #tpu.memory_space<vmem>>, %arg7: memref<16x256xbf16, #tpu.memory_space<vmem>>, %arg8: memref<16x256xf32, #tpu.memory_space<vmem>>) attributes {dimension_semantics = [#tpu.dimension_semantics<parallel>, #tpu.dimension_semantics<parallel>, #tpu.dimension_semantics<arbitrary>], iteration_bounds = array<i64: 1, 1, 1>, scalar_prefetch = 0 : i64, scratch_operands = 1 : i64, tpu.core_type = #tpu.core_type<tc>, window_params = [{transform_indices = @transform_0, window_bounds = array<i64: 16, 128>}, {transform_indices = @transform_1, window_bounds = array<i64: 128, 256>}, {transform_indices = @transform_2, window_bounds = array<i64: 1, 256>}, {transform_indices = @transform_3, window_bounds = array<i64: 1, 256>}, {transform_indices = @transform_4, window_bounds = array<i64: 16, 256>}]} {
    %c0_i32 = arith.constant 0 : i32
    %0 = arith.cmpi eq, %arg2, %c0_i32 : i32
    %1 = arith.extui %0 : i1 to i32
    %c0_i32_0 = arith.constant 0 : i32
    %2 = arith.cmpi ne, %1, %c0_i32_0 : i32
    scf.if %2 {
      %cst_10 = arith.constant 0.000000e+00 : f32
      %12 = vector.broadcast %cst_10 : f32 to vector<16x256xf32>
      %c0_11 = arith.constant 0 : index
      %c0_12 = arith.constant 0 : index
      %13 = vector.load %arg8[%c0_11, %c0_12] : memref<16x256xf32, #tpu.memory_space<vmem>>, vector<16x256xf32>
      tpu.vector_store %arg8[%c0_11, %c0_12], %12 {strides = array<i32>} : memref<16x256xf32, #tpu.memory_space<vmem>>, vector<16x256xf32>,
    } else {
    }
    %c0 = arith.constant 0 : index
    %c0_1 = arith.constant 0 : index
    %3 = vector.load %arg8[%c0, %c0_1] : memref<16x256xf32, #tpu.memory_space<vmem>>, vector<16x256xf32>
    %c0_2 = arith.constant 0 : index
    %c0_3 = arith.constant 0 : index
    %4 = vector.load %arg3[%c0_2, %c0_3] : memref<16x128xbf16, #tpu.memory_space<vmem>>, vector<16x128xbf16>
    %c0_4 = arith.constant 0 : index
    %c0_5 = arith.constant 0 : index
    %5 = vector.load %arg4[%c0_4, %c0_5] : memref<128x256xbf16, #tpu.memory_space<vmem>>, vector<128x256xbf16>
    %cst = arith.constant dense<0.000000e+00> : vector<16x256xf32>
    %6 = tpu.matmul %4, %5, %cst {dimension_numbers = #tpu.dot_dimension_numbers<[1], [0], [0], [1], [0, 0, 1, 1], [], []>} : vector<16x128xbf16>, vector<128x256xbf16>, vector<16x256xf32> -> vector<16x256xf32>
    %7 = arith.addf %3, %6 : vector<16x256xf32>
    %c0_6 = arith.constant 0 : index
    %c0_7 = arith.constant 0 : index
    %8 = vector.load %arg8[%c0_6, %c0_7] : memref<16x256xf32, #tpu.memory_space<vmem>>, vector<16x256xf32>
    tpu.vector_store %arg8[%c0_6, %c0_7], %7 {strides = array<i32>} : memref<16x256xf32, #tpu.memory_space<vmem>>, vector<16x256xf32>,
    %c0_i32_8 = arith.constant 0 : i32
    %9 = arith.cmpi eq, %arg2, %c0_i32_8 : i32
    %10 = arith.extui %9 : i1 to i32
    %c0_i32_9 = arith.constant 0 : i32
    %11 = arith.cmpi ne, %10, %c0_i32_9 : i32
    scf.if %11 {
      %c0_10 = arith.constant 0 : index
      %c0_11 = arith.constant 0 : index
      %12 = vector.load %arg8[%c0_10, %c0_11] : memref<16x256xf32, #tpu.memory_space<vmem>>, vector<16x256xf32>
      %c0_12 = arith.constant 0 : index
      %c0_13 = arith.constant 0 : index
      %13 = vector.load %arg5[%c0_12, %c0_13] : memref<1x256xf32, #tpu.memory_space<vmem>>, vector<1x256xf32>
      %14 = vector.broadcast %13 : vector<1x256xf32> to vector<16x256xf32>
      %15 = arith.mulf %12, %14 : vector<16x256xf32>
      %c0_14 = arith.constant 0 : index
      %c0_15 = arith.constant 0 : index
      %16 = vector.load %arg6[%c0_14, %c0_15] : memref<1x256xf32, #tpu.memory_space<vmem>>, vector<1x256xf32>
      %17 = vector.broadcast %16 : vector<1x256xf32> to vector<16x256xf32>
      %18 = arith.addf %15, %17 : vector<16x256xf32>
      %19 = arith.truncf %18 : vector<16x256xf32> to vector<16x256xbf16>
      %c0_16 = arith.constant 0 : index
      %c0_17 = arith.constant 0 : index
      %20 = vector.load %arg7[%c0_16, %c0_17] : memref<16x256xbf16, #tpu.memory_space<vmem>>, vector<16x256xbf16>
      tpu.vector_store %arg7[%c0_16, %c0_17], %19 {strides = array<i32>} : memref<16x256xbf16, #tpu.memory_space<vmem>>, vector<16x256xbf16>,
    } else {
    }
    return
  }
  func.func @transform_0(%arg0: i32, %arg1: i32, %arg2: i32) -> (i32, i32) {
    %c0_i32 = arith.constant 0 : i32
    return %arg0, %arg2 : i32, i32
  }
  func.func @transform_1(%arg0: i32, %arg1: i32, %arg2: i32) -> (i32, i32) {
    %c0_i32 = arith.constant 0 : i32
    return %arg2, %arg1 : i32, i32
  }
  func.func @transform_2(%arg0: i32, %arg1: i32, %arg2: i32) -> (i32, i32) {
    %c0_i32 = arith.constant 0 : i32
    %c0_i32_0 = arith.constant 0 : i32
    return %c0_i32, %arg1 : i32, i32
  }
  func.func @transform_3(%arg0: i32, %arg1: i32, %arg2: i32) -> (i32, i32) {
    %c0_i32 = arith.constant 0 : i32
    %c0_i32_0 = arith.constant 0 : i32
    return %c0_i32, %arg1 : i32, i32
  }
  func.func @transform_4(%arg0: i32, %arg1: i32, %arg2: i32) -> (i32, i32) {
    %c0_i32 = arith.constant 0 : i32
    return %arg0, %arg1 : i32, i32
  }
}

module attributes {stable_mosaic.version = 11 : i64} {
  func.func @_mm_bn_res_kernel(%arg0: i32, %arg1: i32, %arg2: i32, %arg3: memref<16x256xbf16, #tpu.memory_space<vmem>>, %arg4: memref<256x256xbf16, #tpu.memory_space<vmem>>, %arg5: memref<1x256xf32, #tpu.memory_space<vmem>>, %arg6: memref<1x256xf32, #tpu.memory_space<vmem>>, %arg7: memref<16x256xbf16, #tpu.memory_space<vmem>>, %arg8: memref<16x256xbf16, #tpu.memory_space<vmem>>, %arg9: memref<16x256xf32, #tpu.memory_space<vmem>>) attributes {dimension_semantics = [#tpu.dimension_semantics<parallel>, #tpu.dimension_semantics<parallel>, #tpu.dimension_semantics<arbitrary>], iteration_bounds = array<i64: 1, 1, 9>, scalar_prefetch = 0 : i64, scratch_operands = 1 : i64, tpu.core_type = #tpu.core_type<tc>, window_params = [{transform_indices = @transform_0, window_bounds = array<i64: 16, 256>}, {transform_indices = @transform_1, window_bounds = array<i64: 256, 256>}, {transform_indices = @transform_2, window_bounds = array<i64: 1, 256>}, {transform_indices = @transform_3, window_bounds = array<i64: 1, 256>}, {transform_indices = @transform_4, window_bounds = array<i64: 16, 256>}, {transform_indices = @transform_5, window_bounds = array<i64: 16, 256>}]} {
    %c0_i32 = arith.constant 0 : i32
    %0 = arith.cmpi eq, %arg2, %c0_i32 : i32
    %1 = arith.extui %0 : i1 to i32
    %c0_i32_0 = arith.constant 0 : i32
    %2 = arith.cmpi ne, %1, %c0_i32_0 : i32
    scf.if %2 {
      %cst_9 = arith.constant 0.000000e+00 : f32
      %12 = vector.broadcast %cst_9 : f32 to vector<16x256xf32>
      %c0_10 = arith.constant 0 : index
      %c0_11 = arith.constant 0 : index
      %13 = vector.load %arg9[%c0_10, %c0_11] : memref<16x256xf32, #tpu.memory_space<vmem>>, vector<16x256xf32>
      tpu.vector_store %arg9[%c0_10, %c0_11], %12 {strides = array<i32>} : memref<16x256xf32, #tpu.memory_space<vmem>>, vector<16x256xf32>,
    } else {
    }
    %c0 = arith.constant 0 : index
    %c0_1 = arith.constant 0 : index
    %3 = vector.load %arg9[%c0, %c0_1] : memref<16x256xf32, #tpu.memory_space<vmem>>, vector<16x256xf32>
    %c0_2 = arith.constant 0 : index
    %c0_3 = arith.constant 0 : index
    %4 = vector.load %arg3[%c0_2, %c0_3] : memref<16x256xbf16, #tpu.memory_space<vmem>>, vector<16x256xbf16>
    %c0_4 = arith.constant 0 : index
    %c0_5 = arith.constant 0 : index
    %5 = vector.load %arg4[%c0_4, %c0_5] : memref<256x256xbf16, #tpu.memory_space<vmem>>, vector<256x256xbf16>
    %cst = arith.constant dense<0.000000e+00> : vector<16x256xf32>
    %6 = tpu.matmul %4, %5, %cst {dimension_numbers = #tpu.dot_dimension_numbers<[1], [0], [0], [1], [0, 0, 1, 1], [], []>} : vector<16x256xbf16>, vector<256x256xbf16>, vector<16x256xf32> -> vector<16x256xf32>
    %7 = arith.addf %3, %6 : vector<16x256xf32>
    %c0_6 = arith.constant 0 : index
    %c0_7 = arith.constant 0 : index
    %8 = vector.load %arg9[%c0_6, %c0_7] : memref<16x256xf32, #tpu.memory_space<vmem>>, vector<16x256xf32>
    tpu.vector_store %arg9[%c0_6, %c0_7], %7 {strides = array<i32>} : memref<16x256xf32, #tpu.memory_space<vmem>>, vector<16x256xf32>,
    %c8_i32 = arith.constant 8 : i32
    %9 = arith.cmpi eq, %arg2, %c8_i32 : i32
    %10 = arith.extui %9 : i1 to i32
    %c0_i32_8 = arith.constant 0 : i32
    %11 = arith.cmpi ne, %10, %c0_i32_8 : i32
    scf.if %11 {
      %c0_9 = arith.constant 0 : index
      %c0_10 = arith.constant 0 : index
      %12 = vector.load %arg9[%c0_9, %c0_10] : memref<16x256xf32, #tpu.memory_space<vmem>>, vector<16x256xf32>
      %c0_11 = arith.constant 0 : index
      %c0_12 = arith.constant 0 : index
      %13 = vector.load %arg5[%c0_11, %c0_12] : memref<1x256xf32, #tpu.memory_space<vmem>>, vector<1x256xf32>
      %14 = vector.broadcast %13 : vector<1x256xf32> to vector<16x256xf32>
      %15 = arith.mulf %12, %14 : vector<16x256xf32>
      %c0_13 = arith.constant 0 : index
      %c0_14 = arith.constant 0 : index
      %16 = vector.load %arg6[%c0_13, %c0_14] : memref<1x256xf32, #tpu.memory_space<vmem>>, vector<1x256xf32>
      %17 = vector.broadcast %16 : vector<1x256xf32> to vector<16x256xf32>
      %18 = arith.addf %15, %17 : vector<16x256xf32>
      %c0_15 = arith.constant 0 : index
      %c0_16 = arith.constant 0 : index
      %19 = vector.load %arg7[%c0_15, %c0_16] : memref<16x256xbf16, #tpu.memory_space<vmem>>, vector<16x256xbf16>
      %20 = arith.extf %19 : vector<16x256xbf16> to vector<16x256xf32>
      %21 = arith.addf %18, %20 : vector<16x256xf32>
      %cst_17 = arith.constant 0.000000e+00 : f32
      %22 = vector.broadcast %cst_17 : f32 to vector<16x256xf32>
      %23 = arith.maximumf %21, %22 : vector<16x256xf32>
      %24 = arith.truncf %23 : vector<16x256xf32> to vector<16x256xbf16>
      %c0_18 = arith.constant 0 : index
      %c0_19 = arith.constant 0 : index
      %25 = vector.load %arg8[%c0_18, %c0_19] : memref<16x256xbf16, #tpu.memory_space<vmem>>, vector<16x256xbf16>
      tpu.vector_store %arg8[%c0_18, %c0_19], %24 {strides = array<i32>} : memref<16x256xbf16, #tpu.memory_space<vmem>>, vector<16x256xbf16>,
    } else {
    }
    return
  }
  func.func @transform_0(%arg0: i32, %arg1: i32, %arg2: i32) -> (i32, i32) {
    %c0_i32 = arith.constant 0 : i32
    return %arg0, %arg2 : i32, i32
  }
  func.func @transform_1(%arg0: i32, %arg1: i32, %arg2: i32) -> (i32, i32) {
    %c0_i32 = arith.constant 0 : i32
    return %arg2, %arg1 : i32, i32
  }
  func.func @transform_2(%arg0: i32, %arg1: i32, %arg2: i32) -> (i32, i32) {
    %c0_i32 = arith.constant 0 : i32
    %c0_i32_0 = arith.constant 0 : i32
    return %c0_i32, %arg1 : i32, i32
  }
  func.func @transform_3(%arg0: i32, %arg1: i32, %arg2: i32) -> (i32, i32) {
    %c0_i32 = arith.constant 0 : i32
    %c0_i32_0 = arith.constant 0 : i32
    return %c0_i32, %arg1 : i32, i32
  }
  func.func @transform_4(%arg0: i32, %arg1: i32, %arg2: i32) -> (i32, i32) {
    %c0_i32 = arith.constant 0 : i32
    return %arg0, %arg1 : i32, i32
  }
  func.func @transform_5(%arg0: i32, %arg1: i32, %arg2: i32) -> (i32, i32) {
    %c0_i32 = arith.constant 0 : i32
    return %arg0, %arg1 : i32, i32
  }
}

module attributes {stable_mosaic.version = 11 : i64} {
  func.func @_mm_bn_kernel(%arg0: i32, %arg1: i32, %arg2: i32, %arg3: memref<16x256xbf16, #tpu.memory_space<vmem>>, %arg4: memref<256x512xbf16, #tpu.memory_space<vmem>>, %arg5: memref<1x512xf32, #tpu.memory_space<vmem>>, %arg6: memref<1x512xf32, #tpu.memory_space<vmem>>, %arg7: memref<16x512xbf16, #tpu.memory_space<vmem>>, %arg8: memref<16x512xf32, #tpu.memory_space<vmem>>) attributes {dimension_semantics = [#tpu.dimension_semantics<parallel>, #tpu.dimension_semantics<parallel>, #tpu.dimension_semantics<arbitrary>], iteration_bounds = array<i64: 1, 1, 9>, scalar_prefetch = 0 : i64, scratch_operands = 1 : i64, tpu.core_type = #tpu.core_type<tc>, window_params = [{transform_indices = @transform_0, window_bounds = array<i64: 16, 256>}, {transform_indices = @transform_1, window_bounds = array<i64: 256, 512>}, {transform_indices = @transform_2, window_bounds = array<i64: 1, 512>}, {transform_indices = @transform_3, window_bounds = array<i64: 1, 512>}, {transform_indices = @transform_4, window_bounds = array<i64: 16, 512>}]} {
    %c0_i32 = arith.constant 0 : i32
    %0 = arith.cmpi eq, %arg2, %c0_i32 : i32
    %1 = arith.extui %0 : i1 to i32
    %c0_i32_0 = arith.constant 0 : i32
    %2 = arith.cmpi ne, %1, %c0_i32_0 : i32
    scf.if %2 {
      %cst_9 = arith.constant 0.000000e+00 : f32
      %12 = vector.broadcast %cst_9 : f32 to vector<16x512xf32>
      %c0_10 = arith.constant 0 : index
      %c0_11 = arith.constant 0 : index
      %13 = vector.load %arg8[%c0_10, %c0_11] : memref<16x512xf32, #tpu.memory_space<vmem>>, vector<16x512xf32>
      tpu.vector_store %arg8[%c0_10, %c0_11], %12 {strides = array<i32>} : memref<16x512xf32, #tpu.memory_space<vmem>>, vector<16x512xf32>,
    } else {
    }
    %c0 = arith.constant 0 : index
    %c0_1 = arith.constant 0 : index
    %3 = vector.load %arg8[%c0, %c0_1] : memref<16x512xf32, #tpu.memory_space<vmem>>, vector<16x512xf32>
    %c0_2 = arith.constant 0 : index
    %c0_3 = arith.constant 0 : index
    %4 = vector.load %arg3[%c0_2, %c0_3] : memref<16x256xbf16, #tpu.memory_space<vmem>>, vector<16x256xbf16>
    %c0_4 = arith.constant 0 : index
    %c0_5 = arith.constant 0 : index
    %5 = vector.load %arg4[%c0_4, %c0_5] : memref<256x512xbf16, #tpu.memory_space<vmem>>, vector<256x512xbf16>
    %cst = arith.constant dense<0.000000e+00> : vector<16x512xf32>
    %6 = tpu.matmul %4, %5, %cst {dimension_numbers = #tpu.dot_dimension_numbers<[1], [0], [0], [1], [0, 0, 1, 1], [], []>} : vector<16x256xbf16>, vector<256x512xbf16>, vector<16x512xf32> -> vector<16x512xf32>
    %7 = arith.addf %3, %6 : vector<16x512xf32>
    %c0_6 = arith.constant 0 : index
    %c0_7 = arith.constant 0 : index
    %8 = vector.load %arg8[%c0_6, %c0_7] : memref<16x512xf32, #tpu.memory_space<vmem>>, vector<16x512xf32>
    tpu.vector_store %arg8[%c0_6, %c0_7], %7 {strides = array<i32>} : memref<16x512xf32, #tpu.memory_space<vmem>>, vector<16x512xf32>,
    %c8_i32 = arith.constant 8 : i32
    %9 = arith.cmpi eq, %arg2, %c8_i32 : i32
    %10 = arith.extui %9 : i1 to i32
    %c0_i32_8 = arith.constant 0 : i32
    %11 = arith.cmpi ne, %10, %c0_i32_8 : i32
    scf.if %11 {
      %c0_9 = arith.constant 0 : index
      %c0_10 = arith.constant 0 : index
      %12 = vector.load %arg8[%c0_9, %c0_10] : memref<16x512xf32, #tpu.memory_space<vmem>>, vector<16x512xf32>
      %c0_11 = arith.constant 0 : index
      %c0_12 = arith.constant 0 : index
      %13 = vector.load %arg5[%c0_11, %c0_12] : memref<1x512xf32, #tpu.memory_space<vmem>>, vector<1x512xf32>
      %14 = vector.broadcast %13 : vector<1x512xf32> to vector<16x512xf32>
      %15 = arith.mulf %12, %14 : vector<16x512xf32>
      %c0_13 = arith.constant 0 : index
      %c0_14 = arith.constant 0 : index
      %16 = vector.load %arg6[%c0_13, %c0_14] : memref<1x512xf32, #tpu.memory_space<vmem>>, vector<1x512xf32>
      %17 = vector.broadcast %16 : vector<1x512xf32> to vector<16x512xf32>
      %18 = arith.addf %15, %17 : vector<16x512xf32>
      %cst_15 = arith.constant 0.000000e+00 : f32
      %19 = vector.broadcast %cst_15 : f32 to vector<16x512xf32>
      %20 = arith.maximumf %18, %19 : vector<16x512xf32>
      %21 = arith.truncf %20 : vector<16x512xf32> to vector<16x512xbf16>
      %c0_16 = arith.constant 0 : index
      %c0_17 = arith.constant 0 : index
      %22 = vector.load %arg7[%c0_16, %c0_17] : memref<16x512xbf16, #tpu.memory_space<vmem>>, vector<16x512xbf16>
      tpu.vector_store %arg7[%c0_16, %c0_17], %21 {strides = array<i32>} : memref<16x512xbf16, #tpu.memory_space<vmem>>, vector<16x512xbf16>,
    } else {
    }
    return
  }
  func.func @transform_0(%arg0: i32, %arg1: i32, %arg2: i32) -> (i32, i32) {
    %c0_i32 = arith.constant 0 : i32
    return %arg0, %arg2 : i32, i32
  }
  func.func @transform_1(%arg0: i32, %arg1: i32, %arg2: i32) -> (i32, i32) {
    %c0_i32 = arith.constant 0 : i32
    return %arg2, %arg1 : i32, i32
  }
  func.func @transform_2(%arg0: i32, %arg1: i32, %arg2: i32) -> (i32, i32) {
    %c0_i32 = arith.constant 0 : i32
    %c0_i32_0 = arith.constant 0 : i32
    return %c0_i32, %arg1 : i32, i32
  }
  func.func @transform_3(%arg0: i32, %arg1: i32, %arg2: i32) -> (i32, i32) {
    %c0_i32 = arith.constant 0 : i32
    %c0_i32_0 = arith.constant 0 : i32
    return %c0_i32, %arg1 : i32, i32
  }
  func.func @transform_4(%arg0: i32, %arg1: i32, %arg2: i32) -> (i32, i32) {
    %c0_i32 = arith.constant 0 : i32
    return %arg0, %arg1 : i32, i32
  }
}

module attributes {stable_mosaic.version = 11 : i64} {
  func.func @_mm_bn_kernel(%arg0: i32, %arg1: i32, %arg2: i32, %arg3: memref<16x256xbf16, #tpu.memory_space<vmem>>, %arg4: memref<256x512xbf16, #tpu.memory_space<vmem>>, %arg5: memref<1x512xf32, #tpu.memory_space<vmem>>, %arg6: memref<1x512xf32, #tpu.memory_space<vmem>>, %arg7: memref<16x512xbf16, #tpu.memory_space<vmem>>, %arg8: memref<16x512xf32, #tpu.memory_space<vmem>>) attributes {dimension_semantics = [#tpu.dimension_semantics<parallel>, #tpu.dimension_semantics<parallel>, #tpu.dimension_semantics<arbitrary>], iteration_bounds = array<i64: 1, 1, 1>, scalar_prefetch = 0 : i64, scratch_operands = 1 : i64, tpu.core_type = #tpu.core_type<tc>, window_params = [{transform_indices = @transform_0, window_bounds = array<i64: 16, 256>}, {transform_indices = @transform_1, window_bounds = array<i64: 256, 512>}, {transform_indices = @transform_2, window_bounds = array<i64: 1, 512>}, {transform_indices = @transform_3, window_bounds = array<i64: 1, 512>}, {transform_indices = @transform_4, window_bounds = array<i64: 16, 512>}]} {
    %c0_i32 = arith.constant 0 : i32
    %0 = arith.cmpi eq, %arg2, %c0_i32 : i32
    %1 = arith.extui %0 : i1 to i32
    %c0_i32_0 = arith.constant 0 : i32
    %2 = arith.cmpi ne, %1, %c0_i32_0 : i32
    scf.if %2 {
      %cst_10 = arith.constant 0.000000e+00 : f32
      %12 = vector.broadcast %cst_10 : f32 to vector<16x512xf32>
      %c0_11 = arith.constant 0 : index
      %c0_12 = arith.constant 0 : index
      %13 = vector.load %arg8[%c0_11, %c0_12] : memref<16x512xf32, #tpu.memory_space<vmem>>, vector<16x512xf32>
      tpu.vector_store %arg8[%c0_11, %c0_12], %12 {strides = array<i32>} : memref<16x512xf32, #tpu.memory_space<vmem>>, vector<16x512xf32>,
    } else {
    }
    %c0 = arith.constant 0 : index
    %c0_1 = arith.constant 0 : index
    %3 = vector.load %arg8[%c0, %c0_1] : memref<16x512xf32, #tpu.memory_space<vmem>>, vector<16x512xf32>
    %c0_2 = arith.constant 0 : index
    %c0_3 = arith.constant 0 : index
    %4 = vector.load %arg3[%c0_2, %c0_3] : memref<16x256xbf16, #tpu.memory_space<vmem>>, vector<16x256xbf16>
    %c0_4 = arith.constant 0 : index
    %c0_5 = arith.constant 0 : index
    %5 = vector.load %arg4[%c0_4, %c0_5] : memref<256x512xbf16, #tpu.memory_space<vmem>>, vector<256x512xbf16>
    %cst = arith.constant dense<0.000000e+00> : vector<16x512xf32>
    %6 = tpu.matmul %4, %5, %cst {dimension_numbers = #tpu.dot_dimension_numbers<[1], [0], [0], [1], [0, 0, 1, 1], [], []>} : vector<16x256xbf16>, vector<256x512xbf16>, vector<16x512xf32> -> vector<16x512xf32>
    %7 = arith.addf %3, %6 : vector<16x512xf32>
    %c0_6 = arith.constant 0 : index
    %c0_7 = arith.constant 0 : index
    %8 = vector.load %arg8[%c0_6, %c0_7] : memref<16x512xf32, #tpu.memory_space<vmem>>, vector<16x512xf32>
    tpu.vector_store %arg8[%c0_6, %c0_7], %7 {strides = array<i32>} : memref<16x512xf32, #tpu.memory_space<vmem>>, vector<16x512xf32>,
    %c0_i32_8 = arith.constant 0 : i32
    %9 = arith.cmpi eq, %arg2, %c0_i32_8 : i32
    %10 = arith.extui %9 : i1 to i32
    %c0_i32_9 = arith.constant 0 : i32
    %11 = arith.cmpi ne, %10, %c0_i32_9 : i32
    scf.if %11 {
      %c0_10 = arith.constant 0 : index
      %c0_11 = arith.constant 0 : index
      %12 = vector.load %arg8[%c0_10, %c0_11] : memref<16x512xf32, #tpu.memory_space<vmem>>, vector<16x512xf32>
      %c0_12 = arith.constant 0 : index
      %c0_13 = arith.constant 0 : index
      %13 = vector.load %arg5[%c0_12, %c0_13] : memref<1x512xf32, #tpu.memory_space<vmem>>, vector<1x512xf32>
      %14 = vector.broadcast %13 : vector<1x512xf32> to vector<16x512xf32>
      %15 = arith.mulf %12, %14 : vector<16x512xf32>
      %c0_14 = arith.constant 0 : index
      %c0_15 = arith.constant 0 : index
      %16 = vector.load %arg6[%c0_14, %c0_15] : memref<1x512xf32, #tpu.memory_space<vmem>>, vector<1x512xf32>
      %17 = vector.broadcast %16 : vector<1x512xf32> to vector<16x512xf32>
      %18 = arith.addf %15, %17 : vector<16x512xf32>
      %19 = arith.truncf %18 : vector<16x512xf32> to vector<16x512xbf16>
      %c0_16 = arith.constant 0 : index
      %c0_17 = arith.constant 0 : index
      %20 = vector.load %arg7[%c0_16, %c0_17] : memref<16x512xbf16, #tpu.memory_space<vmem>>, vector<16x512xbf16>
      tpu.vector_store %arg7[%c0_16, %c0_17], %19 {strides = array<i32>} : memref<16x512xbf16, #tpu.memory_space<vmem>>, vector<16x512xbf16>,
    } else {
    }
    return
  }
  func.func @transform_0(%arg0: i32, %arg1: i32, %arg2: i32) -> (i32, i32) {
    %c0_i32 = arith.constant 0 : i32
    return %arg0, %arg2 : i32, i32
  }
  func.func @transform_1(%arg0: i32, %arg1: i32, %arg2: i32) -> (i32, i32) {
    %c0_i32 = arith.constant 0 : i32
    return %arg2, %arg1 : i32, i32
  }
  func.func @transform_2(%arg0: i32, %arg1: i32, %arg2: i32) -> (i32, i32) {
    %c0_i32 = arith.constant 0 : i32
    %c0_i32_0 = arith.constant 0 : i32
    return %c0_i32, %arg1 : i32, i32
  }
  func.func @transform_3(%arg0: i32, %arg1: i32, %arg2: i32) -> (i32, i32) {
    %c0_i32 = arith.constant 0 : i32
    %c0_i32_0 = arith.constant 0 : i32
    return %c0_i32, %arg1 : i32, i32
  }
  func.func @transform_4(%arg0: i32, %arg1: i32, %arg2: i32) -> (i32, i32) {
    %c0_i32 = arith.constant 0 : i32
    return %arg0, %arg1 : i32, i32
  }
}

module attributes {stable_mosaic.version = 11 : i64} {
  func.func @_mm_bn_res_kernel(%arg0: i32, %arg1: i32, %arg2: i32, %arg3: memref<16x512xbf16, #tpu.memory_space<vmem>>, %arg4: memref<512x512xbf16, #tpu.memory_space<vmem>>, %arg5: memref<1x512xf32, #tpu.memory_space<vmem>>, %arg6: memref<1x512xf32, #tpu.memory_space<vmem>>, %arg7: memref<16x512xbf16, #tpu.memory_space<vmem>>, %arg8: memref<16x512xbf16, #tpu.memory_space<vmem>>, %arg9: memref<16x512xf32, #tpu.memory_space<vmem>>) attributes {dimension_semantics = [#tpu.dimension_semantics<parallel>, #tpu.dimension_semantics<parallel>, #tpu.dimension_semantics<arbitrary>], iteration_bounds = array<i64: 1, 1, 9>, scalar_prefetch = 0 : i64, scratch_operands = 1 : i64, tpu.core_type = #tpu.core_type<tc>, window_params = [{transform_indices = @transform_0, window_bounds = array<i64: 16, 512>}, {transform_indices = @transform_1, window_bounds = array<i64: 512, 512>}, {transform_indices = @transform_2, window_bounds = array<i64: 1, 512>}, {transform_indices = @transform_3, window_bounds = array<i64: 1, 512>}, {transform_indices = @transform_4, window_bounds = array<i64: 16, 512>}, {transform_indices = @transform_5, window_bounds = array<i64: 16, 512>}]} {
    %c0_i32 = arith.constant 0 : i32
    %0 = arith.cmpi eq, %arg2, %c0_i32 : i32
    %1 = arith.extui %0 : i1 to i32
    %c0_i32_0 = arith.constant 0 : i32
    %2 = arith.cmpi ne, %1, %c0_i32_0 : i32
    scf.if %2 {
      %cst_9 = arith.constant 0.000000e+00 : f32
      %12 = vector.broadcast %cst_9 : f32 to vector<16x512xf32>
      %c0_10 = arith.constant 0 : index
      %c0_11 = arith.constant 0 : index
      %13 = vector.load %arg9[%c0_10, %c0_11] : memref<16x512xf32, #tpu.memory_space<vmem>>, vector<16x512xf32>
      tpu.vector_store %arg9[%c0_10, %c0_11], %12 {strides = array<i32>} : memref<16x512xf32, #tpu.memory_space<vmem>>, vector<16x512xf32>,
    } else {
    }
    %c0 = arith.constant 0 : index
    %c0_1 = arith.constant 0 : index
    %3 = vector.load %arg9[%c0, %c0_1] : memref<16x512xf32, #tpu.memory_space<vmem>>, vector<16x512xf32>
    %c0_2 = arith.constant 0 : index
    %c0_3 = arith.constant 0 : index
    %4 = vector.load %arg3[%c0_2, %c0_3] : memref<16x512xbf16, #tpu.memory_space<vmem>>, vector<16x512xbf16>
    %c0_4 = arith.constant 0 : index
    %c0_5 = arith.constant 0 : index
    %5 = vector.load %arg4[%c0_4, %c0_5] : memref<512x512xbf16, #tpu.memory_space<vmem>>, vector<512x512xbf16>
    %cst = arith.constant dense<0.000000e+00> : vector<16x512xf32>
    %6 = tpu.matmul %4, %5, %cst {dimension_numbers = #tpu.dot_dimension_numbers<[1], [0], [0], [1], [0, 0, 1, 1], [], []>} : vector<16x512xbf16>, vector<512x512xbf16>, vector<16x512xf32> -> vector<16x512xf32>
    %7 = arith.addf %3, %6 : vector<16x512xf32>
    %c0_6 = arith.constant 0 : index
    %c0_7 = arith.constant 0 : index
    %8 = vector.load %arg9[%c0_6, %c0_7] : memref<16x512xf32, #tpu.memory_space<vmem>>, vector<16x512xf32>
    tpu.vector_store %arg9[%c0_6, %c0_7], %7 {strides = array<i32>} : memref<16x512xf32, #tpu.memory_space<vmem>>, vector<16x512xf32>,
    %c8_i32 = arith.constant 8 : i32
    %9 = arith.cmpi eq, %arg2, %c8_i32 : i32
    %10 = arith.extui %9 : i1 to i32
    %c0_i32_8 = arith.constant 0 : i32
    %11 = arith.cmpi ne, %10, %c0_i32_8 : i32
    scf.if %11 {
      %c0_9 = arith.constant 0 : index
      %c0_10 = arith.constant 0 : index
      %12 = vector.load %arg9[%c0_9, %c0_10] : memref<16x512xf32, #tpu.memory_space<vmem>>, vector<16x512xf32>
      %c0_11 = arith.constant 0 : index
      %c0_12 = arith.constant 0 : index
      %13 = vector.load %arg5[%c0_11, %c0_12] : memref<1x512xf32, #tpu.memory_space<vmem>>, vector<1x512xf32>
      %14 = vector.broadcast %13 : vector<1x512xf32> to vector<16x512xf32>
      %15 = arith.mulf %12, %14 : vector<16x512xf32>
      %c0_13 = arith.constant 0 : index
      %c0_14 = arith.constant 0 : index
      %16 = vector.load %arg6[%c0_13, %c0_14] : memref<1x512xf32, #tpu.memory_space<vmem>>, vector<1x512xf32>
      %17 = vector.broadcast %16 : vector<1x512xf32> to vector<16x512xf32>
      %18 = arith.addf %15, %17 : vector<16x512xf32>
      %c0_15 = arith.constant 0 : index
      %c0_16 = arith.constant 0 : index
      %19 = vector.load %arg7[%c0_15, %c0_16] : memref<16x512xbf16, #tpu.memory_space<vmem>>, vector<16x512xbf16>
      %20 = arith.extf %19 : vector<16x512xbf16> to vector<16x512xf32>
      %21 = arith.addf %18, %20 : vector<16x512xf32>
      %cst_17 = arith.constant 0.000000e+00 : f32
      %22 = vector.broadcast %cst_17 : f32 to vector<16x512xf32>
      %23 = arith.maximumf %21, %22 : vector<16x512xf32>
      %24 = arith.truncf %23 : vector<16x512xf32> to vector<16x512xbf16>
      %c0_18 = arith.constant 0 : index
      %c0_19 = arith.constant 0 : index
      %25 = vector.load %arg8[%c0_18, %c0_19] : memref<16x512xbf16, #tpu.memory_space<vmem>>, vector<16x512xbf16>
      tpu.vector_store %arg8[%c0_18, %c0_19], %24 {strides = array<i32>} : memref<16x512xbf16, #tpu.memory_space<vmem>>, vector<16x512xbf16>,
    } else {
    }
    return
  }
  func.func @transform_0(%arg0: i32, %arg1: i32, %arg2: i32) -> (i32, i32) {
    %c0_i32 = arith.constant 0 : i32
    return %arg0, %arg2 : i32, i32
  }
  func.func @transform_1(%arg0: i32, %arg1: i32, %arg2: i32) -> (i32, i32) {
    %c0_i32 = arith.constant 0 : i32
    return %arg2, %arg1 : i32, i32
  }
  func.func @transform_2(%arg0: i32, %arg1: i32, %arg2: i32) -> (i32, i32) {
    %c0_i32 = arith.constant 0 : i32
    %c0_i32_0 = arith.constant 0 : i32
    return %c0_i32, %arg1 : i32, i32
  }
  func.func @transform_3(%arg0: i32, %arg1: i32, %arg2: i32) -> (i32, i32) {
    %c0_i32 = arith.constant 0 : i32
    %c0_i32_0 = arith.constant 0 : i32
    return %c0_i32, %arg1 : i32, i32
  }
  func.func @transform_4(%arg0: i32, %arg1: i32, %arg2: i32) -> (i32, i32) {
    %c0_i32 = arith.constant 0 : i32
    return %arg0, %arg1 : i32, i32
  }
  func.func @transform_5(%arg0: i32, %arg1: i32, %arg2: i32) -> (i32, i32) {
    %c0_i32 = arith.constant 0 : i32
    return %arg0, %arg1 : i32, i32
  }
}

module attributes {stable_mosaic.version = 11 : i64} {
  func.func @_mm_bn_kernel(%arg0: i32, %arg1: i32, %arg2: i32, %arg3: memref<16x512xbf16, #tpu.memory_space<vmem>>, %arg4: memref<512x512xbf16, #tpu.memory_space<vmem>>, %arg5: memref<1x512xf32, #tpu.memory_space<vmem>>, %arg6: memref<1x512xf32, #tpu.memory_space<vmem>>, %arg7: memref<16x512xbf16, #tpu.memory_space<vmem>>, %arg8: memref<16x512xf32, #tpu.memory_space<vmem>>) attributes {dimension_semantics = [#tpu.dimension_semantics<parallel>, #tpu.dimension_semantics<parallel>, #tpu.dimension_semantics<arbitrary>], iteration_bounds = array<i64: 1, 1, 9>, scalar_prefetch = 0 : i64, scratch_operands = 1 : i64, tpu.core_type = #tpu.core_type<tc>, window_params = [{transform_indices = @transform_0, window_bounds = array<i64: 16, 512>}, {transform_indices = @transform_1, window_bounds = array<i64: 512, 512>}, {transform_indices = @transform_2, window_bounds = array<i64: 1, 512>}, {transform_indices = @transform_3, window_bounds = array<i64: 1, 512>}, {transform_indices = @transform_4, window_bounds = array<i64: 16, 512>}]} {
    %c0_i32 = arith.constant 0 : i32
    %0 = arith.cmpi eq, %arg2, %c0_i32 : i32
    %1 = arith.extui %0 : i1 to i32
    %c0_i32_0 = arith.constant 0 : i32
    %2 = arith.cmpi ne, %1, %c0_i32_0 : i32
    scf.if %2 {
      %cst_9 = arith.constant 0.000000e+00 : f32
      %12 = vector.broadcast %cst_9 : f32 to vector<16x512xf32>
      %c0_10 = arith.constant 0 : index
      %c0_11 = arith.constant 0 : index
      %13 = vector.load %arg8[%c0_10, %c0_11] : memref<16x512xf32, #tpu.memory_space<vmem>>, vector<16x512xf32>
      tpu.vector_store %arg8[%c0_10, %c0_11], %12 {strides = array<i32>} : memref<16x512xf32, #tpu.memory_space<vmem>>, vector<16x512xf32>,
    } else {
    }
    %c0 = arith.constant 0 : index
    %c0_1 = arith.constant 0 : index
    %3 = vector.load %arg8[%c0, %c0_1] : memref<16x512xf32, #tpu.memory_space<vmem>>, vector<16x512xf32>
    %c0_2 = arith.constant 0 : index
    %c0_3 = arith.constant 0 : index
    %4 = vector.load %arg3[%c0_2, %c0_3] : memref<16x512xbf16, #tpu.memory_space<vmem>>, vector<16x512xbf16>
    %c0_4 = arith.constant 0 : index
    %c0_5 = arith.constant 0 : index
    %5 = vector.load %arg4[%c0_4, %c0_5] : memref<512x512xbf16, #tpu.memory_space<vmem>>, vector<512x512xbf16>
    %cst = arith.constant dense<0.000000e+00> : vector<16x512xf32>
    %6 = tpu.matmul %4, %5, %cst {dimension_numbers = #tpu.dot_dimension_numbers<[1], [0], [0], [1], [0, 0, 1, 1], [], []>} : vector<16x512xbf16>, vector<512x512xbf16>, vector<16x512xf32> -> vector<16x512xf32>
    %7 = arith.addf %3, %6 : vector<16x512xf32>
    %c0_6 = arith.constant 0 : index
    %c0_7 = arith.constant 0 : index
    %8 = vector.load %arg8[%c0_6, %c0_7] : memref<16x512xf32, #tpu.memory_space<vmem>>, vector<16x512xf32>
    tpu.vector_store %arg8[%c0_6, %c0_7], %7 {strides = array<i32>} : memref<16x512xf32, #tpu.memory_space<vmem>>, vector<16x512xf32>,
    %c8_i32 = arith.constant 8 : i32
    %9 = arith.cmpi eq, %arg2, %c8_i32 : i32
    %10 = arith.extui %9 : i1 to i32
    %c0_i32_8 = arith.constant 0 : i32
    %11 = arith.cmpi ne, %10, %c0_i32_8 : i32
    scf.if %11 {
      %c0_9 = arith.constant 0 : index
      %c0_10 = arith.constant 0 : index
      %12 = vector.load %arg8[%c0_9, %c0_10] : memref<16x512xf32, #tpu.memory_space<vmem>>, vector<16x512xf32>
      %c0_11 = arith.constant 0 : index
      %c0_12 = arith.constant 0 : index
      %13 = vector.load %arg5[%c0_11, %c0_12] : memref<1x512xf32, #tpu.memory_space<vmem>>, vector<1x512xf32>
      %14 = vector.broadcast %13 : vector<1x512xf32> to vector<16x512xf32>
      %15 = arith.mulf %12, %14 : vector<16x512xf32>
      %c0_13 = arith.constant 0 : index
      %c0_14 = arith.constant 0 : index
      %16 = vector.load %arg6[%c0_13, %c0_14] : memref<1x512xf32, #tpu.memory_space<vmem>>, vector<1x512xf32>
      %17 = vector.broadcast %16 : vector<1x512xf32> to vector<16x512xf32>
      %18 = arith.addf %15, %17 : vector<16x512xf32>
      %cst_15 = arith.constant 0.000000e+00 : f32
      %19 = vector.broadcast %cst_15 : f32 to vector<16x512xf32>
      %20 = arith.maximumf %18, %19 : vector<16x512xf32>
      %21 = arith.truncf %20 : vector<16x512xf32> to vector<16x512xbf16>
      %c0_16 = arith.constant 0 : index
      %c0_17 = arith.constant 0 : index
      %22 = vector.load %arg7[%c0_16, %c0_17] : memref<16x512xbf16, #tpu.memory_space<vmem>>, vector<16x512xbf16>
      tpu.vector_store %arg7[%c0_16, %c0_17], %21 {strides = array<i32>} : memref<16x512xbf16, #tpu.memory_space<vmem>>, vector<16x512xbf16>,
    } else {
    }
    return
  }
  func.func @transform_0(%arg0: i32, %arg1: i32, %arg2: i32) -> (i32, i32) {
    %c0_i32 = arith.constant 0 : i32
    return %arg0, %arg2 : i32, i32
  }
  func.func @transform_1(%arg0: i32, %arg1: i32, %arg2: i32) -> (i32, i32) {
    %c0_i32 = arith.constant 0 : i32
    return %arg2, %arg1 : i32, i32
  }
  func.func @transform_2(%arg0: i32, %arg1: i32, %arg2: i32) -> (i32, i32) {
    %c0_i32 = arith.constant 0 : i32
    %c0_i32_0 = arith.constant 0 : i32
    return %c0_i32, %arg1 : i32, i32
  }
  func.func @transform_3(%arg0: i32, %arg1: i32, %arg2: i32) -> (i32, i32) {
    %c0_i32 = arith.constant 0 : i32
    %c0_i32_0 = arith.constant 0 : i32
    return %c0_i32, %arg1 : i32, i32
  }
  func.func @transform_4(%arg0: i32, %arg1: i32, %arg2: i32) -> (i32, i32) {
    %c0_i32 = arith.constant 0 : i32
    return %arg0, %arg1 : i32, i32
  }
}

module attributes {stable_mosaic.version = 11 : i64} {
  func.func @_avgpool_kernel(%arg0: memref<2x1x512xbf16, #tpu.memory_space<vmem>>, %arg1: memref<2x512xf32, #tpu.memory_space<vmem>>) attributes {dimension_semantics = [], scalar_prefetch = 0 : i64, scratch_operands = 0 : i64, tpu.core_type = #tpu.core_type<tc>} {
    %c0 = arith.constant 0 : index
    %c0_0 = arith.constant 0 : index
    %c0_1 = arith.constant 0 : index
    %0 = vector.load %arg0[%c0, %c0_0, %c0_1] : memref<2x1x512xbf16, #tpu.memory_space<vmem>>, vector<2x1x512xbf16>
    %1 = arith.extf %0 : vector<2x1x512xbf16> to vector<2x1x512xf32>
    %cst = arith.constant dense<0.000000e+00> : vector<2x512xf32>
    %2 = vector.multi_reduction <add>, %1, %cst [1] : vector<2x1x512xf32> to vector<2x512xf32>
    %cst_2 = arith.constant 1.000000e+00 : f32
    %3 = vector.broadcast %cst_2 : f32 to vector<2x512xf32>
    %4 = arith.divf %2, %3 : vector<2x512xf32>
    %c0_3 = arith.constant 0 : index
    %c0_4 = arith.constant 0 : index
    %5 = vector.load %arg1[%c0_3, %c0_4] : memref<2x512xf32, #tpu.memory_space<vmem>>, vector<2x512xf32>
    tpu.vector_store %arg1[%c0_3, %c0_4], %4 {strides = array<i32>} : memref<2x512xf32, #tpu.memory_space<vmem>>, vector<2x512xf32>,
    return
  }
}

module attributes {stable_mosaic.version = 11 : i64} {
  func.func @_l2norm_kernel(%arg0: memref<2x128xf32, #tpu.memory_space<vmem>>, %arg1: memref<2x128xf32, #tpu.memory_space<vmem>>) attributes {dimension_semantics = [], scalar_prefetch = 0 : i64, scratch_operands = 0 : i64, tpu.core_type = #tpu.core_type<tc>} {
    %c0 = arith.constant 0 : index
    %c0_0 = arith.constant 0 : index
    %0 = vector.load %arg0[%c0, %c0_0] : memref<2x128xf32, #tpu.memory_space<vmem>>, vector<2x128xf32>
    %1 = arith.mulf %0, %0 : vector<2x128xf32>
    %cst = arith.constant dense<0.000000e+00> : vector<2xf32>
    %2 = vector.multi_reduction <add>, %1, %cst [1] : vector<2x128xf32> to vector<2xf32>
    %3 = vector.shape_cast %2 : vector<2xf32> to vector<2x1xf32>
    %4 = math.sqrt %3 : vector<2x1xf32>
    %cst_1 = arith.constant 9.99999996E-13 : f32
    %5 = vector.broadcast %cst_1 : f32 to vector<2x1xf32>
    %6 = arith.maximumf %4, %5 : vector<2x1xf32>
    %7 = vector.broadcast %6 : vector<2x1xf32> to vector<2x128xf32>
    %8 = arith.divf %0, %7 : vector<2x128xf32>
    %c0_2 = arith.constant 0 : index
    %c0_3 = arith.constant 0 : index
    %9 = vector.load %arg1[%c0_2, %c0_3] : memref<2x128xf32, #tpu.memory_space<vmem>>, vector<2x128xf32>
    tpu.vector_store %arg1[%c0_2, %c0_3], %8 {strides = array<i32>} : memref<2x128xf32, #tpu.memory_space<vmem>>, vector<2x128xf32>,
    return
  }
}

module attributes {stable_mosaic.version = 11 : i64} {
  func.func @_mm_bn_kernel(%arg0: i32, %arg1: i32, %arg2: i32, %arg3: memref<16x512xbf16, #tpu.memory_space<vmem>>, %arg4: memref<512x128xbf16, #tpu.memory_space<vmem>>, %arg5: memref<1x128xf32, #tpu.memory_space<vmem>>, %arg6: memref<1x128xf32, #tpu.memory_space<vmem>>, %arg7: memref<16x128xf32, #tpu.memory_space<vmem>>, %arg8: memref<16x128xf32, #tpu.memory_space<vmem>>) attributes {dimension_semantics = [#tpu.dimension_semantics<parallel>, #tpu.dimension_semantics<parallel>, #tpu.dimension_semantics<arbitrary>], iteration_bounds = array<i64: 1, 1, 1>, scalar_prefetch = 0 : i64, scratch_operands = 1 : i64, tpu.core_type = #tpu.core_type<tc>, window_params = [{transform_indices = @transform_0, window_bounds = array<i64: 16, 512>}, {transform_indices = @transform_1, window_bounds = array<i64: 512, 128>}, {transform_indices = @transform_2, window_bounds = array<i64: 1, 128>}, {transform_indices = @transform_3, window_bounds = array<i64: 1, 128>}, {transform_indices = @transform_4, window_bounds = array<i64: 16, 128>}]} {
    %c0_i32 = arith.constant 0 : i32
    %0 = arith.cmpi eq, %arg2, %c0_i32 : i32
    %1 = arith.extui %0 : i1 to i32
    %c0_i32_0 = arith.constant 0 : i32
    %2 = arith.cmpi ne, %1, %c0_i32_0 : i32
    scf.if %2 {
      %cst_10 = arith.constant 0.000000e+00 : f32
      %12 = vector.broadcast %cst_10 : f32 to vector<16x128xf32>
      %c0_11 = arith.constant 0 : index
      %c0_12 = arith.constant 0 : index
      %13 = vector.load %arg8[%c0_11, %c0_12] : memref<16x128xf32, #tpu.memory_space<vmem>>, vector<16x128xf32>
      tpu.vector_store %arg8[%c0_11, %c0_12], %12 {strides = array<i32>} : memref<16x128xf32, #tpu.memory_space<vmem>>, vector<16x128xf32>,
    } else {
    }
    %c0 = arith.constant 0 : index
    %c0_1 = arith.constant 0 : index
    %3 = vector.load %arg8[%c0, %c0_1] : memref<16x128xf32, #tpu.memory_space<vmem>>, vector<16x128xf32>
    %c0_2 = arith.constant 0 : index
    %c0_3 = arith.constant 0 : index
    %4 = vector.load %arg3[%c0_2, %c0_3] : memref<16x512xbf16, #tpu.memory_space<vmem>>, vector<16x512xbf16>
    %c0_4 = arith.constant 0 : index
    %c0_5 = arith.constant 0 : index
    %5 = vector.load %arg4[%c0_4, %c0_5] : memref<512x128xbf16, #tpu.memory_space<vmem>>, vector<512x128xbf16>
    %cst = arith.constant dense<0.000000e+00> : vector<16x128xf32>
    %6 = tpu.matmul %4, %5, %cst {dimension_numbers = #tpu.dot_dimension_numbers<[1], [0], [0], [1], [0, 0, 1, 1], [], []>} : vector<16x512xbf16>, vector<512x128xbf16>, vector<16x128xf32> -> vector<16x128xf32>
    %7 = arith.addf %3, %6 : vector<16x128xf32>
    %c0_6 = arith.constant 0 : index
    %c0_7 = arith.constant 0 : index
    %8 = vector.load %arg8[%c0_6, %c0_7] : memref<16x128xf32, #tpu.memory_space<vmem>>, vector<16x128xf32>
    tpu.vector_store %arg8[%c0_6, %c0_7], %7 {strides = array<i32>} : memref<16x128xf32, #tpu.memory_space<vmem>>, vector<16x128xf32>,
    %c0_i32_8 = arith.constant 0 : i32
    %9 = arith.cmpi eq, %arg2, %c0_i32_8 : i32
    %10 = arith.extui %9 : i1 to i32
    %c0_i32_9 = arith.constant 0 : i32
    %11 = arith.cmpi ne, %10, %c0_i32_9 : i32
    scf.if %11 {
      %c0_10 = arith.constant 0 : index
      %c0_11 = arith.constant 0 : index
      %12 = vector.load %arg8[%c0_10, %c0_11] : memref<16x128xf32, #tpu.memory_space<vmem>>, vector<16x128xf32>
      %c0_12 = arith.constant 0 : index
      %c0_13 = arith.constant 0 : index
      %13 = vector.load %arg5[%c0_12, %c0_13] : memref<1x128xf32, #tpu.memory_space<vmem>>, vector<1x128xf32>
      %14 = vector.broadcast %13 : vector<1x128xf32> to vector<16x128xf32>
      %15 = arith.mulf %12, %14 : vector<16x128xf32>
      %c0_14 = arith.constant 0 : index
      %c0_15 = arith.constant 0 : index
      %16 = vector.load %arg6[%c0_14, %c0_15] : memref<1x128xf32, #tpu.memory_space<vmem>>, vector<1x128xf32>
      %17 = vector.broadcast %16 : vector<1x128xf32> to vector<16x128xf32>
      %18 = arith.addf %15, %17 : vector<16x128xf32>
      %c0_16 = arith.constant 0 : index
      %c0_17 = arith.constant 0 : index
      %19 = vector.load %arg7[%c0_16, %c0_17] : memref<16x128xf32, #tpu.memory_space<vmem>>, vector<16x128xf32>
      tpu.vector_store %arg7[%c0_16, %c0_17], %18 {strides = array<i32>} : memref<16x128xf32, #tpu.memory_space<vmem>>, vector<16x128xf32>,
    } else {
    }
    return
  }
  func.func @transform_0(%arg0: i32, %arg1: i32, %arg2: i32) -> (i32, i32) {
    %c0_i32 = arith.constant 0 : i32
    return %arg0, %arg2 : i32, i32
  }
  func.func @transform_1(%arg0: i32, %arg1: i32, %arg2: i32) -> (i32, i32) {
    %c0_i32 = arith.constant 0 : i32
    return %arg2, %arg1 : i32, i32
  }
  func.func @transform_2(%arg0: i32, %arg1: i32, %arg2: i32) -> (i32, i32) {
    %c0_i32 = arith.constant 0 : i32
    %c0_i32_0 = arith.constant 0 : i32
    return %c0_i32, %arg1 : i32, i32
  }
  func.func @transform_3(%arg0: i32, %arg1: i32, %arg2: i32) -> (i32, i32) {
    %c0_i32 = arith.constant 0 : i32
    %c0_i32_0 = arith.constant 0 : i32
    return %c0_i32, %arg1 : i32, i32
  }
  func.func @transform_4(%arg0: i32, %arg1: i32, %arg2: i32) -> (i32, i32) {
    %c0_i32 = arith.constant 0 : i32
    return %arg0, %arg1 : i32, i32
  }
}

</mosaic_0001>

<bundles_post_ra>
// kernel: base_resnet18_forward.24
= control target key start
LH: loop header
LB: loop body
LE: loop exit
PB: predicated region body
PF: predicated region fallthrough
CT: control target
= control target key end

     0   :  { %v2222_v0 = vmov 0   ;;  %s2754_s1 = inlined_call_operand.vmem [shape: bf16[256,128], index: 1, kind: input, shape index: {}]   ;;  %s2755_s0 = inlined_call_operand.vmem [shape: bf16[512,256], index: 0, kind: input, shape index: {}]   ;;  %s2756_s2 = inlined_call_operand.vmem [shape: f32[1,128], index: 2, kind: input, shape index: {}]   ;;  %s2757_s3 = inlined_call_operand.vmem [shape: f32[1,128], index: 3, kind: input, shape index: {}]   ;;  %s2758_s4 = inlined_call_operand.vmem [shape: bf16[512,128], index: 4, kind: output, shape index: {}]  }
   0x1   :  { %662 = vmatprep.subr.bf16.mxu0 %v2222_v0  ;;  %2077 = vmatprep.subr.bf16.mxu1 %v2222_v0  ;;  %v2110_v1 = vld [vmem:[%s2754_s1] sm:$0xff]   ;;  %v2111_v2 = vld [vmem:[%s2754_s1 + $0x8] sm:$0xff]   ;;  %v2112_v3 = vld [vmem:[%s2754_s1 + $0x10] sm:$0xff]  }
   0x2   :  { %663 = vmatpush1.bf16.msra.mxu0 %v2110_v1  ;;  %2093 = vmatpush1.bf16.msra.mxu1 %v2110_v1  ;;  %v2113_v4 = vld [vmem:[%s2754_s1 + $0x18] sm:$0xff]   ;;  %v2114_v5 = vld [vmem:[%s2754_s1 + $0x20] sm:$0xff]   ;;  %v2115_v7 = vld [vmem:[%s2754_s1 + $0x28] sm:$0xff]  }
   0x3   :  { %664 = vmatprep.subr.bf16.mxu0 %v2222_v0  ;;  %2078 = vmatprep.subr.bf16.mxu1 %v2222_v0  ;;  %v2128_v6 = vld [vmem:[%s2755_s0 + $0x4] ss:$8 sps:$4 sm:$0xff]   ;;  %v2116_v9 = vld [vmem:[%s2754_s1 + $0x30] sm:$0xff]   ;;  %v2117_v10 = vld [vmem:[%s2754_s1 + $0x38] sm:$0xff]  }
   0x4   :  { %v2131_v8 = vld [vmem:[%s2755_s0 + $0x104] ss:$8 sps:$4 sm:$0xff]   ;;  %694 = vmatprep.mubr.bf16.mxu0 %v2128_v6  ;;  %v2120_v13 = vld [vmem:[%s2754_s1 + $0x50] sm:$0xff]   ;;  %v2121_v14 = vld [vmem:[%s2754_s1 + $0x58] sm:$0xff]  }
   0x5   :  { %822 = vmatprep.mubr.bf16.mxu1 %v2131_v8  ;;  %v2118_v11 = vld [vmem:[%s2754_s1 + $0x40] sm:$0xff]   ;;  %v2119_v12 = vld [vmem:[%s2754_s1 + $0x48] sm:$0xff]   ;;  %v2124_v17 = vld [vmem:[%s2754_s1 + $0x70] sm:$0xff]  }
   0x6   :  { %665 = vmatpush1.bf16.msra.mxu0 %v2111_v2  ;;  %2094 = vmatpush1.bf16.msra.mxu1 %v2111_v2  ;;  %v2122_v15 = vld [vmem:[%s2754_s1 + $0x60] sm:$0xff]   ;;  %v2123_v16 = vld [vmem:[%s2754_s1 + $0x68] sm:$0xff]   ;;  %v2125_v18 = vld [vmem:[%s2754_s1 + $0x78] sm:$0xff]  }
   0x7   :  { %666 = vmatprep.subr.bf16.mxu0 %v2222_v0  ;;  %2079 = vmatprep.subr.bf16.mxu1 %v2222_v0  ;;  %v2126_v19 = vld [vmem:[%s2755_s0] ss:$8 sps:$4 sm:$0xff]   ;;  %v2132_v21 = vld [vmem:[%s2755_s0 + $0x14] ss:$8 sps:$4 sm:$0xff]   ;;  %v2136_v23 = vld [vmem:[%s2755_s0 + $0x10] ss:$8 sps:$4 sm:$0xff]  }
   0x8   :  { %v2129_v20 = vld [vmem:[%s2755_s0 + $0x100] ss:$8 sps:$4 sm:$0xff]   ;;  %v2134_v22 = vld [vmem:[%s2755_s0 + $0x114] ss:$8 sps:$4 sm:$0xff]   ;;  %v2137_v24 = vld [vmem:[%s2755_s0 + $0x110] ss:$8 sps:$4 sm:$0xff]  }
   0x9   :  { %v2138_v25 = vld [vmem:[%s2755_s0 + $0x24] ss:$8 sps:$4 sm:$0xff]   ;;  %v2142_v27 = vld [vmem:[%s2755_s0 + $0x20] ss:$8 sps:$4 sm:$0xff]   ;;  %v2144_v29 = vld [vmem:[%s2755_s0 + $0x34] ss:$8 sps:$4 sm:$0xff]  }
   0xa   :  { %667 = vmatpush1.bf16.msra.mxu0 %v2112_v3  ;;  %2095 = vmatpush1.bf16.msra.mxu1 %v2112_v3  ;;  %v2140_v26 = vld [vmem:[%s2755_s0 + $0x124] ss:$8 sps:$4 sm:$0xff]   ;;  %v2143_v28 = vld [vmem:[%s2755_s0 + $0x120] ss:$8 sps:$4 sm:$0xff]   ;;  %v2146_v30 = vld [vmem:[%s2755_s0 + $0x134] ss:$8 sps:$4 sm:$0xff]  }
   0xb   :  { %668 = vmatprep.subr.bf16.mxu0 %v2222_v0  ;;  %2080 = vmatprep.subr.bf16.mxu1 %v2222_v0  ;;  %v2148_v31 = vld [vmem:[%s2755_s0 + $0x30] ss:$8 sps:$4 sm:$0xff]   ;;  %v2150_v33 = vld [vmem:[%s2755_s0 + $0x44] ss:$8 sps:$4 sm:$0xff]   ;;  %v2154_v35 = vld [vmem:[%s2755_s0 + $0x40] ss:$8 sps:$4 sm:$0xff]  }
   0xc   :  { %v2149_v32 = vld [vmem:[%s2755_s0 + $0x130] ss:$8 sps:$4 sm:$0xff]   ;;  %v2152_v34 = vld [vmem:[%s2755_s0 + $0x144] ss:$8 sps:$4 sm:$0xff]   ;;  %v2155_v36 = vld [vmem:[%s2755_s0 + $0x140] ss:$8 sps:$4 sm:$0xff]  }
   0xd   :  { %v2156_v37 = vld [vmem:[%s2755_s0 + $0x54] ss:$8 sps:$4 sm:$0xff]   ;;  %v2160_v39 = vld [vmem:[%s2755_s0 + $0x50] ss:$8 sps:$4 sm:$0xff]   ;;  %v2162_v41 = vld [vmem:[%s2755_s0 + $0x64] ss:$8 sps:$4 sm:$0xff]  }
   0xe   :  { %669 = vmatpush1.bf16.msra.mxu0 %v2113_v4  ;;  %2096 = vmatpush1.bf16.msra.mxu1 %v2113_v4  ;;  %v2158_v38 = vld [vmem:[%s2755_s0 + $0x154] ss:$8 sps:$4 sm:$0xff]   ;;  %v2161_v40 = vld [vmem:[%s2755_s0 + $0x150] ss:$8 sps:$4 sm:$0xff]   ;;  %v2164_v42 = vld [vmem:[%s2755_s0 + $0x164] ss:$8 sps:$4 sm:$0xff]  }
   0xf   :  { %670 = vmatprep.subr.bf16.mxu0 %v2222_v0  ;;  %2081 = vmatprep.subr.bf16.mxu1 %v2222_v0  ;;  %v2166_v43 = vld [vmem:[%s2755_s0 + $0x60] ss:$8 sps:$4 sm:$0xff]   ;;  %v2168_v45 = vld [vmem:[%s2755_s0 + $0x74] ss:$8 sps:$4 sm:$0xff]   ;;  %v2172_v47 = vld [vmem:[%s2755_s0 + $0x70] ss:$8 sps:$4 sm:$0xff]  }
  0x10   :  { %v2167_v44 = vld [vmem:[%s2755_s0 + $0x160] ss:$8 sps:$4 sm:$0xff]   ;;  %v2170_v46 = vld [vmem:[%s2755_s0 + $0x174] ss:$8 sps:$4 sm:$0xff]   ;;  %v2173_v48 = vld [vmem:[%s2755_s0 + $0x170] ss:$8 sps:$4 sm:$0xff]  }
  0x11   :  { %v2174_v49 = vld [vmem:[%s2755_s0 + $0x84] ss:$8 sps:$4 sm:$0xff]   ;;  %v2178_v51 = vld [vmem:[%s2755_s0 + $0x80] ss:$8 sps:$4 sm:$0xff]   ;;  %v2180_v53 = vld [vmem:[%s2755_s0 + $0x94] ss:$8 sps:$4 sm:$0xff]  }
  0x12   :  { %671 = vmatpush1.bf16.msra.mxu0 %v2114_v5  ;;  %2097 = vmatpush1.bf16.msra.mxu1 %v2114_v5  ;;  %v2176_v50 = vld [vmem:[%s2755_s0 + $0x184] ss:$8 sps:$4 sm:$0xff]   ;;  %v2179_v52 = vld [vmem:[%s2755_s0 + $0x180] ss:$8 sps:$4 sm:$0xff]   ;;  %v2182_v54 = vld [vmem:[%s2755_s0 + $0x194] ss:$8 sps:$4 sm:$0xff]  }
  0x13   :  { %672 = vmatprep.subr.bf16.mxu0 %v2222_v0  ;;  %2082 = vmatprep.subr.bf16.mxu1 %v2222_v0  ;;  %v2184_v55 = vld [vmem:[%s2755_s0 + $0x90] ss:$8 sps:$4 sm:$0xff]   ;;  %v2186_v57 = vld [vmem:[%s2755_s0 + $0xa4] ss:$8 sps:$4 sm:$0xff]   ;;  %v2190_v59 = vld [vmem:[%s2755_s0 + $0xa0] ss:$8 sps:$4 sm:$0xff]  }
  0x14   :  { %v2185_v56 = vld [vmem:[%s2755_s0 + $0x190] ss:$8 sps:$4 sm:$0xff]   ;;  %v2188_v58 = vld [vmem:[%s2755_s0 + $0x1a4] ss:$8 sps:$4 sm:$0xff]   ;;  %v2191_v60 = vld [vmem:[%s2755_s0 + $0x1a0] ss:$8 sps:$4 sm:$0xff]  }
  0x15   :  { %v2192_v61 = vld [vmem:[%s2755_s0 + $0xb4] ss:$8 sps:$4 sm:$0xff]   ;;  %v2196_v63 = vld [vmem:[%s2755_s0 + $0xb0] ss:$8 sps:$4 sm:$0xff]   ;;  %v2198_v1 = vld [vmem:[%s2755_s0 + $0xc4] ss:$8 sps:$4 sm:$0xff]  }
  0x16   :  { %673 = vmatpush1.bf16.msra.mxu0 %v2115_v7  ;;  %2098 = vmatpush1.bf16.msra.mxu1 %v2115_v7  ;;  %v2194_v62 = vld [vmem:[%s2755_s0 + $0x1b4] ss:$8 sps:$4 sm:$0xff]   ;;  %v2200_v2 = vld [vmem:[%s2755_s0 + $0x1c4] ss:$8 sps:$4 sm:$0xff]   ;;  %v2202_v3 = vld [vmem:[%s2755_s0 + $0xc0] ss:$8 sps:$4 sm:$0xff]  }
  0x17   :  { %674 = vmatprep.subr.bf16.mxu0 %v2222_v0  ;;  %2083 = vmatprep.subr.bf16.mxu1 %v2222_v0  ;;  %v2203_v4 = vld [vmem:[%s2755_s0 + $0x1c0] ss:$8 sps:$4 sm:$0xff]   ;;  %v2204_v5 = vld [vmem:[%s2755_s0 + $0xd4] ss:$8 sps:$4 sm:$0xff]   ;;  %v2208_v7 = vld [vmem:[%s2755_s0 + $0xd0] ss:$8 sps:$4 sm:$0xff]  }
  0x18   :  { %v2206_v6 = vld [vmem:[%s2755_s0 + $0x1d4] ss:$8 sps:$4 sm:$0xff]   ;;  %v2209_v8 = vld [vmem:[%s2755_s0 + $0x1d0] ss:$8 sps:$4 sm:$0xff]  }
  0x1a   :  { %675 = vmatpush1.bf16.msra.mxu0 %v2116_v9  ;;  %2099 = vmatpush1.bf16.msra.mxu1 %v2116_v9  ;;  %v2210_v9 = vld [vmem:[%s2755_s0 + $0xe4] ss:$8 sps:$4 sm:$0xff]  }
  0x1b   :  { %676 = vmatprep.subr.bf16.mxu0 %v2222_v0  ;;  %2084 = vmatprep.subr.bf16.mxu1 %v2222_v0 }
  0x1e   :  { %677 = vmatpush1.bf16.msra.mxu0 %v2117_v10  ;;  %2100 = vmatpush1.bf16.msra.mxu1 %v2117_v10  ;;  %v2212_v10 = vld [vmem:[%s2755_s0 + $0x1e4] ss:$8 sps:$4 sm:$0xff]  }
  0x1f   :  { %678 = vmatprep.subr.bf16.mxu0 %v2222_v0  ;;  %2085 = vmatprep.subr.bf16.mxu1 %v2222_v0 }
  0x22   :  { %679 = vmatpush1.bf16.msra.mxu0 %v2118_v11  ;;  %2101 = vmatpush1.bf16.msra.mxu1 %v2118_v11  ;;  %v2214_v11 = vld [vmem:[%s2755_s0 + $0xe0] ss:$8 sps:$4 sm:$0xff]  }
  0x23   :  { %680 = vmatprep.subr.bf16.mxu0 %v2222_v0  ;;  %2086 = vmatprep.subr.bf16.mxu1 %v2222_v0 }
  0x26   :  { %681 = vmatpush1.bf16.msra.mxu0 %v2119_v12  ;;  %2102 = vmatpush1.bf16.msra.mxu1 %v2119_v12  ;;  %v2215_v12 = vld [vmem:[%s2755_s0 + $0x1e0] ss:$8 sps:$4 sm:$0xff]  }
  0x27   :  { %682 = vmatprep.subr.bf16.mxu0 %v2222_v0  ;;  %2087 = vmatprep.subr.bf16.mxu1 %v2222_v0 }
  0x2a   :  { %683 = vmatpush1.bf16.msra.mxu0 %v2120_v13  ;;  %2103 = vmatpush1.bf16.msra.mxu1 %v2120_v13  ;;  %v2216_v13 = vld [vmem:[%s2755_s0 + $0xf4] ss:$8 sps:$4 sm:$0xff]  }
  0x2b   :  { %684 = vmatprep.subr.bf16.mxu0 %v2222_v0  ;;  %2088 = vmatprep.subr.bf16.mxu1 %v2222_v0 }
  0x2e   :  { %685 = vmatpush1.bf16.msra.mxu0 %v2121_v14  ;;  %2104 = vmatpush1.bf16.msra.mxu1 %v2121_v14  ;;  %v2218_v14 = vld [vmem:[%s2755_s0 + $0x1f4] ss:$8 sps:$4 sm:$0xff]  }
  0x2f   :  { %686 = vmatprep.subr.bf16.mxu0 %v2222_v0  ;;  %2089 = vmatprep.subr.bf16.mxu1 %v2222_v0 }
  0x32   :  { %687 = vmatpush1.bf16.msra.mxu0 %v2122_v15  ;;  %2105 = vmatpush1.bf16.msra.mxu1 %v2122_v15  ;;  %v2220_v15 = vld [vmem:[%s2755_s0 + $0xf0] ss:$8 sps:$4 sm:$0xff]  }
  0x33   :  { %688 = vmatprep.subr.bf16.mxu0 %v2222_v0  ;;  %2090 = vmatprep.subr.bf16.mxu1 %v2222_v0 }
  0x36   :  { %689 = vmatpush1.bf16.msra.mxu0 %v2123_v16  ;;  %2106 = vmatpush1.bf16.msra.mxu1 %v2123_v16  ;;  %v2221_v16 = vld [vmem:[%s2755_s0 + $0x1f0] ss:$8 sps:$4 sm:$0xff]  }
  0x37   :  { %690 = vmatprep.subr.bf16.mxu0 %v2222_v0  ;;  %2091 = vmatprep.subr.bf16.mxu1 %v2222_v0 }
  0x3a   :  { %691 = vmatpush1.bf16.msra.mxu0 %v2124_v17  ;;  %2107 = vmatpush1.bf16.msra.mxu1 %v2124_v17  ;;  %v2523_v17 = vld [vmem:[%s2756_s2] ss:$0 sm:$0xff] }
  0x3b   :  { %692 = vmatprep.subr.bf16.mxu0 %v2222_v0  ;;  %2092 = vmatprep.subr.bf16.mxu1 %v2222_v0  ;;  %v2197_v0 = vld [vmem:[%s2755_s0 + $0x1b0] ss:$8 sps:$4 sm:$0xff]  }
  0x3e   :  { %693 = vmatpush1.bf16.msra.mxu0 %v2125_v18  ;;  %2108 = vmatpush1.bf16.msra.mxu1 %v2125_v18 }
  0x41   :  { %695 = vmatmul.mubr.bf16.vlgmr.msra.gmra.mrb[0].mxu0 %v2126_v19  ;;  %823 = vmatmul.mubr.bf16.vlgmr.msra.gmra.mrb[0].mxu1 %v2129_v20  ;;  %v2528_v19 = vld [vmem:[%s2757_s3] ss:$0 sm:$0xff] }
  0x42   :  { %702 = vmatprep.mubr.bf16.mxu0 %v2132_v21  ;;  %830 = vmatprep.mubr.bf16.mxu1 %v2134_v22 }
  0x49   :  { %703 = vmatmul.mubr.bf16.gmra.mrb[4].mxu0 %v2136_v23  ;;  %831 = vmatmul.mubr.bf16.gmra.mrb[4].mxu1 %v2137_v24 }
  0x4a   :  { %710 = vmatprep.mubr.bf16.mxu0 %v2138_v25  ;;  %838 = vmatprep.mubr.bf16.mxu1 %v2140_v26 }
  0x51   :  { %711 = vmatmul.mubr.bf16.gmra.mrb[8].mxu0 %v2142_v27  ;;  %839 = vmatmul.mubr.bf16.gmra.mrb[8].mxu1 %v2143_v28 }
  0x52   :  { %718 = vmatprep.mubr.bf16.mxu0 %v2144_v29  ;;  %846 = vmatprep.mubr.bf16.mxu1 %v2146_v30 }
  0x59   :  { %719 = vmatmul.mubr.bf16.gmra.mrb[12].mxu0 %v2148_v31  ;;  %847 = vmatmul.mubr.bf16.gmra.mrb[12].mxu1 %v2149_v32 }
  0x5a   :  { %726 = vmatprep.mubr.bf16.mxu0 %v2150_v33  ;;  %854 = vmatprep.mubr.bf16.mxu1 %v2152_v34 }
  0x61   :  { %727 = vmatmul.mubr.bf16.gmra.mrb[16].mxu0 %v2154_v35  ;;  %855 = vmatmul.mubr.bf16.gmra.mrb[16].mxu1 %v2155_v36 }
  0x62   :  { %734 = vmatprep.mubr.bf16.mxu0 %v2156_v37  ;;  %862 = vmatprep.mubr.bf16.mxu1 %v2158_v38 }
  0x69   :  { %735 = vmatmul.mubr.bf16.gmra.mrb[20].mxu0 %v2160_v39  ;;  %863 = vmatmul.mubr.bf16.gmra.mrb[20].mxu1 %v2161_v40 }
  0x6a   :  { %742 = vmatprep.mubr.bf16.mxu0 %v2162_v41  ;;  %870 = vmatprep.mubr.bf16.mxu1 %v2164_v42 }
  0x71   :  { %743 = vmatmul.mubr.bf16.gmra.mrb[24].mxu0 %v2166_v43  ;;  %871 = vmatmul.mubr.bf16.gmra.mrb[24].mxu1 %v2167_v44 }
  0x72   :  { %750 = vmatprep.mubr.bf16.mxu0 %v2168_v45  ;;  %878 = vmatprep.mubr.bf16.mxu1 %v2170_v46 }
  0x79   :  { %751 = vmatmul.mubr.bf16.gmra.mrb[28].mxu0 %v2172_v47  ;;  %879 = vmatmul.mubr.bf16.gmra.mrb[28].mxu1 %v2173_v48 }
  0x7a   :  { %758 = vmatprep.mubr.bf16.mxu0 %v2174_v49  ;;  %886 = vmatprep.mubr.bf16.mxu1 %v2176_v50 }
  0x81   :  { %759 = vmatmul.mubr.bf16.gmra.mrb[32].mxu0 %v2178_v51  ;;  %887 = vmatmul.mubr.bf16.gmra.mrb[32].mxu1 %v2179_v52 }
  0x82   :  { %766 = vmatprep.mubr.bf16.mxu0 %v2180_v53  ;;  %894 = vmatprep.mubr.bf16.mxu1 %v2182_v54 }
  0x89   :  { %767 = vmatmul.mubr.bf16.gmra.mrb[36].mxu0 %v2184_v55  ;;  %895 = vmatmul.mubr.bf16.gmra.mrb[36].mxu1 %v2185_v56 }
  0x8a   :  { %774 = vmatprep.mubr.bf16.mxu0 %v2186_v57  ;;  %902 = vmatprep.mubr.bf16.mxu1 %v2188_v58 }
  0x91   :  { %775 = vmatmul.mubr.bf16.gmra.mrb[40].mxu0 %v2190_v59  ;;  %903 = vmatmul.mubr.bf16.gmra.mrb[40].mxu1 %v2191_v60 }
  0x92   :  { %782 = vmatprep.mubr.bf16.mxu0 %v2192_v61  ;;  %910 = vmatprep.mubr.bf16.mxu1 %v2194_v62 }
  0x99   :  { %783 = vmatmul.mubr.bf16.gmra.mrb[44].mxu0 %v2196_v63  ;;  %911 = vmatmul.mubr.bf16.gmra.mrb[44].mxu1 %v2197_v0 }
  0x9a   :  { %790 = vmatprep.mubr.bf16.mxu0 %v2198_v1  ;;  %918 = vmatprep.mubr.bf16.mxu1 %v2200_v2 }
  0xa1   :  { %791 = vmatmul.mubr.bf16.gmra.mrb[48].mxu0 %v2202_v3  ;;  %919 = vmatmul.mubr.bf16.gmra.mrb[48].mxu1 %v2203_v4 }
  0xa2   :  { %798 = vmatprep.mubr.bf16.mxu0 %v2204_v5  ;;  %926 = vmatprep.mubr.bf16.mxu1 %v2206_v6 }
  0xa9   :  { %799 = vmatmul.mubr.bf16.gmra.mrb[52].mxu0 %v2208_v7  ;;  %927 = vmatmul.mubr.bf16.gmra.mrb[52].mxu1 %v2209_v8 }
  0xaa   :  { %806 = vmatprep.mubr.bf16.mxu0 %v2210_v9  ;;  %934 = vmatprep.mubr.bf16.mxu1 %v2212_v10 }
  0xb1   :  { %807 = vmatmul.mubr.bf16.gmra.mrb[56].mxu0 %v2214_v11  ;;  %935 = vmatmul.mubr.bf16.gmra.mrb[56].mxu1 %v2215_v12 }
  0xb2   :  { %814 = vmatprep.mubr.bf16.mxu0 %v2216_v13  ;;  %942 = vmatprep.mubr.bf16.mxu1 %v2218_v14 }
  0xb9   :  { %815 = vmatmul.mubr.bf16.gmra.mrb[60].mxu0 %v2220_v15  ;;  %943 = vmatmul.mubr.bf16.gmra.mrb[60].mxu1 %v2221_v16 }
 0x114   :  { %v696_v18 = vpop.f32.mrb[0].mxu0  ;;  %v824_v20 = vpop.f32.mrb[0].mxu1 }
 0x115   :  { %v1153_v21 = vmul.f32 %v2523_v17, %v696_v18  ;;  %v1185_v22 = vmul.f32 %v2523_v17, %v824_v20  ;;  %v698_v23 = vpop.f32.mrb[1].mxu0  ;;  %v826_v24 = vpop.f32.mrb[1].mxu1 }
 0x116   :  { %v699_v25 = vpop.f32.mrb[2].mxu0  ;;  %v827_v26 = vpop.f32.mrb[2].mxu1 }
 0x117   :  { %v1224_v27 = vadd.f32 %v2528_v19, %v1153_v21  ;;  %v1256_v28 = vadd.f32 %v2528_v19, %v1185_v22  ;;  %v1154_v29 = vmul.f32 %v2523_v17, %v699_v25  ;;  %v1186_v30 = vmul.f32 %v2523_v17, %v827_v26  ;;  %v701_v31 = vpop.f32.mrb[3].mxu0  ;;  %v829_v32 = vpop.f32.mrb[3].mxu1 }
 0x119   :  { %v1225_v33 = vadd.f32 %v2528_v19, %v1154_v29  ;;  %v1257_v34 = vadd.f32 %v2528_v19, %v1186_v30  ;;  %v1288_v35 = vmax.f32 %v1224_v27, 0.0  ;;  %v1320_v36 = vmax.f32 %v1256_v28, 0.0 }
 0x11b   :  { %v1289_v37 = vmax.f32 %v1225_v33, 0.0  ;;  %v1321_v38 = vmax.f32 %v1257_v34, 0.0 }
 0x11c   :  { %v704_v39 = vpop.f32.mrb[4].mxu0  ;;  %v832_v40 = vpop.f32.mrb[4].mxu1 }
 0x11d   :  { %v1889_v41 = vpack.c.bf16 %v1289_v37, %v1288_v35  ;;  %v1969_v42 = vpack.c.bf16 %v1321_v38, %v1320_v36  ;;  %v1155_v43 = vmul.f32 %v2523_v17, %v704_v39  ;;  %v1187_v44 = vmul.f32 %v2523_v17, %v832_v40  ;;  %v706_v45 = vpop.f32.mrb[5].mxu0  ;;  %v834_v46 = vpop.f32.mrb[5].mxu1 }
 0x11e   :  { %v707_v47 = vpop.f32.mrb[6].mxu0  ;;  %v835_v48 = vpop.f32.mrb[6].mxu1 }
 0x11f   :  { %1890 = vst [vmem:[%s2758_s4] sm:$0xff] %v1889_v41   ;;  %2061 = vst [vmem:[%s2758_s4 + $0x80] sm:$0xff] %v1969_v42   ;;  %v1226_v49 = vadd.f32 %v2528_v19, %v1155_v43  ;;  %v1258_v50 = vadd.f32 %v2528_v19, %v1187_v44  ;;  %v1156_v51 = vmul.f32 %v2523_v17, %v707_v47  ;;  %v709_v53 = vpop.f32.mrb[7].mxu0  ;;  %v837_v54 = vpop.f32.mrb[7].mxu1 }
 0x120   :  { %v1188_v52 = vmul.f32 %v2523_v17, %v835_v48 }
 0x121   :  { %v1227_v55 = vadd.f32 %v2528_v19, %v1156_v51  ;;  %v1290_v57 = vmax.f32 %v1226_v49, 0.0  ;;  %v1322_v58 = vmax.f32 %v1258_v50, 0.0 }
 0x122   :  { %v1259_v56 = vadd.f32 %v2528_v19, %v1188_v52 }
 0x123   :  { %v1291_v59 = vmax.f32 %v1227_v55, 0.0 }
 0x124   :  { %v1323_v60 = vmax.f32 %v1259_v56, 0.0  ;;  %v712_v61 = vpop.f32.mrb[8].mxu0  ;;  %v840_v62 = vpop.f32.mrb[8].mxu1 }
 0x125   :  { %v1894_v63 = vpack.c.bf16 %v1291_v59, %v1290_v57  ;;  %v1157_v1 = vmul.f32 %v2523_v17, %v712_v61  ;;  %v1189_v2 = vmul.f32 %v2523_v17, %v840_v62  ;;  %v714_v3 = vpop.f32.mrb[9].mxu0  ;;  %v842_v4 = vpop.f32.mrb[9].mxu1 }
 0x126   :  { %v1974_v0 = vpack.c.bf16 %v1323_v60, %v1322_v58  ;;  %v715_v5 = vpop.f32.mrb[10].mxu0  ;;  %v843_v6 = vpop.f32.mrb[10].mxu1 }
 0x127   :  { %2046 = vst [vmem:[%s2758_s4 + $0x8] sm:$0xff] %v1894_v63   ;;  %v1228_v7 = vadd.f32 %v2528_v19, %v1157_v1  ;;  %v1260_v8 = vadd.f32 %v2528_v19, %v1189_v2  ;;  %v1158_v9 = vmul.f32 %v2523_v17, %v715_v5  ;;  %v1190_v10 = vmul.f32 %v2523_v17, %v843_v6  ;;  %v717_v11 = vpop.f32.mrb[11].mxu0  ;;  %v845_v12 = vpop.f32.mrb[11].mxu1 }
 0x128   :  { %2062 = vst [vmem:[%s2758_s4 + $0x88] sm:$0xff] %v1974_v0  }
 0x129   :  { %v1229_v13 = vadd.f32 %v2528_v19, %v1158_v9  ;;  %v1261_v14 = vadd.f32 %v2528_v19, %v1190_v10  ;;  %v1292_v15 = vmax.f32 %v1228_v7, 0.0  ;;  %v1324_v16 = vmax.f32 %v1260_v8, 0.0 }
 0x12b   :  { %v1293_v18 = vmax.f32 %v1229_v13, 0.0  ;;  %v1325_v20 = vmax.f32 %v1261_v14, 0.0 }
 0x12c   :  { %v720_v21 = vpop.f32.mrb[12].mxu0  ;;  %v848_v22 = vpop.f32.mrb[12].mxu1 }
 0x12d   :  { %v1899_v23 = vpack.c.bf16 %v1293_v18, %v1292_v15  ;;  %v1979_v24 = vpack.c.bf16 %v1325_v20, %v1324_v16  ;;  %v1159_v25 = vmul.f32 %v2523_v17, %v720_v21  ;;  %v1191_v26 = vmul.f32 %v2523_v17, %v848_v22  ;;  %v722_v27 = vpop.f32.mrb[13].mxu0  ;;  %v850_v28 = vpop.f32.mrb[13].mxu1 }
 0x12e   :  { %v723_v29 = vpop.f32.mrb[14].mxu0  ;;  %v851_v30 = vpop.f32.mrb[14].mxu1 }
 0x12f   :  { %2047 = vst [vmem:[%s2758_s4 + $0x10] sm:$0xff] %v1899_v23   ;;  %2063 = vst [vmem:[%s2758_s4 + $0x90] sm:$0xff] %v1979_v24   ;;  %v1230_v31 = vadd.f32 %v2528_v19, %v1159_v25  ;;  %v1262_v32 = vadd.f32 %v2528_v19, %v1191_v26  ;;  %v1160_v33 = vmul.f32 %v2523_v17, %v723_v29  ;;  %v725_v35 = vpop.f32.mrb[15].mxu0  ;;  %v853_v36 = vpop.f32.mrb[15].mxu1 }
 0x130   :  { %v1192_v34 = vmul.f32 %v2523_v17, %v851_v30 }
 0x131   :  { %v1231_v37 = vadd.f32 %v2528_v19, %v1160_v33  ;;  %v1294_v39 = vmax.f32 %v1230_v31, 0.0  ;;  %v1326_v40 = vmax.f32 %v1262_v32, 0.0 }
 0x132   :  { %v1263_v38 = vadd.f32 %v2528_v19, %v1192_v34 }
 0x133   :  { %v1295_v41 = vmax.f32 %v1231_v37, 0.0 }
 0x134   :  { %v1327_v42 = vmax.f32 %v1263_v38, 0.0  ;;  %v728_v43 = vpop.f32.mrb[16].mxu0  ;;  %v856_v44 = vpop.f32.mrb[16].mxu1 }
 0x135   :  { %v1904_v45 = vpack.c.bf16 %v1295_v41, %v1294_v39  ;;  %v1161_v47 = vmul.f32 %v2523_v17, %v728_v43  ;;  %v1193_v48 = vmul.f32 %v2523_v17, %v856_v44  ;;  %v730_v49 = vpop.f32.mrb[17].mxu0  ;;  %v858_v50 = vpop.f32.mrb[17].mxu1 }
 0x136   :  { %v1984_v46 = vpack.c.bf16 %v1327_v42, %v1326_v40  ;;  %v731_v51 = vpop.f32.mrb[18].mxu0  ;;  %v859_v52 = vpop.f32.mrb[18].mxu1 }
 0x137   :  { %2048 = vst [vmem:[%s2758_s4 + $0x18] sm:$0xff] %v1904_v45   ;;  %v1232_v53 = vadd.f32 %v2528_v19, %v1161_v47  ;;  %v1264_v54 = vadd.f32 %v2528_v19, %v1193_v48  ;;  %v1162_v55 = vmul.f32 %v2523_v17, %v731_v51  ;;  %v1194_v56 = vmul.f32 %v2523_v17, %v859_v52  ;;  %v733_v57 = vpop.f32.mrb[19].mxu0  ;;  %v861_v58 = vpop.f32.mrb[19].mxu1 }
 0x138   :  { %2064 = vst [vmem:[%s2758_s4 + $0x98] sm:$0xff] %v1984_v46  }
 0x139   :  { %v1233_v59 = vadd.f32 %v2528_v19, %v1162_v55  ;;  %v1265_v60 = vadd.f32 %v2528_v19, %v1194_v56  ;;  %v1296_v61 = vmax.f32 %v1232_v53, 0.0  ;;  %v1328_v62 = vmax.f32 %v1264_v54, 0.0 }
 0x13b   :  { %v1297_v63 = vmax.f32 %v1233_v59, 0.0  ;;  %v1329_v0 = vmax.f32 %v1265_v60, 0.0 }
 0x13c   :  { %v736_v1 = vpop.f32.mrb[20].mxu0  ;;  %v864_v2 = vpop.f32.mrb[20].mxu1 }
 0x13d   :  { %v1909_v3 = vpack.c.bf16 %v1297_v63, %v1296_v61  ;;  %v1989_v4 = vpack.c.bf16 %v1329_v0, %v1328_v62  ;;  %v1163_v5 = vmul.f32 %v2523_v17, %v736_v1  ;;  %v1195_v6 = vmul.f32 %v2523_v17, %v864_v2  ;;  %v738_v7 = vpop.f32.mrb[21].mxu0  ;;  %v866_v8 = vpop.f32.mrb[21].mxu1 }
 0x13e   :  { %v739_v9 = vpop.f32.mrb[22].mxu0  ;;  %v867_v10 = vpop.f32.mrb[22].mxu1 }
 0x13f   :  { %2049 = vst [vmem:[%s2758_s4 + $0x20] sm:$0xff] %v1909_v3   ;;  %2065 = vst [vmem:[%s2758_s4 + $0xa0] sm:$0xff] %v1989_v4   ;;  %v1234_v11 = vadd.f32 %v2528_v19, %v1163_v5  ;;  %v1266_v12 = vadd.f32 %v2528_v19, %v1195_v6  ;;  %v1164_v13 = vmul.f32 %v2523_v17, %v739_v9  ;;  %v741_v15 = vpop.f32.mrb[23].mxu0  ;;  %v869_v16 = vpop.f32.mrb[23].mxu1 }
 0x140   :  { %v1196_v14 = vmul.f32 %v2523_v17, %v867_v10 }
 0x141   :  { %v1235_v18 = vadd.f32 %v2528_v19, %v1164_v13  ;;  %v1298_v21 = vmax.f32 %v1234_v11, 0.0  ;;  %v1330_v22 = vmax.f32 %v1266_v12, 0.0 }
 0x142   :  { %v1267_v20 = vadd.f32 %v2528_v19, %v1196_v14 }
 0x143   :  { %v1299_v23 = vmax.f32 %v1235_v18, 0.0 }
 0x144   :  { %v1331_v24 = vmax.f32 %v1267_v20, 0.0  ;;  %v744_v25 = vpop.f32.mrb[24].mxu0  ;;  %v872_v26 = vpop.f32.mrb[24].mxu1 }
 0x145   :  { %v1914_v27 = vpack.c.bf16 %v1299_v23, %v1298_v21  ;;  %v1165_v29 = vmul.f32 %v2523_v17, %v744_v25  ;;  %v1197_v30 = vmul.f32 %v2523_v17, %v872_v26  ;;  %v746_v31 = vpop.f32.mrb[25].mxu0  ;;  %v874_v32 = vpop.f32.mrb[25].mxu1 }
 0x146   :  { %v1994_v28 = vpack.c.bf16 %v1331_v24, %v1330_v22  ;;  %v747_v33 = vpop.f32.mrb[26].mxu0  ;;  %v875_v34 = vpop.f32.mrb[26].mxu1 }
 0x147   :  { %2050 = vst [vmem:[%s2758_s4 + $0x28] sm:$0xff] %v1914_v27   ;;  %v1236_v35 = vadd.f32 %v2528_v19, %v1165_v29  ;;  %v1268_v36 = vadd.f32 %v2528_v19, %v1197_v30  ;;  %v1166_v37 = vmul.f32 %v2523_v17, %v747_v33  ;;  %v1198_v38 = vmul.f32 %v2523_v17, %v875_v34  ;;  %v749_v39 = vpop.f32.mrb[27].mxu0  ;;  %v877_v40 = vpop.f32.mrb[27].mxu1 }
 0x148   :  { %2066 = vst [vmem:[%s2758_s4 + $0xa8] sm:$0xff] %v1994_v28  }
 0x149   :  { %v1237_v41 = vadd.f32 %v2528_v19, %v1166_v37  ;;  %v1269_v42 = vadd.f32 %v2528_v19, %v1198_v38  ;;  %v1300_v43 = vmax.f32 %v1236_v35, 0.0  ;;  %v1332_v44 = vmax.f32 %v1268_v36, 0.0 }
 0x14b   :  { %v1301_v45 = vmax.f32 %v1237_v41, 0.0  ;;  %v1333_v46 = vmax.f32 %v1269_v42, 0.0 }
 0x14c   :  { %v752_v47 = vpop.f32.mrb[28].mxu0  ;;  %v880_v48 = vpop.f32.mrb[28].mxu1 }
 0x14d   :  { %v1919_v49 = vpack.c.bf16 %v1301_v45, %v1300_v43  ;;  %v1999_v50 = vpack.c.bf16 %v1333_v46, %v1332_v44  ;;  %v1167_v51 = vmul.f32 %v2523_v17, %v752_v47  ;;  %v1199_v52 = vmul.f32 %v2523_v17, %v880_v48  ;;  %v754_v53 = vpop.f32.mrb[29].mxu0  ;;  %v882_v54 = vpop.f32.mrb[29].mxu1 }
 0x14e   :  { %v755_v55 = vpop.f32.mrb[30].mxu0  ;;  %v883_v56 = vpop.f32.mrb[30].mxu1 }
 0x14f   :  { %2051 = vst [vmem:[%s2758_s4 + $0x30] sm:$0xff] %v1919_v49   ;;  %2067 = vst [vmem:[%s2758_s4 + $0xb0] sm:$0xff] %v1999_v50   ;;  %v1238_v57 = vadd.f32 %v2528_v19, %v1167_v51  ;;  %v1270_v58 = vadd.f32 %v2528_v19, %v1199_v52  ;;  %v1168_v59 = vmul.f32 %v2523_v17, %v755_v55  ;;  %v757_v61 = vpop.f32.mrb[31].mxu0  ;;  %v885_v62 = vpop.f32.mrb[31].mxu1 }
 0x150   :  { %v1200_v60 = vmul.f32 %v2523_v17, %v883_v56 }
 0x151   :  { %v1239_v63 = vadd.f32 %v2528_v19, %v1168_v59  ;;  %v1302_v1 = vmax.f32 %v1238_v57, 0.0  ;;  %v1334_v2 = vmax.f32 %v1270_v58, 0.0 }
 0x152   :  { %v1271_v0 = vadd.f32 %v2528_v19, %v1200_v60 }
 0x153   :  { %v1303_v3 = vmax.f32 %v1239_v63, 0.0 }
 0x154   :  { %v1335_v4 = vmax.f32 %v1271_v0, 0.0  ;;  %v760_v5 = vpop.f32.mrb[32].mxu0  ;;  %v888_v6 = vpop.f32.mrb[32].mxu1 }
 0x155   :  { %v1924_v7 = vpack.c.bf16 %v1303_v3, %v1302_v1  ;;  %v1169_v9 = vmul.f32 %v2523_v17, %v760_v5  ;;  %v1201_v10 = vmul.f32 %v2523_v17, %v888_v6  ;;  %v762_v11 = vpop.f32.mrb[33].mxu0  ;;  %v890_v12 = vpop.f32.mrb[33].mxu1 }
 0x156   :  { %v2004_v8 = vpack.c.bf16 %v1335_v4, %v1334_v2  ;;  %v763_v13 = vpop.f32.mrb[34].mxu0  ;;  %v891_v14 = vpop.f32.mrb[34].mxu1 }
 0x157   :  { %2052 = vst [vmem:[%s2758_s4 + $0x38] sm:$0xff] %v1924_v7   ;;  %v1240_v15 = vadd.f32 %v2528_v19, %v1169_v9  ;;  %v1272_v16 = vadd.f32 %v2528_v19, %v1201_v10  ;;  %v1170_v18 = vmul.f32 %v2523_v17, %v763_v13  ;;  %v1202_v20 = vmul.f32 %v2523_v17, %v891_v14  ;;  %v765_v21 = vpop.f32.mrb[35].mxu0  ;;  %v893_v22 = vpop.f32.mrb[35].mxu1 }
 0x158   :  { %2068 = vst [vmem:[%s2758_s4 + $0xb8] sm:$0xff] %v2004_v8  }
 0x159   :  { %v1241_v23 = vadd.f32 %v2528_v19, %v1170_v18  ;;  %v1273_v24 = vadd.f32 %v2528_v19, %v1202_v20  ;;  %v1304_v25 = vmax.f32 %v1240_v15, 0.0  ;;  %v1336_v26 = vmax.f32 %v1272_v16, 0.0 }
 0x15b   :  { %v1305_v27 = vmax.f32 %v1241_v23, 0.0  ;;  %v1337_v28 = vmax.f32 %v1273_v24, 0.0 }
 0x15c   :  { %v768_v29 = vpop.f32.mrb[36].mxu0  ;;  %v896_v30 = vpop.f32.mrb[36].mxu1 }
 0x15d   :  { %v1929_v31 = vpack.c.bf16 %v1305_v27, %v1304_v25  ;;  %v2009_v32 = vpack.c.bf16 %v1337_v28, %v1336_v26  ;;  %v1171_v33 = vmul.f32 %v2523_v17, %v768_v29  ;;  %v1203_v34 = vmul.f32 %v2523_v17, %v896_v30  ;;  %v770_v35 = vpop.f32.mrb[37].mxu0  ;;  %v898_v36 = vpop.f32.mrb[37].mxu1 }
 0x15e   :  { %v771_v37 = vpop.f32.mrb[38].mxu0  ;;  %v899_v38 = vpop.f32.mrb[38].mxu1 }
 0x15f   :  { %2053 = vst [vmem:[%s2758_s4 + $0x40] sm:$0xff] %v1929_v31   ;;  %2069 = vst [vmem:[%s2758_s4 + $0xc0] sm:$0xff] %v2009_v32   ;;  %v1242_v39 = vadd.f32 %v2528_v19, %v1171_v33  ;;  %v1274_v40 = vadd.f32 %v2528_v19, %v1203_v34  ;;  %v1172_v41 = vmul.f32 %v2523_v17, %v771_v37  ;;  %v773_v43 = vpop.f32.mrb[39].mxu0  ;;  %v901_v44 = vpop.f32.mrb[39].mxu1 }
 0x160   :  { %v1204_v42 = vmul.f32 %v2523_v17, %v899_v38 }
 0x161   :  { %v1243_v45 = vadd.f32 %v2528_v19, %v1172_v41  ;;  %v1306_v47 = vmax.f32 %v1242_v39, 0.0  ;;  %v1338_v48 = vmax.f32 %v1274_v40, 0.0 }
 0x162   :  { %v1275_v46 = vadd.f32 %v2528_v19, %v1204_v42 }
 0x163   :  { %v1307_v49 = vmax.f32 %v1243_v45, 0.0 }
 0x164   :  { %v1339_v50 = vmax.f32 %v1275_v46, 0.0  ;;  %v776_v51 = vpop.f32.mrb[40].mxu0  ;;  %v904_v52 = vpop.f32.mrb[40].mxu1 }
 0x165   :  { %v1934_v53 = vpack.c.bf16 %v1307_v49, %v1306_v47  ;;  %v1173_v55 = vmul.f32 %v2523_v17, %v776_v51  ;;  %v1205_v56 = vmul.f32 %v2523_v17, %v904_v52  ;;  %v778_v57 = vpop.f32.mrb[41].mxu0  ;;  %v906_v58 = vpop.f32.mrb[41].mxu1 }
 0x166   :  { %v2014_v54 = vpack.c.bf16 %v1339_v50, %v1338_v48  ;;  %v779_v59 = vpop.f32.mrb[42].mxu0  ;;  %v907_v60 = vpop.f32.mrb[42].mxu1 }
 0x167   :  { %2054 = vst [vmem:[%s2758_s4 + $0x48] sm:$0xff] %v1934_v53   ;;  %v1244_v61 = vadd.f32 %v2528_v19, %v1173_v55  ;;  %v1276_v62 = vadd.f32 %v2528_v19, %v1205_v56  ;;  %v1174_v63 = vmul.f32 %v2523_v17, %v779_v59  ;;  %v1206_v0 = vmul.f32 %v2523_v17, %v907_v60  ;;  %v781_v1 = vpop.f32.mrb[43].mxu0  ;;  %v909_v2 = vpop.f32.mrb[43].mxu1 }
 0x168   :  { %2070 = vst [vmem:[%s2758_s4 + $0xc8] sm:$0xff] %v2014_v54  }
 0x169   :  { %v1245_v3 = vadd.f32 %v2528_v19, %v1174_v63  ;;  %v1277_v4 = vadd.f32 %v2528_v19, %v1206_v0  ;;  %v1308_v5 = vmax.f32 %v1244_v61, 0.0  ;;  %v1340_v6 = vmax.f32 %v1276_v62, 0.0 }
 0x16b   :  { %v1309_v7 = vmax.f32 %v1245_v3, 0.0  ;;  %v1341_v8 = vmax.f32 %v1277_v4, 0.0 }
 0x16c   :  { %v784_v9 = vpop.f32.mrb[44].mxu0  ;;  %v912_v10 = vpop.f32.mrb[44].mxu1 }
 0x16d   :  { %v1939_v11 = vpack.c.bf16 %v1309_v7, %v1308_v5  ;;  %v2019_v12 = vpack.c.bf16 %v1341_v8, %v1340_v6  ;;  %v1175_v13 = vmul.f32 %v2523_v17, %v784_v9  ;;  %v1207_v14 = vmul.f32 %v2523_v17, %v912_v10  ;;  %v786_v15 = vpop.f32.mrb[45].mxu0  ;;  %v914_v16 = vpop.f32.mrb[45].mxu1 }
 0x16e   :  { %v787_v18 = vpop.f32.mrb[46].mxu0  ;;  %v915_v20 = vpop.f32.mrb[46].mxu1 }
 0x16f   :  { %2055 = vst [vmem:[%s2758_s4 + $0x50] sm:$0xff] %v1939_v11   ;;  %2071 = vst [vmem:[%s2758_s4 + $0xd0] sm:$0xff] %v2019_v12   ;;  %v1246_v21 = vadd.f32 %v2528_v19, %v1175_v13  ;;  %v1278_v22 = vadd.f32 %v2528_v19, %v1207_v14  ;;  %v1176_v23 = vmul.f32 %v2523_v17, %v787_v18  ;;  %v789_v25 = vpop.f32.mrb[47].mxu0  ;;  %v917_v26 = vpop.f32.mrb[47].mxu1 }
 0x170   :  { %v1208_v24 = vmul.f32 %v2523_v17, %v915_v20 }
 0x171   :  { %v1247_v27 = vadd.f32 %v2528_v19, %v1176_v23  ;;  %v1310_v29 = vmax.f32 %v1246_v21, 0.0  ;;  %v1342_v30 = vmax.f32 %v1278_v22, 0.0 }
 0x172   :  { %v1279_v28 = vadd.f32 %v2528_v19, %v1208_v24 }
 0x173   :  { %v1311_v31 = vmax.f32 %v1247_v27, 0.0 }
 0x174   :  { %v1343_v32 = vmax.f32 %v1279_v28, 0.0  ;;  %v792_v33 = vpop.f32.mrb[48].mxu0  ;;  %v920_v34 = vpop.f32.mrb[48].mxu1 }
 0x175   :  { %v1944_v35 = vpack.c.bf16 %v1311_v31, %v1310_v29  ;;  %v1177_v37 = vmul.f32 %v2523_v17, %v792_v33  ;;  %v1209_v38 = vmul.f32 %v2523_v17, %v920_v34  ;;  %v794_v39 = vpop.f32.mrb[49].mxu0  ;;  %v922_v40 = vpop.f32.mrb[49].mxu1 }
 0x176   :  { %v2024_v36 = vpack.c.bf16 %v1343_v32, %v1342_v30  ;;  %v795_v41 = vpop.f32.mrb[50].mxu0  ;;  %v923_v42 = vpop.f32.mrb[50].mxu1 }
 0x177   :  { %2056 = vst [vmem:[%s2758_s4 + $0x58] sm:$0xff] %v1944_v35   ;;  %v1248_v43 = vadd.f32 %v2528_v19, %v1177_v37  ;;  %v1280_v44 = vadd.f32 %v2528_v19, %v1209_v38  ;;  %v1178_v45 = vmul.f32 %v2523_v17, %v795_v41  ;;  %v1210_v46 = vmul.f32 %v2523_v17, %v923_v42  ;;  %v797_v47 = vpop.f32.mrb[51].mxu0  ;;  %v925_v48 = vpop.f32.mrb[51].mxu1 }
 0x178   :  { %2072 = vst [vmem:[%s2758_s4 + $0xd8] sm:$0xff] %v2024_v36  }
 0x179   :  { %v1249_v49 = vadd.f32 %v2528_v19, %v1178_v45  ;;  %v1281_v50 = vadd.f32 %v2528_v19, %v1210_v46  ;;  %v1312_v51 = vmax.f32 %v1248_v43, 0.0  ;;  %v1344_v52 = vmax.f32 %v1280_v44, 0.0 }
 0x17b   :  { %v1313_v53 = vmax.f32 %v1249_v49, 0.0  ;;  %v1345_v54 = vmax.f32 %v1281_v50, 0.0 }
 0x17c   :  { %v800_v55 = vpop.f32.mrb[52].mxu0  ;;  %v928_v56 = vpop.f32.mrb[52].mxu1 }
 0x17d   :  { %v1949_v57 = vpack.c.bf16 %v1313_v53, %v1312_v51  ;;  %v2029_v58 = vpack.c.bf16 %v1345_v54, %v1344_v52  ;;  %v1179_v59 = vmul.f32 %v2523_v17, %v800_v55  ;;  %v1211_v60 = vmul.f32 %v2523_v17, %v928_v56  ;;  %v802_v61 = vpop.f32.mrb[53].mxu0  ;;  %v930_v62 = vpop.f32.mrb[53].mxu1 }
 0x17e   :  { %v803_v63 = vpop.f32.mrb[54].mxu0  ;;  %v931_v0 = vpop.f32.mrb[54].mxu1 }
 0x17f   :  { %2057 = vst [vmem:[%s2758_s4 + $0x60] sm:$0xff] %v1949_v57   ;;  %2073 = vst [vmem:[%s2758_s4 + $0xe0] sm:$0xff] %v2029_v58   ;;  %v1250_v1 = vadd.f32 %v2528_v19, %v1179_v59  ;;  %v1282_v2 = vadd.f32 %v2528_v19, %v1211_v60  ;;  %v1180_v3 = vmul.f32 %v2523_v17, %v803_v63  ;;  %v805_v5 = vpop.f32.mrb[55].mxu0  ;;  %v933_v6 = vpop.f32.mrb[55].mxu1 }
 0x180   :  { %v1212_v4 = vmul.f32 %v2523_v17, %v931_v0 }
 0x181   :  { %v1251_v7 = vadd.f32 %v2528_v19, %v1180_v3  ;;  %v1314_v9 = vmax.f32 %v1250_v1, 0.0  ;;  %v1346_v10 = vmax.f32 %v1282_v2, 0.0 }
 0x182   :  { %v1283_v8 = vadd.f32 %v2528_v19, %v1212_v4 }
 0x183   :  { %v1315_v11 = vmax.f32 %v1251_v7, 0.0 }
 0x184   :  { %v1347_v12 = vmax.f32 %v1283_v8, 0.0  ;;  %v808_v13 = vpop.f32.mrb[56].mxu0  ;;  %v936_v14 = vpop.f32.mrb[56].mxu1 }
 0x185   :  { %v1954_v15 = vpack.c.bf16 %v1315_v11, %v1314_v9  ;;  %v1181_v18 = vmul.f32 %v2523_v17, %v808_v13  ;;  %v1213_v20 = vmul.f32 %v2523_v17, %v936_v14  ;;  %v810_v21 = vpop.f32.mrb[57].mxu0  ;;  %v938_v22 = vpop.f32.mrb[57].mxu1 }
 0x186   :  { %v2034_v16 = vpack.c.bf16 %v1347_v12, %v1346_v10  ;;  %v811_v23 = vpop.f32.mrb[58].mxu0  ;;  %v939_v24 = vpop.f32.mrb[58].mxu1 }
 0x187   :  { %2058 = vst [vmem:[%s2758_s4 + $0x68] sm:$0xff] %v1954_v15   ;;  %v1252_v25 = vadd.f32 %v2528_v19, %v1181_v18  ;;  %v1284_v26 = vadd.f32 %v2528_v19, %v1213_v20  ;;  %v1182_v27 = vmul.f32 %v2523_v17, %v811_v23  ;;  %v1214_v28 = vmul.f32 %v2523_v17, %v939_v24  ;;  %v813_v29 = vpop.f32.mrb[59].mxu0  ;;  %v941_v30 = vpop.f32.mrb[59].mxu1 }
 0x188   :  { %2074 = vst [vmem:[%s2758_s4 + $0xe8] sm:$0xff] %v2034_v16  }
 0x189   :  { %v1253_v31 = vadd.f32 %v2528_v19, %v1182_v27  ;;  %v1285_v32 = vadd.f32 %v2528_v19, %v1214_v28  ;;  %v1316_v33 = vmax.f32 %v1252_v25, 0.0  ;;  %v1348_v34 = vmax.f32 %v1284_v26, 0.0 }
 0x18b   :  { %v1317_v35 = vmax.f32 %v1253_v31, 0.0  ;;  %v1349_v36 = vmax.f32 %v1285_v32, 0.0 }
 0x18c   :  { %v816_v37 = vpop.f32.mrb[60].mxu0  ;;  %v944_v38 = vpop.f32.mrb[60].mxu1 }
 0x18d   :  { %v1959_v39 = vpack.c.bf16 %v1317_v35, %v1316_v33  ;;  %v2039_v40 = vpack.c.bf16 %v1349_v36, %v1348_v34  ;;  %v1183_v41 = vmul.f32 %v2523_v17, %v816_v37  ;;  %v1215_v42 = vmul.f32 %v2523_v17, %v944_v38  ;;  %v818_v43 = vpop.f32.mrb[61].mxu0  ;;  %v946_v44 = vpop.f32.mrb[61].mxu1 }
 0x18e   :  { %v819_v45 = vpop.f32.mrb[62].mxu0  ;;  %v947_v46 = vpop.f32.mrb[62].mxu1 }
 0x18f   :  { %2059 = vst [vmem:[%s2758_s4 + $0x70] sm:$0xff] %v1959_v39   ;;  %2075 = vst [vmem:[%s2758_s4 + $0xf0] sm:$0xff] %v2039_v40   ;;  %v1254_v47 = vadd.f32 %v2528_v19, %v1183_v41  ;;  %v1286_v48 = vadd.f32 %v2528_v19, %v1215_v42  ;;  %v1184_v49 = vmul.f32 %v2523_v17, %v819_v45  ;;  %v821_v51 = vpop.f32.mrb[63].mxu0  ;;  %v949_v52 = vpop.f32.mrb[63].mxu1 }
 0x190   :  { %v1216_v50 = vmul.f32 %v2523_v17, %v947_v46 }
 0x191   :  { %v1255_v53 = vadd.f32 %v2528_v19, %v1184_v49  ;;  %v1318_v55 = vmax.f32 %v1254_v47, 0.0  ;;  %v1350_v56 = vmax.f32 %v1286_v48, 0.0 }
 0x192   :  { %v1287_v54 = vadd.f32 %v2528_v19, %v1216_v50 }
 0x193   :  { %v1319_v57 = vmax.f32 %v1255_v53, 0.0 }
 0x194   :  { %v1351_v58 = vmax.f32 %v1287_v54, 0.0 }
 0x195   :  { %v1964_v59 = vpack.c.bf16 %v1319_v57, %v1318_v55 }
 0x196   :  { %v2044_v60 = vpack.c.bf16 %v1351_v58, %v1350_v56 }
 0x197   :  { %2060 = vst [vmem:[%s2758_s4 + $0x78] sm:$0xff] %v1964_v59  }
 0x198   :  { %2076 = vst [vmem:[%s2758_s4 + $0xf8] sm:$0xff] %v2044_v60  }

// kernel: base_resnet18_forward.25
= control target key start
LH: loop header
LB: loop body
LE: loop exit
PB: predicated region body
PF: predicated region fallthrough
CT: control target
= control target key end

     0   :  { %vm288_vm0 = vcmask 519168   ;;  %s943_s0 = inlined_call_operand.vmem [shape: bf16[9,128,64], index: 0, kind: input, shape index: {}]   ;;  %s944_s1 = inlined_call_operand.vmem [shape: bf16[128,64], index: 1, kind: output, shape index: {}]  }
   0x1   :  { %v8_v0 = vld [vmem:[%s943_s0] sm:$0xf]  ;;  %v9_v6 = vld [vmem:[%s943_s0 + $0x4] sm:$0xf]  ;;  %v10_v15 = vld [vmem:[%s943_s0 + $0x8] sm:$0xf] }
   0x2   :  { %v309_v1 = vld [vmem:[%s943_s0 + $0x40] sm:$0xf]  ;;  %v310_v7 = vld [vmem:[%s943_s0 + $0x44] sm:$0xf]  ;;  %v311_v16 = vld [vmem:[%s943_s0 + $0x48] sm:$0xf] }
   0x3   :  { %v325_v2 = vld [vmem:[%s943_s0 + $0x80] sm:$0xf]  ;;  %v41_v3 = vmax.bf16 %v309_v1, %v8_v0  ;;  %v326_v8 = vld [vmem:[%s943_s0 + $0x84] sm:$0xf]  ;;  %v42_v10 = vmax.bf16 %v310_v7, %v9_v6  ;;  %v327_v17 = vld [vmem:[%s943_s0 + $0x88] sm:$0xf]  ;;  %v43_v20 = vmax.bf16 %v311_v16, %v10_v15 }
   0x4   :  { %v341_v4 = vld [vmem:[%s943_s0 + $0xc0] sm:$0xf]  ;;  %v342_v13 = vld [vmem:[%s943_s0 + $0xc4] sm:$0xf]  ;;  %v343_v24 = vld [vmem:[%s943_s0 + $0xc8] sm:$0xf] }
   0x5   :  { %v74_v5 = vmax.bf16 %v325_v2, %v41_v3  ;;  %v357_v9 = vld [vmem:[%s943_s0 + $0x100] sm:$0xf]  ;;  %v75_v14 = vmax.bf16 %v326_v8, %v42_v10  ;;  %v358_v19 = vld [vmem:[%s943_s0 + $0x104] sm:$0xf]  ;;  %v76_v26 = vmax.bf16 %v327_v17, %v43_v20  ;;  %v11_v27 = vld [vmem:[%s943_s0 + $0xc] sm:$0xf] }
   0x6   :  { %v373_v12 = vld [vmem:[%s943_s0 + $0x140] sm:$0xf]  ;;  %v374_v23 = vld [vmem:[%s943_s0 + $0x144] sm:$0xf]  ;;  %v312_v28 = vld [vmem:[%s943_s0 + $0x4c] sm:$0xf] }
   0x7   :  { %v107_v11 = vmax.bf16 %v341_v4, %v74_v5  ;;  %v389_v21 = vld [vmem:[%s943_s0 + $0x180] sm:$0xf]  ;;  %v108_v22 = vmax.bf16 %v342_v13, %v75_v14  ;;  %v328_v29 = vld [vmem:[%s943_s0 + $0x8c] sm:$0xf]  ;;  %v359_v33 = vld [vmem:[%s943_s0 + $0x108] sm:$0xf]  ;;  %v44_v34 = vmax.bf16 %v312_v28, %v11_v27  ;;  %v109_v37 = vmax.bf16 %v343_v24, %v76_v26 }
   0x8   :  { %v405_v30 = vld [vmem:[%s943_s0 + $0x1c0] sm:$0xf]  ;;  %v390_v36 = vld [vmem:[%s943_s0 + $0x184] sm:$0xf]  ;;  %v375_v38 = vld [vmem:[%s943_s0 + $0x148] sm:$0xf] }
   0x9   :  { %v140_v18 = vmax.bf16 %v357_v9, %v107_v11  ;;  %v421_v31 = vld [vmem:[%s943_s0 + $0x200] sm:$0xf]  ;;  %v141_v32 = vmax.bf16 %v358_v19, %v108_v22  ;;  %v344_v39 = vld [vmem:[%s943_s0 + $0xcc] sm:$0xf]  ;;  %v77_v41 = vmax.bf16 %v328_v29, %v44_v34  ;;  %v12_v42 = vld [vmem:[%s943_s0 + $0x10] sm:$0xf]  ;;  %v142_v48 = vmax.bf16 %v359_v33, %v109_v37 }
   0xa   :  { %v313_v43 = vld [vmem:[%s943_s0 + $0x50] sm:$0xf]  ;;  %v406_v46 = vld [vmem:[%s943_s0 + $0x1c4] sm:$0xf]  ;;  %v360_v49 = vld [vmem:[%s943_s0 + $0x10c] sm:$0xf] }
   0xb   :  { %v173_v25 = vmax.bf16 %v373_v12, %v140_v18  ;;  %v174_v40 = vmax.bf16 %v374_v23, %v141_v32  ;;  %v329_v44 = vld [vmem:[%s943_s0 + $0x90] sm:$0xf]  ;;  %v422_v47 = vld [vmem:[%s943_s0 + $0x204] sm:$0xf]  ;;  %v45_v50 = vmax.bf16 %v313_v43, %v12_v42  ;;  %v391_v52 = vld [vmem:[%s943_s0 + $0x188] sm:$0xf]  ;;  %v110_v53 = vmax.bf16 %v344_v39, %v77_v41 }
   0xc   :  { %v376_v54 = vld [vmem:[%s943_s0 + $0x14c] sm:$0xf]  ;;  %v345_v55 = vld [vmem:[%s943_s0 + $0xd0] sm:$0xf]  ;;  %v175_v57 = vmax.bf16 %v375_v38, %v142_v48  ;;  %v13_v59 = vld [vmem:[%s943_s0 + $0x14] sm:$0xf] }
   0xd   :  { %v206_v35 = vmax.bf16 %v389_v21, %v173_v25  ;;  %v207_v51 = vmax.bf16 %v390_v36, %v174_v40  ;;  %v78_v58 = vmax.bf16 %v329_v44, %v45_v50  ;;  %v314_v60 = vld [vmem:[%s943_s0 + $0x54] sm:$0xf]  ;;  %v407_v63 = vld [vmem:[%s943_s0 + $0x1c8] sm:$0xf]  ;;  %v143_v1 = vmax.bf16 %v360_v49, %v110_v53  ;;  %v361_v2 = vld [vmem:[%s943_s0 + $0x110] sm:$0xf] }
   0xe   :  { %v330_v61 = vld [vmem:[%s943_s0 + $0x94] sm:$0xf]  ;;  %v423_v0 = vld [vmem:[%s943_s0 + $0x208] sm:$0xf]  ;;  %v46_v3 = vmax.bf16 %v314_v60, %v13_v59  ;;  %v208_v4 = vmax.bf16 %v391_v52, %v175_v57  ;;  %v392_v5 = vld [vmem:[%s943_s0 + $0x18c] sm:$0xf] }
   0xf   :  { %v239_v45 = vmax.bf16 %v405_v30, %v206_v35  ;;  %v240_v62 = vmax.bf16 %v406_v46, %v207_v51  ;;  %v111_v6 = vmax.bf16 %v345_v55, %v78_v58  ;;  %v377_v7 = vld [vmem:[%s943_s0 + $0x150] sm:$0xf]  ;;  %v346_v8 = vld [vmem:[%s943_s0 + $0xd4] sm:$0xf]  ;;  %v176_v10 = vmax.bf16 %v376_v54, %v143_v1  ;;  %v14_v12 = vld [vmem:[%s943_s0 + $0x18] sm:$0xf] }
  0x10   :  { %v79_v11 = vmax.bf16 %v330_v61, %v46_v3  ;;  %v315_v13 = vld [vmem:[%s943_s0 + $0x58] sm:$0xf]  ;;  %v241_v15 = vmax.bf16 %v407_v63, %v208_v4  ;;  %v408_v16 = vld [vmem:[%s943_s0 + $0x1cc] sm:$0xf]  ;;  %v362_v19 = vld [vmem:[%s943_s0 + $0x114] sm:$0xf] }
  0x11   :  { %v272_v56 = vmax.bf16 %v421_v31, %v239_v45  ;;  %v273_v9 = vmax.bf16 %v422_v47, %v240_v62  ;;  %v331_v14 = vld [vmem:[%s943_s0 + $0x98] sm:$0xf]  ;;  %v424_v17 = vld [vmem:[%s943_s0 + $0x20c] sm:$0xf]  ;;  %v144_v18 = vmax.bf16 %v361_v2, %v111_v6  ;;  %v47_v20 = vmax.bf16 %v315_v13, %v14_v12  ;;  %v393_v22 = vld [vmem:[%s943_s0 + $0x190] sm:$0xf] }
  0x12   :  { %v209_v21 = vmax.bf16 %v392_v5, %v176_v10  ;;  %v112_v23 = vmax.bf16 %v346_v8, %v79_v11  ;;  %v378_v24 = vld [vmem:[%s943_s0 + $0x154] sm:$0xf]  ;;  %v347_v25 = vld [vmem:[%s943_s0 + $0xd8] sm:$0xf]  ;;  %v274_v26 = vmax.bf16 %v423_v0, %v241_v15  ;;  %v15_v29 = vld [vmem:[%s943_s0 + $0x1c] sm:$0xf] }
  0x13   :  { %289 = vst.msk [vmem:[%s944_s1] sm:$0xf] %vm288_vm0, %v272_v56  ;;  %290 = vst.msk [vmem:[%s944_s1 + $0x4] sm:$0xf] %vm288_vm0, %v273_v9  ;;  %v177_v27 = vmax.bf16 %v377_v7, %v144_v18  ;;  %v80_v28 = vmax.bf16 %v331_v14, %v47_v20  ;;  %v316_v30 = vld [vmem:[%s943_s0 + $0x5c] sm:$0xf] }
  0x14   :  { %v332_v31 = vld [vmem:[%s943_s0 + $0x9c] sm:$0xf]  ;;  %v242_v32 = vmax.bf16 %v408_v16, %v209_v21  ;;  %v409_v33 = vld [vmem:[%s943_s0 + $0x1d0] sm:$0xf]  ;;  %v145_v35 = vmax.bf16 %v362_v19, %v112_v23  ;;  %v363_v36 = vld [vmem:[%s943_s0 + $0x118] sm:$0xf]  ;;  %v48_v37 = vmax.bf16 %v316_v30, %v15_v29 }
  0x15   :  { %v425_v34 = vld [vmem:[%s943_s0 + $0x210] sm:$0xf]  ;;  %291 = vst.msk [vmem:[%s944_s1 + $0x8] sm:$0xf] %vm288_vm0, %v274_v26  ;;  %v210_v38 = vmax.bf16 %v393_v22, %v177_v27  ;;  %v394_v39 = vld [vmem:[%s943_s0 + $0x194] sm:$0xf]  ;;  %v113_v40 = vmax.bf16 %v347_v25, %v80_v28 }
  0x16   :  { %v379_v41 = vld [vmem:[%s943_s0 + $0x158] sm:$0xf]  ;;  %v348_v42 = vld [vmem:[%s943_s0 + $0xdc] sm:$0xf]  ;;  %v275_v43 = vmax.bf16 %v424_v17, %v242_v32  ;;  %v178_v44 = vmax.bf16 %v378_v24, %v145_v35  ;;  %v81_v45 = vmax.bf16 %v332_v31, %v48_v37  ;;  %v16_v46 = vld [vmem:[%s943_s0 + $0x20] sm:$0xf] }
  0x17   :  { %v317_v47 = vld [vmem:[%s943_s0 + $0x60] sm:$0xf]  ;;  %v243_v49 = vmax.bf16 %v409_v33, %v210_v38  ;;  %v410_v50 = vld [vmem:[%s943_s0 + $0x1d4] sm:$0xf]  ;;  %v146_v52 = vmax.bf16 %v363_v36, %v113_v40  ;;  %v364_v53 = vld [vmem:[%s943_s0 + $0x11c] sm:$0xf] }
  0x18   :  { %v333_v48 = vld [vmem:[%s943_s0 + $0xa0] sm:$0xf]  ;;  %v426_v51 = vld [vmem:[%s943_s0 + $0x214] sm:$0xf]  ;;  %v49_v54 = vmax.bf16 %v317_v47, %v16_v46  ;;  %292 = vst.msk [vmem:[%s944_s1 + $0xc] sm:$0xf] %vm288_vm0, %v275_v43  ;;  %v211_v55 = vmax.bf16 %v394_v39, %v178_v44  ;;  %v114_v57 = vmax.bf16 %v348_v42, %v81_v45 }
  0x19   :  { %v395_v56 = vld [vmem:[%s943_s0 + $0x198] sm:$0xf]  ;;  %v380_v58 = vld [vmem:[%s943_s0 + $0x15c] sm:$0xf]  ;;  %v349_v59 = vld [vmem:[%s943_s0 + $0xe0] sm:$0xf]  ;;  %v276_v60 = vmax.bf16 %v425_v34, %v243_v49  ;;  %v179_v61 = vmax.bf16 %v379_v41, %v146_v52 }
  0x1a   :  { %v82_v62 = vmax.bf16 %v333_v48, %v49_v54  ;;  %v17_v63 = vld [vmem:[%s943_s0 + $0x24] sm:$0xf]  ;;  %v244_v2 = vmax.bf16 %v410_v50, %v211_v55  ;;  %v411_v3 = vld [vmem:[%s943_s0 + $0x1d8] sm:$0xf]  ;;  %v147_v5 = vmax.bf16 %v364_v53, %v114_v57  ;;  %v365_v6 = vld [vmem:[%s943_s0 + $0x120] sm:$0xf] }
  0x1b   :  { %v318_v0 = vld [vmem:[%s943_s0 + $0x64] sm:$0xf]  ;;  %v427_v4 = vld [vmem:[%s943_s0 + $0x218] sm:$0xf]  ;;  %293 = vst.msk [vmem:[%s944_s1 + $0x10] sm:$0xf] %vm288_vm0, %v276_v60  ;;  %v212_v8 = vmax.bf16 %v395_v56, %v179_v61 }
  0x1c   :  { %v334_v1 = vld [vmem:[%s943_s0 + $0xa4] sm:$0xf]  ;;  %v50_v7 = vmax.bf16 %v318_v0, %v17_v63  ;;  %v396_v9 = vld [vmem:[%s943_s0 + $0x19c] sm:$0xf]  ;;  %v115_v10 = vmax.bf16 %v349_v59, %v82_v62  ;;  %v381_v11 = vld [vmem:[%s943_s0 + $0x160] sm:$0xf]  ;;  %v277_v13 = vmax.bf16 %v426_v51, %v244_v2  ;;  %v180_v14 = vmax.bf16 %v380_v58, %v147_v5 }
  0x1d   :  { %v350_v12 = vld [vmem:[%s943_s0 + $0xe4] sm:$0xf]  ;;  %v18_v16 = vld [vmem:[%s943_s0 + $0x28] sm:$0xf]  ;;  %v245_v19 = vmax.bf16 %v411_v3, %v212_v8  ;;  %v412_v20 = vld [vmem:[%s943_s0 + $0x1dc] sm:$0xf] }
  0x1e   :  { %v83_v15 = vmax.bf16 %v334_v1, %v50_v7  ;;  %v319_v17 = vld [vmem:[%s943_s0 + $0x68] sm:$0xf]  ;;  %v428_v21 = vld [vmem:[%s943_s0 + $0x21c] sm:$0xf]  ;;  %v148_v22 = vmax.bf16 %v365_v6, %v115_v10  ;;  %v366_v23 = vld [vmem:[%s943_s0 + $0x124] sm:$0xf]  ;;  %v213_v25 = vmax.bf16 %v396_v9, %v180_v14 }
  0x1f   :  { %v335_v18 = vld [vmem:[%s943_s0 + $0xa8] sm:$0xf]  ;;  %v51_v24 = vmax.bf16 %v319_v17, %v18_v16  ;;  %294 = vst.msk [vmem:[%s944_s1 + $0x14] sm:$0xf] %vm288_vm0, %v277_v13  ;;  %v397_v26 = vld [vmem:[%s943_s0 + $0x1a0] sm:$0xf]  ;;  %v278_v30 = vmax.bf16 %v427_v4, %v245_v19 }
  0x20   :  { %v116_v27 = vmax.bf16 %v350_v12, %v83_v15  ;;  %v382_v28 = vld [vmem:[%s943_s0 + $0x164] sm:$0xf]  ;;  %v351_v29 = vld [vmem:[%s943_s0 + $0xe8] sm:$0xf]  ;;  %v181_v31 = vmax.bf16 %v381_v11, %v148_v22  ;;  %v19_v33 = vld [vmem:[%s943_s0 + $0x2c] sm:$0xf]  ;;  %v246_v36 = vmax.bf16 %v412_v20, %v213_v25 }
  0x21   :  { %v84_v32 = vmax.bf16 %v335_v18, %v51_v24  ;;  %v320_v34 = vld [vmem:[%s943_s0 + $0x6c] sm:$0xf]  ;;  %v413_v37 = vld [vmem:[%s943_s0 + $0x1e0] sm:$0xf]  ;;  %v367_v40 = vld [vmem:[%s943_s0 + $0x128] sm:$0xf] }
  0x22   :  { %v336_v35 = vld [vmem:[%s943_s0 + $0xac] sm:$0xf]  ;;  %v429_v38 = vld [vmem:[%s943_s0 + $0x220] sm:$0xf]  ;;  %v149_v39 = vmax.bf16 %v366_v23, %v116_v27  ;;  %v52_v41 = vmax.bf16 %v320_v34, %v19_v33  ;;  %295 = vst.msk [vmem:[%s944_s1 + $0x18] sm:$0xf] %vm288_vm0, %v278_v30  ;;  %v214_v42 = vmax.bf16 %v397_v26, %v181_v31  ;;  %v279_v47 = vmax.bf16 %v428_v21, %v246_v36 }
  0x23   :  { %v398_v43 = vld [vmem:[%s943_s0 + $0x1a4] sm:$0xf]  ;;  %v117_v44 = vmax.bf16 %v351_v29, %v84_v32  ;;  %v383_v45 = vld [vmem:[%s943_s0 + $0x168] sm:$0xf]  ;;  %v352_v46 = vld [vmem:[%s943_s0 + $0xec] sm:$0xf] }
  0x24   :  { %v182_v48 = vmax.bf16 %v382_v28, %v149_v39  ;;  %v85_v49 = vmax.bf16 %v336_v35, %v52_v41  ;;  %v20_v50 = vld [vmem:[%s943_s0 + $0x30] sm:$0xf]  ;;  %v247_v53 = vmax.bf16 %v413_v37, %v214_v42  ;;  %v414_v54 = vld [vmem:[%s943_s0 + $0x1e4] sm:$0xf]  ;;  %v368_v57 = vld [vmem:[%s943_s0 + $0x12c] sm:$0xf] }
  0x25   :  { %v321_v51 = vld [vmem:[%s943_s0 + $0x70] sm:$0xf]  ;;  %v430_v55 = vld [vmem:[%s943_s0 + $0x224] sm:$0xf]  ;;  %v150_v56 = vmax.bf16 %v367_v40, %v117_v44  ;;  %296 = vst.msk [vmem:[%s944_s1 + $0x1c] sm:$0xf] %vm288_vm0, %v279_v47 }
  0x26   :  { %v337_v52 = vld [vmem:[%s943_s0 + $0xb0] sm:$0xf]  ;;  %v53_v58 = vmax.bf16 %v321_v51, %v20_v50  ;;  %v215_v59 = vmax.bf16 %v398_v43, %v182_v48  ;;  %v399_v60 = vld [vmem:[%s943_s0 + $0x1a8] sm:$0xf]  ;;  %v118_v61 = vmax.bf16 %v352_v46, %v85_v49  ;;  %v384_v62 = vld [vmem:[%s943_s0 + $0x16c] sm:$0xf]  ;;  %v280_v0 = vmax.bf16 %v429_v38, %v247_v53 }
  0x27   :  { %v353_v63 = vld [vmem:[%s943_s0 + $0xf0] sm:$0xf]  ;;  %v183_v1 = vmax.bf16 %v383_v45, %v150_v56  ;;  %v21_v3 = vld [vmem:[%s943_s0 + $0x34] sm:$0xf]  ;;  %v415_v7 = vld [vmem:[%s943_s0 + $0x1e8] sm:$0xf] }
  0x28   :  { %v86_v2 = vmax.bf16 %v337_v52, %v53_v58  ;;  %v322_v4 = vld [vmem:[%s943_s0 + $0x74] sm:$0xf]  ;;  %v248_v6 = vmax.bf16 %v414_v54, %v215_v59  ;;  %v431_v8 = vld [vmem:[%s943_s0 + $0x228] sm:$0xf]  ;;  %v151_v9 = vmax.bf16 %v368_v57, %v118_v61  ;;  %v369_v10 = vld [vmem:[%s943_s0 + $0x130] sm:$0xf] }
  0x29   :  { %v338_v5 = vld [vmem:[%s943_s0 + $0xb4] sm:$0xf]  ;;  %v54_v11 = vmax.bf16 %v322_v4, %v21_v3  ;;  %297 = vst.msk [vmem:[%s944_s1 + $0x20] sm:$0xf] %vm288_vm0, %v280_v0  ;;  %v216_v12 = vmax.bf16 %v399_v60, %v183_v1  ;;  %v400_v13 = vld [vmem:[%s943_s0 + $0x1ac] sm:$0xf] }
  0x2a   :  { %v119_v14 = vmax.bf16 %v353_v63, %v86_v2  ;;  %v385_v15 = vld [vmem:[%s943_s0 + $0x170] sm:$0xf]  ;;  %v354_v16 = vld [vmem:[%s943_s0 + $0xf4] sm:$0xf]  ;;  %v281_v17 = vmax.bf16 %v430_v55, %v248_v6  ;;  %v184_v18 = vmax.bf16 %v384_v62, %v151_v9  ;;  %v22_v20 = vld [vmem:[%s943_s0 + $0x38] sm:$0xf] }
  0x2b   :  { %v87_v19 = vmax.bf16 %v338_v5, %v54_v11  ;;  %v323_v21 = vld [vmem:[%s943_s0 + $0x78] sm:$0xf]  ;;  %v249_v23 = vmax.bf16 %v415_v7, %v216_v12  ;;  %v416_v24 = vld [vmem:[%s943_s0 + $0x1ec] sm:$0xf]  ;;  %v370_v27 = vld [vmem:[%s943_s0 + $0x134] sm:$0xf] }
  0x2c   :  { %v339_v22 = vld [vmem:[%s943_s0 + $0xb8] sm:$0xf]  ;;  %v432_v25 = vld [vmem:[%s943_s0 + $0x22c] sm:$0xf]  ;;  %v152_v26 = vmax.bf16 %v369_v10, %v119_v14  ;;  %v55_v28 = vmax.bf16 %v323_v21, %v22_v20  ;;  %298 = vst.msk [vmem:[%s944_s1 + $0x24] sm:$0xf] %vm288_vm0, %v281_v17  ;;  %v217_v29 = vmax.bf16 %v400_v13, %v184_v18 }
  0x2d   :  { %v401_v30 = vld [vmem:[%s943_s0 + $0x1b0] sm:$0xf]  ;;  %v120_v31 = vmax.bf16 %v354_v16, %v87_v19  ;;  %v386_v32 = vld [vmem:[%s943_s0 + $0x174] sm:$0xf]  ;;  %v355_v33 = vld [vmem:[%s943_s0 + $0xf8] sm:$0xf]  ;;  %v282_v34 = vmax.bf16 %v431_v8, %v249_v23 }
  0x2e   :  { %v185_v35 = vmax.bf16 %v385_v15, %v152_v26  ;;  %v88_v36 = vmax.bf16 %v339_v22, %v55_v28  ;;  %v23_v37 = vld [vmem:[%s943_s0 + $0x3c] sm:$0xf]  ;;  %v250_v40 = vmax.bf16 %v416_v24, %v217_v29  ;;  %v417_v41 = vld [vmem:[%s943_s0 + $0x1f0] sm:$0xf]  ;;  %v371_v43 = vld [vmem:[%s943_s0 + $0x138] sm:$0xf] }
  0x2f   :  { %v324_v38 = vld [vmem:[%s943_s0 + $0x7c] sm:$0xf]  ;;  %v153_v42 = vmax.bf16 %v370_v27, %v120_v31  ;;  %299 = vst.msk [vmem:[%s944_s1 + $0x28] sm:$0xf] %vm288_vm0, %v282_v34  ;;  %v402_v46 = vld [vmem:[%s943_s0 + $0x1b4] sm:$0xf] }
  0x30   :  { %v340_v39 = vld [vmem:[%s943_s0 + $0xbc] sm:$0xf]  ;;  %v56_v44 = vmax.bf16 %v324_v38, %v23_v37  ;;  %v218_v45 = vmax.bf16 %v401_v30, %v185_v35  ;;  %v121_v47 = vmax.bf16 %v355_v33, %v88_v36  ;;  %v283_v49 = vmax.bf16 %v432_v25, %v250_v40  ;;  %v433_v50 = vld [vmem:[%s943_s0 + $0x230] sm:$0xf]  ;;  %v387_v52 = vld [vmem:[%s943_s0 + $0x178] sm:$0xf] }
  0x31   :  { %v356_v48 = vld [vmem:[%s943_s0 + $0xfc] sm:$0xf]  ;;  %v186_v51 = vmax.bf16 %v386_v32, %v153_v42  ;;  %v418_v55 = vld [vmem:[%s943_s0 + $0x1f4] sm:$0xf]  ;;  %v403_v59 = vld [vmem:[%s943_s0 + $0x1b8] sm:$0xf] }
  0x32   :  { %v89_v53 = vmax.bf16 %v340_v39, %v56_v44  ;;  %v251_v54 = vmax.bf16 %v417_v41, %v218_v45  ;;  %v154_v56 = vmax.bf16 %v371_v43, %v121_v47  ;;  %v372_v57 = vld [vmem:[%s943_s0 + $0x13c] sm:$0xf]  ;;  %300 = vst.msk [vmem:[%s944_s1 + $0x2c] sm:$0xf] %vm288_vm0, %v283_v49  ;;  %v434_v62 = vld [vmem:[%s943_s0 + $0x234] sm:$0xf] }
  0x33   :  { %v219_v58 = vmax.bf16 %v402_v46, %v186_v51  ;;  %v388_v0 = vld [vmem:[%s943_s0 + $0x17c] sm:$0xf]  ;;  %v419_v2 = vld [vmem:[%s943_s0 + $0x1f8] sm:$0xf] }
  0x34   :  { %v122_v60 = vmax.bf16 %v356_v48, %v89_v53  ;;  %v284_v61 = vmax.bf16 %v433_v50, %v251_v54  ;;  %v187_v63 = vmax.bf16 %v387_v52, %v154_v56  ;;  %v404_v5 = vld [vmem:[%s943_s0 + $0x1bc] sm:$0xf]  ;;  %v435_v7 = vld [vmem:[%s943_s0 + $0x238] sm:$0xf] }
  0x35   :  { %v252_v1 = vmax.bf16 %v418_v55, %v219_v58  ;;  %v420_v10 = vld [vmem:[%s943_s0 + $0x1fc] sm:$0xf] }
  0x36   :  { %v155_v3 = vmax.bf16 %v372_v57, %v122_v60  ;;  %301 = vst.msk [vmem:[%s944_s1 + $0x30] sm:$0xf] %vm288_vm0, %v284_v61  ;;  %v220_v4 = vmax.bf16 %v403_v59, %v187_v63  ;;  %v436_v13 = vld [vmem:[%s943_s0 + $0x23c] sm:$0xf] }
  0x37   :  { %v285_v6 = vmax.bf16 %v434_v62, %v252_v1 }
  0x38   :  { %v188_v8 = vmax.bf16 %v388_v0, %v155_v3  ;;  %v253_v9 = vmax.bf16 %v419_v2, %v220_v4 }
  0x39   :  { %302 = vst.msk [vmem:[%s944_s1 + $0x34] sm:$0xf] %vm288_vm0, %v285_v6 }
  0x3a   :  { %v221_v11 = vmax.bf16 %v404_v5, %v188_v8  ;;  %v286_v12 = vmax.bf16 %v435_v7, %v253_v9 }
  0x3c   :  { %v254_v14 = vmax.bf16 %v420_v10, %v221_v11  ;;  %303 = vst.msk [vmem:[%s944_s1 + $0x38] sm:$0xf] %vm288_vm0, %v286_v12 }
  0x3e   :  { %v287_v15 = vmax.bf16 %v436_v13, %v254_v14 }
  0x40   :  { %304 = vst.msk [vmem:[%s944_s1 + $0x3c] sm:$0xf] %vm288_vm0, %v287_v15 }

// kernel: base_resnet18_forward.26
= control target key start
LH: loop header
LB: loop body
LE: loop exit
PB: predicated region body
PF: predicated region fallthrough
CT: control target
= control target key end

     0   :  { %s1273_s15 = smov 0   ;;  %s1275_s16 = smov 0   ;;  %s1444_s0 = inlined_call_operand.vmem [shape: bf16[128,640], index: 0, kind: input, shape index: {}]   ;;  %s1445_s1 = inlined_call_operand.vmem [shape: bf16[640,128], index: 1, kind: input, shape index: {}]   ;;  %s1446_s2 = inlined_call_operand.vmem [shape: f32[1,128], index: 2, kind: input, shape index: {}]   ;;  %s1447_s3 = inlined_call_operand.vmem [shape: f32[1,128], index: 3, kind: input, shape index: {}]   ;;  %s1448_s4 = inlined_call_operand.vmem [shape: bf16[128,128], index: 4, kind: output, shape index: {}]  }
   0x1   :  { %s1277_s17 = smov 0   ;;  %s1279_s18 = smov 0  }
   0x2   :  { %s1281_s19 = smov 0  }
   0x3 LB: > { %s26_s20 = sadd.s32 1, %s1241_s18  ;;  %p49_p1 = scmp.ne.s32.totalorder %s1233_s16, %s1229_s15  ;;  %s1245_s19 = sphi %s1281_s19, %s14_s19   ;;  %s1241_s18 = sphi %s1279_s18, %s1452_s18   ;;  %s1237_s17 = sphi %s1277_s17, %s1451_s17   ;;  %s1233_s16 = sphi %s1275_s16, %s1450_s16   ;;  %s1229_s15 = sphi %s1273_s15, %s1449_s15  }
   0x4   : > { %p27_p0 = scmp.ge.s32.totalorder %s26_s20, 5  ;;  %p50_p2 = scmp.eq.s32.totalorder %s1245_s19, 0 }
   0x5   : > { %s42_s22 = sadd.s32 1, %s1233_s16  ;;  %p976_p5 = scmp.ge.s32.totalorder %s1245_s19, 5 }
   0x6   : > { %s1454_s20 = smov (%p27_p0, %s26_s20), 0  ;;  %p51_p3 = por %p50_p2, %p49_p1 }
   0x7   : > { %s38_s21 = ssub.s32 %s1241_s18, %s1454_s20  ;;  %195 = sbr.rel (%p976_p5) target bundleno = 28 (0x1c), region = 24 }
   0x8   : > { %p40_p4 = scmp.eq.s32.totalorder %s38_s21, 0 }
   0xa   : > { %s1308_s23 = scalar_select %p40_p4, %s1233_s16, %s42_s22  }
   0xe   : > { %198 = sbr.rel (!%p51_p3) target bundleno = 28 (0x1c), region = 28  ;;  %s200_s24 = sand.u32 (%p51_p3), 1, %s1233_s16  }
   0xf   : > { %s978_s25 = sshll.u32 (%p51_p3), %s1241_s18, 2  ;;  %s977_s26 = sshll.u32 (%p51_p3), %s200_s24, 6 }
  0x10   : > { %s1316_s29 = scalar_lea.vmem (%p51_p3), %s1444_s0, %s978_s25  ;;  %s202_s30 = scalar_lea.vmem (%p51_p3), [#allocation3], %s977_s26 }
  0x11   : > { %v223_v0 = vld [vmem:[%s1316_s29] sm:$0xf] (%p51_p3)  ;;  %v225_v1 = vld [vmem:[%s1316_s29 + $0x14] sm:$0xf] (%p51_p3)  ;;  %v227_v2 = vld [vmem:[%s1316_s29 + $0x28] sm:$0xf] (%p51_p3) }
  0x12   : > { %224 = vst [vmem:[%s202_s30] sm:$0xf] (%p51_p3), %v223_v0  ;;  %226 = vst [vmem:[%s202_s30 + $0x4] sm:$0xf] (%p51_p3), %v225_v1  ;;  %v229_v3 = vld [vmem:[%s1316_s29 + $0x3c] sm:$0xf] (%p51_p3) }
  0x13   : > { %v231_v4 = vld [vmem:[%s1316_s29 + $0x50] sm:$0xf] (%p51_p3)  ;;  %228 = vst [vmem:[%s202_s30 + $0x8] sm:$0xf] (%p51_p3), %v227_v2  ;;  %230 = vst [vmem:[%s202_s30 + $0xc] sm:$0xf] (%p51_p3), %v229_v3 }
  0x14   : > { %232 = vst [vmem:[%s202_s30 + $0x10] sm:$0xf] (%p51_p3), %v231_v4  ;;  %v233_v5 = vld [vmem:[%s1316_s29 + $0x64] sm:$0xf] (%p51_p3)  ;;  %v235_v6 = vld [vmem:[%s1316_s29 + $0x78] sm:$0xf] (%p51_p3) }
  0x15   : > { %v237_v7 = vld [vmem:[%s1316_s29 + $0x8c] sm:$0xf]  ;;  %234 = vst [vmem:[%s202_s30 + $0x14] sm:$0xf] %v233_v5  ;;  %236 = vst [vmem:[%s202_s30 + $0x18] sm:$0xf] %v235_v6 }
  0x16   : > { %238 = vst [vmem:[%s202_s30 + $0x1c] sm:$0xf] %v237_v7  ;;  %v239_v8 = vld [vmem:[%s1316_s29 + $0xa0] sm:$0xf]  ;;  %v241_v9 = vld [vmem:[%s1316_s29 + $0xb4] sm:$0xf] }
  0x17   : > { %v243_v10 = vld [vmem:[%s1316_s29 + $0xc8] sm:$0xf]  ;;  %240 = vst [vmem:[%s202_s30 + $0x20] sm:$0xf] %v239_v8  ;;  %242 = vst [vmem:[%s202_s30 + $0x24] sm:$0xf] %v241_v9 }
  0x18   : > { %244 = vst [vmem:[%s202_s30 + $0x28] sm:$0xf] %v243_v10  ;;  %v245_v11 = vld [vmem:[%s1316_s29 + $0xdc] sm:$0xf]  ;;  %v247_v12 = vld [vmem:[%s1316_s29 + $0xf0] sm:$0xf] }
  0x19   : > { %v249_v13 = vld [vmem:[%s1316_s29 + $0x104] sm:$0xf]  ;;  %246 = vst [vmem:[%s202_s30 + $0x2c] sm:$0xf] %v245_v11  ;;  %248 = vst [vmem:[%s202_s30 + $0x30] sm:$0xf] %v247_v12 }
  0x1a   : > { %250 = vst [vmem:[%s202_s30 + $0x34] sm:$0xf] %v249_v13  ;;  %v251_v14 = vld [vmem:[%s1316_s29 + $0x118] sm:$0xf]  ;;  %v253_v15 = vld [vmem:[%s1316_s29 + $0x12c] sm:$0xf] }
  0x1b   : > { %252 = vst [vmem:[%s202_s30 + $0x38] sm:$0xf] %v251_v14  ;;  %254 = vst [vmem:[%s202_s30 + $0x3c] sm:$0xf] %v253_v15 }
  0x1c PF: > { %p979_p6 = scmp.ge.s32.totalorder %s1245_s19, 1  ;;  %p320_p7 = scmp.lt.s32.totalorder %s1245_s19, 6 }
  0x1e   : > { %p321_p8 = pnand %p979_p6, %p320_p7 }
  0x1f   : > { %s327_s5 = sand.u32 (!%p321_p8), 1, %s1229_s15   ;;  %s981_s6 = sshll.u32 (!%p321_p8), %s1237_s17, 4 }
  0x20   : > { %324 = sbr.rel (%p321_p8) target bundleno = 325 (0x145), region = 73  ;;  %s980_s7 = sshll.u32 (!%p321_p8), %s327_s5, 6 }
  0x21   : > { %p371_p9 = scmp.lt.s32.totalorder (!%p321_p8), %s981_s6, 79  ;;  %s1343_s12 = scalar_lea.vmem (!%p321_p8), [#allocation3], %s980_s7 }
  0x22   : > { %p983_p10 = scmp.ne.s32.totalorder (!%p321_p8), %s1237_s17, 0 }
  0x27   : > { %s1456_s6 = smov (!%p371_p9, %s981_s6), 79  ;;  %398 = sbr.rel (%p983_p10) target bundleno = 49 (0x31), region = 81 }
  0x28   : > { %s982_s8 = sshll.u32 %s1456_s6, 2  ;;  %v1247_v16 = vmov (!%p983_p10), 0.0  }
  0x29   : > { %s1341_s11 = scalar_lea.vmem %s1445_s1, %s982_s8  ;;  %399 = vst [vmem:[#allocation2] sm:$0xff] (!%p983_p10), %v1247_v16  ;;  %400 = vst [vmem:[#allocation2 + $0x8] sm:$0xff] (!%p983_p10), %v1247_v16 }
  0x2a   : > { %401 = vst [vmem:[#allocation2 + $0x10] sm:$0xff] (!%p983_p10), %v1247_v16  ;;  %402 = vst [vmem:[#allocation2 + $0x18] sm:$0xff] (!%p983_p10), %v1247_v16 }
  0x2b   : > { %403 = vst [vmem:[#allocation2 + $0x20] sm:$0xff] (!%p983_p10), %v1247_v16  ;;  %404 = vst [vmem:[#allocation2 + $0x28] sm:$0xff] (!%p983_p10), %v1247_v16 }
  0x2c   : > { %405 = vst [vmem:[#allocation2 + $0x30] sm:$0xff] (!%p983_p10), %v1247_v16  ;;  %406 = vst [vmem:[#allocation2 + $0x38] sm:$0xff] (!%p983_p10), %v1247_v16 }
  0x2d   : > { %407 = vst [vmem:[#allocation2 + $0x40] sm:$0xff] (!%p983_p10), %v1247_v16  ;;  %408 = vst [vmem:[#allocation2 + $0x48] sm:$0xff] (!%p983_p10), %v1247_v16 }
  0x2e   : > { %409 = vst [vmem:[#allocation2 + $0x50] sm:$0xff] %v1247_v16  ;;  %410 = vst [vmem:[#allocation2 + $0x58] sm:$0xff] %v1247_v16 }
  0x2f   : > { %411 = vst [vmem:[#allocation2 + $0x60] sm:$0xff] %v1247_v16  ;;  %412 = vst [vmem:[#allocation2 + $0x68] sm:$0xff] %v1247_v16 }
  0x30   : > { %413 = vst [vmem:[#allocation2 + $0x70] sm:$0xff] %v1247_v16  ;;  %414 = vst [vmem:[#allocation2 + $0x78] sm:$0xff] %v1247_v16 }
  0x31 PF: > { %v1191_v17 = vld [vmem:[%s1341_s11] sm:$0xff]   ;;  %v1192_v18 = vld [vmem:[%s1341_s11 + $0x8] sm:$0xff]   ;;  %v1193_v19 = vld [vmem:[%s1341_s11 + $0x10] sm:$0xff]   ;;  %p1000_p11 = scmp.ne.s32.totalorder %s1237_s17, 4 }
  0x32   : > { %1102 = vmatprep.subr.bf16.mxu0 %v1191_v17  ;;  %1134 = vmatprep.subr.bf16.mxu1 %v1191_v17  ;;  %v1194_v20 = vld [vmem:[%s1341_s11 + $0x18] sm:$0xff]   ;;  %v1199_v21 = vld [vmem:[%s1343_s12] sm:$0xff]   ;;  %v1196_v24 = vld [vmem:[%s1341_s11 + $0x28] sm:$0xff]  }
  0x33   : > { %1103 = vmatpush3.bf16.msra.mxu0 %v1191_v17  ;;  %1142 = vmatpush3.bf16.msra.mxu1 %v1191_v17  ;;  %v1200_v22 = vld [vmem:[%s1343_s12 + $0x20] sm:$0xff]   ;;  %v1197_v25 = vld [vmem:[%s1341_s11 + $0x30] sm:$0xff]   ;;  %v1198_v26 = vld [vmem:[%s1341_s11 + $0x38] sm:$0xff]  }
  0x34   : > { %1104 = vmatprep.subr.bf16.mxu0 %v1192_v18  ;;  %1135 = vmatprep.subr.bf16.mxu1 %v1192_v18  ;;  %v1195_v23 = vld [vmem:[%s1341_s11 + $0x20] sm:$0xff]   ;;  %v1201_v27 = vld [vmem:[%s1343_s12 + $0x8] sm:$0xff]   ;;  %v1203_v29 = vld [vmem:[%s1343_s12 + $0x10] sm:$0xff]  }
  0x35   : > { %1118 = vmatprep.mubr.bf16.mxu0 %v1199_v21  ;;  %1126 = vmatprep.mubr.bf16.mxu1 %v1200_v22  ;;  %v1202_v28 = vld [vmem:[%s1343_s12 + $0x28] sm:$0xff]   ;;  %v1204_v30 = vld [vmem:[%s1343_s12 + $0x30] sm:$0xff]   ;;  %v1205_v31 = vld [vmem:[%s1343_s12 + $0x18] sm:$0xff]  }
  0x36   : > { %v1206_v32 = vld [vmem:[%s1343_s12 + $0x38] sm:$0xff]   ;;  %v417_v33 = vld [vmem:[#allocation2 + $0x10] sm:$0xff]  ;;  %v415_v35 = vld [vmem:[#allocation2] sm:$0xff] }
  0x37   : > { %1105 = vmatpush3.bf16.msra.mxu0 %v1192_v18  ;;  %1143 = vmatpush3.bf16.msra.mxu1 %v1192_v18  ;;  %v425_v34 = vld [vmem:[#allocation2 + $0x50] sm:$0xff]  ;;  %v423_v36 = vld [vmem:[#allocation2 + $0x40] sm:$0xff]  ;;  %v418_v39 = vld [vmem:[#allocation2 + $0x18] sm:$0xff] }
  0x38   : > { %1106 = vmatprep.subr.bf16.mxu0 %v1193_v19  ;;  %1136 = vmatprep.subr.bf16.mxu1 %v1193_v19  ;;  %v426_v40 = vld [vmem:[#allocation2 + $0x58] sm:$0xff]  ;;  %v416_v45 = vld [vmem:[#allocation2 + $0x8] sm:$0xff]  ;;  %v421_v57 = vld [vmem:[#allocation2 + $0x30] sm:$0xff] }
  0x39   : > { %v424_v46 = vld [vmem:[#allocation2 + $0x48] sm:$0xff]  ;;  %v429_v58 = vld [vmem:[#allocation2 + $0x70] sm:$0xff]  ;;  %v419_v59 = vld [vmem:[#allocation2 + $0x20] sm:$0xff] }
  0x3a   : > { %v427_v60 = vld [vmem:[#allocation2 + $0x60] sm:$0xff]  ;;  %v422_v63 = vld [vmem:[#allocation2 + $0x38] sm:$0xff]  ;;  %v420_v5 = vld [vmem:[#allocation2 + $0x28] sm:$0xff] }
  0x3b   : > { %1107 = vmatpush3.bf16.msra.mxu0 %v1193_v19  ;;  %1144 = vmatpush3.bf16.msra.mxu1 %v1193_v19  ;;  %v430_v0 = vld [vmem:[#allocation2 + $0x78] sm:$0xff]  ;;  %v428_v6 = vld [vmem:[#allocation2 + $0x68] sm:$0xff]  ;;  %v1366_v19 = vld [vmem:[%s1446_s2] ss:$0 sm:$0xff] (!%p1000_p11) }
  0x3c   : > { %1108 = vmatprep.subr.bf16.mxu0 %v1194_v20  ;;  %1137 = vmatprep.subr.bf16.mxu1 %v1194_v20  ;;  %v1373_v22 = vld [vmem:[%s1447_s3] ss:$0 sm:$0xff] (!%p1000_p11) }
  0x3f   : > { %1109 = vmatpush3.bf16.msra.mxu0 %v1194_v20  ;;  %1145 = vmatpush3.bf16.msra.mxu1 %v1194_v20 }
  0x40   : > { %1110 = vmatprep.subr.bf16.mxu0 %v1195_v23  ;;  %1138 = vmatprep.subr.bf16.mxu1 %v1195_v23 }
  0x43   : > { %1111 = vmatpush3.bf16.msra.mxu0 %v1195_v23  ;;  %1146 = vmatpush3.bf16.msra.mxu1 %v1195_v23 }
  0x44   : > { %1112 = vmatprep.subr.bf16.mxu0 %v1196_v24  ;;  %1139 = vmatprep.subr.bf16.mxu1 %v1196_v24 }
  0x47   : > { %1113 = vmatpush3.bf16.msra.mxu0 %v1196_v24  ;;  %1147 = vmatpush3.bf16.msra.mxu1 %v1196_v24 }
  0x48   : > { %1114 = vmatprep.subr.bf16.mxu0 %v1197_v25  ;;  %1140 = vmatprep.subr.bf16.mxu1 %v1197_v25 }
  0x4b   : > { %1115 = vmatpush3.bf16.msra.mxu0 %v1197_v25  ;;  %1148 = vmatpush3.bf16.msra.mxu1 %v1197_v25 }
  0x4c   : > { %1116 = vmatprep.subr.bf16.mxu0 %v1198_v26  ;;  %1141 = vmatprep.subr.bf16.mxu1 %v1198_v26 }
  0x4f   : > { %1117 = vmatpush3.bf16.msra.mxu0 %v1198_v26  ;;  %1149 = vmatpush3.bf16.msra.mxu1 %v1198_v26 }
  0x52   : > { %1119 = vmatmul.mubr.bf16.vlgmr.msra.gmra.mrb[0].mxu0 %v1201_v27  ;;  %1127 = vmatmul.mubr.bf16.vlgmr.msra.gmra.mrb[0].mxu1 %v1202_v28 }
  0x53   : > { %1122 = vmatprep.mubr.bf16.mxu0 %v1203_v29  ;;  %1130 = vmatprep.mubr.bf16.mxu1 %v1204_v30 }
  0x5a   : > { %1123 = vmatmul.mubr.bf16.gmra.mrb[4].mxu0 %v1205_v31  ;;  %1131 = vmatmul.mubr.bf16.gmra.mrb[4].mxu1 %v1206_v32 }
 0x125   : > { %v1120_v37 = vpop.f32.mrb[0].mxu0  ;;  %v1128_v38 = vpop.f32.mrb[0].mxu1 }
 0x126   : > { %v658_v41 = vadd.f32 %v1120_v37, %v417_v33  ;;  %v666_v42 = vadd.f32 %v1128_v38, %v425_v34  ;;  %v593_v43 = vpop.f32.mrb[1].mxu0  ;;  %v625_v44 = vpop.f32.mrb[1].mxu1 }
 0x127   : > { %v656_v47 = vadd.f32 %v593_v43, %v415_v35  ;;  %v664_v48 = vadd.f32 %v625_v44, %v423_v36  ;;  %v1121_v49 = vpop.f32.mrb[2].mxu0  ;;  %v1129_v50 = vpop.f32.mrb[2].mxu1 }
 0x128   : > { %674 = vst [vmem:[#allocation2 + $0x10] sm:$0xff] %v658_v41  ;;  %682 = vst [vmem:[#allocation2 + $0x50] sm:$0xff] %v666_v42  ;;  %v659_v51 = vadd.f32 %v1121_v49, %v418_v39  ;;  %v667_v52 = vadd.f32 %v1129_v50, %v426_v40  ;;  %v596_v53 = vpop.f32.mrb[3].mxu0  ;;  %v628_v54 = vpop.f32.mrb[3].mxu1 }
 0x129   : > { %672 = vst [vmem:[#allocation2] sm:$0xff] %v656_v47  ;;  %680 = vst [vmem:[#allocation2 + $0x40] sm:$0xff] %v664_v48  ;;  %v657_v55 = vadd.f32 %v596_v53, %v416_v45  ;;  %v665_v56 = vadd.f32 %v628_v54, %v424_v46 }
 0x12a   : > { %675 = vst [vmem:[#allocation2 + $0x18] sm:$0xff] %v659_v51  ;;  %683 = vst [vmem:[#allocation2 + $0x58] sm:$0xff] %v667_v52 }
 0x12b   : > { %673 = vst [vmem:[#allocation2 + $0x8] sm:$0xff] %v657_v55  ;;  %681 = vst [vmem:[#allocation2 + $0x48] sm:$0xff] %v665_v56 }
 0x12d   : > { %v1124_v61 = vpop.f32.mrb[4].mxu0  ;;  %v1132_v62 = vpop.f32.mrb[4].mxu1  ;;  %691 = sbr.rel (%p1000_p11) target bundleno = 325 (0x145), region = 85 }
 0x12e   : > { %v662_v1 = vadd.f32 %v1124_v61, %v421_v57  ;;  %v670_v2 = vadd.f32 %v1132_v62, %v429_v58  ;;  %v609_v3 = vpop.f32.mrb[5].mxu0  ;;  %v641_v4 = vpop.f32.mrb[5].mxu1 }
 0x12f   : > { %v660_v7 = vadd.f32 %v609_v3, %v419_v59  ;;  %v668_v8 = vadd.f32 %v641_v4, %v427_v60  ;;  %v1125_v9 = vpop.f32.mrb[6].mxu0  ;;  %v1133_v10 = vpop.f32.mrb[6].mxu1  ;;  %v694_v23 = vld [vmem:[#allocation2 + $0x10] sm:$0xff] (!%p1000_p11) }
 0x130   : > { %678 = vst [vmem:[#allocation2 + $0x30] sm:$0xff] %v662_v1  ;;  %686 = vst [vmem:[#allocation2 + $0x70] sm:$0xff] %v670_v2  ;;  %v663_v11 = vadd.f32 %v1125_v9, %v422_v63  ;;  %v671_v12 = vadd.f32 %v1133_v10, %v430_v0  ;;  %v612_v13 = vpop.f32.mrb[7].mxu0  ;;  %v644_v14 = vpop.f32.mrb[7].mxu1  ;;  %v692_v17 = vld [vmem:[#allocation2] sm:$0xff] (!%p1000_p11)  ;;  %v717_v25 = vmul.f32 (!%p1000_p11), %v1366_v19, %v694_v23  ;;  %v702_v49 = vld [vmem:[#allocation2 + $0x50] sm:$0xff] (!%p1000_p11) }
 0x131   : > { %676 = vst [vmem:[#allocation2 + $0x20] sm:$0xff] %v660_v7  ;;  %684 = vst [vmem:[#allocation2 + $0x60] sm:$0xff] %v668_v8  ;;  %v661_v15 = vadd.f32 %v612_v13, %v420_v5  ;;  %v669_v16 = vadd.f32 %v644_v14, %v428_v6  ;;  %v715_v20 = vmul.f32 (!%p1000_p11), %v1366_v19, %v692_v17  ;;  %v695_v24 = vld [vmem:[#allocation2 + $0x18] sm:$0xff] (!%p1000_p11)  ;;  %v700_v39 = vld [vmem:[#allocation2 + $0x40] sm:$0xff] (!%p1000_p11) }
 0x132   : > { %679 = vst [vmem:[#allocation2 + $0x38] sm:$0xff] %v663_v11  ;;  %687 = vst [vmem:[#allocation2 + $0x78] sm:$0xff] %v671_v12  ;;  %v693_v18 = vld [vmem:[#allocation2 + $0x8] sm:$0xff] (!%p1000_p11)  ;;  %v718_v26 = vmul.f32 (!%p1000_p11), %v1366_v19, %v695_v24  ;;  %v740_v35 = vadd.f32 (!%p1000_p11), %v1373_v22, %v717_v25  ;;  %v703_v50 = vld [vmem:[#allocation2 + $0x58] sm:$0xff] (!%p1000_p11)  ;;  %v723_v54 = vmul.f32 (!%p1000_p11), %v1366_v19, %v700_v39 }
 0x133   : > { %677 = vst [vmem:[#allocation2 + $0x28] sm:$0xff] %v661_v15  ;;  %685 = vst [vmem:[#allocation2 + $0x68] sm:$0xff] %v669_v16  ;;  %v716_v21 = vmul.f32 (!%p1000_p11), %v1366_v19, %v693_v18  ;;  %v738_v30 = vadd.f32 (!%p1000_p11), %v1373_v22, %v715_v20  ;;  %v701_v44 = vld [vmem:[#allocation2 + $0x48] sm:$0xff] (!%p1000_p11)  ;;  %v725_v0 = vmul.f32 (!%p1000_p11), %v1366_v19, %v702_v49 }
 0x134   : > { %v741_v36 = vadd.f32 %v1373_v22, %v718_v26  ;;  %v756_v45 = vmax.f32 %v740_v35, 0.0  ;;  %v724_v60 = vmul.f32 %v1366_v19, %v701_v44  ;;  %v746_v63 = vadd.f32 %v1373_v22, %v723_v54 }
 0x135   : > { %v739_v31 = vadd.f32 %v1373_v22, %v716_v21  ;;  %v754_v40 = vmax.f32 %v738_v30, 0.0  ;;  %v726_v1 = vmul.f32 %v1366_v19, %v703_v50  ;;  %v748_v8 = vadd.f32 %v1373_v22, %v725_v0 }
 0x136   : > { %v757_v46 = vmax.f32 %v741_v36, 0.0  ;;  %v747_v4 = vadd.f32 %v1373_v22, %v724_v60  ;;  %v762_v7 = vmax.f32 %v746_v63, 0.0 }
 0x137   : > { %v698_v29 = vld [vmem:[#allocation2 + $0x30] sm:$0xff]  ;;  %v755_v41 = vmax.f32 %v739_v31, 0.0  ;;  %v749_v9 = vadd.f32 %v1373_v22, %v726_v1  ;;  %v764_v15 = vmax.f32 %v748_v8, 0.0 }
 0x138   : > { %v696_v27 = vld [vmem:[#allocation2 + $0x20] sm:$0xff]  ;;  %v721_v37 = vmul.f32 %v1366_v19, %v698_v29  ;;  %v1047_v57 = vpack.c.bf16 %v757_v46, %v756_v45  ;;  %v706_v61 = vld [vmem:[#allocation2 + $0x70] sm:$0xff]  ;;  %v763_v11 = vmax.f32 %v747_v4, 0.0 }
 0x139   : > { %v719_v32 = vmul.f32 %v1366_v19, %v696_v27  ;;  %v699_v34 = vld [vmem:[#allocation2 + $0x38] sm:$0xff]  ;;  %v1042_v51 = vpack.c.bf16 %v755_v41, %v754_v40  ;;  %v704_v55 = vld [vmem:[#allocation2 + $0x60] sm:$0xff]  ;;  %v729_v10 = vmul.f32 %v1366_v19, %v706_v61  ;;  %v765_v16 = vmax.f32 %v749_v9, 0.0 }
 0x13a   : > { %v697_v28 = vld [vmem:[#allocation2 + $0x28] sm:$0xff]  ;;  %v722_v38 = vmul.f32 %v1366_v19, %v699_v34  ;;  %v744_v47 = vadd.f32 %v1373_v22, %v721_v37  ;;  %v707_v2 = vld [vmem:[#allocation2 + $0x78] sm:$0xff]  ;;  %1079 = vst [vmem:[%s1448_s4 + $0x8] sm:$0xff] %v1047_v57   ;;  %v727_v5 = vmul.f32 %v1366_v19, %v704_v55  ;;  %v1062_v18 = vpack.c.bf16 %v763_v11, %v762_v7 }
 0x13b   : > { %v720_v33 = vmul.f32 %v1366_v19, %v697_v28  ;;  %v742_v42 = vadd.f32 %v1373_v22, %v719_v32  ;;  %v705_v56 = vld [vmem:[#allocation2 + $0x68] sm:$0xff]  ;;  %1043 = vst [vmem:[%s1448_s4] sm:$0xff] %v1042_v51   ;;  %v730_v14 = vmul.f32 %v1366_v19, %v707_v2  ;;  %v752_v17 = vadd.f32 %v1373_v22, %v729_v10 }
 0x13c   : > { %v745_v48 = vadd.f32 %v1373_v22, %v722_v38  ;;  %v760_v58 = vmax.f32 %v744_v47, 0.0  ;;  %v728_v6 = vmul.f32 %v1366_v19, %v705_v56  ;;  %v750_v12 = vadd.f32 %v1373_v22, %v727_v5  ;;  %1082 = vst [vmem:[%s1448_s4 + $0x20] sm:$0xff] %v1062_v18  }
 0x13d   : > { %v743_v43 = vadd.f32 %v1373_v22, %v720_v33  ;;  %v758_v52 = vmax.f32 %v742_v42, 0.0  ;;  %v753_v23 = vadd.f32 %v1373_v22, %v730_v14  ;;  %v1067_v24 = vpack.c.bf16 %v765_v16, %v764_v15 }
 0x13e   : > { %v761_v59 = vmax.f32 %v745_v48, 0.0  ;;  %v751_v13 = vadd.f32 %v1373_v22, %v728_v6  ;;  %v766_v20 = vmax.f32 %v750_v12, 0.0  ;;  %v768_v25 = vmax.f32 %v752_v17, 0.0 }
 0x13f   : > { %v759_v53 = vmax.f32 %v743_v43, 0.0  ;;  %v769_v27 = vmax.f32 %v753_v23, 0.0  ;;  %1083 = vst [vmem:[%s1448_s4 + $0x28] sm:$0xff] %v1067_v24  }
 0x140   : > { %v1057_v3 = vpack.c.bf16 %v761_v59, %v760_v58  ;;  %v767_v21 = vmax.f32 %v751_v13, 0.0 }
 0x141   : > { %v1052_v62 = vpack.c.bf16 %v759_v53, %v758_v52  ;;  %v1077_v19 = vpack.c.bf16 %v769_v27, %v768_v25 }
 0x142   : > { %1081 = vst [vmem:[%s1448_s4 + $0x18] sm:$0xff] %v1057_v3   ;;  %v1072_v26 = vpack.c.bf16 %v767_v21, %v766_v20 }
 0x143   : > { %1080 = vst [vmem:[%s1448_s4 + $0x10] sm:$0xff] %v1052_v62   ;;  %1085 = vst [vmem:[%s1448_s4 + $0x38] sm:$0xff] %v1077_v19  }
 0x144   : > { %1084 = vst [vmem:[%s1448_s4 + $0x30] sm:$0xff] %v1072_v26  }
 0x145 PF: > { %s14_s19 = sadd.s32 1, %s1245_s19   ;;  %s1449_s15 = smov %s1233_s16 }
 0x146   : > { %p11_p12 = scmp.ge.s32.totalorder %s14_s19, 7   ;;  %s1450_s16 = smov %s1308_s23 }
 0x147   : > { %s1451_s17 = smov %s1241_s18  ;;  %s1452_s18 = smov %s1454_s20 }
 0x148   :  { %13 = sbr.rel (!%p11_p12) target bundleno = 3 (0x3), region = 129 }

// kernel: base_resnet18_forward.27
= control target key start
LH: loop header
LB: loop body
LE: loop exit
PB: predicated region body
PF: predicated region fallthrough
CT: control target
= control target key end

     0   :  { %s1444_s18 = smov 0   ;;  %s1446_s19 = smov 0   ;;  %s1639_s0 = inlined_call_operand.vmem [shape: bf16[128,640], index: 0, kind: input, shape index: {}]   ;;  %s1640_s1 = inlined_call_operand.vmem [shape: bf16[640,128], index: 1, kind: input, shape index: {}]   ;;  %s1641_s2 = inlined_call_operand.vmem [shape: f32[1,128], index: 2, kind: input, shape index: {}]   ;;  %s1642_s3 = inlined_call_operand.vmem [shape: f32[1,128], index: 3, kind: input, shape index: {}]   ;;  %s1643_s4 = inlined_call_operand.vmem [shape: bf16[128,128], index: 4, kind: input, shape index: {}]   ;;  %s1644_s5 = inlined_call_operand.vmem [shape: bf16[128,128], index: 5, kind: output, shape index: {}]  }
   0x1   :  { %s1448_s20 = smov 0   ;;  %s1450_s21 = smov 0  }
   0x2   :  { %s1452_s22 = smov 0  }
   0x3 LB: > { %s27_s23 = sadd.s32 1, %s1407_s21  ;;  %p50_p1 = scmp.ne.s32.totalorder %s1399_s19, %s1395_s18  ;;  %s1411_s22 = sphi %s1452_s22, %s15_s22   ;;  %s1407_s21 = sphi %s1450_s21, %s1648_s21   ;;  %s1403_s20 = sphi %s1448_s20, %s1647_s20   ;;  %s1399_s19 = sphi %s1446_s19, %s1646_s19   ;;  %s1395_s18 = sphi %s1444_s18, %s1645_s18  }
   0x4   : > { %p28_p0 = scmp.ge.s32.totalorder %s27_s23, 5  ;;  %p51_p2 = scmp.eq.s32.totalorder %s1411_s22, 0 }
   0x5   : > { %s43_s25 = sadd.s32 1, %s1399_s19  ;;  %p1103_p5 = scmp.ge.s32.totalorder %s1411_s22, 5 }
   0x6   : > { %s1650_s23 = smov (%p28_p0, %s27_s23), 0  ;;  %p52_p3 = por %p51_p2, %p50_p1 }
   0x7   : > { %s39_s24 = ssub.s32 %s1407_s21, %s1650_s23  ;;  %236 = sbr.rel (%p1103_p5) target bundleno = 28 (0x1c), region = 28 }
   0x8   : > { %p41_p4 = scmp.eq.s32.totalorder %s39_s24, 0 }
   0xa   : > { %s1479_s26 = scalar_select %p41_p4, %s1399_s19, %s43_s25  }
   0xe   : > { %239 = sbr.rel (!%p52_p3) target bundleno = 28 (0x1c), region = 32  ;;  %s241_s27 = sand.u32 (%p52_p3), 1, %s1399_s19  }
   0xf   : > { %s1105_s28 = sshll.u32 (%p52_p3), %s1407_s21, 2  ;;  %s1104_s29 = sshll.u32 (%p52_p3), %s241_s27, 6 }
  0x10   : > { %s1487_s7 = scalar_lea.vmem (%p52_p3), %s1639_s0, %s1105_s28  ;;  %s243_s8 = scalar_lea.vmem (%p52_p3), [#allocation3], %s1104_s29 }
  0x11   : > { %v264_v0 = vld [vmem:[%s1487_s7] sm:$0xf] (%p52_p3)  ;;  %v266_v1 = vld [vmem:[%s1487_s7 + $0x14] sm:$0xf] (%p52_p3)  ;;  %v268_v2 = vld [vmem:[%s1487_s7 + $0x28] sm:$0xf] (%p52_p3) }
  0x12   : > { %265 = vst [vmem:[%s243_s8] sm:$0xf] (%p52_p3), %v264_v0  ;;  %267 = vst [vmem:[%s243_s8 + $0x4] sm:$0xf] (%p52_p3), %v266_v1  ;;  %v270_v3 = vld [vmem:[%s1487_s7 + $0x3c] sm:$0xf] (%p52_p3) }
  0x13   : > { %v272_v4 = vld [vmem:[%s1487_s7 + $0x50] sm:$0xf] (%p52_p3)  ;;  %269 = vst [vmem:[%s243_s8 + $0x8] sm:$0xf] (%p52_p3), %v268_v2  ;;  %271 = vst [vmem:[%s243_s8 + $0xc] sm:$0xf] (%p52_p3), %v270_v3 }
  0x14   : > { %273 = vst [vmem:[%s243_s8 + $0x10] sm:$0xf] (%p52_p3), %v272_v4  ;;  %v274_v5 = vld [vmem:[%s1487_s7 + $0x64] sm:$0xf] (%p52_p3)  ;;  %v276_v6 = vld [vmem:[%s1487_s7 + $0x78] sm:$0xf] (%p52_p3) }
  0x15   : > { %v278_v7 = vld [vmem:[%s1487_s7 + $0x8c] sm:$0xf]  ;;  %275 = vst [vmem:[%s243_s8 + $0x14] sm:$0xf] %v274_v5  ;;  %277 = vst [vmem:[%s243_s8 + $0x18] sm:$0xf] %v276_v6 }
  0x16   : > { %279 = vst [vmem:[%s243_s8 + $0x1c] sm:$0xf] %v278_v7  ;;  %v280_v8 = vld [vmem:[%s1487_s7 + $0xa0] sm:$0xf]  ;;  %v282_v9 = vld [vmem:[%s1487_s7 + $0xb4] sm:$0xf] }
  0x17   : > { %v284_v10 = vld [vmem:[%s1487_s7 + $0xc8] sm:$0xf]  ;;  %281 = vst [vmem:[%s243_s8 + $0x20] sm:$0xf] %v280_v8  ;;  %283 = vst [vmem:[%s243_s8 + $0x24] sm:$0xf] %v282_v9 }
  0x18   : > { %285 = vst [vmem:[%s243_s8 + $0x28] sm:$0xf] %v284_v10  ;;  %v286_v11 = vld [vmem:[%s1487_s7 + $0xdc] sm:$0xf]  ;;  %v288_v12 = vld [vmem:[%s1487_s7 + $0xf0] sm:$0xf] }
  0x19   : > { %v290_v13 = vld [vmem:[%s1487_s7 + $0x104] sm:$0xf]  ;;  %287 = vst [vmem:[%s243_s8 + $0x2c] sm:$0xf] %v286_v11  ;;  %289 = vst [vmem:[%s243_s8 + $0x30] sm:$0xf] %v288_v12 }
  0x1a   : > { %291 = vst [vmem:[%s243_s8 + $0x34] sm:$0xf] %v290_v13  ;;  %v292_v14 = vld [vmem:[%s1487_s7 + $0x118] sm:$0xf]  ;;  %v294_v15 = vld [vmem:[%s1487_s7 + $0x12c] sm:$0xf] }
  0x1b   : > { %293 = vst [vmem:[%s243_s8 + $0x38] sm:$0xf] %v292_v14  ;;  %295 = vst [vmem:[%s243_s8 + $0x3c] sm:$0xf] %v294_v15 }
  0x1c PF: > { %p1106_p6 = scmp.ge.s32.totalorder %s1411_s22, 1  ;;  %p361_p7 = scmp.lt.s32.totalorder %s1411_s22, 6 }
  0x1e   : > { %p362_p8 = pnand %p1106_p6, %p361_p7 }
  0x1f   : > { %s368_s9 = sand.u32 (!%p362_p8), 1, %s1395_s18   ;;  %s1108_s10 = sshll.u32 (!%p362_p8), %s1403_s20, 4 }
  0x20   : > { %365 = sbr.rel (%p362_p8) target bundleno = 332 (0x14c), region = 77  ;;  %s1107_s11 = sshll.u32 (!%p362_p8), %s368_s9, 6 }
  0x21   : > { %p422_p9 = scmp.lt.s32.totalorder (!%p362_p8), %s1108_s10, 79  ;;  %s1514_s16 = scalar_lea.vmem (!%p362_p8), [#allocation3], %s1107_s11 }
  0x22   : > { %p1110_p10 = scmp.ne.s32.totalorder (!%p362_p8), %s1403_s20, 0 }
  0x27   : > { %s1652_s10 = smov (!%p422_p9, %s1108_s10), 79  ;;  %458 = sbr.rel (%p1110_p10) target bundleno = 49 (0x31), region = 85 }
  0x28   : > { %s1109_s12 = sshll.u32 %s1652_s10, 2  ;;  %v1413_v16 = vmov (!%p1110_p10), 0.0  }
  0x29   : > { %s1512_s15 = scalar_lea.vmem %s1640_s1, %s1109_s12  ;;  %459 = vst [vmem:[#allocation2] sm:$0xff] (!%p1110_p10), %v1413_v16  ;;  %460 = vst [vmem:[#allocation2 + $0x8] sm:$0xff] (!%p1110_p10), %v1413_v16 }
  0x2a   : > { %461 = vst [vmem:[#allocation2 + $0x10] sm:$0xff] (!%p1110_p10), %v1413_v16  ;;  %462 = vst [vmem:[#allocation2 + $0x18] sm:$0xff] (!%p1110_p10), %v1413_v16 }
  0x2b   : > { %463 = vst [vmem:[#allocation2 + $0x20] sm:$0xff] (!%p1110_p10), %v1413_v16  ;;  %464 = vst [vmem:[#allocation2 + $0x28] sm:$0xff] (!%p1110_p10), %v1413_v16 }
  0x2c   : > { %465 = vst [vmem:[#allocation2 + $0x30] sm:$0xff] (!%p1110_p10), %v1413_v16  ;;  %466 = vst [vmem:[#allocation2 + $0x38] sm:$0xff] (!%p1110_p10), %v1413_v16 }
  0x2d   : > { %467 = vst [vmem:[#allocation2 + $0x40] sm:$0xff] (!%p1110_p10), %v1413_v16  ;;  %468 = vst [vmem:[#allocation2 + $0x48] sm:$0xff] (!%p1110_p10), %v1413_v16 }
  0x2e   : > { %469 = vst [vmem:[#allocation2 + $0x50] sm:$0xff] %v1413_v16  ;;  %470 = vst [vmem:[#allocation2 + $0x58] sm:$0xff] %v1413_v16 }
  0x2f   : > { %471 = vst [vmem:[#allocation2 + $0x60] sm:$0xff] %v1413_v16  ;;  %472 = vst [vmem:[#allocation2 + $0x68] sm:$0xff] %v1413_v16 }
  0x30   : > { %473 = vst [vmem:[#allocation2 + $0x70] sm:$0xff] %v1413_v16  ;;  %474 = vst [vmem:[#allocation2 + $0x78] sm:$0xff] %v1413_v16 }
  0x31 PF: > { %v1357_v17 = vld [vmem:[%s1512_s15] sm:$0xff]   ;;  %v1358_v18 = vld [vmem:[%s1512_s15 + $0x8] sm:$0xff]   ;;  %v1359_v19 = vld [vmem:[%s1512_s15 + $0x10] sm:$0xff]   ;;  %p1127_p11 = scmp.ne.s32.totalorder %s1403_s20, 4 }
  0x32   : > { %1268 = vmatprep.subr.bf16.mxu0 %v1357_v17  ;;  %1300 = vmatprep.subr.bf16.mxu1 %v1357_v17  ;;  %v1360_v20 = vld [vmem:[%s1512_s15 + $0x18] sm:$0xff]   ;;  %v1365_v21 = vld [vmem:[%s1514_s16] sm:$0xff]   ;;  %v1362_v24 = vld [vmem:[%s1512_s15 + $0x28] sm:$0xff]  }
  0x33   : > { %1269 = vmatpush3.bf16.msra.mxu0 %v1357_v17  ;;  %1308 = vmatpush3.bf16.msra.mxu1 %v1357_v17  ;;  %v1366_v22 = vld [vmem:[%s1514_s16 + $0x20] sm:$0xff]   ;;  %v1363_v25 = vld [vmem:[%s1512_s15 + $0x30] sm:$0xff]   ;;  %v1364_v26 = vld [vmem:[%s1512_s15 + $0x38] sm:$0xff]  }
  0x34   : > { %1270 = vmatprep.subr.bf16.mxu0 %v1358_v18  ;;  %1301 = vmatprep.subr.bf16.mxu1 %v1358_v18  ;;  %v1361_v23 = vld [vmem:[%s1512_s15 + $0x20] sm:$0xff]   ;;  %v1367_v27 = vld [vmem:[%s1514_s16 + $0x8] sm:$0xff]   ;;  %v1369_v29 = vld [vmem:[%s1514_s16 + $0x10] sm:$0xff]  }
  0x35   : > { %1284 = vmatprep.mubr.bf16.mxu0 %v1365_v21  ;;  %1292 = vmatprep.mubr.bf16.mxu1 %v1366_v22  ;;  %v1368_v28 = vld [vmem:[%s1514_s16 + $0x28] sm:$0xff]   ;;  %v1370_v30 = vld [vmem:[%s1514_s16 + $0x30] sm:$0xff]   ;;  %v1371_v31 = vld [vmem:[%s1514_s16 + $0x18] sm:$0xff]  }
  0x36   : > { %v1372_v32 = vld [vmem:[%s1514_s16 + $0x38] sm:$0xff]   ;;  %v477_v33 = vld [vmem:[#allocation2 + $0x10] sm:$0xff]  ;;  %v475_v35 = vld [vmem:[#allocation2] sm:$0xff] }
  0x37   : > { %1271 = vmatpush3.bf16.msra.mxu0 %v1358_v18  ;;  %1309 = vmatpush3.bf16.msra.mxu1 %v1358_v18  ;;  %v485_v34 = vld [vmem:[#allocation2 + $0x50] sm:$0xff]  ;;  %v483_v36 = vld [vmem:[#allocation2 + $0x40] sm:$0xff]  ;;  %v478_v39 = vld [vmem:[#allocation2 + $0x18] sm:$0xff] }
  0x38   : > { %1272 = vmatprep.subr.bf16.mxu0 %v1359_v19  ;;  %1302 = vmatprep.subr.bf16.mxu1 %v1359_v19  ;;  %v486_v40 = vld [vmem:[#allocation2 + $0x58] sm:$0xff]  ;;  %v476_v45 = vld [vmem:[#allocation2 + $0x8] sm:$0xff]  ;;  %v481_v57 = vld [vmem:[#allocation2 + $0x30] sm:$0xff] }
  0x39   : > { %v484_v46 = vld [vmem:[#allocation2 + $0x48] sm:$0xff]  ;;  %v489_v58 = vld [vmem:[#allocation2 + $0x70] sm:$0xff]  ;;  %v479_v59 = vld [vmem:[#allocation2 + $0x20] sm:$0xff] }
  0x3a   : > { %v487_v60 = vld [vmem:[#allocation2 + $0x60] sm:$0xff]  ;;  %v482_v63 = vld [vmem:[#allocation2 + $0x38] sm:$0xff]  ;;  %v480_v5 = vld [vmem:[#allocation2 + $0x28] sm:$0xff] }
  0x3b   : > { %1273 = vmatpush3.bf16.msra.mxu0 %v1359_v19  ;;  %1310 = vmatpush3.bf16.msra.mxu1 %v1359_v19  ;;  %v490_v0 = vld [vmem:[#allocation2 + $0x78] sm:$0xff]  ;;  %v488_v6 = vld [vmem:[#allocation2 + $0x68] sm:$0xff]  ;;  %v1537_v19 = vld [vmem:[%s1641_s2] ss:$0 sm:$0xff] (!%p1127_p11) }
  0x3c   : > { %1274 = vmatprep.subr.bf16.mxu0 %v1360_v20  ;;  %1303 = vmatprep.subr.bf16.mxu1 %v1360_v20  ;;  %v1544_v22 = vld [vmem:[%s1642_s3] ss:$0 sm:$0xff] (!%p1127_p11) }
  0x3f   : > { %1275 = vmatpush3.bf16.msra.mxu0 %v1360_v20  ;;  %1311 = vmatpush3.bf16.msra.mxu1 %v1360_v20 }
  0x40   : > { %1276 = vmatprep.subr.bf16.mxu0 %v1361_v23  ;;  %1304 = vmatprep.subr.bf16.mxu1 %v1361_v23 }
  0x43   : > { %1277 = vmatpush3.bf16.msra.mxu0 %v1361_v23  ;;  %1312 = vmatpush3.bf16.msra.mxu1 %v1361_v23  ;;  %v1167_v23 = vld [vmem:[%s1643_s4] sm:$0xff] (!%p1127_p11)  }
  0x44   : > { %1278 = vmatprep.subr.bf16.mxu0 %v1362_v24  ;;  %1305 = vmatprep.subr.bf16.mxu1 %v1362_v24 }
  0x47   : > { %1279 = vmatpush3.bf16.msra.mxu0 %v1362_v24  ;;  %1313 = vmatpush3.bf16.msra.mxu1 %v1362_v24 }
  0x48   : > { %1280 = vmatprep.subr.bf16.mxu0 %v1363_v25  ;;  %1306 = vmatprep.subr.bf16.mxu1 %v1363_v25 }
  0x4b   : > { %1281 = vmatpush3.bf16.msra.mxu0 %v1363_v25  ;;  %1314 = vmatpush3.bf16.msra.mxu1 %v1363_v25  ;;  %v1168_v25 = vunpack.c.l.bf16 (!%p1127_p11), %v1167_v23 }
  0x4c   : > { %1282 = vmatprep.subr.bf16.mxu0 %v1364_v26  ;;  %1307 = vmatprep.subr.bf16.mxu1 %v1364_v26 }
  0x4f   : > { %1283 = vmatpush3.bf16.msra.mxu0 %v1364_v26  ;;  %1315 = vmatpush3.bf16.msra.mxu1 %v1364_v26  ;;  %v1169_v26 = vunpack.c.h.bf16 (!%p1127_p11), %v1167_v23 }
  0x52   : > { %1285 = vmatmul.mubr.bf16.vlgmr.msra.gmra.mrb[0].mxu0 %v1367_v27  ;;  %1293 = vmatmul.mubr.bf16.vlgmr.msra.gmra.mrb[0].mxu1 %v1368_v28 }
  0x53   : > { %1288 = vmatprep.mubr.bf16.mxu0 %v1369_v29  ;;  %1296 = vmatprep.mubr.bf16.mxu1 %v1370_v30  ;;  %v1238_v29 = vld [vmem:[%s1643_s4 + $0x8] sm:$0xff] (!%p1127_p11)  }
  0x5a   : > { %1289 = vmatmul.mubr.bf16.gmra.mrb[4].mxu0 %v1371_v31  ;;  %1297 = vmatmul.mubr.bf16.gmra.mrb[4].mxu1 %v1372_v32 }
 0x125   : > { %v1286_v37 = vpop.f32.mrb[0].mxu0  ;;  %v1294_v38 = vpop.f32.mrb[0].mxu1 }
 0x126   : > { %v718_v41 = vadd.f32 %v1286_v37, %v477_v33  ;;  %v726_v42 = vadd.f32 %v1294_v38, %v485_v34  ;;  %v653_v43 = vpop.f32.mrb[1].mxu0  ;;  %v685_v44 = vpop.f32.mrb[1].mxu1  ;;  %v1172_v34 = vunpack.c.l.bf16 (!%p1127_p11), %v1238_v29  ;;  %v1173_v38 = vunpack.c.h.bf16 (!%p1127_p11), %v1238_v29 }
 0x127   : > { %v716_v47 = vadd.f32 %v653_v43, %v475_v35  ;;  %v724_v48 = vadd.f32 %v685_v44, %v483_v36  ;;  %v1287_v49 = vpop.f32.mrb[2].mxu0  ;;  %v1295_v50 = vpop.f32.mrb[2].mxu1  ;;  %v1239_v36 = vld [vmem:[%s1643_s4 + $0x10] sm:$0xff] (!%p1127_p11)  }
 0x128   : > { %734 = vst [vmem:[#allocation2 + $0x10] sm:$0xff] %v718_v41  ;;  %742 = vst [vmem:[#allocation2 + $0x50] sm:$0xff] %v726_v42  ;;  %v719_v51 = vadd.f32 %v1287_v49, %v478_v39  ;;  %v727_v52 = vadd.f32 %v1295_v50, %v486_v40  ;;  %v656_v53 = vpop.f32.mrb[3].mxu0  ;;  %v688_v54 = vpop.f32.mrb[3].mxu1  ;;  %v1177_v50 = vunpack.c.h.bf16 (!%p1127_p11), %v1239_v36 }
 0x129   : > { %732 = vst [vmem:[#allocation2] sm:$0xff] %v716_v47  ;;  %740 = vst [vmem:[#allocation2 + $0x40] sm:$0xff] %v724_v48  ;;  %v717_v55 = vadd.f32 %v656_v53, %v476_v45  ;;  %v725_v56 = vadd.f32 %v688_v54, %v484_v46  ;;  %v1176_v45 = vunpack.c.l.bf16 (!%p1127_p11), %v1239_v36 }
 0x12a   : > { %735 = vst [vmem:[#allocation2 + $0x18] sm:$0xff] %v719_v51  ;;  %743 = vst [vmem:[#allocation2 + $0x58] sm:$0xff] %v727_v52  ;;  %v1240_v51 = vld [vmem:[%s1643_s4 + $0x18] sm:$0xff] (!%p1127_p11)  }
 0x12b   : > { %733 = vst [vmem:[#allocation2 + $0x8] sm:$0xff] %v717_v55  ;;  %741 = vst [vmem:[#allocation2 + $0x48] sm:$0xff] %v725_v56 }
 0x12d   : > { %v1290_v61 = vpop.f32.mrb[4].mxu0  ;;  %v1298_v62 = vpop.f32.mrb[4].mxu1  ;;  %751 = sbr.rel (%p1127_p11) target bundleno = 332 (0x14c), region = 89 }
 0x12e   : > { %v722_v1 = vadd.f32 %v1290_v61, %v481_v57  ;;  %v730_v2 = vadd.f32 %v1298_v62, %v489_v58  ;;  %v669_v3 = vpop.f32.mrb[5].mxu0  ;;  %v701_v4 = vpop.f32.mrb[5].mxu1 }
 0x12f   : > { %v720_v7 = vadd.f32 %v669_v3, %v479_v59  ;;  %v728_v8 = vadd.f32 %v701_v4, %v487_v60  ;;  %v1291_v9 = vpop.f32.mrb[6].mxu0  ;;  %v1299_v10 = vpop.f32.mrb[6].mxu1  ;;  %v754_v24 = vld [vmem:[#allocation2 + $0x10] sm:$0xff] (!%p1127_p11) }
 0x130   : > { %738 = vst [vmem:[#allocation2 + $0x30] sm:$0xff] %v722_v1  ;;  %746 = vst [vmem:[#allocation2 + $0x70] sm:$0xff] %v730_v2  ;;  %v723_v11 = vadd.f32 %v1291_v9, %v482_v63  ;;  %v731_v12 = vadd.f32 %v1299_v10, %v490_v0  ;;  %v672_v13 = vpop.f32.mrb[7].mxu0  ;;  %v704_v14 = vpop.f32.mrb[7].mxu1  ;;  %v752_v17 = vld [vmem:[#allocation2] sm:$0xff] (!%p1127_p11)  ;;  %v777_v28 = vmul.f32 (!%p1127_p11), %v1537_v19, %v754_v24  ;;  %v1180_v1 = vunpack.c.l.bf16 (!%p1127_p11), %v1240_v51 }
 0x131   : > { %736 = vst [vmem:[#allocation2 + $0x20] sm:$0xff] %v720_v7  ;;  %744 = vst [vmem:[#allocation2 + $0x60] sm:$0xff] %v728_v8  ;;  %v721_v15 = vadd.f32 %v672_v13, %v480_v5  ;;  %v729_v16 = vadd.f32 %v704_v14, %v488_v6  ;;  %v775_v20 = vmul.f32 (!%p1127_p11), %v1537_v19, %v752_v17  ;;  %v755_v27 = vld [vmem:[#allocation2 + $0x18] sm:$0xff] (!%p1127_p11)  ;;  %v760_v60 = vld [vmem:[#allocation2 + $0x40] sm:$0xff] (!%p1127_p11)  ;;  %v1181_v6 = vunpack.c.h.bf16 (!%p1127_p11), %v1240_v51 }
 0x132   : > { %739 = vst [vmem:[#allocation2 + $0x38] sm:$0xff] %v723_v11  ;;  %747 = vst [vmem:[#allocation2 + $0x78] sm:$0xff] %v731_v12  ;;  %v753_v18 = vld [vmem:[#allocation2 + $0x8] sm:$0xff] (!%p1127_p11)  ;;  %v778_v33 = vmul.f32 (!%p1127_p11), %v1537_v19, %v755_v27  ;;  %v800_v37 = vadd.f32 (!%p1127_p11), %v1544_v22, %v777_v28  ;;  %v1241_v2 = vld [vmem:[%s1643_s4 + $0x20] sm:$0xff] (!%p1127_p11)   ;;  %v783_v10 = vmul.f32 (!%p1127_p11), %v1537_v19, %v760_v60 }
 0x133   : > { %737 = vst [vmem:[#allocation2 + $0x28] sm:$0xff] %v721_v15  ;;  %745 = vst [vmem:[#allocation2 + $0x68] sm:$0xff] %v729_v16  ;;  %v776_v21 = vmul.f32 (!%p1127_p11), %v1537_v19, %v753_v18  ;;  %v798_v31 = vadd.f32 (!%p1127_p11), %v1544_v22, %v775_v20  ;;  %v761_v61 = vld [vmem:[#allocation2 + $0x48] sm:$0xff] (!%p1127_p11)  ;;  %v762_v7 = vld [vmem:[#allocation2 + $0x50] sm:$0xff] (!%p1127_p11)  ;;  %v1184_v16 = vunpack.c.l.bf16 (!%p1127_p11), %v1241_v2  ;;  %v1185_v17 = vunpack.c.h.bf16 (!%p1127_p11), %v1241_v2 }
 0x134   : > { %v801_v44 = vadd.f32 %v1544_v22, %v778_v33  ;;  %v848_v47 = vadd.f32 %v1172_v34, %v800_v37  ;;  %v784_v11 = vmul.f32 %v1537_v19, %v761_v61  ;;  %v763_v12 = vld [vmem:[#allocation2 + $0x58] sm:$0xff]  ;;  %v1242_v13 = vld [vmem:[%s1643_s4 + $0x28] sm:$0xff]   ;;  %v785_v24 = vmul.f32 %v1537_v19, %v762_v7 }
 0x135   : > { %v799_v32 = vadd.f32 %v1544_v22, %v776_v21  ;;  %v846_v42 = vadd.f32 %v1168_v25, %v798_v31  ;;  %v806_v21 = vadd.f32 %v1544_v22, %v783_v10  ;;  %v786_v28 = vmul.f32 %v1537_v19, %v763_v12 }
 0x136   : > { %v849_v54 = vadd.f32 %v1173_v38, %v801_v44  ;;  %v864_v56 = vmax.f32 %v848_v47, 0.0  ;;  %v807_v23 = vadd.f32 %v1544_v22, %v784_v11  ;;  %v1188_v29 = vunpack.c.l.bf16 %v1242_v13 }
 0x137   : > { %v758_v41 = vld [vmem:[#allocation2 + $0x30] sm:$0xff]  ;;  %v847_v43 = vadd.f32 %v1169_v26, %v799_v32  ;;  %v862_v52 = vmax.f32 %v846_v42, 0.0  ;;  %v854_v31 = vadd.f32 %v1184_v16, %v806_v21  ;;  %v808_v33 = vadd.f32 %v1544_v22, %v785_v24 }
 0x138   : > { %v756_v30 = vld [vmem:[#allocation2 + $0x20] sm:$0xff]  ;;  %v781_v55 = vmul.f32 %v1537_v19, %v758_v41  ;;  %v865_v63 = vmax.f32 %v849_v54, 0.0  ;;  %v1243_v26 = vld [vmem:[%s1643_s4 + $0x30] sm:$0xff]   ;;  %v855_v32 = vadd.f32 %v1185_v17, %v807_v23  ;;  %v809_v37 = vadd.f32 %v1544_v22, %v786_v28 }
 0x139   : > { %v779_v39 = vmul.f32 %v1537_v19, %v756_v30  ;;  %v759_v46 = vld [vmem:[#allocation2 + $0x38] sm:$0xff]  ;;  %v863_v53 = vmax.f32 %v847_v43, 0.0  ;;  %v764_v18 = vld [vmem:[#allocation2 + $0x60] sm:$0xff]  ;;  %v1189_v30 = vunpack.c.h.bf16 %v1242_v13  ;;  %v870_v41 = vmax.f32 %v854_v31, 0.0 }
 0x13a   : > { %v757_v35 = vld [vmem:[#allocation2 + $0x28] sm:$0xff]  ;;  %v782_v59 = vmul.f32 %v1537_v19, %v759_v46  ;;  %v804_v0 = vadd.f32 %v1544_v22, %v781_v55  ;;  %v1206_v8 = vpack.c.bf16 %v865_v63, %v864_v56  ;;  %v787_v34 = vmul.f32 %v1537_v19, %v764_v18 }
 0x13b   : > { %v780_v40 = vmul.f32 %v1537_v19, %v757_v35  ;;  %v802_v48 = vadd.f32 %v1544_v22, %v779_v39  ;;  %v1201_v62 = vpack.c.bf16 %v863_v53, %v862_v52  ;;  %v765_v25 = vld [vmem:[#allocation2 + $0x68] sm:$0xff]  ;;  %v766_v35 = vld [vmem:[#allocation2 + $0x70] sm:$0xff]  ;;  %v1192_v39 = vunpack.c.l.bf16 %v1243_v26 }
 0x13c   : > { %v805_v5 = vadd.f32 %v1544_v22, %v782_v59  ;;  %v852_v9 = vadd.f32 %v1180_v1, %v804_v0  ;;  %1245 = vst [vmem:[%s1644_s5 + $0x8] sm:$0xff] %v1206_v8   ;;  %v788_v38 = vmul.f32 %v1537_v19, %v765_v25  ;;  %v871_v42 = vmax.f32 %v855_v32, 0.0 }
 0x13d   : > { %v803_v49 = vadd.f32 %v1544_v22, %v780_v40  ;;  %v850_v57 = vadd.f32 %v1176_v45, %v802_v48  ;;  %1202 = vst [vmem:[%s1644_s5] sm:$0xff] %v1201_v62   ;;  %v767_v40 = vld [vmem:[#allocation2 + $0x78] sm:$0xff]  ;;  %v856_v43 = vadd.f32 %v1188_v29, %v808_v33  ;;  %v810_v44 = vadd.f32 %v1544_v22, %v787_v34 }
 0x13e   : > { %v853_v15 = vadd.f32 %v1181_v6, %v805_v5  ;;  %v868_v20 = vmax.f32 %v852_v9, 0.0  ;;  %v1244_v45 = vld [vmem:[%s1643_s4 + $0x38] sm:$0xff]   ;;  %v857_v46 = vadd.f32 %v1189_v30, %v809_v37  ;;  %v811_v47 = vadd.f32 %v1544_v22, %v788_v38 }
 0x13f   : > { %v851_v58 = vadd.f32 %v1177_v50, %v803_v49  ;;  %v866_v3 = vmax.f32 %v850_v57, 0.0  ;;  %v1193_v48 = vunpack.c.h.bf16 %v1243_v26  ;;  %v789_v49 = vmul.f32 %v1537_v19, %v766_v35 }
 0x140   : > { %v869_v27 = vmax.f32 %v853_v15, 0.0  ;;  %v1221_v50 = vpack.c.bf16 %v871_v42, %v870_v41  ;;  %v872_v51 = vmax.f32 %v856_v43, 0.0  ;;  %v858_v52 = vadd.f32 %v1192_v39, %v810_v44 }
 0x141   : > { %v867_v4 = vmax.f32 %v851_v58, 0.0  ;;  %v790_v53 = vmul.f32 %v1537_v19, %v767_v40  ;;  %v873_v54 = vmax.f32 %v857_v46, 0.0  ;;  %v859_v55 = vadd.f32 %v1193_v48, %v811_v47 }
 0x142   : > { %v1216_v36 = vpack.c.bf16 %v869_v27, %v868_v20  ;;  %v812_v56 = vadd.f32 %v1544_v22, %v789_v49  ;;  %v1196_v57 = vunpack.c.l.bf16 %v1244_v45  ;;  %1248 = vst [vmem:[%s1644_s5 + $0x20] sm:$0xff] %v1221_v50   ;;  %v874_v58 = vmax.f32 %v858_v52, 0.0 }
 0x143   : > { %v1211_v14 = vpack.c.bf16 %v867_v4, %v866_v3  ;;  %v813_v59 = vadd.f32 %v1544_v22, %v790_v53  ;;  %v1197_v60 = vunpack.c.h.bf16 %v1244_v45  ;;  %v1226_v61 = vpack.c.bf16 %v873_v54, %v872_v51 }
 0x144   : > { %1247 = vst [vmem:[%s1644_s5 + $0x18] sm:$0xff] %v1216_v36   ;;  %v875_v62 = vmax.f32 %v859_v55, 0.0  ;;  %v860_v63 = vadd.f32 %v1196_v57, %v812_v56 }
 0x145   : > { %1246 = vst [vmem:[%s1644_s5 + $0x10] sm:$0xff] %v1211_v14   ;;  %v861_v0 = vadd.f32 %v1197_v60, %v813_v59  ;;  %1249 = vst [vmem:[%s1644_s5 + $0x28] sm:$0xff] %v1226_v61  }
 0x146   : > { %v1231_v19 = vpack.c.bf16 %v875_v62, %v874_v58  ;;  %v876_v1 = vmax.f32 %v860_v63, 0.0 }
 0x147   : > { %v877_v2 = vmax.f32 %v861_v0, 0.0 }
 0x148   : > { %1250 = vst [vmem:[%s1644_s5 + $0x30] sm:$0xff] %v1231_v19  }
 0x149   : > { %v1236_v3 = vpack.c.bf16 %v877_v2, %v876_v1 }
 0x14b   : > { %1251 = vst [vmem:[%s1644_s5 + $0x38] sm:$0xff] %v1236_v3  }
 0x14c PF: > { %s15_s22 = sadd.s32 1, %s1411_s22   ;;  %s1645_s18 = smov %s1399_s19 }
 0x14d   : > { %p12_p12 = scmp.ge.s32.totalorder %s15_s22, 7   ;;  %s1646_s19 = smov %s1479_s26 }
 0x14e   : > { %s1647_s20 = smov %s1407_s21  ;;  %s1648_s21 = smov %s1650_s23 }
 0x14f   :  { %14 = sbr.rel (!%p12_p12) target bundleno = 3 (0x3), region = 136 }

// kernel: base_resnet18_forward.31
= control target key start
LH: loop header
LB: loop body
LE: loop exit
PB: predicated region body
PF: predicated region fallthrough
CT: control target
= control target key end

     0   :  { %s867_s15 = smov 0   ;;  %s869_s16 = smov 0   ;;  %s963_s0 = inlined_call_operand.vmem [shape: bf16[32,640], index: 0, kind: input, shape index: {}]   ;;  %s964_s1 = inlined_call_operand.vmem [shape: bf16[640,128], index: 1, kind: input, shape index: {}]   ;;  %s965_s2 = inlined_call_operand.vmem [shape: f32[1,128], index: 2, kind: input, shape index: {}]   ;;  %s966_s3 = inlined_call_operand.vmem [shape: f32[1,128], index: 3, kind: input, shape index: {}]   ;;  %s967_s4 = inlined_call_operand.vmem [shape: bf16[32,128], index: 4, kind: output, shape index: {}]  }
   0x1   :  { %s871_s17 = smov 0   ;;  %s873_s18 = smov 0  }
   0x2   :  { %s875_s19 = smov 0  }
   0x3 LB: > { %s26_s20 = sadd.s32 1, %s835_s18  ;;  %p49_p1 = scmp.ne.s32.totalorder %s827_s16, %s823_s15  ;;  %s839_s19 = sphi %s875_s19, %s14_s19   ;;  %s835_s18 = sphi %s873_s18, %s971_s18   ;;  %s831_s17 = sphi %s871_s17, %s970_s17   ;;  %s827_s16 = sphi %s869_s16, %s969_s16   ;;  %s823_s15 = sphi %s867_s15, %s968_s15  }
   0x4   : > { %p27_p0 = scmp.ge.s32.totalorder %s26_s20, 5  ;;  %p50_p2 = scmp.eq.s32.totalorder %s839_s19, 0 }
   0x5   : > { %s42_s22 = sadd.s32 1, %s827_s16  ;;  %p676_p5 = scmp.ge.s32.totalorder %s839_s19, 5 }
   0x6   : > { %s973_s20 = smov (%p27_p0, %s26_s20), 0  ;;  %p51_p3 = por %p50_p2, %p49_p1 }
   0x7   : > { %s38_s21 = ssub.s32 %s835_s18, %s973_s20  ;;  %195 = sbr.rel (%p676_p5) target bundleno = 21 (0x15), region = 24 }
   0x8   : > { %p40_p4 = scmp.eq.s32.totalorder %s38_s21, 0 }
   0xa   : > { %s902_s23 = scalar_select %p40_p4, %s827_s16, %s42_s22  }
   0xe   : > { %198 = sbr.rel (!%p51_p3) target bundleno = 21 (0x15), region = 28  ;;  %s200_s24 = sand.u32 (%p51_p3), 1, %s827_s16  }
   0xf   : > { %s678_s25 = sshll.u32 (%p51_p3), %s835_s18, 2  ;;  %s677_s26 = sshll.u32 (%p51_p3), %s200_s24, 4 }
  0x10   : > { %s207_s29 = scalar_lea.vmem (%p51_p3), %s963_s0, %s678_s25  ;;  %s202_s30 = scalar_lea.vmem (%p51_p3), [#allocation3], %s677_s26 }
  0x11   : > { %v223_v0 = vld [vmem:[%s207_s29] sm:$0xf] (%p51_p3)  ;;  %v225_v1 = vld [vmem:[%s207_s29 + $0x14] sm:$0xf] (%p51_p3)  ;;  %v227_v2 = vld [vmem:[%s207_s29 + $0x28] sm:$0xf] (%p51_p3) }
  0x12   : > { %224 = vst [vmem:[%s202_s30] sm:$0xf] (%p51_p3), %v223_v0  ;;  %226 = vst [vmem:[%s202_s30 + $0x4] sm:$0xf] (%p51_p3), %v225_v1  ;;  %v229_v3 = vld [vmem:[%s207_s29 + $0x3c] sm:$0xf] (%p51_p3) }
  0x13   : > { %228 = vst [vmem:[%s202_s30 + $0x8] sm:$0xf] (%p51_p3), %v227_v2  ;;  %230 = vst [vmem:[%s202_s30 + $0xc] sm:$0xf] (%p51_p3), %v229_v3 }
  0x15 PF: > { %p679_p6 = scmp.ge.s32.totalorder %s839_s19, 1  ;;  %p272_p7 = scmp.lt.s32.totalorder %s839_s19, 6 }
  0x17   : > { %p273_p8 = pnand %p679_p6, %p272_p7 }
  0x18   : > { %s279_s5 = sand.u32 (!%p273_p8), 1, %s823_s15   ;;  %s681_s6 = sshll.u32 (!%p273_p8), %s831_s17, 4 }
  0x19   : > { %276 = sbr.rel (%p273_p8) target bundleno = 306 (0x132), region = 73  ;;  %s914_s7 = sshll.u32 (!%p273_p8), %s279_s5, 4 }
  0x1a   : > { %p323_p9 = scmp.lt.s32.totalorder (!%p273_p8), %s681_s6, 79  ;;  %s281_s12 = scalar_lea.vmem (!%p273_p8), [#allocation3], %s914_s7 }
  0x1b   : > { %p683_p10 = scmp.ne.s32.totalorder (!%p273_p8), %s831_s17, 0 }
  0x20   : > { %s975_s6 = smov (!%p323_p9, %s681_s6), 79  ;;  %350 = sbr.rel (%p683_p10) target bundleno = 39 (0x27), region = 81 }
  0x21   : > { %s682_s8 = sshll.u32 %s975_s6, 2  ;;  %v841_v4 = vmov (!%p683_p10), 0.0  }
  0x22   : > { %s919_s11 = scalar_lea.vmem %s964_s1, %s682_s8  ;;  %351 = vst [vmem:[#allocation2] sm:$0xff] (!%p683_p10), %v841_v4  ;;  %352 = vst [vmem:[#allocation2 + $0x8] sm:$0xff] (!%p683_p10), %v841_v4 }
  0x23   : > { %353 = vst [vmem:[#allocation2 + $0x10] sm:$0xff] (!%p683_p10), %v841_v4  ;;  %354 = vst [vmem:[#allocation2 + $0x18] sm:$0xff] (!%p683_p10), %v841_v4 }
  0x27 PF: > { %v791_v5 = vld [vmem:[%s919_s11] sm:$0xff]   ;;  %v792_v6 = vld [vmem:[%s919_s11 + $0x8] sm:$0xff]   ;;  %v793_v7 = vld [vmem:[%s919_s11 + $0x10] sm:$0xff]   ;;  %p694_p11 = scmp.ne.s32.totalorder %s831_s17, 4 }
  0x28   : > { %730 = vmatprep.subr.bf16.mxu0 %v791_v5  ;;  %v794_v8 = vld [vmem:[%s919_s11 + $0x18] sm:$0xff]   ;;  %v799_v9 = vld [vmem:[%s281_s12] sm:$0xff]   ;;  %v796_v11 = vld [vmem:[%s919_s11 + $0x28] sm:$0xff]  }
  0x29   : > { %731 = vmatpush3.bf16.msra.mxu0 %v791_v5  ;;  %746 = vmatprep.mubr.bf16.mxu0 %v799_v9  ;;  %v795_v10 = vld [vmem:[%s919_s11 + $0x20] sm:$0xff]   ;;  %v797_v12 = vld [vmem:[%s919_s11 + $0x30] sm:$0xff]   ;;  %v798_v13 = vld [vmem:[%s919_s11 + $0x38] sm:$0xff]  }
  0x2a   : > { %732 = vmatprep.subr.bf16.mxu0 %v792_v6  ;;  %v800_v14 = vld [vmem:[%s281_s12 + $0x8] sm:$0xff]   ;;  %v357_v15 = vld [vmem:[#allocation2 + $0x10] sm:$0xff]  ;;  %v355_v16 = vld [vmem:[#allocation2] sm:$0xff] }
  0x2b   : > { %v358_v18 = vld [vmem:[#allocation2 + $0x18] sm:$0xff]  ;;  %v356_v21 = vld [vmem:[#allocation2 + $0x8] sm:$0xff]  ;;  %v695_v29 = vld [vmem:[%s965_s2] ss:$0 sm:$0xff] (!%p694_p11) }
  0x2c   : > { %v696_v32 = vld [vmem:[%s966_s3] ss:$0 sm:$0xff] (!%p694_p11) }
  0x2d   : > { %733 = vmatpush3.bf16.msra.mxu0 %v792_v6 }
  0x2e   : > { %734 = vmatprep.subr.bf16.mxu0 %v793_v7 }
  0x31   : > { %735 = vmatpush3.bf16.msra.mxu0 %v793_v7 }
  0x32   : > { %736 = vmatprep.subr.bf16.mxu0 %v794_v8 }
  0x35   : > { %737 = vmatpush3.bf16.msra.mxu0 %v794_v8 }
  0x36   : > { %738 = vmatprep.subr.bf16.mxu0 %v795_v10 }
  0x39   : > { %739 = vmatpush3.bf16.msra.mxu0 %v795_v10 }
  0x3a   : > { %740 = vmatprep.subr.bf16.mxu0 %v796_v11 }
  0x3d   : > { %741 = vmatpush3.bf16.msra.mxu0 %v796_v11 }
  0x3e   : > { %742 = vmatprep.subr.bf16.mxu0 %v797_v12 }
  0x41   : > { %743 = vmatpush3.bf16.msra.mxu0 %v797_v12 }
  0x42   : > { %744 = vmatprep.subr.bf16.mxu0 %v798_v13 }
  0x45   : > { %745 = vmatpush3.bf16.msra.mxu0 %v798_v13 }
  0x48   : > { %747 = vmatmul.mubr.bf16.vlgmr.msra.gmra.mrb[0].mxu0 %v800_v14 }
 0x11b   : > { %v748_v17 = vpop.f32.mrb[0].mxu0  ;;  %499 = sbr.rel (%p694_p11) target bundleno = 306 (0x132), region = 85 }
 0x11c   : > { %v490_v19 = vadd.f32 %v748_v17, %v357_v15  ;;  %v473_v20 = vpop.f32.mrb[1].mxu0 }
 0x11d   : > { %v488_v22 = vadd.f32 %v473_v20, %v355_v16  ;;  %v749_v23 = vpop.f32.mrb[2].mxu0 }
 0x11e   : > { %494 = vst [vmem:[#allocation2 + $0x10] sm:$0xff] %v490_v19  ;;  %v491_v24 = vadd.f32 %v749_v23, %v358_v18  ;;  %v476_v25 = vpop.f32.mrb[3].mxu0 }
 0x11f   : > { %492 = vst [vmem:[#allocation2] sm:$0xff] %v488_v22  ;;  %v489_v26 = vadd.f32 %v476_v25, %v356_v21 }
 0x120   : > { %495 = vst [vmem:[#allocation2 + $0x18] sm:$0xff] %v491_v24 }
 0x121   : > { %493 = vst [vmem:[#allocation2 + $0x8] sm:$0xff] %v489_v26 }
 0x125   : > { %v502_v33 = vld [vmem:[#allocation2 + $0x10] sm:$0xff] }
 0x126   : > { %v500_v27 = vld [vmem:[#allocation2] sm:$0xff]  ;;  %v513_v35 = vmul.f32 %v695_v29, %v502_v33 }
 0x127   : > { %v511_v30 = vmul.f32 %v695_v29, %v500_v27  ;;  %v503_v34 = vld [vmem:[#allocation2 + $0x18] sm:$0xff] }
 0x128   : > { %v501_v28 = vld [vmem:[#allocation2 + $0x8] sm:$0xff]  ;;  %v514_v36 = vmul.f32 %v695_v29, %v503_v34  ;;  %v524_v39 = vadd.f32 %v696_v32, %v513_v35 }
 0x129   : > { %v512_v31 = vmul.f32 %v695_v29, %v501_v28  ;;  %v522_v37 = vadd.f32 %v696_v32, %v511_v30 }
 0x12a   : > { %v525_v40 = vadd.f32 %v696_v32, %v514_v36  ;;  %v528_v43 = vmax.f32 %v524_v39, 0.0 }
 0x12b   : > { %v523_v38 = vadd.f32 %v696_v32, %v512_v31  ;;  %v526_v41 = vmax.f32 %v522_v37, 0.0 }
 0x12c   : > { %v529_v44 = vmax.f32 %v525_v40, 0.0 }
 0x12d   : > { %v527_v42 = vmax.f32 %v523_v38, 0.0 }
 0x12e   : > { %v717_v46 = vpack.c.bf16 %v529_v44, %v528_v43 }
 0x12f   : > { %v712_v45 = vpack.c.bf16 %v527_v42, %v526_v41 }
 0x130   : > { %719 = vst [vmem:[%s967_s4 + $0x8] sm:$0xff] %v717_v46  }
 0x131   : > { %713 = vst [vmem:[%s967_s4] sm:$0xff] %v712_v45  }
 0x132 PF: > { %s14_s19 = sadd.s32 1, %s839_s19   ;;  %s968_s15 = smov %s827_s16 }
 0x133   : > { %p11_p12 = scmp.ge.s32.totalorder %s14_s19, 7   ;;  %s969_s16 = smov %s902_s23 }
 0x134   : > { %s970_s17 = smov %s835_s18  ;;  %s971_s18 = smov %s973_s20 }
 0x135   :  { %13 = sbr.rel (!%p11_p12) target bundleno = 3 (0x3), region = 129 }

// kernel: base_resnet18_forward.30
= control target key start
LH: loop header
LB: loop body
LE: loop exit
PB: predicated region body
PF: predicated region fallthrough
CT: control target
= control target key end

     0   :  { %s358_s1 = inlined_call_operand.vmem [shape: bf16[128,128], index: 1, kind: input, shape index: {}]   ;;  %s359_s0 = inlined_call_operand.vmem [shape: bf16[32,128], index: 0, kind: input, shape index: {}]   ;;  %s360_s2 = inlined_call_operand.vmem [shape: f32[1,128], index: 2, kind: input, shape index: {}]   ;;  %s361_s3 = inlined_call_operand.vmem [shape: f32[1,128], index: 3, kind: input, shape index: {}]   ;;  %s362_s4 = inlined_call_operand.vmem [shape: bf16[32,128], index: 4, kind: output, shape index: {}]  }
   0x1   :  { %v281_v0 = vld [vmem:[%s358_s1] sm:$0xff]   ;;  %v282_v1 = vld [vmem:[%s358_s1 + $0x8] sm:$0xff]   ;;  %v283_v2 = vld [vmem:[%s358_s1 + $0x10] sm:$0xff]  }
   0x2   :  { %261 = vmatprep.subr.bf16.mxu0 %v281_v0  ;;  %v284_v3 = vld [vmem:[%s358_s1 + $0x18] sm:$0xff]   ;;  %v289_v4 = vld [vmem:[%s359_s0] sm:$0xff]   ;;  %v286_v6 = vld [vmem:[%s358_s1 + $0x28] sm:$0xff]  }
   0x3   :  { %262 = vmatpush3.bf16.msra.mxu0 %v281_v0  ;;  %277 = vmatprep.mubr.bf16.mxu0 %v289_v4  ;;  %v285_v5 = vld [vmem:[%s358_s1 + $0x20] sm:$0xff]   ;;  %v287_v7 = vld [vmem:[%s358_s1 + $0x30] sm:$0xff]   ;;  %v288_v8 = vld [vmem:[%s358_s1 + $0x38] sm:$0xff]  }
   0x4   :  { %263 = vmatprep.subr.bf16.mxu0 %v282_v1  ;;  %v290_v9 = vld [vmem:[%s359_s0 + $0x8] sm:$0xff]   ;;  %v230_v10 = vld [vmem:[%s360_s2] ss:$0 sm:$0xff] }
   0x5   :  { %v231_v14 = vld [vmem:[%s361_s3] ss:$0 sm:$0xff] }
   0x7   :  { %264 = vmatpush3.bf16.msra.mxu0 %v282_v1 }
   0x8   :  { %265 = vmatprep.subr.bf16.mxu0 %v283_v2 }
   0xb   :  { %266 = vmatpush3.bf16.msra.mxu0 %v283_v2 }
   0xc   :  { %267 = vmatprep.subr.bf16.mxu0 %v284_v3 }
   0xf   :  { %268 = vmatpush3.bf16.msra.mxu0 %v284_v3 }
  0x10   :  { %269 = vmatprep.subr.bf16.mxu0 %v285_v5 }
  0x13   :  { %270 = vmatpush3.bf16.msra.mxu0 %v285_v5 }
  0x14   :  { %271 = vmatprep.subr.bf16.mxu0 %v286_v6 }
  0x17   :  { %272 = vmatpush3.bf16.msra.mxu0 %v286_v6 }
  0x18   :  { %273 = vmatprep.subr.bf16.mxu0 %v287_v7 }
  0x1b   :  { %274 = vmatpush3.bf16.msra.mxu0 %v287_v7 }
  0x1c   :  { %275 = vmatprep.subr.bf16.mxu0 %v288_v8 }
  0x1f   :  { %276 = vmatpush3.bf16.msra.mxu0 %v288_v8 }
  0x22   :  { %278 = vmatmul.mubr.bf16.vlgmr.msra.gmra.mrb[0].mxu0 %v290_v9 }
  0xf5   :  { %v279_v11 = vpop.f32.mrb[0].mxu0 }
  0xf6   :  { %v183_v12 = vmul.f32 %v279_v11, %v230_v10  ;;  %v144_v13 = vpop.f32.mrb[1].mxu0 }
  0xf7   :  { %v181_v15 = vmul.f32 %v230_v10, %v144_v13  ;;  %v280_v16 = vpop.f32.mrb[2].mxu0 }
  0xf8   :  { %v184_v17 = vmul.f32 %v280_v16, %v230_v10  ;;  %v147_v18 = vpop.f32.mrb[3].mxu0  ;;  %v194_v20 = vadd.f32 %v231_v14, %v183_v12 }
  0xf9   :  { %v182_v19 = vmul.f32 %v230_v10, %v147_v18  ;;  %v192_v22 = vadd.f32 %v231_v14, %v181_v15 }
  0xfa   :  { %v195_v21 = vadd.f32 %v231_v14, %v184_v17 }
  0xfb   :  { %v193_v23 = vadd.f32 %v231_v14, %v182_v19 }
  0xfc   :  { %v248_v24 = vpack.c.bf16 %v195_v21, %v194_v20 }
  0xfd   :  { %v243_v25 = vpack.c.bf16 %v193_v23, %v192_v22 }
  0xfe   :  { %250 = vst [vmem:[%s362_s4 + $0x8] sm:$0xff] %v248_v24  }
  0xff   :  { %244 = vst [vmem:[%s362_s4] sm:$0xff] %v243_v25  }

// kernel: base_resnet18_forward.32
= control target key start
LH: loop header
LB: loop body
LE: loop exit
PB: predicated region body
PF: predicated region fallthrough
CT: control target
= control target key end

     0   :  { %s972_s18 = smov 0   ;;  %s974_s19 = smov 0   ;;  %s1074_s0 = inlined_call_operand.vmem [shape: bf16[32,1152], index: 0, kind: input, shape index: {}]   ;;  %s1075_s1 = inlined_call_operand.vmem [shape: bf16[1152,128], index: 1, kind: input, shape index: {}]   ;;  %s1076_s2 = inlined_call_operand.vmem [shape: f32[1,128], index: 2, kind: input, shape index: {}]   ;;  %s1077_s3 = inlined_call_operand.vmem [shape: f32[1,128], index: 3, kind: input, shape index: {}]   ;;  %s1078_s4 = inlined_call_operand.vmem [shape: bf16[32,128], index: 4, kind: input, shape index: {}]   ;;  %s1079_s5 = inlined_call_operand.vmem [shape: bf16[32,128], index: 5, kind: output, shape index: {}]  }
   0x1   :  { %s976_s20 = smov 0   ;;  %s978_s21 = smov 0  }
   0x2   :  { %s980_s22 = smov 0  }
   0x3 LB: > { %s27_s23 = sadd.s32 1, %s935_s21  ;;  %p50_p1 = scmp.ne.s32.totalorder %s927_s19, %s923_s18  ;;  %s939_s22 = sphi %s980_s22, %s15_s22   ;;  %s935_s21 = sphi %s978_s21, %s1083_s21   ;;  %s931_s20 = sphi %s976_s20, %s1082_s20   ;;  %s927_s19 = sphi %s974_s19, %s1081_s19   ;;  %s923_s18 = sphi %s972_s18, %s1080_s18  }
   0x4   : > { %p28_p0 = scmp.ge.s32.totalorder %s27_s23, 9  ;;  %p51_p2 = scmp.eq.s32.totalorder %s939_s22, 0 }
   0x5   : > { %s43_s25 = sadd.s32 1, %s927_s19  ;;  %p767_p5 = scmp.ge.s32.totalorder %s939_s22, 9 }
   0x6   : > { %s1085_s23 = smov (%p28_p0, %s27_s23), 0  ;;  %p52_p3 = por %p51_p2, %p50_p1 }
   0x7   : > { %s39_s24 = ssub.s32 %s935_s21, %s1085_s23  ;;  %236 = sbr.rel (%p767_p5) target bundleno = 21 (0x15), region = 28 }
   0x8   : > { %p41_p4 = scmp.eq.s32.totalorder %s39_s24, 0 }
   0xa   : > { %s1007_s26 = scalar_select %p41_p4, %s927_s19, %s43_s25  }
   0xe   : > { %239 = sbr.rel (!%p52_p3) target bundleno = 21 (0x15), region = 32  ;;  %s241_s27 = sand.u32 (%p52_p3), 1, %s927_s19  }
   0xf   : > { %s769_s28 = sshll.u32 (%p52_p3), %s935_s21, 2  ;;  %s768_s29 = sshll.u32 (%p52_p3), %s241_s27, 4 }
  0x10   : > { %s248_s7 = scalar_lea.vmem (%p52_p3), %s1074_s0, %s769_s28  ;;  %s243_s8 = scalar_lea.vmem (%p52_p3), [#allocation3], %s768_s29 }
  0x11   : > { %v264_v0 = vld [vmem:[%s248_s7] sm:$0xf] (%p52_p3)  ;;  %v266_v1 = vld [vmem:[%s248_s7 + $0x24] sm:$0xf] (%p52_p3)  ;;  %v268_v2 = vld [vmem:[%s248_s7 + $0x48] sm:$0xf] (%p52_p3) }
  0x12   : > { %265 = vst [vmem:[%s243_s8] sm:$0xf] (%p52_p3), %v264_v0  ;;  %267 = vst [vmem:[%s243_s8 + $0x4] sm:$0xf] (%p52_p3), %v266_v1  ;;  %v270_v3 = vld [vmem:[%s248_s7 + $0x6c] sm:$0xf] (%p52_p3) }
  0x13   : > { %269 = vst [vmem:[%s243_s8 + $0x8] sm:$0xf] (%p52_p3), %v268_v2  ;;  %271 = vst [vmem:[%s243_s8 + $0xc] sm:$0xf] (%p52_p3), %v270_v3 }
  0x15 PF: > { %p770_p6 = scmp.ge.s32.totalorder %s939_s22, 1  ;;  %p313_p7 = scmp.lt.s32.totalorder %s939_s22, 10 }
  0x17   : > { %p314_p8 = pnand %p770_p6, %p313_p7 }
  0x18   : > { %s320_s9 = sand.u32 (!%p314_p8), 1, %s923_s18   ;;  %s772_s10 = sshll.u32 (!%p314_p8), %s931_s20, 4 }
  0x19   : > { %317 = sbr.rel (%p314_p8) target bundleno = 308 (0x134), region = 77  ;;  %s1019_s11 = sshll.u32 (!%p314_p8), %s320_s9, 4 }
  0x1a   : > { %p374_p9 = scmp.lt.s32.totalorder (!%p314_p8), %s772_s10, 143  ;;  %s322_s16 = scalar_lea.vmem (!%p314_p8), [#allocation3], %s1019_s11 }
  0x1b   : > { %p774_p10 = scmp.ne.s32.totalorder (!%p314_p8), %s931_s20, 0 }
  0x20   : > { %s1087_s10 = smov (!%p374_p9, %s772_s10), 143  ;;  %410 = sbr.rel (%p774_p10) target bundleno = 39 (0x27), region = 85 }
  0x21   : > { %s773_s12 = sshll.u32 %s1087_s10, 2  ;;  %v941_v4 = vmov (!%p774_p10), 0.0  }
  0x22   : > { %s1024_s15 = scalar_lea.vmem %s1075_s1, %s773_s12  ;;  %411 = vst [vmem:[#allocation2] sm:$0xff] (!%p774_p10), %v941_v4  ;;  %412 = vst [vmem:[#allocation2 + $0x8] sm:$0xff] (!%p774_p10), %v941_v4 }
  0x23   : > { %413 = vst [vmem:[#allocation2 + $0x10] sm:$0xff] (!%p774_p10), %v941_v4  ;;  %414 = vst [vmem:[#allocation2 + $0x18] sm:$0xff] (!%p774_p10), %v941_v4 }
  0x27 PF: > { %v891_v5 = vld [vmem:[%s1024_s15] sm:$0xff]   ;;  %v892_v6 = vld [vmem:[%s1024_s15 + $0x8] sm:$0xff]   ;;  %v893_v7 = vld [vmem:[%s1024_s15 + $0x10] sm:$0xff]   ;;  %p785_p11 = scmp.ne.s32.totalorder %s931_s20, 8 }
  0x28   : > { %830 = vmatprep.subr.bf16.mxu0 %v891_v5  ;;  %v894_v8 = vld [vmem:[%s1024_s15 + $0x18] sm:$0xff]   ;;  %v899_v9 = vld [vmem:[%s322_s16] sm:$0xff]   ;;  %v896_v11 = vld [vmem:[%s1024_s15 + $0x28] sm:$0xff]  }
  0x29   : > { %831 = vmatpush3.bf16.msra.mxu0 %v891_v5  ;;  %846 = vmatprep.mubr.bf16.mxu0 %v899_v9  ;;  %v895_v10 = vld [vmem:[%s1024_s15 + $0x20] sm:$0xff]   ;;  %v897_v12 = vld [vmem:[%s1024_s15 + $0x30] sm:$0xff]   ;;  %v898_v13 = vld [vmem:[%s1024_s15 + $0x38] sm:$0xff]  }
  0x2a   : > { %832 = vmatprep.subr.bf16.mxu0 %v892_v6  ;;  %v900_v14 = vld [vmem:[%s322_s16 + $0x8] sm:$0xff]   ;;  %v417_v15 = vld [vmem:[#allocation2 + $0x10] sm:$0xff]  ;;  %v415_v16 = vld [vmem:[#allocation2] sm:$0xff] }
  0x2b   : > { %v418_v18 = vld [vmem:[#allocation2 + $0x18] sm:$0xff]  ;;  %v416_v21 = vld [vmem:[#allocation2 + $0x8] sm:$0xff]  ;;  %v786_v29 = vld [vmem:[%s1076_s2] ss:$0 sm:$0xff] (!%p785_p11) }
  0x2c   : > { %v787_v32 = vld [vmem:[%s1077_s3] ss:$0 sm:$0xff] (!%p785_p11)  ;;  %v818_v39 = vld [vmem:[%s1078_s4 + $0x8] sm:$0xff] (!%p785_p11)  }
  0x2d   : > { %833 = vmatpush3.bf16.msra.mxu0 %v892_v6  ;;  %v801_v33 = vld [vmem:[%s1078_s4] sm:$0xff] (!%p785_p11)   ;;  %v806_v43 = vunpack.c.l.bf16 (!%p785_p11), %v818_v39  ;;  %v807_v45 = vunpack.c.h.bf16 (!%p785_p11), %v818_v39 }
  0x2e   : > { %834 = vmatprep.subr.bf16.mxu0 %v893_v7  ;;  %v802_v35 = vunpack.c.l.bf16 (!%p785_p11), %v801_v33  ;;  %v803_v36 = vunpack.c.h.bf16 (!%p785_p11), %v801_v33 }
  0x31   : > { %835 = vmatpush3.bf16.msra.mxu0 %v893_v7 }
  0x32   : > { %836 = vmatprep.subr.bf16.mxu0 %v894_v8 }
  0x35   : > { %837 = vmatpush3.bf16.msra.mxu0 %v894_v8 }
  0x36   : > { %838 = vmatprep.subr.bf16.mxu0 %v895_v10 }
  0x39   : > { %839 = vmatpush3.bf16.msra.mxu0 %v895_v10 }
  0x3a   : > { %840 = vmatprep.subr.bf16.mxu0 %v896_v11 }
  0x3d   : > { %841 = vmatpush3.bf16.msra.mxu0 %v896_v11 }
  0x3e   : > { %842 = vmatprep.subr.bf16.mxu0 %v897_v12 }
  0x41   : > { %843 = vmatpush3.bf16.msra.mxu0 %v897_v12 }
  0x42   : > { %844 = vmatprep.subr.bf16.mxu0 %v898_v13 }
  0x45   : > { %845 = vmatpush3.bf16.msra.mxu0 %v898_v13 }
  0x48   : > { %847 = vmatmul.mubr.bf16.vlgmr.msra.gmra.mrb[0].mxu0 %v900_v14 }
 0x11b   : > { %v848_v17 = vpop.f32.mrb[0].mxu0  ;;  %559 = sbr.rel (%p785_p11) target bundleno = 308 (0x134), region = 89 }
 0x11c   : > { %v550_v19 = vadd.f32 %v848_v17, %v417_v15  ;;  %v533_v20 = vpop.f32.mrb[1].mxu0 }
 0x11d   : > { %v548_v22 = vadd.f32 %v533_v20, %v415_v16  ;;  %v849_v23 = vpop.f32.mrb[2].mxu0 }
 0x11e   : > { %554 = vst [vmem:[#allocation2 + $0x10] sm:$0xff] %v550_v19  ;;  %v551_v24 = vadd.f32 %v849_v23, %v418_v18  ;;  %v536_v25 = vpop.f32.mrb[3].mxu0 }
 0x11f   : > { %552 = vst [vmem:[#allocation2] sm:$0xff] %v548_v22  ;;  %v549_v26 = vadd.f32 %v536_v25, %v416_v21 }
 0x120   : > { %555 = vst [vmem:[#allocation2 + $0x18] sm:$0xff] %v551_v24 }
 0x121   : > { %553 = vst [vmem:[#allocation2 + $0x8] sm:$0xff] %v549_v26 }
 0x125   : > { %v562_v34 = vld [vmem:[#allocation2 + $0x10] sm:$0xff] }
 0x126   : > { %v560_v27 = vld [vmem:[#allocation2] sm:$0xff]  ;;  %v573_v38 = vmul.f32 %v786_v29, %v562_v34 }
 0x127   : > { %v571_v30 = vmul.f32 %v786_v29, %v560_v27  ;;  %v563_v37 = vld [vmem:[#allocation2 + $0x18] sm:$0xff] }
 0x128   : > { %v561_v28 = vld [vmem:[#allocation2 + $0x8] sm:$0xff]  ;;  %v574_v42 = vmul.f32 %v786_v29, %v563_v37  ;;  %v584_v44 = vadd.f32 %v787_v32, %v573_v38 }
 0x129   : > { %v572_v31 = vmul.f32 %v786_v29, %v561_v28  ;;  %v582_v40 = vadd.f32 %v787_v32, %v571_v30 }
 0x12a   : > { %v585_v48 = vadd.f32 %v787_v32, %v574_v42  ;;  %v596_v49 = vadd.f32 %v806_v43, %v584_v44 }
 0x12b   : > { %v583_v41 = vadd.f32 %v787_v32, %v572_v31  ;;  %v594_v46 = vadd.f32 %v802_v35, %v582_v40 }
 0x12c   : > { %v597_v52 = vadd.f32 %v807_v45, %v585_v48  ;;  %v600_v53 = vmax.f32 %v596_v49, 0.0 }
 0x12d   : > { %v595_v47 = vadd.f32 %v803_v36, %v583_v41  ;;  %v598_v50 = vmax.f32 %v594_v46, 0.0 }
 0x12e   : > { %v601_v55 = vmax.f32 %v597_v52, 0.0 }
 0x12f   : > { %v599_v51 = vmax.f32 %v595_v47, 0.0 }
 0x130   : > { %v816_v56 = vpack.c.bf16 %v601_v55, %v600_v53 }
 0x131   : > { %v811_v54 = vpack.c.bf16 %v599_v51, %v598_v50 }
 0x132   : > { %819 = vst [vmem:[%s1079_s5 + $0x8] sm:$0xff] %v816_v56  }
 0x133   : > { %812 = vst [vmem:[%s1079_s5] sm:$0xff] %v811_v54  }
 0x134 PF: > { %s15_s22 = sadd.s32 1, %s939_s22   ;;  %s1080_s18 = smov %s927_s19 }
 0x135   : > { %p12_p12 = scmp.ge.s32.totalorder %s15_s22, 11   ;;  %s1081_s19 = smov %s1007_s26 }
 0x136   : > { %s1082_s20 = smov %s935_s21  ;;  %s1083_s21 = smov %s1085_s23 }
 0x137   :  { %14 = sbr.rel (!%p12_p12) target bundleno = 3 (0x3), region = 136 }

// kernel: base_resnet18_forward.33
= control target key start
LH: loop header
LB: loop body
LE: loop exit
PB: predicated region body
PF: predicated region fallthrough
CT: control target
= control target key end

     0   :  { %s867_s15 = smov 0   ;;  %s869_s16 = smov 0   ;;  %s963_s0 = inlined_call_operand.vmem [shape: bf16[32,1152], index: 0, kind: input, shape index: {}]   ;;  %s964_s1 = inlined_call_operand.vmem [shape: bf16[1152,128], index: 1, kind: input, shape index: {}]   ;;  %s965_s2 = inlined_call_operand.vmem [shape: f32[1,128], index: 2, kind: input, shape index: {}]   ;;  %s966_s3 = inlined_call_operand.vmem [shape: f32[1,128], index: 3, kind: input, shape index: {}]   ;;  %s967_s4 = inlined_call_operand.vmem [shape: bf16[32,128], index: 4, kind: output, shape index: {}]  }
   0x1   :  { %s871_s17 = smov 0   ;;  %s873_s18 = smov 0  }
   0x2   :  { %s875_s19 = smov 0  }
   0x3 LB: > { %s26_s20 = sadd.s32 1, %s835_s18  ;;  %p49_p1 = scmp.ne.s32.totalorder %s827_s16, %s823_s15  ;;  %s839_s19 = sphi %s875_s19, %s14_s19   ;;  %s835_s18 = sphi %s873_s18, %s971_s18   ;;  %s831_s17 = sphi %s871_s17, %s970_s17   ;;  %s827_s16 = sphi %s869_s16, %s969_s16   ;;  %s823_s15 = sphi %s867_s15, %s968_s15  }
   0x4   : > { %p27_p0 = scmp.ge.s32.totalorder %s26_s20, 9  ;;  %p50_p2 = scmp.eq.s32.totalorder %s839_s19, 0 }
   0x5   : > { %s42_s22 = sadd.s32 1, %s827_s16  ;;  %p676_p5 = scmp.ge.s32.totalorder %s839_s19, 9 }
   0x6   : > { %s973_s20 = smov (%p27_p0, %s26_s20), 0  ;;  %p51_p3 = por %p50_p2, %p49_p1 }
   0x7   : > { %s38_s21 = ssub.s32 %s835_s18, %s973_s20  ;;  %195 = sbr.rel (%p676_p5) target bundleno = 21 (0x15), region = 24 }
   0x8   : > { %p40_p4 = scmp.eq.s32.totalorder %s38_s21, 0 }
   0xa   : > { %s902_s23 = scalar_select %p40_p4, %s827_s16, %s42_s22  }
   0xe   : > { %198 = sbr.rel (!%p51_p3) target bundleno = 21 (0x15), region = 28  ;;  %s200_s24 = sand.u32 (%p51_p3), 1, %s827_s16  }
   0xf   : > { %s678_s25 = sshll.u32 (%p51_p3), %s835_s18, 2  ;;  %s677_s26 = sshll.u32 (%p51_p3), %s200_s24, 4 }
  0x10   : > { %s207_s29 = scalar_lea.vmem (%p51_p3), %s963_s0, %s678_s25  ;;  %s202_s30 = scalar_lea.vmem (%p51_p3), [#allocation3], %s677_s26 }
  0x11   : > { %v223_v0 = vld [vmem:[%s207_s29] sm:$0xf] (%p51_p3)  ;;  %v225_v1 = vld [vmem:[%s207_s29 + $0x24] sm:$0xf] (%p51_p3)  ;;  %v227_v2 = vld [vmem:[%s207_s29 + $0x48] sm:$0xf] (%p51_p3) }
  0x12   : > { %224 = vst [vmem:[%s202_s30] sm:$0xf] (%p51_p3), %v223_v0  ;;  %226 = vst [vmem:[%s202_s30 + $0x4] sm:$0xf] (%p51_p3), %v225_v1  ;;  %v229_v3 = vld [vmem:[%s207_s29 + $0x6c] sm:$0xf] (%p51_p3) }
  0x13   : > { %228 = vst [vmem:[%s202_s30 + $0x8] sm:$0xf] (%p51_p3), %v227_v2  ;;  %230 = vst [vmem:[%s202_s30 + $0xc] sm:$0xf] (%p51_p3), %v229_v3 }
  0x15 PF: > { %p679_p6 = scmp.ge.s32.totalorder %s839_s19, 1  ;;  %p272_p7 = scmp.lt.s32.totalorder %s839_s19, 10 }
  0x17   : > { %p273_p8 = pnand %p679_p6, %p272_p7 }
  0x18   : > { %s279_s5 = sand.u32 (!%p273_p8), 1, %s823_s15   ;;  %s681_s6 = sshll.u32 (!%p273_p8), %s831_s17, 4 }
  0x19   : > { %276 = sbr.rel (%p273_p8) target bundleno = 306 (0x132), region = 73  ;;  %s914_s7 = sshll.u32 (!%p273_p8), %s279_s5, 4 }
  0x1a   : > { %p323_p9 = scmp.lt.s32.totalorder (!%p273_p8), %s681_s6, 143  ;;  %s281_s12 = scalar_lea.vmem (!%p273_p8), [#allocation3], %s914_s7 }
  0x1b   : > { %p683_p10 = scmp.ne.s32.totalorder (!%p273_p8), %s831_s17, 0 }
  0x20   : > { %s975_s6 = smov (!%p323_p9, %s681_s6), 143  ;;  %350 = sbr.rel (%p683_p10) target bundleno = 39 (0x27), region = 81 }
  0x21   : > { %s682_s8 = sshll.u32 %s975_s6, 2  ;;  %v841_v4 = vmov (!%p683_p10), 0.0  }
  0x22   : > { %s919_s11 = scalar_lea.vmem %s964_s1, %s682_s8  ;;  %351 = vst [vmem:[#allocation2] sm:$0xff] (!%p683_p10), %v841_v4  ;;  %352 = vst [vmem:[#allocation2 + $0x8] sm:$0xff] (!%p683_p10), %v841_v4 }
  0x23   : > { %353 = vst [vmem:[#allocation2 + $0x10] sm:$0xff] (!%p683_p10), %v841_v4  ;;  %354 = vst [vmem:[#allocation2 + $0x18] sm:$0xff] (!%p683_p10), %v841_v4 }
  0x27 PF: > { %v791_v5 = vld [vmem:[%s919_s11] sm:$0xff]   ;;  %v792_v6 = vld [vmem:[%s919_s11 + $0x8] sm:$0xff]   ;;  %v793_v7 = vld [vmem:[%s919_s11 + $0x10] sm:$0xff]   ;;  %p694_p11 = scmp.ne.s32.totalorder %s831_s17, 8 }
  0x28   : > { %730 = vmatprep.subr.bf16.mxu0 %v791_v5  ;;  %v794_v8 = vld [vmem:[%s919_s11 + $0x18] sm:$0xff]   ;;  %v799_v9 = vld [vmem:[%s281_s12] sm:$0xff]   ;;  %v796_v11 = vld [vmem:[%s919_s11 + $0x28] sm:$0xff]  }
  0x29   : > { %731 = vmatpush3.bf16.msra.mxu0 %v791_v5  ;;  %746 = vmatprep.mubr.bf16.mxu0 %v799_v9  ;;  %v795_v10 = vld [vmem:[%s919_s11 + $0x20] sm:$0xff]   ;;  %v797_v12 = vld [vmem:[%s919_s11 + $0x30] sm:$0xff]   ;;  %v798_v13 = vld [vmem:[%s919_s11 + $0x38] sm:$0xff]  }
  0x2a   : > { %732 = vmatprep.subr.bf16.mxu0 %v792_v6  ;;  %v800_v14 = vld [vmem:[%s281_s12 + $0x8] sm:$0xff]   ;;  %v357_v15 = vld [vmem:[#allocation2 + $0x10] sm:$0xff]  ;;  %v355_v16 = vld [vmem:[#allocation2] sm:$0xff] }
  0x2b   : > { %v358_v18 = vld [vmem:[#allocation2 + $0x18] sm:$0xff]  ;;  %v356_v21 = vld [vmem:[#allocation2 + $0x8] sm:$0xff]  ;;  %v695_v29 = vld [vmem:[%s965_s2] ss:$0 sm:$0xff] (!%p694_p11) }
  0x2c   : > { %v696_v32 = vld [vmem:[%s966_s3] ss:$0 sm:$0xff] (!%p694_p11) }
  0x2d   : > { %733 = vmatpush3.bf16.msra.mxu0 %v792_v6 }
  0x2e   : > { %734 = vmatprep.subr.bf16.mxu0 %v793_v7 }
  0x31   : > { %735 = vmatpush3.bf16.msra.mxu0 %v793_v7 }
  0x32   : > { %736 = vmatprep.subr.bf16.mxu0 %v794_v8 }
  0x35   : > { %737 = vmatpush3.bf16.msra.mxu0 %v794_v8 }
  0x36   : > { %738 = vmatprep.subr.bf16.mxu0 %v795_v10 }
  0x39   : > { %739 = vmatpush3.bf16.msra.mxu0 %v795_v10 }
  0x3a   : > { %740 = vmatprep.subr.bf16.mxu0 %v796_v11 }
  0x3d   : > { %741 = vmatpush3.bf16.msra.mxu0 %v796_v11 }
  0x3e   : > { %742 = vmatprep.subr.bf16.mxu0 %v797_v12 }
  0x41   : > { %743 = vmatpush3.bf16.msra.mxu0 %v797_v12 }
  0x42   : > { %744 = vmatprep.subr.bf16.mxu0 %v798_v13 }
  0x45   : > { %745 = vmatpush3.bf16.msra.mxu0 %v798_v13 }
  0x48   : > { %747 = vmatmul.mubr.bf16.vlgmr.msra.gmra.mrb[0].mxu0 %v800_v14 }
 0x11b   : > { %v748_v17 = vpop.f32.mrb[0].mxu0  ;;  %499 = sbr.rel (%p694_p11) target bundleno = 306 (0x132), region = 85 }
 0x11c   : > { %v490_v19 = vadd.f32 %v748_v17, %v357_v15  ;;  %v473_v20 = vpop.f32.mrb[1].mxu0 }
 0x11d   : > { %v488_v22 = vadd.f32 %v473_v20, %v355_v16  ;;  %v749_v23 = vpop.f32.mrb[2].mxu0 }
 0x11e   : > { %494 = vst [vmem:[#allocation2 + $0x10] sm:$0xff] %v490_v19  ;;  %v491_v24 = vadd.f32 %v749_v23, %v358_v18  ;;  %v476_v25 = vpop.f32.mrb[3].mxu0 }
 0x11f   : > { %492 = vst [vmem:[#allocation2] sm:$0xff] %v488_v22  ;;  %v489_v26 = vadd.f32 %v476_v25, %v356_v21 }
 0x120   : > { %495 = vst [vmem:[#allocation2 + $0x18] sm:$0xff] %v491_v24 }
 0x121   : > { %493 = vst [vmem:[#allocation2 + $0x8] sm:$0xff] %v489_v26 }
 0x125   : > { %v502_v33 = vld [vmem:[#allocation2 + $0x10] sm:$0xff] }
 0x126   : > { %v500_v27 = vld [vmem:[#allocation2] sm:$0xff]  ;;  %v513_v35 = vmul.f32 %v695_v29, %v502_v33 }
 0x127   : > { %v511_v30 = vmul.f32 %v695_v29, %v500_v27  ;;  %v503_v34 = vld [vmem:[#allocation2 + $0x18] sm:$0xff] }
 0x128   : > { %v501_v28 = vld [vmem:[#allocation2 + $0x8] sm:$0xff]  ;;  %v514_v36 = vmul.f32 %v695_v29, %v503_v34  ;;  %v524_v39 = vadd.f32 %v696_v32, %v513_v35 }
 0x129   : > { %v512_v31 = vmul.f32 %v695_v29, %v501_v28  ;;  %v522_v37 = vadd.f32 %v696_v32, %v511_v30 }
 0x12a   : > { %v525_v40 = vadd.f32 %v696_v32, %v514_v36  ;;  %v528_v43 = vmax.f32 %v524_v39, 0.0 }
 0x12b   : > { %v523_v38 = vadd.f32 %v696_v32, %v512_v31  ;;  %v526_v41 = vmax.f32 %v522_v37, 0.0 }
 0x12c   : > { %v529_v44 = vmax.f32 %v525_v40, 0.0 }
 0x12d   : > { %v527_v42 = vmax.f32 %v523_v38, 0.0 }
 0x12e   : > { %v717_v46 = vpack.c.bf16 %v529_v44, %v528_v43 }
 0x12f   : > { %v712_v45 = vpack.c.bf16 %v527_v42, %v526_v41 }
 0x130   : > { %719 = vst [vmem:[%s967_s4 + $0x8] sm:$0xff] %v717_v46  }
 0x131   : > { %713 = vst [vmem:[%s967_s4] sm:$0xff] %v712_v45  }
 0x132 PF: > { %s14_s19 = sadd.s32 1, %s839_s19   ;;  %s968_s15 = smov %s827_s16 }
 0x133   : > { %p11_p12 = scmp.ge.s32.totalorder %s14_s19, 11   ;;  %s969_s16 = smov %s902_s23 }
 0x134   : > { %s970_s17 = smov %s835_s18  ;;  %s971_s18 = smov %s973_s20 }
 0x135   :  { %13 = sbr.rel (!%p11_p12) target bundleno = 3 (0x3), region = 129 }

// kernel: base_resnet18_forward.36
= control target key start
LH: loop header
LB: loop body
LE: loop exit
PB: predicated region body
PF: predicated region fallthrough
CT: control target
= control target key end

     0   :  { %s895_s15 = smov 0   ;;  %s897_s16 = smov 0   ;;  %s997_s0 = inlined_call_operand.vmem [shape: bf16[16,1152], index: 0, kind: input, shape index: {}]   ;;  %s998_s1 = inlined_call_operand.vmem [shape: bf16[1152,256], index: 1, kind: input, shape index: {}]   ;;  %s999_s2 = inlined_call_operand.vmem [shape: f32[1,256], index: 2, kind: input, shape index: {}]   ;;  %s1000_s3 = inlined_call_operand.vmem [shape: f32[1,256], index: 3, kind: input, shape index: {}]   ;;  %s1001_s4 = inlined_call_operand.vmem [shape: bf16[16,256], index: 4, kind: output, shape index: {}]  }
   0x1   :  { %s899_s17 = smov 0   ;;  %s901_s18 = smov 0  }
   0x2   :  { %s903_s19 = smov 0  }
   0x3 LB: > { %s26_s20 = sadd.s32 1, %s862_s18  ;;  %p49_p1 = scmp.ne.s32.totalorder %s854_s16, %s850_s15  ;;  %s866_s19 = sphi %s903_s19, %s14_s19   ;;  %s862_s18 = sphi %s901_s18, %s1005_s18   ;;  %s858_s17 = sphi %s899_s17, %s1004_s17   ;;  %s854_s16 = sphi %s897_s16, %s1003_s16   ;;  %s850_s15 = sphi %s895_s15, %s1002_s15  }
   0x4   : > { %p27_p0 = scmp.ge.s32.totalorder %s26_s20, 9  ;;  %p50_p2 = scmp.eq.s32.totalorder %s866_s19, 0 }
   0x5   : > { %s42_s22 = sadd.s32 1, %s854_s16  ;;  %p725_p5 = scmp.ge.s32.totalorder %s866_s19, 9 }
   0x6   : > { %s1007_s20 = smov (%p27_p0, %s26_s20), 0  ;;  %p51_p3 = por %p50_p2, %p49_p1 }
   0x7   : > { %s38_s21 = ssub.s32 %s862_s18, %s1007_s20  ;;  %199 = sbr.rel (%p725_p5) target bundleno = 21 (0x15), region = 24 }
   0x8   : > { %p40_p4 = scmp.eq.s32.totalorder %s38_s21, 0 }
   0xa   : > { %s930_s23 = scalar_select %p40_p4, %s854_s16, %s42_s22  }
   0xe   : > { %202 = sbr.rel (!%p51_p3) target bundleno = 21 (0x15), region = 28  ;;  %s204_s24 = sand.u32 (%p51_p3), 1, %s854_s16  }
   0xf   : > { %s727_s25 = sshll.u32 (%p51_p3), %s862_s18, 2  ;;  %s726_s26 = sshll.u32 (%p51_p3), %s204_s24, 3 }
  0x10   : > { %s211_s29 = scalar_lea.vmem (%p51_p3), %s997_s0, %s727_s25  ;;  %s206_s30 = scalar_lea.vmem (%p51_p3), [#allocation3], %s726_s26 }
  0x11   : > { %v227_v0 = vld [vmem:[%s211_s29] sm:$0xf] (%p51_p3)  ;;  %v229_v1 = vld [vmem:[%s211_s29 + $0x24] sm:$0xf] (%p51_p3) }
  0x12   : > { %228 = vst [vmem:[%s206_s30] sm:$0xf] (%p51_p3), %v227_v0  ;;  %230 = vst [vmem:[%s206_s30 + $0x4] sm:$0xf] (%p51_p3), %v229_v1 }
  0x15 PF: > { %p728_p6 = scmp.ge.s32.totalorder %s866_s19, 1  ;;  %p271_p7 = scmp.lt.s32.totalorder %s866_s19, 10 }
  0x17   : > { %p272_p8 = pnand %p728_p6, %p271_p7 }
  0x18   : > { %s278_s5 = sand.u32 (!%p272_p8), 1, %s850_s15   ;;  %s730_s6 = sshll.u32 (!%p272_p8), %s858_s17, 4 }
  0x19   : > { %275 = sbr.rel (%p272_p8) target bundleno = 306 (0x132), region = 73  ;;  %s942_s7 = sshll.u32 (!%p272_p8), %s278_s5, 3 }
  0x1a   : > { %p329_p9 = scmp.lt.s32.totalorder (!%p272_p8), %s730_s6, 143  ;;  %s280_s12 = scalar_lea.vmem (!%p272_p8), [#allocation3], %s942_s7 }
  0x1b   : > { %p733_p10 = scmp.ne.s32.totalorder (!%p272_p8), %s858_s17, 0 }
  0x20   : > { %s1009_s6 = smov (!%p329_p9, %s730_s6), 143  ;;  %365 = sbr.rel (%p733_p10) target bundleno = 39 (0x27), region = 81 }
  0x21   : > { %s758_s8 = sshll.u32 %s1009_s6, 3  ;;  %v868_v2 = vmov (!%p733_p10), 0.0  }
  0x22   : > { %s947_s11 = scalar_lea.vmem %s998_s1, %s758_s8  ;;  %366 = vst [vmem:[#allocation2] sm:$0xff] (!%p733_p10), %v868_v2  ;;  %367 = vst [vmem:[#allocation2 + $0x8] sm:$0xff] (!%p733_p10), %v868_v2 }
  0x23   : > { %368 = vst [vmem:[#allocation2 + $0x10] sm:$0xff] (!%p733_p10), %v868_v2  ;;  %369 = vst [vmem:[#allocation2 + $0x18] sm:$0xff] (!%p733_p10), %v868_v2 }
  0x27 PF: > { %v803_v3 = vld [vmem:[%s947_s11 + $0x4] ss:$8 sps:$4 sm:$0xff]   ;;  %v805_v4 = vld [vmem:[%s947_s11] ss:$8 sps:$4 sm:$0xff]   ;;  %v869_v5 = vmov 0   ;;  %p751_p11 = scmp.ne.s32.totalorder %s858_s17, 8 }
  0x28   : > { %510 = vmatprep.mubr.bf16.mxu0 %v869_v5  ;;  %478 = vmatprep.subr.bf16.mxu0 %v803_v3  ;;  %v806_v6 = vld [vmem:[%s947_s11 + $0x14] ss:$8 sps:$4 sm:$0xff]   ;;  %v808_v7 = vld [vmem:[%s947_s11 + $0x10] ss:$8 sps:$4 sm:$0xff]   ;;  %v809_v8 = vld [vmem:[%s947_s11 + $0x24] ss:$8 sps:$4 sm:$0xff]   ;;  %v539_v33 = vlaneseq (!%p751_p11) }
  0x29   : > { %479 = vmatpush1.bf16.msra.mxu0 %v805_v4  ;;  %v811_v9 = vld [vmem:[%s947_s11 + $0x20] ss:$8 sps:$4 sm:$0xff]   ;;  %v812_v10 = vld [vmem:[%s947_s11 + $0x34] ss:$8 sps:$4 sm:$0xff]   ;;  %v814_v11 = vld [vmem:[%s947_s11 + $0x30] ss:$8 sps:$4 sm:$0xff]  }
  0x2a   : > { %480 = vmatprep.subr.bf16.mxu0 %v806_v6  ;;  %v815_v12 = vld [vmem:[%s947_s11 + $0x44] ss:$8 sps:$4 sm:$0xff]   ;;  %v817_v13 = vld [vmem:[%s947_s11 + $0x40] ss:$8 sps:$4 sm:$0xff]   ;;  %v818_v14 = vld [vmem:[%s947_s11 + $0x54] ss:$8 sps:$4 sm:$0xff]  }
  0x2b   : > { %v820_v15 = vld [vmem:[%s947_s11 + $0x50] ss:$8 sps:$4 sm:$0xff]   ;;  %v821_v16 = vld [vmem:[%s947_s11 + $0x64] ss:$8 sps:$4 sm:$0xff]   ;;  %v823_v17 = vld [vmem:[%s947_s11 + $0x60] ss:$8 sps:$4 sm:$0xff]  }
  0x2c   : > { %v824_v18 = vld [vmem:[%s947_s11 + $0x74] ss:$8 sps:$4 sm:$0xff]   ;;  %v826_v19 = vld [vmem:[%s947_s11 + $0x70] ss:$8 sps:$4 sm:$0xff]   ;;  %v827_v20 = vld [vmem:[%s280_s12] sm:$0xff]   ;;  %v540_v34 = vshrl.u32 (!%p751_p11), %v539_v33, 7 }
  0x2d   : > { %481 = vmatpush1.bf16.msra.mxu0 %v808_v7  ;;  %v370_v21 = vld [vmem:[#allocation2] sm:$0xff]  ;;  %v371_v22 = vld [vmem:[#allocation2 + $0x8] sm:$0xff]  ;;  %v372_v24 = vld [vmem:[#allocation2 + $0x10] sm:$0xff] }
  0x2e   : > { %482 = vmatprep.subr.bf16.mxu0 %v809_v8  ;;  %v373_v27 = vld [vmem:[#allocation2 + $0x18] sm:$0xff]  ;;  %v537_v35 = vld [vmem:[%s999_s2] sm:$0x3] (!%p751_p11)  ;;  %v541_v38 = vsub.s32 (!%p751_p11), 0, %v540_v34  ;;  %v545_v39 = vsub.s32 (!%p751_p11), 1, %v540_v34 }
  0x2f   : > { %v553_v36 = vld [vmem:[%s1000_s3] sm:$0x3] (!%p751_p11) }
  0x30   : > { %v542_v43 = vrot.slane (!%p751_p11), %v537_v35, %v541_v38  ;;  %v546_v44 = vrot.slane (!%p751_p11), %v537_v35, %v545_v39  ;;  %v558_v45 = vrot.slane (!%p751_p11), %v553_v36, %v541_v38  ;;  %v562_v46 = vrot.slane (!%p751_p11), %v553_v36, %v545_v39 }
  0x31   : > { %483 = vmatpush1.bf16.msra.mxu0 %v811_v9 }
  0x32   : > { %484 = vmatprep.subr.bf16.mxu0 %v812_v10 }
  0x35   : > { %485 = vmatpush1.bf16.msra.mxu0 %v814_v11 }
  0x36   : > { %486 = vmatprep.subr.bf16.mxu0 %v815_v12 }
  0x39   : > { %487 = vmatpush1.bf16.msra.mxu0 %v817_v13 }
  0x3a   : > { %488 = vmatprep.subr.bf16.mxu0 %v818_v14 }
  0x3d   : > { %489 = vmatpush1.bf16.msra.mxu0 %v820_v15 }
  0x3e   : > { %490 = vmatprep.subr.bf16.mxu0 %v821_v16 }
  0x41   : > { %491 = vmatpush1.bf16.msra.mxu0 %v823_v17 }
  0x42   : > { %492 = vmatprep.subr.bf16.mxu0 %v824_v18 }
  0x45   : > { %493 = vmatpush1.bf16.msra.mxu0 %v826_v19 }
  0x48   : > { %511 = vmatmul.mubr.bf16.vlgmr.msra.gmra.mrb[0].mxu0 %v827_v20 }
 0x11b   : > { %v512_v23 = vpop.f32.mrb[0].mxu0  ;;  %532 = sbr.rel (%p751_p11) target bundleno = 306 (0x132), region = 85 }
 0x11c   : > { %v521_v25 = vadd.f32 %v512_v23, %v370_v21  ;;  %v514_v26 = vpop.f32.mrb[1].mxu0 }
 0x11d   : > { %v522_v28 = vadd.f32 %v514_v26, %v371_v22  ;;  %v516_v29 = vpop.f32.mrb[2].mxu0 }
 0x11e   : > { %525 = vst [vmem:[#allocation2] sm:$0xff] %v521_v25  ;;  %v523_v30 = vadd.f32 %v516_v29, %v372_v24  ;;  %v518_v31 = vpop.f32.mrb[3].mxu0 }
 0x11f   : > { %526 = vst [vmem:[#allocation2 + $0x8] sm:$0xff] %v522_v28  ;;  %v524_v32 = vadd.f32 %v518_v31, %v373_v27 }
 0x120   : > { %527 = vst [vmem:[#allocation2 + $0x10] sm:$0xff] %v523_v30 }
 0x121   : > { %528 = vst [vmem:[#allocation2 + $0x18] sm:$0xff] %v524_v32 }
 0x125   : > { %v533_v37 = vld [vmem:[#allocation2] sm:$0xff] }
 0x126   : > { %v534_v40 = vld [vmem:[#allocation2 + $0x8] sm:$0xff]  ;;  %v549_v47 = vmul.f32 %v542_v43, %v533_v37 }
 0x127   : > { %v535_v41 = vld [vmem:[#allocation2 + $0x10] sm:$0xff]  ;;  %v550_v48 = vmul.f32 %v546_v44, %v534_v40 }
 0x128   : > { %v536_v42 = vld [vmem:[#allocation2 + $0x18] sm:$0xff]  ;;  %v551_v49 = vmul.f32 %v542_v43, %v535_v41  ;;  %v565_v51 = vadd.f32 %v558_v45, %v549_v47 }
 0x129   : > { %v552_v50 = vmul.f32 %v546_v44, %v536_v42  ;;  %v566_v52 = vadd.f32 %v562_v46, %v550_v48 }
 0x12a   : > { %v567_v53 = vadd.f32 %v558_v45, %v551_v49  ;;  %v569_v55 = vmax.f32 %v565_v51, 0.0 }
 0x12b   : > { %v568_v54 = vadd.f32 %v562_v46, %v552_v50  ;;  %v570_v56 = vmax.f32 %v566_v52, 0.0 }
 0x12c   : > { %v571_v57 = vmax.f32 %v567_v53, 0.0 }
 0x12d   : > { %v572_v58 = vmax.f32 %v568_v54, 0.0  ;;  %v759_v59 = vpack.c.bf16 %v570_v56, %v569_v55 }
 0x12f   : > { %v760_v60 = vpack.c.bf16 %v572_v58, %v571_v57  ;;  %585 = vst [vmem:[%s1001_s4] sm:$0xff] %v759_v59 }
 0x131   : > { %586 = vst [vmem:[%s1001_s4 + $0x8] sm:$0xff] %v760_v60 }
 0x132 PF: > { %s14_s19 = sadd.s32 1, %s866_s19   ;;  %s1002_s15 = smov %s854_s16 }
 0x133   : > { %p11_p12 = scmp.ge.s32.totalorder %s14_s19, 11   ;;  %s1003_s16 = smov %s930_s23 }
 0x134   : > { %s1004_s17 = smov %s862_s18  ;;  %s1005_s18 = smov %s1007_s20 }
 0x135   :  { %13 = sbr.rel (!%p11_p12) target bundleno = 3 (0x3), region = 129 }

// kernel: base_resnet18_forward.35
= control target key start
LH: loop header
LB: loop body
LE: loop exit
PB: predicated region body
PF: predicated region fallthrough
CT: control target
= control target key end

     0   :  { %v289_v1 = vmov 0   ;;  %v194_v18 = vlaneseq  ;;  %s378_s1 = inlined_call_operand.vmem [shape: bf16[128,256], index: 1, kind: input, shape index: {}]   ;;  %s379_s0 = inlined_call_operand.vmem [shape: bf16[16,128], index: 0, kind: input, shape index: {}]   ;;  %s380_s2 = inlined_call_operand.vmem [shape: f32[1,256], index: 2, kind: input, shape index: {}]   ;;  %s381_s3 = inlined_call_operand.vmem [shape: f32[1,256], index: 3, kind: input, shape index: {}]   ;;  %s382_s4 = inlined_call_operand.vmem [shape: bf16[16,256], index: 4, kind: output, shape index: {}]  }
   0x1   :  { %v264_v0 = vld [vmem:[%s378_s1 + $0x4] ss:$8 sps:$4 sm:$0xff]   ;;  %166 = vmatprep.mubr.bf16.mxu0 %v289_v1  ;;  %v266_v2 = vld [vmem:[%s378_s1] ss:$8 sps:$4 sm:$0xff]   ;;  %v267_v3 = vld [vmem:[%s378_s1 + $0x14] ss:$8 sps:$4 sm:$0xff]  }
   0x2   :  { %134 = vmatprep.subr.bf16.mxu0 %v264_v0  ;;  %v269_v4 = vld [vmem:[%s378_s1 + $0x10] ss:$8 sps:$4 sm:$0xff]   ;;  %v270_v5 = vld [vmem:[%s378_s1 + $0x24] ss:$8 sps:$4 sm:$0xff]   ;;  %v272_v6 = vld [vmem:[%s378_s1 + $0x20] ss:$8 sps:$4 sm:$0xff]  }
   0x3   :  { %135 = vmatpush1.bf16.msra.mxu0 %v266_v2  ;;  %v273_v7 = vld [vmem:[%s378_s1 + $0x34] ss:$8 sps:$4 sm:$0xff]   ;;  %v275_v8 = vld [vmem:[%s378_s1 + $0x30] ss:$8 sps:$4 sm:$0xff]   ;;  %v276_v9 = vld [vmem:[%s378_s1 + $0x44] ss:$8 sps:$4 sm:$0xff]  }
   0x4   :  { %136 = vmatprep.subr.bf16.mxu0 %v267_v3  ;;  %v278_v10 = vld [vmem:[%s378_s1 + $0x40] ss:$8 sps:$4 sm:$0xff]   ;;  %v279_v11 = vld [vmem:[%s378_s1 + $0x54] ss:$8 sps:$4 sm:$0xff]   ;;  %v281_v12 = vld [vmem:[%s378_s1 + $0x50] ss:$8 sps:$4 sm:$0xff]  }
   0x5   :  { %v282_v13 = vld [vmem:[%s378_s1 + $0x64] ss:$8 sps:$4 sm:$0xff]   ;;  %v284_v14 = vld [vmem:[%s378_s1 + $0x60] ss:$8 sps:$4 sm:$0xff]   ;;  %v285_v15 = vld [vmem:[%s378_s1 + $0x74] ss:$8 sps:$4 sm:$0xff]  }
   0x6   :  { %v287_v16 = vld [vmem:[%s378_s1 + $0x70] ss:$8 sps:$4 sm:$0xff]   ;;  %v288_v17 = vld [vmem:[%s379_s0] sm:$0xff]   ;;  %v195_v19 = vshrl.u32 %v194_v18, 7 }
   0x7   :  { %137 = vmatpush1.bf16.msra.mxu0 %v269_v4  ;;  %v192_v21 = vld [vmem:[%s380_s2] sm:$0x3] }
   0x8   :  { %138 = vmatprep.subr.bf16.mxu0 %v270_v5  ;;  %v196_v20 = vsub.s32 0, %v195_v19  ;;  %v200_v22 = vsub.s32 1, %v195_v19  ;;  %v208_v23 = vld [vmem:[%s381_s3] sm:$0x3] }
   0xa   :  { %v197_v24 = vrot.slane %v192_v21, %v196_v20  ;;  %v201_v25 = vrot.slane %v192_v21, %v200_v22  ;;  %v213_v26 = vrot.slane %v208_v23, %v196_v20  ;;  %v217_v28 = vrot.slane %v208_v23, %v200_v22 }
   0xb   :  { %139 = vmatpush1.bf16.msra.mxu0 %v272_v6 }
   0xc   :  { %140 = vmatprep.subr.bf16.mxu0 %v273_v7 }
   0xf   :  { %141 = vmatpush1.bf16.msra.mxu0 %v275_v8 }
  0x10   :  { %142 = vmatprep.subr.bf16.mxu0 %v276_v9 }
  0x13   :  { %143 = vmatpush1.bf16.msra.mxu0 %v278_v10 }
  0x14   :  { %144 = vmatprep.subr.bf16.mxu0 %v279_v11 }
  0x17   :  { %145 = vmatpush1.bf16.msra.mxu0 %v281_v12 }
  0x18   :  { %146 = vmatprep.subr.bf16.mxu0 %v282_v13 }
  0x1b   :  { %147 = vmatpush1.bf16.msra.mxu0 %v284_v14 }
  0x1c   :  { %148 = vmatprep.subr.bf16.mxu0 %v285_v15 }
  0x1f   :  { %149 = vmatpush1.bf16.msra.mxu0 %v287_v16 }
  0x22   :  { %167 = vmatmul.mubr.bf16.vlgmr.msra.gmra.mrb[0].mxu0 %v288_v17 }
  0xf5   :  { %v168_v27 = vpop.f32.mrb[0].mxu0 }
  0xf6   :  { %v204_v29 = vmul.f32 %v197_v24, %v168_v27  ;;  %v170_v30 = vpop.f32.mrb[1].mxu0 }
  0xf7   :  { %v205_v31 = vmul.f32 %v201_v25, %v170_v30  ;;  %v172_v32 = vpop.f32.mrb[2].mxu0 }
  0xf8   :  { %v220_v33 = vadd.f32 %v213_v26, %v204_v29  ;;  %v206_v34 = vmul.f32 %v197_v24, %v172_v32  ;;  %v174_v35 = vpop.f32.mrb[3].mxu0 }
  0xf9   :  { %v221_v36 = vadd.f32 %v217_v28, %v205_v31  ;;  %v207_v37 = vmul.f32 %v201_v25, %v174_v35 }
  0xfa   :  { %v222_v38 = vadd.f32 %v213_v26, %v206_v34 }
  0xfb   :  { %v261_v39 = vpack.c.bf16 %v221_v36, %v220_v33  ;;  %v223_v40 = vadd.f32 %v217_v28, %v207_v37 }
  0xfd   :  { %236 = vst [vmem:[%s382_s4] sm:$0xff] %v261_v39  ;;  %v262_v41 = vpack.c.bf16 %v223_v40, %v222_v38 }
  0xff   :  { %237 = vst [vmem:[%s382_s4 + $0x8] sm:$0xff] %v262_v41 }

// kernel: base_resnet18_forward.38
= control target key start
LH: loop header
LB: loop body
LE: loop exit
PB: predicated region body
PF: predicated region fallthrough
CT: control target
= control target key end

     0   :  { %s1033_s15 = smov 0   ;;  %s1035_s16 = smov 0   ;;  %s1153_s0 = inlined_call_operand.vmem [shape: bf16[16,2304], index: 0, kind: input, shape index: {}]   ;;  %s1154_s1 = inlined_call_operand.vmem [shape: bf16[2304,256], index: 1, kind: input, shape index: {}]   ;;  %s1155_s2 = inlined_call_operand.vmem [shape: f32[1,256], index: 2, kind: input, shape index: {}]   ;;  %s1156_s3 = inlined_call_operand.vmem [shape: f32[1,256], index: 3, kind: input, shape index: {}]   ;;  %s1157_s4 = inlined_call_operand.vmem [shape: bf16[16,256], index: 4, kind: output, shape index: {}]  }
   0x1   :  { %s1037_s17 = smov 0   ;;  %s1039_s18 = smov 0  }
   0x2   :  { %s1041_s19 = smov 0  }
   0x3 LB: > { %s26_s20 = sadd.s32 1, %s1001_s18  ;;  %p49_p1 = scmp.ne.s32.totalorder %s993_s16, %s989_s15  ;;  %s1005_s19 = sphi %s1041_s19, %s14_s19   ;;  %s1001_s18 = sphi %s1039_s18, %s1161_s18   ;;  %s997_s17 = sphi %s1037_s17, %s1160_s17   ;;  %s993_s16 = sphi %s1035_s16, %s1159_s16   ;;  %s989_s15 = sphi %s1033_s15, %s1158_s15  }
   0x4   : > { %p27_p0 = scmp.ge.s32.totalorder %s26_s20, 9  ;;  %p50_p2 = scmp.eq.s32.totalorder %s1005_s19, 0 }
   0x5   : > { %s42_s22 = sadd.s32 1, %s993_s16  ;;  %p820_p5 = scmp.ge.s32.totalorder %s1005_s19, 9 }
   0x6   : > { %s1163_s20 = smov (%p27_p0, %s26_s20), 0  ;;  %p51_p3 = por %p50_p2, %p49_p1 }
   0x7   : > { %s38_s21 = ssub.s32 %s1001_s18, %s1163_s20  ;;  %199 = sbr.rel (%p820_p5) target bundleno = 21 (0x15), region = 24 }
   0x8   : > { %p40_p4 = scmp.eq.s32.totalorder %s38_s21, 0 }
   0xa   : > { %s1068_s23 = scalar_select %p40_p4, %s993_s16, %s42_s22  }
   0xe   : > { %202 = sbr.rel (!%p51_p3) target bundleno = 21 (0x15), region = 28  ;;  %s204_s24 = sand.u32 (%p51_p3), 1, %s993_s16  }
   0xf   : > { %s871_s25 = sshll.u32 (%p51_p3), %s1001_s18, 3  ;;  %s821_s26 = sshll.u32 (%p51_p3), %s204_s24, 4 }
  0x10   : > { %s212_s29 = scalar_lea.vmem (%p51_p3), %s1153_s0, %s871_s25  ;;  %s206_s30 = scalar_lea.vmem (%p51_p3), [#allocation3], %s821_s26 }
  0x11   : > { %v242_v0 = vld [vmem:[%s212_s29] sm:$0xff] (%p51_p3)  ;;  %v244_v1 = vld [vmem:[%s212_s29 + $0x48] sm:$0xff] (%p51_p3) }
  0x12   : > { %243 = vst [vmem:[%s206_s30] sm:$0xff] (%p51_p3), %v242_v0  ;;  %245 = vst [vmem:[%s206_s30 + $0x8] sm:$0xff] (%p51_p3), %v244_v1 }
  0x15 PF: > { %p824_p6 = scmp.ge.s32.totalorder %s1005_s19, 1  ;;  %p265_p7 = scmp.lt.s32.totalorder %s1005_s19, 10 }
  0x17   : > { %p266_p8 = pnand %p824_p6, %p265_p7 }
  0x18   : > { %s272_s5 = sand.u32 (!%p266_p8), 1, %s989_s15   ;;  %s826_s6 = sshll.u32 (!%p266_p8), %s997_s17, 5 }
  0x19   : > { %269 = sbr.rel (%p266_p8) target bundleno = 338 (0x152), region = 70  ;;  %s1080_s7 = sshll.u32 (!%p266_p8), %s272_s5, 4 }
  0x1a   : > { %p324_p9 = scmp.lt.s32.totalorder (!%p266_p8), %s826_s6, 287  ;;  %s274_s12 = scalar_lea.vmem (!%p266_p8), [#allocation3], %s1080_s7 }
  0x1b   : > { %p829_p10 = scmp.ne.s32.totalorder (!%p266_p8), %s997_s17, 0 }
  0x20   : > { %s1165_s6 = smov (!%p324_p9, %s826_s6), 287  ;;  %359 = sbr.rel (%p829_p10) target bundleno = 39 (0x27), region = 78 }
  0x21   : > { %s872_s8 = sshll.u32 %s1165_s6, 3  ;;  %v1007_v2 = vmov (!%p829_p10), 0.0  }
  0x22   : > { %s1085_s11 = scalar_lea.vmem %s1154_s1, %s872_s8  ;;  %360 = vst [vmem:[#allocation2] sm:$0xff] (!%p829_p10), %v1007_v2  ;;  %361 = vst [vmem:[#allocation2 + $0x8] sm:$0xff] (!%p829_p10), %v1007_v2 }
  0x23   : > { %362 = vst [vmem:[#allocation2 + $0x10] sm:$0xff] (!%p829_p10), %v1007_v2  ;;  %363 = vst [vmem:[#allocation2 + $0x18] sm:$0xff] (!%p829_p10), %v1007_v2 }
  0x27 PF: > { %v916_v3 = vld [vmem:[%s1085_s11 + $0x4] ss:$8 sps:$4 sm:$0xff]   ;;  %v918_v4 = vld [vmem:[%s1085_s11] ss:$8 sps:$4 sm:$0xff]   ;;  %v919_v5 = vld [vmem:[%s1085_s11 + $0x14] ss:$8 sps:$4 sm:$0xff]  }
  0x28   : > { %572 = vmatprep.subr.bf16.mxu0 %v916_v3  ;;  %v921_v6 = vld [vmem:[%s1085_s11 + $0x10] ss:$8 sps:$4 sm:$0xff]   ;;  %v922_v7 = vld [vmem:[%s1085_s11 + $0x24] ss:$8 sps:$4 sm:$0xff]   ;;  %v924_v8 = vld [vmem:[%s1085_s11 + $0x20] ss:$8 sps:$4 sm:$0xff]  }
  0x29   : > { %573 = vmatpush1.bf16.msra.mxu0 %v918_v4  ;;  %v925_v9 = vld [vmem:[%s1085_s11 + $0x34] ss:$8 sps:$4 sm:$0xff]   ;;  %v927_v10 = vld [vmem:[%s1085_s11 + $0x30] ss:$8 sps:$4 sm:$0xff]   ;;  %v928_v11 = vld [vmem:[%s1085_s11 + $0x44] ss:$8 sps:$4 sm:$0xff]  }
  0x2a   : > { %574 = vmatprep.subr.bf16.mxu0 %v919_v5  ;;  %v930_v12 = vld [vmem:[%s1085_s11 + $0x40] ss:$8 sps:$4 sm:$0xff]   ;;  %v931_v13 = vld [vmem:[%s1085_s11 + $0x54] ss:$8 sps:$4 sm:$0xff]   ;;  %v933_v14 = vld [vmem:[%s1085_s11 + $0x50] ss:$8 sps:$4 sm:$0xff]  }
  0x2b   : > { %v934_v15 = vld [vmem:[%s1085_s11 + $0x64] ss:$8 sps:$4 sm:$0xff]   ;;  %v936_v17 = vld [vmem:[%s1085_s11 + $0x60] ss:$8 sps:$4 sm:$0xff]   ;;  %v937_v18 = vld [vmem:[%s1085_s11 + $0x74] ss:$8 sps:$4 sm:$0xff]  }
  0x2c   : > { %v966_v16 = vld [vmem:[%s274_s12 + $0x4] ss:$8 sps:$4 sm:$0xff]   ;;  %v939_v19 = vld [vmem:[%s1085_s11 + $0x70] ss:$8 sps:$4 sm:$0xff]   ;;  %v942_v21 = vld [vmem:[%s1085_s11 + $0x80] ss:$8 sps:$4 sm:$0xff]  }
  0x2d   : > { %575 = vmatpush1.bf16.msra.mxu0 %v921_v6  ;;  %604 = vmatprep.mubr.bf16.mxu0 %v966_v16  ;;  %v940_v20 = vld [vmem:[%s1085_s11 + $0x84] ss:$8 sps:$4 sm:$0xff]   ;;  %v943_v22 = vld [vmem:[%s1085_s11 + $0x94] ss:$8 sps:$4 sm:$0xff]   ;;  %v945_v23 = vld [vmem:[%s1085_s11 + $0x90] ss:$8 sps:$4 sm:$0xff]  }
  0x2e   : > { %576 = vmatprep.subr.bf16.mxu0 %v922_v7  ;;  %v946_v24 = vld [vmem:[%s1085_s11 + $0xa4] ss:$8 sps:$4 sm:$0xff]   ;;  %v948_v25 = vld [vmem:[%s1085_s11 + $0xa0] ss:$8 sps:$4 sm:$0xff]   ;;  %v949_v26 = vld [vmem:[%s1085_s11 + $0xb4] ss:$8 sps:$4 sm:$0xff]  }
  0x2f   : > { %v951_v27 = vld [vmem:[%s1085_s11 + $0xb0] ss:$8 sps:$4 sm:$0xff]   ;;  %v952_v28 = vld [vmem:[%s1085_s11 + $0xc4] ss:$8 sps:$4 sm:$0xff]   ;;  %v954_v29 = vld [vmem:[%s1085_s11 + $0xc0] ss:$8 sps:$4 sm:$0xff]  }
  0x30   : > { %v955_v30 = vld [vmem:[%s1085_s11 + $0xd4] ss:$8 sps:$4 sm:$0xff]   ;;  %v957_v31 = vld [vmem:[%s1085_s11 + $0xd0] ss:$8 sps:$4 sm:$0xff]   ;;  %v958_v32 = vld [vmem:[%s1085_s11 + $0xe4] ss:$8 sps:$4 sm:$0xff]  }
  0x31   : > { %577 = vmatpush1.bf16.msra.mxu0 %v924_v8  ;;  %v960_v33 = vld [vmem:[%s1085_s11 + $0xe0] ss:$8 sps:$4 sm:$0xff]   ;;  %v961_v34 = vld [vmem:[%s1085_s11 + $0xf4] ss:$8 sps:$4 sm:$0xff]   ;;  %v963_v35 = vld [vmem:[%s1085_s11 + $0xf0] ss:$8 sps:$4 sm:$0xff]  }
  0x32   : > { %578 = vmatprep.subr.bf16.mxu0 %v925_v9  ;;  %v964_v36 = vld [vmem:[%s274_s12] ss:$8 sps:$4 sm:$0xff]   ;;  %p864_p11 = scmp.ne.s32.totalorder %s997_s17, 8 }
  0x33   : > { %v364_v37 = vld [vmem:[#allocation2] sm:$0xff]  ;;  %v365_v38 = vld [vmem:[#allocation2 + $0x8] sm:$0xff]  ;;  %v366_v40 = vld [vmem:[#allocation2 + $0x10] sm:$0xff]  ;;  %v633_v49 = vlaneseq (!%p864_p11) }
  0x34   : > { %v367_v43 = vld [vmem:[#allocation2 + $0x18] sm:$0xff]  ;;  %v631_v51 = vld [vmem:[%s1155_s2] sm:$0x3] (!%p864_p11) }
  0x35   : > { %579 = vmatpush1.bf16.msra.mxu0 %v927_v10  ;;  %v634_v50 = vshrl.u32 (!%p864_p11), %v633_v49, 7  ;;  %v647_v52 = vld [vmem:[%s1156_s3] sm:$0x3] (!%p864_p11) }
  0x36   : > { %580 = vmatprep.subr.bf16.mxu0 %v928_v11 }
  0x37   : > { %v635_v54 = vsub.s32 (!%p864_p11), 0, %v634_v50  ;;  %v639_v55 = vsub.s32 (!%p864_p11), 1, %v634_v50 }
  0x39   : > { %581 = vmatpush1.bf16.msra.mxu0 %v930_v12  ;;  %v636_v59 = vrot.slane (!%p864_p11), %v631_v51, %v635_v54  ;;  %v640_v60 = vrot.slane (!%p864_p11), %v631_v51, %v639_v55  ;;  %v652_v61 = vrot.slane (!%p864_p11), %v647_v52, %v635_v54  ;;  %v656_v62 = vrot.slane (!%p864_p11), %v647_v52, %v639_v55 }
  0x3a   : > { %582 = vmatprep.subr.bf16.mxu0 %v931_v13 }
  0x3d   : > { %583 = vmatpush1.bf16.msra.mxu0 %v933_v14 }
  0x3e   : > { %584 = vmatprep.subr.bf16.mxu0 %v934_v15 }
  0x41   : > { %585 = vmatpush1.bf16.msra.mxu0 %v936_v17 }
  0x42   : > { %586 = vmatprep.subr.bf16.mxu0 %v937_v18 }
  0x45   : > { %587 = vmatpush1.bf16.msra.mxu0 %v939_v19 }
  0x46   : > { %588 = vmatprep.subr.bf16.mxu0 %v940_v20 }
  0x49   : > { %589 = vmatpush1.bf16.msra.mxu0 %v942_v21 }
  0x4a   : > { %590 = vmatprep.subr.bf16.mxu0 %v943_v22 }
  0x4d   : > { %591 = vmatpush1.bf16.msra.mxu0 %v945_v23 }
  0x4e   : > { %592 = vmatprep.subr.bf16.mxu0 %v946_v24 }
  0x51   : > { %593 = vmatpush1.bf16.msra.mxu0 %v948_v25 }
  0x52   : > { %594 = vmatprep.subr.bf16.mxu0 %v949_v26 }
  0x55   : > { %595 = vmatpush1.bf16.msra.mxu0 %v951_v27 }
  0x56   : > { %596 = vmatprep.subr.bf16.mxu0 %v952_v28 }
  0x59   : > { %597 = vmatpush1.bf16.msra.mxu0 %v954_v29 }
  0x5a   : > { %598 = vmatprep.subr.bf16.mxu0 %v955_v30 }
  0x5d   : > { %599 = vmatpush1.bf16.msra.mxu0 %v957_v31 }
  0x5e   : > { %600 = vmatprep.subr.bf16.mxu0 %v958_v32 }
  0x61   : > { %601 = vmatpush1.bf16.msra.mxu0 %v960_v33 }
  0x62   : > { %602 = vmatprep.subr.bf16.mxu0 %v961_v34 }
  0x65   : > { %603 = vmatpush1.bf16.msra.mxu0 %v963_v35 }
  0x68   : > { %605 = vmatmul.mubr.bf16.vlgmr.msra.gmra.mrb[0].mxu0 %v964_v36 }
 0x13b   : > { %v606_v39 = vpop.f32.mrb[0].mxu0  ;;  %626 = sbr.rel (%p864_p11) target bundleno = 338 (0x152), region = 82 }
 0x13c   : > { %v615_v41 = vadd.f32 %v606_v39, %v364_v37  ;;  %v608_v42 = vpop.f32.mrb[1].mxu0 }
 0x13d   : > { %v616_v44 = vadd.f32 %v608_v42, %v365_v38  ;;  %v610_v45 = vpop.f32.mrb[2].mxu0 }
 0x13e   : > { %619 = vst [vmem:[#allocation2] sm:$0xff] %v615_v41  ;;  %v617_v46 = vadd.f32 %v610_v45, %v366_v40  ;;  %v612_v47 = vpop.f32.mrb[3].mxu0 }
 0x13f   : > { %620 = vst [vmem:[#allocation2 + $0x8] sm:$0xff] %v616_v44  ;;  %v618_v48 = vadd.f32 %v612_v47, %v367_v43 }
 0x140   : > { %621 = vst [vmem:[#allocation2 + $0x10] sm:$0xff] %v617_v46 }
 0x141   : > { %622 = vst [vmem:[#allocation2 + $0x18] sm:$0xff] %v618_v48 }
 0x145   : > { %v627_v53 = vld [vmem:[#allocation2] sm:$0xff] }
 0x146   : > { %v628_v56 = vld [vmem:[#allocation2 + $0x8] sm:$0xff]  ;;  %v643_v63 = vmul.f32 %v636_v59, %v627_v53 }
 0x147   : > { %v629_v57 = vld [vmem:[#allocation2 + $0x10] sm:$0xff]  ;;  %v644_v0 = vmul.f32 %v640_v60, %v628_v56 }
 0x148   : > { %v630_v58 = vld [vmem:[#allocation2 + $0x18] sm:$0xff]  ;;  %v645_v1 = vmul.f32 %v636_v59, %v629_v57  ;;  %v659_v3 = vadd.f32 %v652_v61, %v643_v63 }
 0x149   : > { %v646_v2 = vmul.f32 %v640_v60, %v630_v58  ;;  %v660_v4 = vadd.f32 %v656_v62, %v644_v0 }
 0x14a   : > { %v661_v5 = vadd.f32 %v652_v61, %v645_v1  ;;  %v663_v7 = vmax.f32 %v659_v3, 0.0 }
 0x14b   : > { %v662_v6 = vadd.f32 %v656_v62, %v646_v2  ;;  %v664_v8 = vmax.f32 %v660_v4, 0.0 }
 0x14c   : > { %v665_v9 = vmax.f32 %v661_v5, 0.0 }
 0x14d   : > { %v666_v10 = vmax.f32 %v662_v6, 0.0  ;;  %v873_v11 = vpack.c.bf16 %v664_v8, %v663_v7 }
 0x14f   : > { %v874_v12 = vpack.c.bf16 %v666_v10, %v665_v9  ;;  %679 = vst [vmem:[%s1157_s4] sm:$0xff] %v873_v11 }
 0x151   : > { %680 = vst [vmem:[%s1157_s4 + $0x8] sm:$0xff] %v874_v12 }
 0x152 PF: > { %s14_s19 = sadd.s32 1, %s1005_s19   ;;  %s1158_s15 = smov %s993_s16 }
 0x153   : > { %p11_p12 = scmp.ge.s32.totalorder %s14_s19, 11   ;;  %s1159_s16 = smov %s1068_s23 }
 0x154   : > { %s1160_s17 = smov %s1001_s18  ;;  %s1161_s18 = smov %s1163_s20 }
 0x155   :  { %13 = sbr.rel (!%p11_p12) target bundleno = 3 (0x3), region = 126 }

// kernel: base_resnet18_forward.37
= control target key start
LH: loop header
LB: loop body
LE: loop exit
PB: predicated region body
PF: predicated region fallthrough
CT: control target
= control target key end

     0   :  { %s1138_s18 = smov 0   ;;  %s1140_s19 = smov 0   ;;  %s1264_s0 = inlined_call_operand.vmem [shape: bf16[16,2304], index: 0, kind: input, shape index: {}]   ;;  %s1265_s1 = inlined_call_operand.vmem [shape: bf16[2304,256], index: 1, kind: input, shape index: {}]   ;;  %s1266_s2 = inlined_call_operand.vmem [shape: f32[1,256], index: 2, kind: input, shape index: {}]   ;;  %s1267_s3 = inlined_call_operand.vmem [shape: f32[1,256], index: 3, kind: input, shape index: {}]   ;;  %s1268_s4 = inlined_call_operand.vmem [shape: bf16[16,256], index: 4, kind: input, shape index: {}]   ;;  %s1269_s5 = inlined_call_operand.vmem [shape: bf16[16,256], index: 5, kind: output, shape index: {}]  }
   0x1   :  { %s1142_s20 = smov 0   ;;  %s1144_s21 = smov 0  }
   0x2   :  { %s1146_s22 = smov 0  }
   0x3 LB: > { %s27_s23 = sadd.s32 1, %s1101_s21  ;;  %p50_p1 = scmp.ne.s32.totalorder %s1093_s19, %s1089_s18  ;;  %s1105_s22 = sphi %s1146_s22, %s15_s22   ;;  %s1101_s21 = sphi %s1144_s21, %s1273_s21   ;;  %s1097_s20 = sphi %s1142_s20, %s1272_s20   ;;  %s1093_s19 = sphi %s1140_s19, %s1271_s19   ;;  %s1089_s18 = sphi %s1138_s18, %s1270_s18  }
   0x4   : > { %p28_p0 = scmp.ge.s32.totalorder %s27_s23, 9  ;;  %p51_p2 = scmp.eq.s32.totalorder %s1105_s22, 0 }
   0x5   : > { %s43_s25 = sadd.s32 1, %s1093_s19  ;;  %p920_p5 = scmp.ge.s32.totalorder %s1105_s22, 9 }
   0x6   : > { %s1275_s23 = smov (%p28_p0, %s27_s23), 0  ;;  %p52_p3 = por %p51_p2, %p50_p1 }
   0x7   : > { %s39_s24 = ssub.s32 %s1101_s21, %s1275_s23  ;;  %243 = sbr.rel (%p920_p5) target bundleno = 21 (0x15), region = 28 }
   0x8   : > { %p41_p4 = scmp.eq.s32.totalorder %s39_s24, 0 }
   0xa   : > { %s1173_s26 = scalar_select %p41_p4, %s1093_s19, %s43_s25  }
   0xe   : > { %246 = sbr.rel (!%p52_p3) target bundleno = 21 (0x15), region = 32  ;;  %s248_s27 = sand.u32 (%p52_p3), 1, %s1093_s19  }
   0xf   : > { %s971_s28 = sshll.u32 (%p52_p3), %s1101_s21, 3  ;;  %s921_s29 = sshll.u32 (%p52_p3), %s248_s27, 4 }
  0x10   : > { %s256_s7 = scalar_lea.vmem (%p52_p3), %s1264_s0, %s971_s28  ;;  %s250_s8 = scalar_lea.vmem (%p52_p3), [#allocation3], %s921_s29 }
  0x11   : > { %v286_v0 = vld [vmem:[%s256_s7] sm:$0xff] (%p52_p3)  ;;  %v288_v1 = vld [vmem:[%s256_s7 + $0x48] sm:$0xff] (%p52_p3) }
  0x12   : > { %287 = vst [vmem:[%s250_s8] sm:$0xff] (%p52_p3), %v286_v0  ;;  %289 = vst [vmem:[%s250_s8 + $0x8] sm:$0xff] (%p52_p3), %v288_v1 }
  0x15 PF: > { %p924_p6 = scmp.ge.s32.totalorder %s1105_s22, 1  ;;  %p309_p7 = scmp.lt.s32.totalorder %s1105_s22, 10 }
  0x17   : > { %p310_p8 = pnand %p924_p6, %p309_p7 }
  0x18   : > { %s316_s9 = sand.u32 (!%p310_p8), 1, %s1089_s18   ;;  %s926_s10 = sshll.u32 (!%p310_p8), %s1097_s20, 5 }
  0x19   : > { %313 = sbr.rel (%p310_p8) target bundleno = 340 (0x154), region = 74  ;;  %s1185_s11 = sshll.u32 (!%p310_p8), %s316_s9, 4 }
  0x1a   : > { %p380_p9 = scmp.lt.s32.totalorder (!%p310_p8), %s926_s10, 287  ;;  %s318_s16 = scalar_lea.vmem (!%p310_p8), [#allocation3], %s1185_s11 }
  0x1b   : > { %p929_p10 = scmp.ne.s32.totalorder (!%p310_p8), %s1097_s20, 0 }
  0x20   : > { %s1277_s10 = smov (!%p380_p9, %s926_s10), 287  ;;  %427 = sbr.rel (%p929_p10) target bundleno = 39 (0x27), region = 82 }
  0x21   : > { %s972_s12 = sshll.u32 %s1277_s10, 3  ;;  %v1107_v2 = vmov (!%p929_p10), 0.0  }
  0x22   : > { %s1190_s15 = scalar_lea.vmem %s1265_s1, %s972_s12  ;;  %428 = vst [vmem:[#allocation2] sm:$0xff] (!%p929_p10), %v1107_v2  ;;  %429 = vst [vmem:[#allocation2 + $0x8] sm:$0xff] (!%p929_p10), %v1107_v2 }
  0x23   : > { %430 = vst [vmem:[#allocation2 + $0x10] sm:$0xff] (!%p929_p10), %v1107_v2  ;;  %431 = vst [vmem:[#allocation2 + $0x18] sm:$0xff] (!%p929_p10), %v1107_v2 }
  0x27 PF: > { %v1016_v3 = vld [vmem:[%s1190_s15 + $0x4] ss:$8 sps:$4 sm:$0xff]   ;;  %v1018_v4 = vld [vmem:[%s1190_s15] ss:$8 sps:$4 sm:$0xff]   ;;  %v1019_v5 = vld [vmem:[%s1190_s15 + $0x14] ss:$8 sps:$4 sm:$0xff]  }
  0x28   : > { %640 = vmatprep.subr.bf16.mxu0 %v1016_v3  ;;  %v1021_v6 = vld [vmem:[%s1190_s15 + $0x10] ss:$8 sps:$4 sm:$0xff]   ;;  %v1022_v7 = vld [vmem:[%s1190_s15 + $0x24] ss:$8 sps:$4 sm:$0xff]   ;;  %v1024_v8 = vld [vmem:[%s1190_s15 + $0x20] ss:$8 sps:$4 sm:$0xff]  }
  0x29   : > { %641 = vmatpush1.bf16.msra.mxu0 %v1018_v4  ;;  %v1025_v9 = vld [vmem:[%s1190_s15 + $0x34] ss:$8 sps:$4 sm:$0xff]   ;;  %v1027_v10 = vld [vmem:[%s1190_s15 + $0x30] ss:$8 sps:$4 sm:$0xff]   ;;  %v1028_v11 = vld [vmem:[%s1190_s15 + $0x44] ss:$8 sps:$4 sm:$0xff]  }
  0x2a   : > { %642 = vmatprep.subr.bf16.mxu0 %v1019_v5  ;;  %v1030_v12 = vld [vmem:[%s1190_s15 + $0x40] ss:$8 sps:$4 sm:$0xff]   ;;  %v1031_v13 = vld [vmem:[%s1190_s15 + $0x54] ss:$8 sps:$4 sm:$0xff]   ;;  %v1033_v14 = vld [vmem:[%s1190_s15 + $0x50] ss:$8 sps:$4 sm:$0xff]  }
  0x2b   : > { %v1034_v15 = vld [vmem:[%s1190_s15 + $0x64] ss:$8 sps:$4 sm:$0xff]   ;;  %v1036_v17 = vld [vmem:[%s1190_s15 + $0x60] ss:$8 sps:$4 sm:$0xff]   ;;  %v1037_v18 = vld [vmem:[%s1190_s15 + $0x74] ss:$8 sps:$4 sm:$0xff]  }
  0x2c   : > { %v1066_v16 = vld [vmem:[%s318_s16 + $0x4] ss:$8 sps:$4 sm:$0xff]   ;;  %v1039_v19 = vld [vmem:[%s1190_s15 + $0x70] ss:$8 sps:$4 sm:$0xff]   ;;  %v1042_v21 = vld [vmem:[%s1190_s15 + $0x80] ss:$8 sps:$4 sm:$0xff]  }
  0x2d   : > { %643 = vmatpush1.bf16.msra.mxu0 %v1021_v6  ;;  %672 = vmatprep.mubr.bf16.mxu0 %v1066_v16  ;;  %v1040_v20 = vld [vmem:[%s1190_s15 + $0x84] ss:$8 sps:$4 sm:$0xff]   ;;  %v1043_v22 = vld [vmem:[%s1190_s15 + $0x94] ss:$8 sps:$4 sm:$0xff]   ;;  %v1045_v23 = vld [vmem:[%s1190_s15 + $0x90] ss:$8 sps:$4 sm:$0xff]  }
  0x2e   : > { %644 = vmatprep.subr.bf16.mxu0 %v1022_v7  ;;  %v1046_v24 = vld [vmem:[%s1190_s15 + $0xa4] ss:$8 sps:$4 sm:$0xff]   ;;  %v1048_v25 = vld [vmem:[%s1190_s15 + $0xa0] ss:$8 sps:$4 sm:$0xff]   ;;  %v1049_v26 = vld [vmem:[%s1190_s15 + $0xb4] ss:$8 sps:$4 sm:$0xff]  }
  0x2f   : > { %v1051_v27 = vld [vmem:[%s1190_s15 + $0xb0] ss:$8 sps:$4 sm:$0xff]   ;;  %v1052_v28 = vld [vmem:[%s1190_s15 + $0xc4] ss:$8 sps:$4 sm:$0xff]   ;;  %v1054_v29 = vld [vmem:[%s1190_s15 + $0xc0] ss:$8 sps:$4 sm:$0xff]  }
  0x30   : > { %v1055_v30 = vld [vmem:[%s1190_s15 + $0xd4] ss:$8 sps:$4 sm:$0xff]   ;;  %v1057_v31 = vld [vmem:[%s1190_s15 + $0xd0] ss:$8 sps:$4 sm:$0xff]   ;;  %v1058_v32 = vld [vmem:[%s1190_s15 + $0xe4] ss:$8 sps:$4 sm:$0xff]  }
  0x31   : > { %645 = vmatpush1.bf16.msra.mxu0 %v1024_v8  ;;  %v1060_v33 = vld [vmem:[%s1190_s15 + $0xe0] ss:$8 sps:$4 sm:$0xff]   ;;  %v1061_v34 = vld [vmem:[%s1190_s15 + $0xf4] ss:$8 sps:$4 sm:$0xff]   ;;  %v1063_v35 = vld [vmem:[%s1190_s15 + $0xf0] ss:$8 sps:$4 sm:$0xff]  }
  0x32   : > { %646 = vmatprep.subr.bf16.mxu0 %v1025_v9  ;;  %v1064_v36 = vld [vmem:[%s318_s16] ss:$8 sps:$4 sm:$0xff]   ;;  %p964_p11 = scmp.ne.s32.totalorder %s1097_s20, 8 }
  0x33   : > { %v432_v37 = vld [vmem:[#allocation2] sm:$0xff]  ;;  %v433_v38 = vld [vmem:[#allocation2 + $0x8] sm:$0xff]  ;;  %v434_v40 = vld [vmem:[#allocation2 + $0x10] sm:$0xff]  ;;  %v701_v49 = vlaneseq (!%p964_p11) }
  0x34   : > { %v435_v43 = vld [vmem:[#allocation2 + $0x18] sm:$0xff]  ;;  %v699_v51 = vld [vmem:[%s1266_s2] sm:$0x3] (!%p964_p11)  ;;  %v732_v57 = vld [vmem:[%s1268_s4 + $0x8] sm:$0xff] (!%p964_p11) }
  0x35   : > { %647 = vmatpush1.bf16.msra.mxu0 %v1027_v10  ;;  %v702_v50 = vshrl.u32 (!%p964_p11), %v701_v49, 7  ;;  %v715_v52 = vld [vmem:[%s1267_s3] sm:$0x3] (!%p964_p11)  ;;  %v735_v3 = vunpack.c.l.bf16 (!%p964_p11), %v732_v57  ;;  %v736_v4 = vunpack.c.h.bf16 (!%p964_p11), %v732_v57 }
  0x36   : > { %648 = vmatprep.subr.bf16.mxu0 %v1028_v11  ;;  %v731_v56 = vld [vmem:[%s1268_s4] sm:$0xff] (!%p964_p11) }
  0x37   : > { %v703_v54 = vsub.s32 (!%p964_p11), 0, %v702_v50  ;;  %v707_v55 = vsub.s32 (!%p964_p11), 1, %v702_v50  ;;  %v733_v1 = vunpack.c.l.bf16 (!%p964_p11), %v731_v56  ;;  %v734_v2 = vunpack.c.h.bf16 (!%p964_p11), %v731_v56 }
  0x39   : > { %649 = vmatpush1.bf16.msra.mxu0 %v1030_v12  ;;  %v704_v61 = vrot.slane (!%p964_p11), %v699_v51, %v703_v54  ;;  %v708_v62 = vrot.slane (!%p964_p11), %v699_v51, %v707_v55  ;;  %v720_v63 = vrot.slane (!%p964_p11), %v715_v52, %v703_v54  ;;  %v724_v0 = vrot.slane (!%p964_p11), %v715_v52, %v707_v55 }
  0x3a   : > { %650 = vmatprep.subr.bf16.mxu0 %v1031_v13 }
  0x3d   : > { %651 = vmatpush1.bf16.msra.mxu0 %v1033_v14 }
  0x3e   : > { %652 = vmatprep.subr.bf16.mxu0 %v1034_v15 }
  0x41   : > { %653 = vmatpush1.bf16.msra.mxu0 %v1036_v17 }
  0x42   : > { %654 = vmatprep.subr.bf16.mxu0 %v1037_v18 }
  0x45   : > { %655 = vmatpush1.bf16.msra.mxu0 %v1039_v19 }
  0x46   : > { %656 = vmatprep.subr.bf16.mxu0 %v1040_v20 }
  0x49   : > { %657 = vmatpush1.bf16.msra.mxu0 %v1042_v21 }
  0x4a   : > { %658 = vmatprep.subr.bf16.mxu0 %v1043_v22 }
  0x4d   : > { %659 = vmatpush1.bf16.msra.mxu0 %v1045_v23 }
  0x4e   : > { %660 = vmatprep.subr.bf16.mxu0 %v1046_v24 }
  0x51   : > { %661 = vmatpush1.bf16.msra.mxu0 %v1048_v25 }
  0x52   : > { %662 = vmatprep.subr.bf16.mxu0 %v1049_v26 }
  0x55   : > { %663 = vmatpush1.bf16.msra.mxu0 %v1051_v27 }
  0x56   : > { %664 = vmatprep.subr.bf16.mxu0 %v1052_v28 }
  0x59   : > { %665 = vmatpush1.bf16.msra.mxu0 %v1054_v29 }
  0x5a   : > { %666 = vmatprep.subr.bf16.mxu0 %v1055_v30 }
  0x5d   : > { %667 = vmatpush1.bf16.msra.mxu0 %v1057_v31 }
  0x5e   : > { %668 = vmatprep.subr.bf16.mxu0 %v1058_v32 }
  0x61   : > { %669 = vmatpush1.bf16.msra.mxu0 %v1060_v33 }
  0x62   : > { %670 = vmatprep.subr.bf16.mxu0 %v1061_v34 }
  0x65   : > { %671 = vmatpush1.bf16.msra.mxu0 %v1063_v35 }
  0x68   : > { %673 = vmatmul.mubr.bf16.vlgmr.msra.gmra.mrb[0].mxu0 %v1064_v36 }
 0x13b   : > { %v674_v39 = vpop.f32.mrb[0].mxu0  ;;  %694 = sbr.rel (%p964_p11) target bundleno = 340 (0x154), region = 86 }
 0x13c   : > { %v683_v41 = vadd.f32 %v674_v39, %v432_v37  ;;  %v676_v42 = vpop.f32.mrb[1].mxu0 }
 0x13d   : > { %v684_v44 = vadd.f32 %v676_v42, %v433_v38  ;;  %v678_v45 = vpop.f32.mrb[2].mxu0 }
 0x13e   : > { %687 = vst [vmem:[#allocation2] sm:$0xff] %v683_v41  ;;  %v685_v46 = vadd.f32 %v678_v45, %v434_v40  ;;  %v680_v47 = vpop.f32.mrb[3].mxu0 }
 0x13f   : > { %688 = vst [vmem:[#allocation2 + $0x8] sm:$0xff] %v684_v44  ;;  %v686_v48 = vadd.f32 %v680_v47, %v435_v43 }
 0x140   : > { %689 = vst [vmem:[#allocation2 + $0x10] sm:$0xff] %v685_v46 }
 0x141   : > { %690 = vst [vmem:[#allocation2 + $0x18] sm:$0xff] %v686_v48 }
 0x145   : > { %v695_v53 = vld [vmem:[#allocation2] sm:$0xff] }
 0x146   : > { %v696_v58 = vld [vmem:[#allocation2 + $0x8] sm:$0xff]  ;;  %v711_v5 = vmul.f32 %v704_v61, %v695_v53 }
 0x147   : > { %v697_v59 = vld [vmem:[#allocation2 + $0x10] sm:$0xff]  ;;  %v712_v6 = vmul.f32 %v708_v62, %v696_v58 }
 0x148   : > { %v698_v60 = vld [vmem:[#allocation2 + $0x18] sm:$0xff]  ;;  %v713_v7 = vmul.f32 %v704_v61, %v697_v59  ;;  %v727_v9 = vadd.f32 %v720_v63, %v711_v5 }
 0x149   : > { %v714_v8 = vmul.f32 %v708_v62, %v698_v60  ;;  %v728_v10 = vadd.f32 %v724_v0, %v712_v6 }
 0x14a   : > { %v729_v11 = vadd.f32 %v720_v63, %v713_v7  ;;  %v737_v13 = vadd.f32 %v733_v1, %v727_v9 }
 0x14b   : > { %v730_v12 = vadd.f32 %v724_v0, %v714_v8  ;;  %v738_v14 = vadd.f32 %v734_v2, %v728_v10 }
 0x14c   : > { %v739_v15 = vadd.f32 %v735_v3, %v729_v11  ;;  %v741_v17 = vmax.f32 %v737_v13, 0.0 }
 0x14d   : > { %v740_v16 = vadd.f32 %v736_v4, %v730_v12  ;;  %v742_v18 = vmax.f32 %v738_v14, 0.0 }
 0x14e   : > { %v743_v19 = vmax.f32 %v739_v15, 0.0 }
 0x14f   : > { %v744_v20 = vmax.f32 %v740_v16, 0.0  ;;  %v973_v21 = vpack.c.bf16 %v742_v18, %v741_v17 }
 0x151   : > { %v974_v22 = vpack.c.bf16 %v744_v20, %v743_v19  ;;  %757 = vst [vmem:[%s1269_s5] sm:$0xff] %v973_v21 }
 0x153   : > { %758 = vst [vmem:[%s1269_s5 + $0x8] sm:$0xff] %v974_v22 }
 0x154 PF: > { %s15_s22 = sadd.s32 1, %s1105_s22   ;;  %s1270_s18 = smov %s1093_s19 }
 0x155   : > { %p12_p12 = scmp.ge.s32.totalorder %s15_s22, 11   ;;  %s1271_s19 = smov %s1173_s26 }
 0x156   : > { %s1272_s20 = smov %s1101_s21  ;;  %s1273_s21 = smov %s1275_s23 }
 0x157   :  { %14 = sbr.rel (!%p12_p12) target bundleno = 3 (0x3), region = 133 }

// kernel: base_resnet18_forward.41
= control target key start
LH: loop header
LB: loop body
LE: loop exit
PB: predicated region body
PF: predicated region fallthrough
CT: control target
= control target key end

     0   :  { %s1418_s15 = smov 0   ;;  %s1420_s16 = smov 0   ;;  %s1576_s0 = inlined_call_operand.vmem [shape: bf16[16,2304], index: 0, kind: input, shape index: {}]   ;;  %s1577_s1 = inlined_call_operand.vmem [shape: bf16[2304,512], index: 1, kind: input, shape index: {}]   ;;  %s1578_s2 = inlined_call_operand.vmem [shape: f32[1,512], index: 2, kind: input, shape index: {}]   ;;  %s1579_s3 = inlined_call_operand.vmem [shape: f32[1,512], index: 3, kind: input, shape index: {}]   ;;  %s1580_s4 = inlined_call_operand.vmem [shape: bf16[16,512], index: 4, kind: output, shape index: {}]  }
   0x1   :  { %s1422_s17 = smov 0   ;;  %s1424_s18 = smov 0  }
   0x2   :  { %s1426_s19 = smov 0  }
   0x3 LB: > { %s26_s20 = sadd.s32 1, %s1386_s18  ;;  %p49_p1 = scmp.ne.s32.totalorder %s1378_s16, %s1374_s15  ;;  %s1390_s19 = sphi %s1426_s19, %s14_s19   ;;  %s1386_s18 = sphi %s1424_s18, %s1584_s18   ;;  %s1382_s17 = sphi %s1422_s17, %s1583_s17   ;;  %s1378_s16 = sphi %s1420_s16, %s1582_s16   ;;  %s1374_s15 = sphi %s1418_s15, %s1581_s15  }
   0x4   : > { %p27_p0 = scmp.ge.s32.totalorder %s26_s20, 9  ;;  %p50_p2 = scmp.eq.s32.totalorder %s1390_s19, 0 }
   0x5   : > { %s42_s22 = sadd.s32 1, %s1378_s16  ;;  %p1121_p5 = scmp.ge.s32.totalorder %s1390_s19, 9 }
   0x6   : > { %s1586_s20 = smov (%p27_p0, %s26_s20), 0  ;;  %p51_p3 = por %p50_p2, %p49_p1 }
   0x7   : > { %s38_s21 = ssub.s32 %s1386_s18, %s1586_s20  ;;  %199 = sbr.rel (%p1121_p5) target bundleno = 21 (0x15), region = 24 }
   0x8   : > { %p40_p4 = scmp.eq.s32.totalorder %s38_s21, 0 }
   0xa   : > { %s1453_s23 = scalar_select %p40_p4, %s1378_s16, %s42_s22  }
   0xe   : > { %202 = sbr.rel (!%p51_p3) target bundleno = 21 (0x15), region = 28  ;;  %s204_s24 = sand.u32 (%p51_p3), 1, %s1378_s16  }
   0xf   : > { %s1206_s25 = sshll.u32 (%p51_p3), %s1386_s18, 3  ;;  %s1122_s26 = sshll.u32 (%p51_p3), %s204_s24, 4 }
  0x10   : > { %s212_s29 = scalar_lea.vmem (%p51_p3), %s1576_s0, %s1206_s25  ;;  %s206_s30 = scalar_lea.vmem (%p51_p3), [#allocation3], %s1122_s26 }
  0x11   : > { %v242_v0 = vld [vmem:[%s212_s29] sm:$0xff] (%p51_p3)  ;;  %v244_v1 = vld [vmem:[%s212_s29 + $0x48] sm:$0xff] (%p51_p3) }
  0x12   : > { %243 = vst [vmem:[%s206_s30] sm:$0xff] (%p51_p3), %v242_v0  ;;  %245 = vst [vmem:[%s206_s30 + $0x8] sm:$0xff] (%p51_p3), %v244_v1 }
  0x15 PF: > { %p1125_p6 = scmp.ge.s32.totalorder %s1390_s19, 1  ;;  %p265_p7 = scmp.lt.s32.totalorder %s1390_s19, 10 }
  0x17   : > { %p266_p8 = pnand %p1125_p6, %p265_p7 }
  0x18   : > { %s272_s5 = sand.u32 (!%p266_p8), 1, %s1374_s15   ;;  %s1127_s6 = sshll.u32 (!%p266_p8), %s1382_s17, 5 }
  0x19   : > { %269 = sbr.rel (%p266_p8) target bundleno = 338 (0x152), region = 70  ;;  %s1465_s7 = sshll.u32 (!%p266_p8), %s272_s5, 4 }
  0x1a   : > { %p324_p9 = scmp.lt.s32.totalorder (!%p266_p8), %s1127_s6, 287  ;;  %s274_s12 = scalar_lea.vmem (!%p266_p8), [#allocation3], %s1465_s7 }
  0x1b   : > { %p1130_p10 = scmp.ne.s32.totalorder (!%p266_p8), %s1382_s17, 0 }
  0x20   : > { %s1588_s6 = smov (!%p324_p9, %s1127_s6), 287  ;;  %359 = sbr.rel (%p1130_p10) target bundleno = 39 (0x27), region = 78 }
  0x21   : > { %s1207_s8 = sshll.u32 %s1588_s6, 4  ;;  %v1392_v2 = vmov (!%p1130_p10), 0.0  }
  0x22   : > { %s1470_s11 = scalar_lea.vmem %s1577_s1, %s1207_s8  ;;  %360 = vst [vmem:[#allocation2] sm:$0xff] (!%p1130_p10), %v1392_v2  ;;  %361 = vst [vmem:[#allocation2 + $0x8] sm:$0xff] (!%p1130_p10), %v1392_v2 }
  0x23   : > { %362 = vst [vmem:[#allocation2 + $0x10] sm:$0xff] (!%p1130_p10), %v1392_v2  ;;  %363 = vst [vmem:[#allocation2 + $0x18] sm:$0xff] (!%p1130_p10), %v1392_v2 }
  0x24   : > { %364 = vst [vmem:[#allocation2 + $0x20] sm:$0xff] (!%p1130_p10), %v1392_v2  ;;  %365 = vst [vmem:[#allocation2 + $0x28] sm:$0xff] (!%p1130_p10), %v1392_v2 }
  0x25   : > { %366 = vst [vmem:[#allocation2 + $0x30] sm:$0xff] (!%p1130_p10), %v1392_v2  ;;  %367 = vst [vmem:[#allocation2 + $0x38] sm:$0xff] (!%p1130_p10), %v1392_v2 }
  0x27 PF: > { %v1253_v3 = vld [vmem:[%s1470_s11 + $0x4] ss:$16 sps:$4 sm:$0xff]   ;;  %v1255_v4 = vld [vmem:[%s1470_s11 + $0xc] ss:$16 sps:$4 sm:$0xff]   ;;  %v1257_v5 = vld [vmem:[%s1470_s11] ss:$16 sps:$4 sm:$0xff]  }
  0x28   : > { %772 = vmatprep.subr.bf16.mxu0 %v1253_v3  ;;  %v1258_v6 = vld [vmem:[%s1470_s11 + $0x8] ss:$16 sps:$4 sm:$0xff]   ;;  %815 = vmatprep.subr.bf16.mxu1 %v1255_v4  ;;  %v1259_v7 = vld [vmem:[%s1470_s11 + $0x24] ss:$16 sps:$4 sm:$0xff]   ;;  %v1261_v8 = vld [vmem:[%s1470_s11 + $0x2c] ss:$16 sps:$4 sm:$0xff]  }
  0x29   : > { %773 = vmatpush1.bf16.msra.mxu0 %v1257_v5  ;;  %816 = vmatpush1.bf16.msra.mxu1 %v1258_v6  ;;  %v1263_v9 = vld [vmem:[%s1470_s11 + $0x20] ss:$16 sps:$4 sm:$0xff]   ;;  %v1264_v10 = vld [vmem:[%s1470_s11 + $0x28] ss:$16 sps:$4 sm:$0xff]   ;;  %v1265_v11 = vld [vmem:[%s1470_s11 + $0x44] ss:$16 sps:$4 sm:$0xff]  }
  0x2a   : > { %774 = vmatprep.subr.bf16.mxu0 %v1259_v7  ;;  %817 = vmatprep.subr.bf16.mxu1 %v1261_v8  ;;  %v1267_v12 = vld [vmem:[%s1470_s11 + $0x4c] ss:$16 sps:$4 sm:$0xff]   ;;  %v1269_v13 = vld [vmem:[%s1470_s11 + $0x40] ss:$16 sps:$4 sm:$0xff]   ;;  %v1270_v14 = vld [vmem:[%s1470_s11 + $0x48] ss:$16 sps:$4 sm:$0xff]  }
  0x2b   : > { %v1271_v15 = vld [vmem:[%s1470_s11 + $0x64] ss:$16 sps:$4 sm:$0xff]   ;;  %v1273_v16 = vld [vmem:[%s1470_s11 + $0x6c] ss:$16 sps:$4 sm:$0xff]   ;;  %v1275_v17 = vld [vmem:[%s1470_s11 + $0x60] ss:$16 sps:$4 sm:$0xff]  }
  0x2c   : > { %v1276_v18 = vld [vmem:[%s1470_s11 + $0x68] ss:$16 sps:$4 sm:$0xff]   ;;  %v1277_v19 = vld [vmem:[%s1470_s11 + $0x84] ss:$16 sps:$4 sm:$0xff]   ;;  %v1279_v20 = vld [vmem:[%s1470_s11 + $0x8c] ss:$16 sps:$4 sm:$0xff]  }
  0x2d   : > { %775 = vmatpush1.bf16.msra.mxu0 %v1263_v9  ;;  %818 = vmatpush1.bf16.msra.mxu1 %v1264_v10  ;;  %v1281_v21 = vld [vmem:[%s1470_s11 + $0x80] ss:$16 sps:$4 sm:$0xff]   ;;  %v1282_v22 = vld [vmem:[%s1470_s11 + $0x88] ss:$16 sps:$4 sm:$0xff]   ;;  %v1283_v23 = vld [vmem:[%s1470_s11 + $0xa4] ss:$16 sps:$4 sm:$0xff]  }
  0x2e   : > { %776 = vmatprep.subr.bf16.mxu0 %v1265_v11  ;;  %819 = vmatprep.subr.bf16.mxu1 %v1267_v12  ;;  %v1285_v24 = vld [vmem:[%s1470_s11 + $0xac] ss:$16 sps:$4 sm:$0xff]   ;;  %v1287_v25 = vld [vmem:[%s1470_s11 + $0xa0] ss:$16 sps:$4 sm:$0xff]   ;;  %v1288_v26 = vld [vmem:[%s1470_s11 + $0xa8] ss:$16 sps:$4 sm:$0xff]  }
  0x2f   : > { %v1289_v27 = vld [vmem:[%s1470_s11 + $0xc4] ss:$16 sps:$4 sm:$0xff]   ;;  %v1291_v28 = vld [vmem:[%s1470_s11 + $0xcc] ss:$16 sps:$4 sm:$0xff]   ;;  %v1293_v29 = vld [vmem:[%s1470_s11 + $0xc0] ss:$16 sps:$4 sm:$0xff]  }
  0x30   : > { %v1294_v30 = vld [vmem:[%s1470_s11 + $0xc8] ss:$16 sps:$4 sm:$0xff]   ;;  %v1295_v31 = vld [vmem:[%s1470_s11 + $0xe4] ss:$16 sps:$4 sm:$0xff]   ;;  %v1297_v32 = vld [vmem:[%s1470_s11 + $0xec] ss:$16 sps:$4 sm:$0xff]  }
  0x31   : > { %777 = vmatpush1.bf16.msra.mxu0 %v1269_v13  ;;  %820 = vmatpush1.bf16.msra.mxu1 %v1270_v14  ;;  %v1299_v33 = vld [vmem:[%s1470_s11 + $0xe0] ss:$16 sps:$4 sm:$0xff]   ;;  %v1300_v34 = vld [vmem:[%s1470_s11 + $0xe8] ss:$16 sps:$4 sm:$0xff]   ;;  %v1301_v35 = vld [vmem:[%s1470_s11 + $0x104] ss:$16 sps:$4 sm:$0xff]  }
  0x32   : > { %778 = vmatprep.subr.bf16.mxu0 %v1271_v15  ;;  %821 = vmatprep.subr.bf16.mxu1 %v1273_v16  ;;  %v1303_v36 = vld [vmem:[%s1470_s11 + $0x10c] ss:$16 sps:$4 sm:$0xff]   ;;  %v1305_v37 = vld [vmem:[%s1470_s11 + $0x100] ss:$16 sps:$4 sm:$0xff]   ;;  %v1306_v38 = vld [vmem:[%s1470_s11 + $0x108] ss:$16 sps:$4 sm:$0xff]  }
  0x33   : > { %v1307_v39 = vld [vmem:[%s1470_s11 + $0x124] ss:$16 sps:$4 sm:$0xff]   ;;  %v1309_v40 = vld [vmem:[%s1470_s11 + $0x12c] ss:$16 sps:$4 sm:$0xff]   ;;  %v1311_v41 = vld [vmem:[%s1470_s11 + $0x120] ss:$16 sps:$4 sm:$0xff]  }
  0x34   : > { %v1312_v42 = vld [vmem:[%s1470_s11 + $0x128] ss:$16 sps:$4 sm:$0xff]   ;;  %v1313_v43 = vld [vmem:[%s1470_s11 + $0x144] ss:$16 sps:$4 sm:$0xff]   ;;  %v1315_v44 = vld [vmem:[%s1470_s11 + $0x14c] ss:$16 sps:$4 sm:$0xff]  }
  0x35   : > { %779 = vmatpush1.bf16.msra.mxu0 %v1275_v17  ;;  %822 = vmatpush1.bf16.msra.mxu1 %v1276_v18  ;;  %v1317_v45 = vld [vmem:[%s1470_s11 + $0x140] ss:$16 sps:$4 sm:$0xff]   ;;  %v1318_v46 = vld [vmem:[%s1470_s11 + $0x148] ss:$16 sps:$4 sm:$0xff]   ;;  %v1319_v47 = vld [vmem:[%s1470_s11 + $0x164] ss:$16 sps:$4 sm:$0xff]  }
  0x36   : > { %780 = vmatprep.subr.bf16.mxu0 %v1277_v19  ;;  %823 = vmatprep.subr.bf16.mxu1 %v1279_v20  ;;  %v1321_v48 = vld [vmem:[%s1470_s11 + $0x16c] ss:$16 sps:$4 sm:$0xff]   ;;  %v1323_v50 = vld [vmem:[%s1470_s11 + $0x160] ss:$16 sps:$4 sm:$0xff]   ;;  %v1324_v51 = vld [vmem:[%s1470_s11 + $0x168] ss:$16 sps:$4 sm:$0xff]  }
  0x37   : > { %v1351_v49 = vld [vmem:[%s274_s12 + $0x4] ss:$8 sps:$4 sm:$0xff]   ;;  %v1329_v54 = vld [vmem:[%s1470_s11 + $0x180] ss:$16 sps:$4 sm:$0xff]   ;;  %v1330_v55 = vld [vmem:[%s1470_s11 + $0x188] ss:$16 sps:$4 sm:$0xff]  }
  0x38   : > { %v1325_v52 = vld [vmem:[%s1470_s11 + $0x184] ss:$16 sps:$4 sm:$0xff]   ;;  %v1327_v53 = vld [vmem:[%s1470_s11 + $0x18c] ss:$16 sps:$4 sm:$0xff]   ;;  %804 = vmatprep.mubr.bf16.mxu0 %v1351_v49  ;;  %847 = vmatprep.mubr.bf16.mxu1 %v1351_v49  ;;  %v1335_v58 = vld [vmem:[%s1470_s11 + $0x1a0] ss:$16 sps:$4 sm:$0xff]  }
  0x39   : > { %781 = vmatpush1.bf16.msra.mxu0 %v1281_v21  ;;  %824 = vmatpush1.bf16.msra.mxu1 %v1282_v22  ;;  %v1331_v56 = vld [vmem:[%s1470_s11 + $0x1a4] ss:$16 sps:$4 sm:$0xff]   ;;  %v1333_v57 = vld [vmem:[%s1470_s11 + $0x1ac] ss:$16 sps:$4 sm:$0xff]   ;;  %v1336_v59 = vld [vmem:[%s1470_s11 + $0x1a8] ss:$16 sps:$4 sm:$0xff]  }
  0x3a   : > { %782 = vmatprep.subr.bf16.mxu0 %v1283_v23  ;;  %825 = vmatprep.subr.bf16.mxu1 %v1285_v24  ;;  %v1337_v60 = vld [vmem:[%s1470_s11 + $0x1c4] ss:$16 sps:$4 sm:$0xff]   ;;  %v1339_v61 = vld [vmem:[%s1470_s11 + $0x1cc] ss:$16 sps:$4 sm:$0xff]   ;;  %v1341_v62 = vld [vmem:[%s1470_s11 + $0x1c0] ss:$16 sps:$4 sm:$0xff]  }
  0x3b   : > { %v1342_v63 = vld [vmem:[%s1470_s11 + $0x1c8] ss:$16 sps:$4 sm:$0xff]   ;;  %v1343_v0 = vld [vmem:[%s1470_s11 + $0x1e4] ss:$16 sps:$4 sm:$0xff]   ;;  %v1345_v1 = vld [vmem:[%s1470_s11 + $0x1ec] ss:$16 sps:$4 sm:$0xff]  }
  0x3c   : > { %v1347_v2 = vld [vmem:[%s1470_s11 + $0x1e0] ss:$16 sps:$4 sm:$0xff]   ;;  %v1348_v3 = vld [vmem:[%s1470_s11 + $0x1e8] ss:$16 sps:$4 sm:$0xff]   ;;  %p1197_p11 = scmp.ne.s32.totalorder %s1382_s17, 8 }
  0x3d   : > { %783 = vmatpush1.bf16.msra.mxu0 %v1287_v25  ;;  %826 = vmatpush1.bf16.msra.mxu1 %v1288_v26  ;;  %v1349_v4 = vld [vmem:[%s274_s12] ss:$8 sps:$4 sm:$0xff]  }
  0x3e   : > { %784 = vmatprep.subr.bf16.mxu0 %v1289_v27  ;;  %827 = vmatprep.subr.bf16.mxu1 %v1291_v28  ;;  %v368_v5 = vld [vmem:[#allocation2] sm:$0xff]  ;;  %v370_v6 = vld [vmem:[#allocation2 + $0x10] sm:$0xff]  ;;  %v369_v7 = vld [vmem:[#allocation2 + $0x8] sm:$0xff] }
  0x3f   : > { %v371_v8 = vld [vmem:[#allocation2 + $0x18] sm:$0xff]  ;;  %v372_v11 = vld [vmem:[#allocation2 + $0x20] sm:$0xff]  ;;  %v374_v12 = vld [vmem:[#allocation2 + $0x30] sm:$0xff] }
  0x40   : > { %v373_v17 = vld [vmem:[#allocation2 + $0x28] sm:$0xff]  ;;  %v375_v18 = vld [vmem:[#allocation2 + $0x38] sm:$0xff] }
  0x41   : > { %785 = vmatpush1.bf16.msra.mxu0 %v1293_v29  ;;  %828 = vmatpush1.bf16.msra.mxu1 %v1294_v30  ;;  %v888_v29 = vlaneseq (!%p1197_p11) }
  0x42   : > { %786 = vmatprep.subr.bf16.mxu0 %v1295_v31  ;;  %829 = vmatprep.subr.bf16.mxu1 %v1297_v32  ;;  %v886_v31 = vld [vmem:[%s1578_s2] sm:$0xf] (!%p1197_p11) }
  0x43   : > { %v889_v30 = vshrl.u32 (!%p1197_p11), %v888_v29, 7  ;;  %v916_v32 = vld [vmem:[%s1579_s3] sm:$0xf] (!%p1197_p11) }
  0x45   : > { %787 = vmatpush1.bf16.msra.mxu0 %v1299_v33  ;;  %830 = vmatpush1.bf16.msra.mxu1 %v1300_v34 }
  0x46   : > { %788 = vmatprep.subr.bf16.mxu0 %v1301_v35  ;;  %831 = vmatprep.subr.bf16.mxu1 %v1303_v36  ;;  %v890_v35 = vsub.s32 (!%p1197_p11), 0, %v889_v30  ;;  %v894_v36 = vsub.s32 (!%p1197_p11), 1, %v889_v30 }
  0x49   : > { %789 = vmatpush1.bf16.msra.mxu0 %v1305_v37  ;;  %832 = vmatpush1.bf16.msra.mxu1 %v1306_v38  ;;  %v898_v37 = vsub.s32 (!%p1197_p11), 2, %v889_v30  ;;  %v902_v38 = vsub.s32 (!%p1197_p11), 3, %v889_v30 }
  0x4a   : > { %790 = vmatprep.subr.bf16.mxu0 %v1307_v39  ;;  %833 = vmatprep.subr.bf16.mxu1 %v1309_v40 }
  0x4b   : > { %v899_v49 = vrot.slane (!%p1197_p11), %v886_v31, %v898_v37 }
  0x4d   : > { %791 = vmatpush1.bf16.msra.mxu0 %v1311_v41  ;;  %834 = vmatpush1.bf16.msra.mxu1 %v1312_v42  ;;  %v891_v42 = vrot.slane (!%p1197_p11), %v886_v31, %v890_v35 }
  0x4e   : > { %792 = vmatprep.subr.bf16.mxu0 %v1313_v43  ;;  %835 = vmatprep.subr.bf16.mxu1 %v1315_v44  ;;  %v895_v43 = vrot.slane (!%p1197_p11), %v886_v31, %v894_v36  ;;  %v921_v44 = vrot.slane (!%p1197_p11), %v916_v32, %v890_v35 }
  0x51   : > { %793 = vmatpush1.bf16.msra.mxu0 %v1317_v45  ;;  %836 = vmatpush1.bf16.msra.mxu1 %v1318_v46  ;;  %v925_v45 = vrot.slane (!%p1197_p11), %v916_v32, %v894_v36 }
  0x52   : > { %794 = vmatprep.subr.bf16.mxu0 %v1319_v47  ;;  %837 = vmatprep.subr.bf16.mxu1 %v1321_v48 }
  0x55   : > { %795 = vmatpush1.bf16.msra.mxu0 %v1323_v50  ;;  %838 = vmatpush1.bf16.msra.mxu1 %v1324_v51  ;;  %v903_v50 = vrot.slane (!%p1197_p11), %v886_v31, %v902_v38  ;;  %v929_v51 = vrot.slane (!%p1197_p11), %v916_v32, %v898_v37 }
  0x56   : > { %796 = vmatprep.subr.bf16.mxu0 %v1325_v52  ;;  %839 = vmatprep.subr.bf16.mxu1 %v1327_v53  ;;  %v933_v52 = vrot.slane (!%p1197_p11), %v916_v32, %v902_v38 }
  0x59   : > { %797 = vmatpush1.bf16.msra.mxu0 %v1329_v54  ;;  %840 = vmatpush1.bf16.msra.mxu1 %v1330_v55 }
  0x5a   : > { %798 = vmatprep.subr.bf16.mxu0 %v1331_v56  ;;  %841 = vmatprep.subr.bf16.mxu1 %v1333_v57 }
  0x5d   : > { %799 = vmatpush1.bf16.msra.mxu0 %v1335_v58  ;;  %842 = vmatpush1.bf16.msra.mxu1 %v1336_v59 }
  0x5e   : > { %800 = vmatprep.subr.bf16.mxu0 %v1337_v60  ;;  %843 = vmatprep.subr.bf16.mxu1 %v1339_v61 }
  0x61   : > { %801 = vmatpush1.bf16.msra.mxu0 %v1341_v62  ;;  %844 = vmatpush1.bf16.msra.mxu1 %v1342_v63 }
  0x62   : > { %802 = vmatprep.subr.bf16.mxu0 %v1343_v0  ;;  %845 = vmatprep.subr.bf16.mxu1 %v1345_v1 }
  0x65   : > { %803 = vmatpush1.bf16.msra.mxu0 %v1347_v2  ;;  %846 = vmatpush1.bf16.msra.mxu1 %v1348_v3 }
  0x68   : > { %805 = vmatmul.mubr.bf16.vlgmr.msra.gmra.mrb[0].mxu0 %v1349_v4  ;;  %848 = vmatmul.mubr.bf16.vlgmr.msra.gmra.mrb[0].mxu1 %v1349_v4 }
 0x13b   : > { %v806_v9 = vpop.f32.mrb[0].mxu0  ;;  %v849_v10 = vpop.f32.mrb[0].mxu1  ;;  %877 = sbr.rel (%p1197_p11) target bundleno = 338 (0x152), region = 82 }
 0x13c   : > { %v858_v13 = vadd.f32 %v806_v9, %v368_v5  ;;  %v860_v14 = vadd.f32 %v849_v10, %v370_v6  ;;  %v808_v15 = vpop.f32.mrb[1].mxu0  ;;  %v851_v16 = vpop.f32.mrb[1].mxu1 }
 0x13d   : > { %v859_v19 = vadd.f32 %v808_v15, %v369_v7  ;;  %v861_v20 = vadd.f32 %v851_v16, %v371_v8  ;;  %v810_v21 = vpop.f32.mrb[2].mxu0  ;;  %v853_v22 = vpop.f32.mrb[2].mxu1 }
 0x13e   : > { %866 = vst [vmem:[#allocation2] sm:$0xff] %v858_v13  ;;  %868 = vst [vmem:[#allocation2 + $0x10] sm:$0xff] %v860_v14  ;;  %v862_v23 = vadd.f32 %v810_v21, %v372_v11  ;;  %v864_v24 = vadd.f32 %v853_v22, %v374_v12  ;;  %v812_v25 = vpop.f32.mrb[3].mxu0  ;;  %v855_v26 = vpop.f32.mrb[3].mxu1 }
 0x13f   : > { %867 = vst [vmem:[#allocation2 + $0x8] sm:$0xff] %v859_v19  ;;  %869 = vst [vmem:[#allocation2 + $0x18] sm:$0xff] %v861_v20  ;;  %v863_v27 = vadd.f32 %v812_v25, %v373_v17  ;;  %v865_v28 = vadd.f32 %v855_v26, %v375_v18 }
 0x140   : > { %870 = vst [vmem:[#allocation2 + $0x20] sm:$0xff] %v862_v23  ;;  %872 = vst [vmem:[#allocation2 + $0x30] sm:$0xff] %v864_v24 }
 0x141   : > { %871 = vst [vmem:[#allocation2 + $0x28] sm:$0xff] %v863_v27  ;;  %873 = vst [vmem:[#allocation2 + $0x38] sm:$0xff] %v865_v28 }
 0x145   : > { %v878_v33 = vld [vmem:[#allocation2] sm:$0xff]  ;;  %v880_v39 = vld [vmem:[#allocation2 + $0x10] sm:$0xff] }
 0x146   : > { %v879_v34 = vld [vmem:[#allocation2 + $0x8] sm:$0xff]  ;;  %v881_v46 = vld [vmem:[#allocation2 + $0x18] sm:$0xff]  ;;  %v908_v53 = vmul.f32 %v891_v42, %v878_v33  ;;  %v910_v57 = vmul.f32 %v899_v49, %v880_v39 }
 0x147   : > { %v882_v40 = vld [vmem:[#allocation2 + $0x20] sm:$0xff]  ;;  %v884_v47 = vld [vmem:[#allocation2 + $0x30] sm:$0xff]  ;;  %v909_v54 = vmul.f32 %v895_v43, %v879_v34  ;;  %v911_v58 = vmul.f32 %v903_v50, %v881_v46 }
 0x148   : > { %v883_v41 = vld [vmem:[#allocation2 + $0x28] sm:$0xff]  ;;  %v885_v48 = vld [vmem:[#allocation2 + $0x38] sm:$0xff]  ;;  %v912_v55 = vmul.f32 %v891_v42, %v882_v40  ;;  %v914_v59 = vmul.f32 %v899_v49, %v884_v47  ;;  %v938_v61 = vadd.f32 %v921_v44, %v908_v53  ;;  %v940_v1 = vadd.f32 %v929_v51, %v910_v57 }
 0x149   : > { %v913_v56 = vmul.f32 %v895_v43, %v883_v41  ;;  %v915_v60 = vmul.f32 %v903_v50, %v885_v48  ;;  %v939_v62 = vadd.f32 %v925_v45, %v909_v54  ;;  %v941_v2 = vadd.f32 %v933_v52, %v911_v58 }
 0x14a   : > { %v942_v63 = vadd.f32 %v921_v44, %v912_v55  ;;  %v944_v3 = vadd.f32 %v929_v51, %v914_v59  ;;  %v946_v5 = vmax.f32 %v938_v61, 0.0  ;;  %v948_v9 = vmax.f32 %v940_v1, 0.0 }
 0x14b   : > { %v943_v0 = vadd.f32 %v925_v45, %v913_v56  ;;  %v945_v4 = vadd.f32 %v933_v52, %v915_v60  ;;  %v947_v6 = vmax.f32 %v939_v62, 0.0  ;;  %v949_v10 = vmax.f32 %v941_v2, 0.0 }
 0x14c   : > { %v950_v7 = vmax.f32 %v942_v63, 0.0  ;;  %v952_v11 = vmax.f32 %v944_v3, 0.0 }
 0x14d   : > { %v951_v8 = vmax.f32 %v943_v0, 0.0  ;;  %v953_v12 = vmax.f32 %v945_v4, 0.0  ;;  %v1208_v13 = vpack.c.bf16 %v947_v6, %v946_v5  ;;  %v1209_v15 = vpack.c.bf16 %v949_v10, %v948_v9 }
 0x14f   : > { %v1210_v14 = vpack.c.bf16 %v951_v8, %v950_v7  ;;  %v1211_v16 = vpack.c.bf16 %v953_v12, %v952_v11  ;;  %978 = vst [vmem:[%s1580_s4] sm:$0xff] %v1208_v13  ;;  %979 = vst [vmem:[%s1580_s4 + $0x8] sm:$0xff] %v1209_v15 }
 0x151   : > { %980 = vst [vmem:[%s1580_s4 + $0x10] sm:$0xff] %v1210_v14  ;;  %981 = vst [vmem:[%s1580_s4 + $0x18] sm:$0xff] %v1211_v16 }
 0x152 PF: > { %s14_s19 = sadd.s32 1, %s1390_s19   ;;  %s1581_s15 = smov %s1378_s16 }
 0x153   : > { %p11_p12 = scmp.ge.s32.totalorder %s14_s19, 11   ;;  %s1582_s16 = smov %s1453_s23 }
 0x154   : > { %s1583_s17 = smov %s1386_s18  ;;  %s1584_s18 = smov %s1586_s20 }
 0x155   :  { %13 = sbr.rel (!%p11_p12) target bundleno = 3 (0x3), region = 126 }

// kernel: base_resnet18_forward.40
= control target key start
LH: loop header
LB: loop body
LE: loop exit
PB: predicated region body
PF: predicated region fallthrough
CT: control target
= control target key end

     0   :  { %s1052_s1 = inlined_call_operand.vmem [shape: bf16[256,512], index: 1, kind: input, shape index: {}]   ;;  %s1053_s0 = inlined_call_operand.vmem [shape: bf16[16,256], index: 0, kind: input, shape index: {}]   ;;  %s1054_s2 = inlined_call_operand.vmem [shape: f32[1,512], index: 2, kind: input, shape index: {}]   ;;  %s1055_s3 = inlined_call_operand.vmem [shape: f32[1,512], index: 3, kind: input, shape index: {}]   ;;  %s1056_s4 = inlined_call_operand.vmem [shape: bf16[16,512], index: 4, kind: output, shape index: {}]  }
   0x1   :  { %v712_v0 = vld [vmem:[%s1052_s1 + $0x4] ss:$16 sps:$4 sm:$0xff]   ;;  %v714_v1 = vld [vmem:[%s1052_s1 + $0xc] ss:$16 sps:$4 sm:$0xff]   ;;  %v716_v2 = vld [vmem:[%s1052_s1] ss:$16 sps:$4 sm:$0xff]  }
   0x2   :  { %433 = vmatprep.subr.bf16.mxu0 %v712_v0  ;;  %v717_v3 = vld [vmem:[%s1052_s1 + $0x8] ss:$16 sps:$4 sm:$0xff]   ;;  %476 = vmatprep.subr.bf16.mxu1 %v714_v1  ;;  %v718_v4 = vld [vmem:[%s1052_s1 + $0x24] ss:$16 sps:$4 sm:$0xff]   ;;  %v720_v5 = vld [vmem:[%s1052_s1 + $0x2c] ss:$16 sps:$4 sm:$0xff]  }
   0x3   :  { %434 = vmatpush1.bf16.msra.mxu0 %v716_v2  ;;  %477 = vmatpush1.bf16.msra.mxu1 %v717_v3  ;;  %v722_v6 = vld [vmem:[%s1052_s1 + $0x20] ss:$16 sps:$4 sm:$0xff]   ;;  %v723_v7 = vld [vmem:[%s1052_s1 + $0x28] ss:$16 sps:$4 sm:$0xff]   ;;  %v724_v8 = vld [vmem:[%s1052_s1 + $0x44] ss:$16 sps:$4 sm:$0xff]   ;;  %v548_v2 = vlaneseq }
   0x4   :  { %435 = vmatprep.subr.bf16.mxu0 %v718_v4  ;;  %478 = vmatprep.subr.bf16.mxu1 %v720_v5  ;;  %v726_v9 = vld [vmem:[%s1052_s1 + $0x4c] ss:$16 sps:$4 sm:$0xff]   ;;  %v728_v10 = vld [vmem:[%s1052_s1 + $0x40] ss:$16 sps:$4 sm:$0xff]   ;;  %v729_v11 = vld [vmem:[%s1052_s1 + $0x48] ss:$16 sps:$4 sm:$0xff]  }
   0x5   :  { %v730_v12 = vld [vmem:[%s1052_s1 + $0x64] ss:$16 sps:$4 sm:$0xff]   ;;  %v732_v13 = vld [vmem:[%s1052_s1 + $0x6c] ss:$16 sps:$4 sm:$0xff]   ;;  %v734_v14 = vld [vmem:[%s1052_s1 + $0x60] ss:$16 sps:$4 sm:$0xff]  }
   0x6   :  { %v735_v15 = vld [vmem:[%s1052_s1 + $0x68] ss:$16 sps:$4 sm:$0xff]   ;;  %v736_v16 = vld [vmem:[%s1052_s1 + $0x84] ss:$16 sps:$4 sm:$0xff]   ;;  %v738_v17 = vld [vmem:[%s1052_s1 + $0x8c] ss:$16 sps:$4 sm:$0xff]  }
   0x7   :  { %436 = vmatpush1.bf16.msra.mxu0 %v722_v6  ;;  %479 = vmatpush1.bf16.msra.mxu1 %v723_v7  ;;  %v740_v18 = vld [vmem:[%s1052_s1 + $0x80] ss:$16 sps:$4 sm:$0xff]   ;;  %v741_v19 = vld [vmem:[%s1052_s1 + $0x88] ss:$16 sps:$4 sm:$0xff]   ;;  %v742_v20 = vld [vmem:[%s1052_s1 + $0xa4] ss:$16 sps:$4 sm:$0xff]  }
   0x8   :  { %437 = vmatprep.subr.bf16.mxu0 %v724_v8  ;;  %480 = vmatprep.subr.bf16.mxu1 %v726_v9  ;;  %v744_v21 = vld [vmem:[%s1052_s1 + $0xac] ss:$16 sps:$4 sm:$0xff]   ;;  %v746_v22 = vld [vmem:[%s1052_s1 + $0xa0] ss:$16 sps:$4 sm:$0xff]   ;;  %v747_v23 = vld [vmem:[%s1052_s1 + $0xa8] ss:$16 sps:$4 sm:$0xff]  }
   0x9   :  { %v748_v24 = vld [vmem:[%s1052_s1 + $0xc4] ss:$16 sps:$4 sm:$0xff]   ;;  %v750_v25 = vld [vmem:[%s1052_s1 + $0xcc] ss:$16 sps:$4 sm:$0xff]   ;;  %v752_v26 = vld [vmem:[%s1052_s1 + $0xc0] ss:$16 sps:$4 sm:$0xff]  }
   0xa   :  { %v753_v27 = vld [vmem:[%s1052_s1 + $0xc8] ss:$16 sps:$4 sm:$0xff]   ;;  %v754_v28 = vld [vmem:[%s1052_s1 + $0xe4] ss:$16 sps:$4 sm:$0xff]   ;;  %v756_v29 = vld [vmem:[%s1052_s1 + $0xec] ss:$16 sps:$4 sm:$0xff]  }
   0xb   :  { %438 = vmatpush1.bf16.msra.mxu0 %v728_v10  ;;  %481 = vmatpush1.bf16.msra.mxu1 %v729_v11  ;;  %v758_v30 = vld [vmem:[%s1052_s1 + $0xe0] ss:$16 sps:$4 sm:$0xff]   ;;  %v759_v31 = vld [vmem:[%s1052_s1 + $0xe8] ss:$16 sps:$4 sm:$0xff]   ;;  %v760_v32 = vld [vmem:[%s1052_s1 + $0x104] ss:$16 sps:$4 sm:$0xff]  }
   0xc   :  { %439 = vmatprep.subr.bf16.mxu0 %v730_v12  ;;  %482 = vmatprep.subr.bf16.mxu1 %v732_v13  ;;  %v762_v33 = vld [vmem:[%s1052_s1 + $0x10c] ss:$16 sps:$4 sm:$0xff]   ;;  %v764_v34 = vld [vmem:[%s1052_s1 + $0x100] ss:$16 sps:$4 sm:$0xff]   ;;  %v765_v35 = vld [vmem:[%s1052_s1 + $0x108] ss:$16 sps:$4 sm:$0xff]  }
   0xd   :  { %v766_v36 = vld [vmem:[%s1052_s1 + $0x124] ss:$16 sps:$4 sm:$0xff]   ;;  %v768_v37 = vld [vmem:[%s1052_s1 + $0x12c] ss:$16 sps:$4 sm:$0xff]   ;;  %v770_v38 = vld [vmem:[%s1052_s1 + $0x120] ss:$16 sps:$4 sm:$0xff]  }
   0xe   :  { %v771_v39 = vld [vmem:[%s1052_s1 + $0x128] ss:$16 sps:$4 sm:$0xff]   ;;  %v772_v40 = vld [vmem:[%s1052_s1 + $0x144] ss:$16 sps:$4 sm:$0xff]   ;;  %v774_v41 = vld [vmem:[%s1052_s1 + $0x14c] ss:$16 sps:$4 sm:$0xff]  }
   0xf   :  { %440 = vmatpush1.bf16.msra.mxu0 %v734_v14  ;;  %483 = vmatpush1.bf16.msra.mxu1 %v735_v15  ;;  %v776_v42 = vld [vmem:[%s1052_s1 + $0x140] ss:$16 sps:$4 sm:$0xff]   ;;  %v777_v43 = vld [vmem:[%s1052_s1 + $0x148] ss:$16 sps:$4 sm:$0xff]   ;;  %v778_v44 = vld [vmem:[%s1052_s1 + $0x164] ss:$16 sps:$4 sm:$0xff]  }
  0x10   :  { %441 = vmatprep.subr.bf16.mxu0 %v736_v16  ;;  %484 = vmatprep.subr.bf16.mxu1 %v738_v17  ;;  %v780_v45 = vld [vmem:[%s1052_s1 + $0x16c] ss:$16 sps:$4 sm:$0xff]   ;;  %v782_v47 = vld [vmem:[%s1052_s1 + $0x160] ss:$16 sps:$4 sm:$0xff]   ;;  %v783_v48 = vld [vmem:[%s1052_s1 + $0x168] ss:$16 sps:$4 sm:$0xff]  }
  0x11   :  { %v810_v46 = vld [vmem:[%s1053_s0 + $0x4] ss:$8 sps:$4 sm:$0xff]   ;;  %v788_v51 = vld [vmem:[%s1052_s1 + $0x180] ss:$16 sps:$4 sm:$0xff]   ;;  %v789_v52 = vld [vmem:[%s1052_s1 + $0x188] ss:$16 sps:$4 sm:$0xff]  }
  0x12   :  { %v784_v49 = vld [vmem:[%s1052_s1 + $0x184] ss:$16 sps:$4 sm:$0xff]   ;;  %v786_v50 = vld [vmem:[%s1052_s1 + $0x18c] ss:$16 sps:$4 sm:$0xff]   ;;  %465 = vmatprep.mubr.bf16.mxu0 %v810_v46  ;;  %508 = vmatprep.mubr.bf16.mxu1 %v810_v46  ;;  %v794_v55 = vld [vmem:[%s1052_s1 + $0x1a0] ss:$16 sps:$4 sm:$0xff]  }
  0x13   :  { %442 = vmatpush1.bf16.msra.mxu0 %v740_v18  ;;  %485 = vmatpush1.bf16.msra.mxu1 %v741_v19  ;;  %v790_v53 = vld [vmem:[%s1052_s1 + $0x1a4] ss:$16 sps:$4 sm:$0xff]   ;;  %v792_v54 = vld [vmem:[%s1052_s1 + $0x1ac] ss:$16 sps:$4 sm:$0xff]   ;;  %v795_v56 = vld [vmem:[%s1052_s1 + $0x1a8] ss:$16 sps:$4 sm:$0xff]  }
  0x14   :  { %443 = vmatprep.subr.bf16.mxu0 %v742_v20  ;;  %486 = vmatprep.subr.bf16.mxu1 %v744_v21  ;;  %v796_v57 = vld [vmem:[%s1052_s1 + $0x1c4] ss:$16 sps:$4 sm:$0xff]   ;;  %v798_v58 = vld [vmem:[%s1052_s1 + $0x1cc] ss:$16 sps:$4 sm:$0xff]   ;;  %v800_v59 = vld [vmem:[%s1052_s1 + $0x1c0] ss:$16 sps:$4 sm:$0xff]  }
  0x15   :  { %v801_v60 = vld [vmem:[%s1052_s1 + $0x1c8] ss:$16 sps:$4 sm:$0xff]   ;;  %v802_v61 = vld [vmem:[%s1052_s1 + $0x1e4] ss:$16 sps:$4 sm:$0xff]   ;;  %v804_v62 = vld [vmem:[%s1052_s1 + $0x1ec] ss:$16 sps:$4 sm:$0xff]  }
  0x16   :  { %v806_v63 = vld [vmem:[%s1052_s1 + $0x1e0] ss:$16 sps:$4 sm:$0xff]   ;;  %v807_v0 = vld [vmem:[%s1052_s1 + $0x1e8] ss:$16 sps:$4 sm:$0xff]   ;;  %v549_v3 = vshrl.u32 %v548_v2, 7 }
  0x17   :  { %444 = vmatpush1.bf16.msra.mxu0 %v746_v22  ;;  %487 = vmatpush1.bf16.msra.mxu1 %v747_v23  ;;  %v808_v1 = vld [vmem:[%s1053_s0] ss:$8 sps:$4 sm:$0xff]  }
  0x18   :  { %445 = vmatprep.subr.bf16.mxu0 %v748_v24  ;;  %488 = vmatprep.subr.bf16.mxu1 %v750_v25  ;;  %v550_v4 = vsub.s32 0, %v549_v3  ;;  %v558_v5 = vsub.s32 2, %v549_v3  ;;  %v546_v6 = vld [vmem:[%s1054_s2] sm:$0xf]  ;;  %v554_v7 = vsub.s32 1, %v549_v3  ;;  %v562_v8 = vsub.s32 3, %v549_v3 }
  0x19   :  { %v576_v9 = vld [vmem:[%s1055_s3] sm:$0xf] }
  0x1a   :  { %v551_v10 = vrot.slane %v546_v6, %v550_v4  ;;  %v559_v11 = vrot.slane %v546_v6, %v558_v5  ;;  %v555_v12 = vrot.slane %v546_v6, %v554_v7  ;;  %v563_v13 = vrot.slane %v546_v6, %v562_v8 }
  0x1b   :  { %446 = vmatpush1.bf16.msra.mxu0 %v752_v26  ;;  %489 = vmatpush1.bf16.msra.mxu1 %v753_v27  ;;  %v581_v14 = vrot.slane %v576_v9, %v550_v4  ;;  %v589_v15 = vrot.slane %v576_v9, %v558_v5  ;;  %v585_v18 = vrot.slane %v576_v9, %v554_v7 }
  0x1c   :  { %447 = vmatprep.subr.bf16.mxu0 %v754_v28  ;;  %490 = vmatprep.subr.bf16.mxu1 %v756_v29  ;;  %v593_v19 = vrot.slane %v576_v9, %v562_v8 }
  0x1f   :  { %448 = vmatpush1.bf16.msra.mxu0 %v758_v30  ;;  %491 = vmatpush1.bf16.msra.mxu1 %v759_v31 }
  0x20   :  { %449 = vmatprep.subr.bf16.mxu0 %v760_v32  ;;  %492 = vmatprep.subr.bf16.mxu1 %v762_v33 }
  0x23   :  { %450 = vmatpush1.bf16.msra.mxu0 %v764_v34  ;;  %493 = vmatpush1.bf16.msra.mxu1 %v765_v35 }
  0x24   :  { %451 = vmatprep.subr.bf16.mxu0 %v766_v36  ;;  %494 = vmatprep.subr.bf16.mxu1 %v768_v37 }
  0x27   :  { %452 = vmatpush1.bf16.msra.mxu0 %v770_v38  ;;  %495 = vmatpush1.bf16.msra.mxu1 %v771_v39 }
  0x28   :  { %453 = vmatprep.subr.bf16.mxu0 %v772_v40  ;;  %496 = vmatprep.subr.bf16.mxu1 %v774_v41 }
  0x2b   :  { %454 = vmatpush1.bf16.msra.mxu0 %v776_v42  ;;  %497 = vmatpush1.bf16.msra.mxu1 %v777_v43 }
  0x2c   :  { %455 = vmatprep.subr.bf16.mxu0 %v778_v44  ;;  %498 = vmatprep.subr.bf16.mxu1 %v780_v45 }
  0x2f   :  { %456 = vmatpush1.bf16.msra.mxu0 %v782_v47  ;;  %499 = vmatpush1.bf16.msra.mxu1 %v783_v48 }
  0x30   :  { %457 = vmatprep.subr.bf16.mxu0 %v784_v49  ;;  %500 = vmatprep.subr.bf16.mxu1 %v786_v50 }
  0x33   :  { %458 = vmatpush1.bf16.msra.mxu0 %v788_v51  ;;  %501 = vmatpush1.bf16.msra.mxu1 %v789_v52 }
  0x34   :  { %459 = vmatprep.subr.bf16.mxu0 %v790_v53  ;;  %502 = vmatprep.subr.bf16.mxu1 %v792_v54 }
  0x37   :  { %460 = vmatpush1.bf16.msra.mxu0 %v794_v55  ;;  %503 = vmatpush1.bf16.msra.mxu1 %v795_v56 }
  0x38   :  { %461 = vmatprep.subr.bf16.mxu0 %v796_v57  ;;  %504 = vmatprep.subr.bf16.mxu1 %v798_v58 }
  0x3b   :  { %462 = vmatpush1.bf16.msra.mxu0 %v800_v59  ;;  %505 = vmatpush1.bf16.msra.mxu1 %v801_v60 }
  0x3c   :  { %463 = vmatprep.subr.bf16.mxu0 %v802_v61  ;;  %506 = vmatprep.subr.bf16.mxu1 %v804_v62 }
  0x3f   :  { %464 = vmatpush1.bf16.msra.mxu0 %v806_v63  ;;  %507 = vmatpush1.bf16.msra.mxu1 %v807_v0 }
  0x42   :  { %466 = vmatmul.mubr.bf16.vlgmr.msra.gmra.mrb[0].mxu0 %v808_v1  ;;  %509 = vmatmul.mubr.bf16.vlgmr.msra.gmra.mrb[0].mxu1 %v808_v1 }
 0x115   :  { %v467_v16 = vpop.f32.mrb[0].mxu0  ;;  %v510_v17 = vpop.f32.mrb[0].mxu1 }
 0x116   :  { %v568_v20 = vmul.f32 %v551_v10, %v467_v16  ;;  %v570_v21 = vmul.f32 %v559_v11, %v510_v17  ;;  %v469_v22 = vpop.f32.mrb[1].mxu0  ;;  %v512_v23 = vpop.f32.mrb[1].mxu1 }
 0x117   :  { %v569_v24 = vmul.f32 %v555_v12, %v469_v22  ;;  %v571_v25 = vmul.f32 %v563_v13, %v512_v23  ;;  %v471_v26 = vpop.f32.mrb[2].mxu0  ;;  %v514_v27 = vpop.f32.mrb[2].mxu1 }
 0x118   :  { %v598_v28 = vadd.f32 %v581_v14, %v568_v20  ;;  %v600_v29 = vadd.f32 %v589_v15, %v570_v21  ;;  %v572_v30 = vmul.f32 %v551_v10, %v471_v26  ;;  %v574_v31 = vmul.f32 %v559_v11, %v514_v27  ;;  %v473_v32 = vpop.f32.mrb[3].mxu0  ;;  %v516_v33 = vpop.f32.mrb[3].mxu1 }
 0x119   :  { %v599_v34 = vadd.f32 %v585_v18, %v569_v24  ;;  %v601_v35 = vadd.f32 %v593_v19, %v571_v25  ;;  %v573_v36 = vmul.f32 %v555_v12, %v473_v32  ;;  %v575_v37 = vmul.f32 %v563_v13, %v516_v33 }
 0x11a   :  { %v602_v38 = vadd.f32 %v581_v14, %v572_v30  ;;  %v604_v39 = vadd.f32 %v589_v15, %v574_v31 }
 0x11b   :  { %v708_v40 = vpack.c.bf16 %v599_v34, %v598_v28  ;;  %v709_v41 = vpack.c.bf16 %v601_v35, %v600_v29  ;;  %v603_v42 = vadd.f32 %v585_v18, %v573_v36  ;;  %v605_v43 = vadd.f32 %v593_v19, %v575_v37 }
 0x11d   :  { %630 = vst [vmem:[%s1056_s4] sm:$0xff] %v708_v40  ;;  %631 = vst [vmem:[%s1056_s4 + $0x8] sm:$0xff] %v709_v41  ;;  %v710_v44 = vpack.c.bf16 %v603_v42, %v602_v38  ;;  %v711_v45 = vpack.c.bf16 %v605_v43, %v604_v39 }
 0x11f   :  { %632 = vst [vmem:[%s1056_s4 + $0x10] sm:$0xff] %v710_v44  ;;  %633 = vst [vmem:[%s1056_s4 + $0x18] sm:$0xff] %v711_v45 }

// kernel: base_resnet18_forward.42
= control target key start
LH: loop header
LB: loop body
LE: loop exit
PB: predicated region body
PF: predicated region fallthrough
CT: control target
= control target key end

     0   :  { %s2175_s18 = smov 0   ;;  %s2177_s19 = smov 0   ;;  %s2408_s0 = inlined_call_operand.vmem [shape: bf16[16,4608], index: 0, kind: input, shape index: {}]   ;;  %s2409_s1 = inlined_call_operand.vmem [shape: bf16[4608,512], index: 1, kind: input, shape index: {}]   ;;  %s2410_s2 = inlined_call_operand.vmem [shape: f32[1,512], index: 2, kind: input, shape index: {}]   ;;  %s2411_s3 = inlined_call_operand.vmem [shape: f32[1,512], index: 3, kind: input, shape index: {}]   ;;  %s2412_s4 = inlined_call_operand.vmem [shape: bf16[16,512], index: 4, kind: input, shape index: {}]   ;;  %s2413_s5 = inlined_call_operand.vmem [shape: bf16[16,512], index: 5, kind: output, shape index: {}]  }
   0x1   :  { %s2179_s20 = smov 0   ;;  %s2181_s21 = smov 0  }
   0x2   :  { %s2183_s22 = smov 0  }
   0x3 LB: > { %s27_s23 = sadd.s32 1, %s2138_s21  ;;  %p50_p1 = scmp.ne.s32.totalorder %s2130_s19, %s2126_s18  ;;  %s2142_s22 = sphi %s2183_s22, %s15_s22   ;;  %s2138_s21 = sphi %s2181_s21, %s2417_s21   ;;  %s2134_s20 = sphi %s2179_s20, %s2416_s20   ;;  %s2130_s19 = sphi %s2177_s19, %s2415_s19   ;;  %s2126_s18 = sphi %s2175_s18, %s2414_s18  }
   0x4   : > { %p28_p0 = scmp.ge.s32.totalorder %s27_s23, 9  ;;  %p51_p2 = scmp.eq.s32.totalorder %s2142_s22, 0 }
   0x5   : > { %s43_s25 = sadd.s32 1, %s2130_s19  ;;  %p1700_p5 = scmp.ge.s32.totalorder %s2142_s22, 9 }
   0x6   : > { %s2419_s23 = smov (%p28_p0, %s27_s23), 0  ;;  %p52_p3 = por %p51_p2, %p50_p1 }
   0x7   : > { %s39_s24 = ssub.s32 %s2138_s21, %s2419_s23  ;;  %243 = sbr.rel (%p1700_p5) target bundleno = 21 (0x15), region = 28 }
   0x8   : > { %p41_p4 = scmp.eq.s32.totalorder %s39_s24, 0 }
   0xa   : > { %s2210_s26 = scalar_select %p41_p4, %s2130_s19, %s43_s25  }
   0xe   : > { %246 = sbr.rel (!%p52_p3) target bundleno = 21 (0x15), region = 32  ;;  %s248_s27 = sand.u32 (%p52_p3), 1, %s2130_s19  }
   0xf   : > { %s1851_s28 = sshll.u32 (%p52_p3), %s2138_s21, 4  ;;  %s1701_s29 = sshll.u32 (%p52_p3), %s248_s27, 5 }
  0x10   : > { %s256_s7 = scalar_lea.vmem (%p52_p3), %s2408_s0, %s1851_s28  ;;  %s250_s8 = scalar_lea.vmem (%p52_p3), [#allocation3], %s1701_s29 }
  0x11   : > { %v269_v0 = vld [vmem:[%s256_s7] sm:$0xff] (%p52_p3)  ;;  %v271_v1 = vld [vmem:[%s256_s7 + $0x8] sm:$0xff] (%p52_p3)  ;;  %v273_v2 = vld [vmem:[%s256_s7 + $0x90] sm:$0xff] (%p52_p3) }
  0x12   : > { %270 = vst [vmem:[%s250_s8] sm:$0xff] (%p52_p3), %v269_v0  ;;  %272 = vst [vmem:[%s250_s8 + $0x8] sm:$0xff] (%p52_p3), %v271_v1  ;;  %v275_v3 = vld [vmem:[%s256_s7 + $0x98] sm:$0xff] (%p52_p3) }
  0x13   : > { %274 = vst [vmem:[%s250_s8 + $0x10] sm:$0xff] (%p52_p3), %v273_v2  ;;  %276 = vst [vmem:[%s250_s8 + $0x18] sm:$0xff] (%p52_p3), %v275_v3 }
  0x15 PF: > { %p1704_p6 = scmp.ge.s32.totalorder %s2142_s22, 1  ;;  %p296_p7 = scmp.lt.s32.totalorder %s2142_s22, 10 }
  0x17   : > { %p297_p8 = pnand %p1704_p6, %p296_p7 }
  0x18   : > { %s303_s9 = sand.u32 (!%p297_p8), 1, %s2126_s18   ;;  %s1706_s10 = sshll.u32 (!%p297_p8), %s2134_s20, 6 }
  0x19   : > { %300 = sbr.rel (%p297_p8) target bundleno = 404 (0x194), region = 59  ;;  %s1705_s11 = sshll.u32 (!%p297_p8), %s303_s9, 5 }
  0x1a   : > { %p367_p9 = scmp.lt.s32.totalorder (!%p297_p8), %s1706_s10, 575  ;;  %s2227_s16 = scalar_lea.vmem (!%p297_p8), [#allocation3], %s1705_s11 }
  0x1b   : > { %p1709_p10 = scmp.ne.s32.totalorder (!%p297_p8), %s2134_s20, 0 }
  0x20   : > { %s2421_s10 = smov (!%p367_p9, %s1706_s10), 575  ;;  %414 = sbr.rel (%p1709_p10) target bundleno = 39 (0x27), region = 67 }
  0x21   : > { %s1852_s12 = sshll.u32 %s2421_s10, 4  ;;  %v2144_v4 = vmov (!%p1709_p10), 0.0  }
  0x22   : > { %s2225_s15 = scalar_lea.vmem %s2409_s1, %s1852_s12  ;;  %415 = vst [vmem:[#allocation2] sm:$0xff] (!%p1709_p10), %v2144_v4  ;;  %416 = vst [vmem:[#allocation2 + $0x8] sm:$0xff] (!%p1709_p10), %v2144_v4 }
  0x23   : > { %417 = vst [vmem:[#allocation2 + $0x10] sm:$0xff] (!%p1709_p10), %v2144_v4  ;;  %418 = vst [vmem:[#allocation2 + $0x18] sm:$0xff] (!%p1709_p10), %v2144_v4 }
  0x24   : > { %419 = vst [vmem:[#allocation2 + $0x20] sm:$0xff] (!%p1709_p10), %v2144_v4  ;;  %420 = vst [vmem:[#allocation2 + $0x28] sm:$0xff] (!%p1709_p10), %v2144_v4 }
  0x25   : > { %421 = vst [vmem:[#allocation2 + $0x30] sm:$0xff] (!%p1709_p10), %v2144_v4  ;;  %422 = vst [vmem:[#allocation2 + $0x38] sm:$0xff] (!%p1709_p10), %v2144_v4 }
  0x27 PF: > { %v1906_v5 = vld [vmem:[%s2225_s15 + $0x4] ss:$16 sps:$4 sm:$0xff]   ;;  %v1908_v6 = vld [vmem:[%s2225_s15 + $0xc] ss:$16 sps:$4 sm:$0xff]   ;;  %v1910_v7 = vld [vmem:[%s2225_s15] ss:$16 sps:$4 sm:$0xff]  }
  0x28   : > { %1223 = vmatprep.subr.bf16.mxu0 %v1906_v5  ;;  %v1911_v8 = vld [vmem:[%s2225_s15 + $0x8] ss:$16 sps:$4 sm:$0xff]   ;;  %1309 = vmatprep.subr.bf16.mxu1 %v1908_v6  ;;  %v1912_v9 = vld [vmem:[%s2225_s15 + $0x24] ss:$16 sps:$4 sm:$0xff]   ;;  %v1914_v10 = vld [vmem:[%s2225_s15 + $0x2c] ss:$16 sps:$4 sm:$0xff]  }
  0x29   : > { %1224 = vmatpush1.bf16.msra.mxu0 %v1910_v7  ;;  %1310 = vmatpush1.bf16.msra.mxu1 %v1911_v8  ;;  %v1916_v11 = vld [vmem:[%s2225_s15 + $0x20] ss:$16 sps:$4 sm:$0xff]   ;;  %v1917_v12 = vld [vmem:[%s2225_s15 + $0x28] ss:$16 sps:$4 sm:$0xff]   ;;  %v1918_v13 = vld [vmem:[%s2225_s15 + $0x44] ss:$16 sps:$4 sm:$0xff]  }
  0x2a   : > { %1225 = vmatprep.subr.bf16.mxu0 %v1912_v9  ;;  %1311 = vmatprep.subr.bf16.mxu1 %v1914_v10  ;;  %v1920_v14 = vld [vmem:[%s2225_s15 + $0x4c] ss:$16 sps:$4 sm:$0xff]   ;;  %v1922_v15 = vld [vmem:[%s2225_s15 + $0x40] ss:$16 sps:$4 sm:$0xff]   ;;  %v1923_v16 = vld [vmem:[%s2225_s15 + $0x48] ss:$16 sps:$4 sm:$0xff]  }
  0x2b   : > { %v1924_v17 = vld [vmem:[%s2225_s15 + $0x64] ss:$16 sps:$4 sm:$0xff]   ;;  %v1926_v18 = vld [vmem:[%s2225_s15 + $0x6c] ss:$16 sps:$4 sm:$0xff]   ;;  %v1928_v19 = vld [vmem:[%s2225_s15 + $0x60] ss:$16 sps:$4 sm:$0xff]  }
  0x2c   : > { %v1929_v20 = vld [vmem:[%s2225_s15 + $0x68] ss:$16 sps:$4 sm:$0xff]   ;;  %v1930_v21 = vld [vmem:[%s2225_s15 + $0x84] ss:$16 sps:$4 sm:$0xff]   ;;  %v1932_v22 = vld [vmem:[%s2225_s15 + $0x8c] ss:$16 sps:$4 sm:$0xff]  }
  0x2d   : > { %1226 = vmatpush1.bf16.msra.mxu0 %v1916_v11  ;;  %1312 = vmatpush1.bf16.msra.mxu1 %v1917_v12  ;;  %v1934_v23 = vld [vmem:[%s2225_s15 + $0x80] ss:$16 sps:$4 sm:$0xff]   ;;  %v1935_v24 = vld [vmem:[%s2225_s15 + $0x88] ss:$16 sps:$4 sm:$0xff]   ;;  %v1936_v25 = vld [vmem:[%s2225_s15 + $0xa4] ss:$16 sps:$4 sm:$0xff]  }
  0x2e   : > { %1227 = vmatprep.subr.bf16.mxu0 %v1918_v13  ;;  %1313 = vmatprep.subr.bf16.mxu1 %v1920_v14  ;;  %v1938_v26 = vld [vmem:[%s2225_s15 + $0xac] ss:$16 sps:$4 sm:$0xff]   ;;  %v1940_v27 = vld [vmem:[%s2225_s15 + $0xa0] ss:$16 sps:$4 sm:$0xff]   ;;  %v1941_v28 = vld [vmem:[%s2225_s15 + $0xa8] ss:$16 sps:$4 sm:$0xff]  }
  0x2f   : > { %v1942_v29 = vld [vmem:[%s2225_s15 + $0xc4] ss:$16 sps:$4 sm:$0xff]   ;;  %v1944_v30 = vld [vmem:[%s2225_s15 + $0xcc] ss:$16 sps:$4 sm:$0xff]   ;;  %v1946_v31 = vld [vmem:[%s2225_s15 + $0xc0] ss:$16 sps:$4 sm:$0xff]  }
  0x30   : > { %v1947_v32 = vld [vmem:[%s2225_s15 + $0xc8] ss:$16 sps:$4 sm:$0xff]   ;;  %v1948_v33 = vld [vmem:[%s2225_s15 + $0xe4] ss:$16 sps:$4 sm:$0xff]   ;;  %v1950_v34 = vld [vmem:[%s2225_s15 + $0xec] ss:$16 sps:$4 sm:$0xff]  }
  0x31   : > { %1228 = vmatpush1.bf16.msra.mxu0 %v1922_v15  ;;  %1314 = vmatpush1.bf16.msra.mxu1 %v1923_v16  ;;  %v1952_v35 = vld [vmem:[%s2225_s15 + $0xe0] ss:$16 sps:$4 sm:$0xff]   ;;  %v1953_v36 = vld [vmem:[%s2225_s15 + $0xe8] ss:$16 sps:$4 sm:$0xff]   ;;  %v1954_v37 = vld [vmem:[%s2225_s15 + $0x104] ss:$16 sps:$4 sm:$0xff]  }
  0x32   : > { %1229 = vmatprep.subr.bf16.mxu0 %v1924_v17  ;;  %1315 = vmatprep.subr.bf16.mxu1 %v1926_v18  ;;  %v1956_v38 = vld [vmem:[%s2225_s15 + $0x10c] ss:$16 sps:$4 sm:$0xff]   ;;  %v1958_v39 = vld [vmem:[%s2225_s15 + $0x100] ss:$16 sps:$4 sm:$0xff]   ;;  %v1959_v40 = vld [vmem:[%s2225_s15 + $0x108] ss:$16 sps:$4 sm:$0xff]  }
  0x33   : > { %v1960_v41 = vld [vmem:[%s2225_s15 + $0x124] ss:$16 sps:$4 sm:$0xff]   ;;  %v1962_v42 = vld [vmem:[%s2225_s15 + $0x12c] ss:$16 sps:$4 sm:$0xff]   ;;  %v1964_v43 = vld [vmem:[%s2225_s15 + $0x120] ss:$16 sps:$4 sm:$0xff]  }
  0x34   : > { %v1965_v44 = vld [vmem:[%s2225_s15 + $0x128] ss:$16 sps:$4 sm:$0xff]   ;;  %v1966_v45 = vld [vmem:[%s2225_s15 + $0x144] ss:$16 sps:$4 sm:$0xff]   ;;  %v1968_v46 = vld [vmem:[%s2225_s15 + $0x14c] ss:$16 sps:$4 sm:$0xff]  }
  0x35   : > { %1230 = vmatpush1.bf16.msra.mxu0 %v1928_v19  ;;  %1316 = vmatpush1.bf16.msra.mxu1 %v1929_v20  ;;  %v1970_v47 = vld [vmem:[%s2225_s15 + $0x140] ss:$16 sps:$4 sm:$0xff]   ;;  %v1971_v48 = vld [vmem:[%s2225_s15 + $0x148] ss:$16 sps:$4 sm:$0xff]   ;;  %v1972_v49 = vld [vmem:[%s2225_s15 + $0x164] ss:$16 sps:$4 sm:$0xff]  }
  0x36   : > { %1231 = vmatprep.subr.bf16.mxu0 %v1930_v21  ;;  %1317 = vmatprep.subr.bf16.mxu1 %v1932_v22  ;;  %v1974_v50 = vld [vmem:[%s2225_s15 + $0x16c] ss:$16 sps:$4 sm:$0xff]   ;;  %v1976_v51 = vld [vmem:[%s2225_s15 + $0x160] ss:$16 sps:$4 sm:$0xff]   ;;  %v1977_v52 = vld [vmem:[%s2225_s15 + $0x168] ss:$16 sps:$4 sm:$0xff]  }
  0x37   : > { %v2004_v53 = vld [vmem:[%s2227_s16 + $0x4] ss:$16 sps:$4 sm:$0xff]   ;;  %v1980_v55 = vld [vmem:[%s2225_s15 + $0x18c] ss:$16 sps:$4 sm:$0xff]   ;;  %v1982_v56 = vld [vmem:[%s2225_s15 + $0x180] ss:$16 sps:$4 sm:$0xff]  }
  0x38   : > { %v1978_v54 = vld [vmem:[%s2225_s15 + $0x184] ss:$16 sps:$4 sm:$0xff]   ;;  %1255 = vmatprep.mubr.bf16.mxu0 %v2004_v53  ;;  %1341 = vmatprep.mubr.bf16.mxu1 %v2004_v53  ;;  %v1983_v57 = vld [vmem:[%s2225_s15 + $0x188] ss:$16 sps:$4 sm:$0xff]   ;;  %v1986_v59 = vld [vmem:[%s2225_s15 + $0x1ac] ss:$16 sps:$4 sm:$0xff]  }
  0x39   : > { %1232 = vmatpush1.bf16.msra.mxu0 %v1934_v23  ;;  %1318 = vmatpush1.bf16.msra.mxu1 %v1935_v24  ;;  %v1984_v58 = vld [vmem:[%s2225_s15 + $0x1a4] ss:$16 sps:$4 sm:$0xff]   ;;  %v1988_v60 = vld [vmem:[%s2225_s15 + $0x1a0] ss:$16 sps:$4 sm:$0xff]   ;;  %v1989_v61 = vld [vmem:[%s2225_s15 + $0x1a8] ss:$16 sps:$4 sm:$0xff]  }
  0x3a   : > { %1233 = vmatprep.subr.bf16.mxu0 %v1936_v25  ;;  %1319 = vmatprep.subr.bf16.mxu1 %v1938_v26  ;;  %v1990_v62 = vld [vmem:[%s2225_s15 + $0x1c4] ss:$16 sps:$4 sm:$0xff]   ;;  %v1992_v63 = vld [vmem:[%s2225_s15 + $0x1cc] ss:$16 sps:$4 sm:$0xff]   ;;  %v1994_v0 = vld [vmem:[%s2225_s15 + $0x1c0] ss:$16 sps:$4 sm:$0xff]  }
  0x3b   : > { %v1995_v1 = vld [vmem:[%s2225_s15 + $0x1c8] ss:$16 sps:$4 sm:$0xff]   ;;  %v1996_v2 = vld [vmem:[%s2225_s15 + $0x1e4] ss:$16 sps:$4 sm:$0xff]   ;;  %v1998_v3 = vld [vmem:[%s2225_s15 + $0x1ec] ss:$16 sps:$4 sm:$0xff]  }
  0x3c   : > { %v2000_v4 = vld [vmem:[%s2225_s15 + $0x1e0] ss:$16 sps:$4 sm:$0xff]   ;;  %v2001_v5 = vld [vmem:[%s2225_s15 + $0x1e8] ss:$16 sps:$4 sm:$0xff]   ;;  %v2007_v6 = vld [vmem:[%s2225_s15 + $0x204] ss:$16 sps:$4 sm:$0xff]  }
  0x3d   : > { %1234 = vmatpush1.bf16.msra.mxu0 %v1940_v27  ;;  %1320 = vmatpush1.bf16.msra.mxu1 %v1941_v28  ;;  %v2010_v7 = vld [vmem:[%s2225_s15 + $0x20c] ss:$16 sps:$4 sm:$0xff]   ;;  %v2002_v8 = vld [vmem:[%s2227_s16] ss:$16 sps:$4 sm:$0xff]   ;;  %v2008_v10 = vld [vmem:[%s2225_s15 + $0x208] ss:$16 sps:$4 sm:$0xff]  }
  0x3e   : > { %1235 = vmatprep.subr.bf16.mxu0 %v1942_v29  ;;  %1321 = vmatprep.subr.bf16.mxu1 %v1944_v30  ;;  %v2005_v9 = vld [vmem:[%s2225_s15 + $0x200] ss:$16 sps:$4 sm:$0xff]   ;;  %v2013_v11 = vld [vmem:[%s2225_s15 + $0x224] ss:$16 sps:$4 sm:$0xff]   ;;  %v2016_v12 = vld [vmem:[%s2225_s15 + $0x22c] ss:$16 sps:$4 sm:$0xff]  }
  0x3f   : > { %v2011_v13 = vld [vmem:[%s2225_s15 + $0x220] ss:$16 sps:$4 sm:$0xff]   ;;  %v2014_v14 = vld [vmem:[%s2225_s15 + $0x228] ss:$16 sps:$4 sm:$0xff]   ;;  %v2019_v15 = vld [vmem:[%s2225_s15 + $0x244] ss:$16 sps:$4 sm:$0xff]  }
  0x40   : > { %v2022_v16 = vld [vmem:[%s2225_s15 + $0x24c] ss:$16 sps:$4 sm:$0xff]   ;;  %v2017_v17 = vld [vmem:[%s2225_s15 + $0x240] ss:$16 sps:$4 sm:$0xff]   ;;  %v2020_v18 = vld [vmem:[%s2225_s15 + $0x248] ss:$16 sps:$4 sm:$0xff]  }
  0x41   : > { %1236 = vmatpush1.bf16.msra.mxu0 %v1946_v31  ;;  %1322 = vmatpush1.bf16.msra.mxu1 %v1947_v32  ;;  %v2025_v19 = vld [vmem:[%s2225_s15 + $0x264] ss:$16 sps:$4 sm:$0xff]   ;;  %v2028_v20 = vld [vmem:[%s2225_s15 + $0x26c] ss:$16 sps:$4 sm:$0xff]   ;;  %v2023_v21 = vld [vmem:[%s2225_s15 + $0x260] ss:$16 sps:$4 sm:$0xff]  }
  0x42   : > { %1237 = vmatprep.subr.bf16.mxu0 %v1948_v33  ;;  %1323 = vmatprep.subr.bf16.mxu1 %v1950_v34  ;;  %v2026_v22 = vld [vmem:[%s2225_s15 + $0x268] ss:$16 sps:$4 sm:$0xff]   ;;  %v2031_v23 = vld [vmem:[%s2225_s15 + $0x284] ss:$16 sps:$4 sm:$0xff]   ;;  %v2034_v24 = vld [vmem:[%s2225_s15 + $0x28c] ss:$16 sps:$4 sm:$0xff]  }
  0x43   : > { %v2029_v25 = vld [vmem:[%s2225_s15 + $0x280] ss:$16 sps:$4 sm:$0xff]   ;;  %v2032_v26 = vld [vmem:[%s2225_s15 + $0x288] ss:$16 sps:$4 sm:$0xff]   ;;  %v2037_v27 = vld [vmem:[%s2225_s15 + $0x2a4] ss:$16 sps:$4 sm:$0xff]  }
  0x44   : > { %v2040_v28 = vld [vmem:[%s2225_s15 + $0x2ac] ss:$16 sps:$4 sm:$0xff]   ;;  %v2035_v29 = vld [vmem:[%s2225_s15 + $0x2a0] ss:$16 sps:$4 sm:$0xff]   ;;  %v2038_v30 = vld [vmem:[%s2225_s15 + $0x2a8] ss:$16 sps:$4 sm:$0xff]  }
  0x45   : > { %1238 = vmatpush1.bf16.msra.mxu0 %v1952_v35  ;;  %1324 = vmatpush1.bf16.msra.mxu1 %v1953_v36  ;;  %v2043_v31 = vld [vmem:[%s2225_s15 + $0x2c4] ss:$16 sps:$4 sm:$0xff]   ;;  %v2046_v32 = vld [vmem:[%s2225_s15 + $0x2cc] ss:$16 sps:$4 sm:$0xff]   ;;  %v2041_v34 = vld [vmem:[%s2225_s15 + $0x2c0] ss:$16 sps:$4 sm:$0xff]  }
  0x46   : > { %1239 = vmatprep.subr.bf16.mxu0 %v1954_v37  ;;  %1325 = vmatprep.subr.bf16.mxu1 %v1956_v38  ;;  %v2103_v33 = vld [vmem:[%s2227_s16 + $0xc] ss:$16 sps:$4 sm:$0xff]   ;;  %v2044_v35 = vld [vmem:[%s2225_s15 + $0x2c8] ss:$16 sps:$4 sm:$0xff]   ;;  %v2049_v36 = vld [vmem:[%s2225_s15 + $0x2e4] ss:$16 sps:$4 sm:$0xff]  }
  0x47   : > { %v2052_v37 = vld [vmem:[%s2225_s15 + $0x2ec] ss:$16 sps:$4 sm:$0xff]   ;;  %v2047_v38 = vld [vmem:[%s2225_s15 + $0x2e0] ss:$16 sps:$4 sm:$0xff]   ;;  %p1842_p11 = scmp.ne.s32.totalorder %s2134_s20, 8 }
  0x48   : > { %v2076_v53 = vld [vmem:[%s2225_s15 + $0x36c] ss:$16 sps:$4 sm:$0xff]  }
  0x49   : > { %1240 = vmatpush1.bf16.msra.mxu0 %v1958_v39  ;;  %1326 = vmatpush1.bf16.msra.mxu1 %v1959_v40  ;;  %v2050_v39 = vld [vmem:[%s2225_s15 + $0x2e8] ss:$16 sps:$4 sm:$0xff]   ;;  %v2055_v40 = vld [vmem:[%s2225_s15 + $0x304] ss:$16 sps:$4 sm:$0xff]  }
  0x4a   : > { %1241 = vmatprep.subr.bf16.mxu0 %v1960_v41  ;;  %1327 = vmatprep.subr.bf16.mxu1 %v1962_v42  ;;  %v2058_v41 = vld [vmem:[%s2225_s15 + $0x30c] ss:$16 sps:$4 sm:$0xff]   ;;  %v2053_v42 = vld [vmem:[%s2225_s15 + $0x300] ss:$16 sps:$4 sm:$0xff]  }
  0x4d   : > { %1242 = vmatpush1.bf16.msra.mxu0 %v1964_v43  ;;  %1328 = vmatpush1.bf16.msra.mxu1 %v1965_v44  ;;  %v2056_v43 = vld [vmem:[%s2225_s15 + $0x308] ss:$16 sps:$4 sm:$0xff]   ;;  %v2061_v44 = vld [vmem:[%s2225_s15 + $0x324] ss:$16 sps:$4 sm:$0xff]  }
  0x4e   : > { %1243 = vmatprep.subr.bf16.mxu0 %v1966_v45  ;;  %1329 = vmatprep.subr.bf16.mxu1 %v1968_v46  ;;  %v2064_v45 = vld [vmem:[%s2225_s15 + $0x32c] ss:$16 sps:$4 sm:$0xff]   ;;  %v2059_v46 = vld [vmem:[%s2225_s15 + $0x320] ss:$16 sps:$4 sm:$0xff]  }
  0x51   : > { %1244 = vmatpush1.bf16.msra.mxu0 %v1970_v47  ;;  %1330 = vmatpush1.bf16.msra.mxu1 %v1971_v48  ;;  %v2062_v47 = vld [vmem:[%s2225_s15 + $0x328] ss:$16 sps:$4 sm:$0xff]   ;;  %v2067_v48 = vld [vmem:[%s2225_s15 + $0x344] ss:$16 sps:$4 sm:$0xff]  }
  0x52   : > { %1245 = vmatprep.subr.bf16.mxu0 %v1972_v49  ;;  %1331 = vmatprep.subr.bf16.mxu1 %v1974_v50  ;;  %v2070_v49 = vld [vmem:[%s2225_s15 + $0x34c] ss:$16 sps:$4 sm:$0xff]   ;;  %v2065_v50 = vld [vmem:[%s2225_s15 + $0x340] ss:$16 sps:$4 sm:$0xff]  }
  0x55   : > { %1246 = vmatpush1.bf16.msra.mxu0 %v1976_v51  ;;  %1332 = vmatpush1.bf16.msra.mxu1 %v1977_v52  ;;  %v2068_v51 = vld [vmem:[%s2225_s15 + $0x348] ss:$16 sps:$4 sm:$0xff]   ;;  %v2073_v52 = vld [vmem:[%s2225_s15 + $0x364] ss:$16 sps:$4 sm:$0xff]  }
  0x56   : > { %1247 = vmatprep.subr.bf16.mxu0 %v1978_v54  ;;  %1333 = vmatprep.subr.bf16.mxu1 %v1980_v55  ;;  %v2071_v54 = vld [vmem:[%s2225_s15 + $0x360] ss:$16 sps:$4 sm:$0xff]   ;;  %v2074_v55 = vld [vmem:[%s2225_s15 + $0x368] ss:$16 sps:$4 sm:$0xff]  }
  0x59   : > { %1248 = vmatpush1.bf16.msra.mxu0 %v1982_v56  ;;  %1334 = vmatpush1.bf16.msra.mxu1 %v1983_v57  ;;  %v2079_v56 = vld [vmem:[%s2225_s15 + $0x384] ss:$16 sps:$4 sm:$0xff]   ;;  %v2082_v57 = vld [vmem:[%s2225_s15 + $0x38c] ss:$16 sps:$4 sm:$0xff]  }
  0x5a   : > { %1249 = vmatprep.subr.bf16.mxu0 %v1984_v58  ;;  %1335 = vmatprep.subr.bf16.mxu1 %v1986_v59  ;;  %v2077_v58 = vld [vmem:[%s2225_s15 + $0x380] ss:$16 sps:$4 sm:$0xff]   ;;  %v2080_v59 = vld [vmem:[%s2225_s15 + $0x388] ss:$16 sps:$4 sm:$0xff]  }
  0x5d   : > { %1250 = vmatpush1.bf16.msra.mxu0 %v1988_v60  ;;  %1336 = vmatpush1.bf16.msra.mxu1 %v1989_v61  ;;  %v2085_v60 = vld [vmem:[%s2225_s15 + $0x3a4] ss:$16 sps:$4 sm:$0xff]   ;;  %v2088_v61 = vld [vmem:[%s2225_s15 + $0x3ac] ss:$16 sps:$4 sm:$0xff]  }
  0x5e   : > { %1251 = vmatprep.subr.bf16.mxu0 %v1990_v62  ;;  %1337 = vmatprep.subr.bf16.mxu1 %v1992_v63  ;;  %v2083_v62 = vld [vmem:[%s2225_s15 + $0x3a0] ss:$16 sps:$4 sm:$0xff]   ;;  %v2086_v63 = vld [vmem:[%s2225_s15 + $0x3a8] ss:$16 sps:$4 sm:$0xff]  }
  0x61   : > { %1252 = vmatpush1.bf16.msra.mxu0 %v1994_v0  ;;  %1338 = vmatpush1.bf16.msra.mxu1 %v1995_v1  ;;  %v2091_v0 = vld [vmem:[%s2225_s15 + $0x3c4] ss:$16 sps:$4 sm:$0xff]   ;;  %v2094_v1 = vld [vmem:[%s2225_s15 + $0x3cc] ss:$16 sps:$4 sm:$0xff]  }
  0x62   : > { %1253 = vmatprep.subr.bf16.mxu0 %v1996_v2  ;;  %1339 = vmatprep.subr.bf16.mxu1 %v1998_v3  ;;  %v2089_v2 = vld [vmem:[%s2225_s15 + $0x3c0] ss:$16 sps:$4 sm:$0xff]   ;;  %v2092_v3 = vld [vmem:[%s2225_s15 + $0x3c8] ss:$16 sps:$4 sm:$0xff]  }
  0x65   : > { %1254 = vmatpush1.bf16.msra.mxu0 %v2000_v4  ;;  %1340 = vmatpush1.bf16.msra.mxu1 %v2001_v5  ;;  %v2097_v4 = vld [vmem:[%s2225_s15 + $0x3e4] ss:$16 sps:$4 sm:$0xff]   ;;  %v2100_v5 = vld [vmem:[%s2225_s15 + $0x3ec] ss:$16 sps:$4 sm:$0xff]  }
  0x66   : > { %1266 = vmatprep.subr.bf16.mxu0 %v2007_v6  ;;  %1352 = vmatprep.subr.bf16.mxu1 %v2010_v7  ;;  %v2095_v6 = vld [vmem:[%s2225_s15 + $0x3e0] ss:$16 sps:$4 sm:$0xff]   ;;  %v2098_v7 = vld [vmem:[%s2225_s15 + $0x3e8] ss:$16 sps:$4 sm:$0xff]  }
  0x68   : > { %1256 = vmatmul.mubr.bf16.vlgmr.msra.gmra.mrb[0].mxu0 %v2002_v8  ;;  %1342 = vmatmul.mubr.bf16.vlgmr.msra.gmra.mrb[0].mxu1 %v2002_v8  ;;  %v2101_v8 = vld [vmem:[%s2227_s16 + $0x8] ss:$16 sps:$4 sm:$0xff]  }
  0x69   : > { %1267 = vmatpush1.bf16.msra.mxu0 %v2005_v9  ;;  %1353 = vmatpush1.bf16.msra.mxu1 %v2008_v10  ;;  %v423_v9 = vld [vmem:[#allocation2] sm:$0xff]  ;;  %v425_v10 = vld [vmem:[#allocation2 + $0x10] sm:$0xff] }
  0x6a   : > { %1268 = vmatprep.subr.bf16.mxu0 %v2013_v11  ;;  %1354 = vmatprep.subr.bf16.mxu1 %v2016_v12  ;;  %v424_v11 = vld [vmem:[#allocation2 + $0x8] sm:$0xff]  ;;  %v426_v12 = vld [vmem:[#allocation2 + $0x18] sm:$0xff] }
  0x6b   : > { %1298 = vmatprep.mubr.bf16.mxu0 %v2103_v33  ;;  %1384 = vmatprep.mubr.bf16.mxu1 %v2103_v33  ;;  %v1425_v33 = vlaneseq (!%p1842_p11) }
  0x6d   : > { %1269 = vmatpush1.bf16.msra.mxu0 %v2011_v13  ;;  %1355 = vmatpush1.bf16.msra.mxu1 %v2014_v14 }
  0x6e   : > { %1270 = vmatprep.subr.bf16.mxu0 %v2019_v15  ;;  %1356 = vmatprep.subr.bf16.mxu1 %v2022_v16  ;;  %v427_v15 = vld [vmem:[#allocation2 + $0x20] sm:$0xff]  ;;  %v429_v16 = vld [vmem:[#allocation2 + $0x30] sm:$0xff] }
  0x71   : > { %1271 = vmatpush1.bf16.msra.mxu0 %v2017_v17  ;;  %1357 = vmatpush1.bf16.msra.mxu1 %v2020_v18 }
  0x72   : > { %1272 = vmatprep.subr.bf16.mxu0 %v2025_v19  ;;  %1358 = vmatprep.subr.bf16.mxu1 %v2028_v20 }
  0x75   : > { %1273 = vmatpush1.bf16.msra.mxu0 %v2023_v21  ;;  %1359 = vmatpush1.bf16.msra.mxu1 %v2026_v22  ;;  %v428_v21 = vld [vmem:[#allocation2 + $0x28] sm:$0xff]  ;;  %v430_v22 = vld [vmem:[#allocation2 + $0x38] sm:$0xff] }
  0x76   : > { %1274 = vmatprep.subr.bf16.mxu0 %v2031_v23  ;;  %1360 = vmatprep.subr.bf16.mxu1 %v2034_v24 }
  0x79   : > { %1275 = vmatpush1.bf16.msra.mxu0 %v2029_v25  ;;  %1361 = vmatpush1.bf16.msra.mxu1 %v2032_v26 }
  0x7a   : > { %1276 = vmatprep.subr.bf16.mxu0 %v2037_v27  ;;  %1362 = vmatprep.subr.bf16.mxu1 %v2040_v28 }
  0x7d   : > { %1277 = vmatpush1.bf16.msra.mxu0 %v2035_v29  ;;  %1363 = vmatpush1.bf16.msra.mxu1 %v2038_v30 }
  0x7e   : > { %1278 = vmatprep.subr.bf16.mxu0 %v2043_v31  ;;  %1364 = vmatprep.subr.bf16.mxu1 %v2046_v32 }
  0x81   : > { %1279 = vmatpush1.bf16.msra.mxu0 %v2041_v34  ;;  %1365 = vmatpush1.bf16.msra.mxu1 %v2044_v35  ;;  %v1483_v34 = vld [vmem:[%s2412_s4] sm:$0xff] (!%p1842_p11)  ;;  %v1426_v35 = vshrl.u32 (!%p1842_p11), %v1425_v33, 7 }
  0x82   : > { %1280 = vmatprep.subr.bf16.mxu0 %v2049_v36  ;;  %1366 = vmatprep.subr.bf16.mxu1 %v2052_v37  ;;  %v1484_v36 = vld [vmem:[%s2412_s4 + $0x8] sm:$0xff] (!%p1842_p11) }
  0x85   : > { %1281 = vmatpush1.bf16.msra.mxu0 %v2047_v38  ;;  %1367 = vmatpush1.bf16.msra.mxu1 %v2050_v39  ;;  %v1423_v38 = vld [vmem:[%s2410_s2] sm:$0xf] (!%p1842_p11) }
  0x86   : > { %1282 = vmatprep.subr.bf16.mxu0 %v2055_v40  ;;  %1368 = vmatprep.subr.bf16.mxu1 %v2058_v41  ;;  %v1453_v39 = vld [vmem:[%s2411_s3] sm:$0xf] (!%p1842_p11)  ;;  %v1487_v40 = vunpack.c.l.bf16 (!%p1842_p11), %v1483_v34  ;;  %v1488_v41 = vunpack.c.h.bf16 (!%p1842_p11), %v1483_v34 }
  0x89   : > { %1283 = vmatpush1.bf16.msra.mxu0 %v2053_v42  ;;  %1369 = vmatpush1.bf16.msra.mxu1 %v2056_v43  ;;  %v1489_v42 = vunpack.c.l.bf16 (!%p1842_p11), %v1484_v36  ;;  %v1490_v43 = vunpack.c.h.bf16 (!%p1842_p11), %v1484_v36 }
  0x8a   : > { %1284 = vmatprep.subr.bf16.mxu0 %v2061_v44  ;;  %1370 = vmatprep.subr.bf16.mxu1 %v2064_v45  ;;  %v1485_v44 = vld [vmem:[%s2412_s4 + $0x10] sm:$0xff] (!%p1842_p11) }
  0x8d   : > { %1285 = vmatpush1.bf16.msra.mxu0 %v2059_v46  ;;  %1371 = vmatpush1.bf16.msra.mxu1 %v2062_v47  ;;  %v1427_v46 = vsub.s32 (!%p1842_p11), 0, %v1426_v35  ;;  %v1431_v47 = vsub.s32 (!%p1842_p11), 1, %v1426_v35 }
  0x8e   : > { %1286 = vmatprep.subr.bf16.mxu0 %v2067_v48  ;;  %1372 = vmatprep.subr.bf16.mxu1 %v2070_v49  ;;  %v1435_v48 = vsub.s32 (!%p1842_p11), 2, %v1426_v35  ;;  %v1439_v49 = vsub.s32 (!%p1842_p11), 3, %v1426_v35 }
  0x91   : > { %1287 = vmatpush1.bf16.msra.mxu0 %v2065_v50  ;;  %1373 = vmatpush1.bf16.msra.mxu1 %v2068_v51  ;;  %v1486_v50 = vld [vmem:[%s2412_s4 + $0x18] sm:$0xff] (!%p1842_p11) }
  0x92   : > { %1288 = vmatprep.subr.bf16.mxu0 %v2073_v52  ;;  %1374 = vmatprep.subr.bf16.mxu1 %v2076_v53 }
  0x95   : > { %1289 = vmatpush1.bf16.msra.mxu0 %v2071_v54  ;;  %1375 = vmatpush1.bf16.msra.mxu1 %v2074_v55  ;;  %v1491_v54 = vunpack.c.l.bf16 (!%p1842_p11), %v1485_v44  ;;  %v1492_v55 = vunpack.c.h.bf16 (!%p1842_p11), %v1485_v44 }
  0x96   : > { %1290 = vmatprep.subr.bf16.mxu0 %v2079_v56  ;;  %1376 = vmatprep.subr.bf16.mxu1 %v2082_v57  ;;  %v1493_v56 = vunpack.c.l.bf16 (!%p1842_p11), %v1486_v50  ;;  %v1494_v57 = vunpack.c.h.bf16 (!%p1842_p11), %v1486_v50 }
  0x99   : > { %1291 = vmatpush1.bf16.msra.mxu0 %v2077_v58  ;;  %1377 = vmatpush1.bf16.msra.mxu1 %v2080_v59  ;;  %v1428_v58 = vrot.slane (!%p1842_p11), %v1423_v38, %v1427_v46  ;;  %v1432_v59 = vrot.slane (!%p1842_p11), %v1423_v38, %v1431_v47 }
  0x9a   : > { %1292 = vmatprep.subr.bf16.mxu0 %v2085_v60  ;;  %1378 = vmatprep.subr.bf16.mxu1 %v2088_v61  ;;  %v1458_v60 = vrot.slane (!%p1842_p11), %v1453_v39, %v1427_v46  ;;  %v1462_v61 = vrot.slane (!%p1842_p11), %v1453_v39, %v1431_v47 }
  0x9d   : > { %1293 = vmatpush1.bf16.msra.mxu0 %v2083_v62  ;;  %1379 = vmatpush1.bf16.msra.mxu1 %v2086_v63 }
  0x9e   : > { %1294 = vmatprep.subr.bf16.mxu0 %v2091_v0  ;;  %1380 = vmatprep.subr.bf16.mxu1 %v2094_v1  ;;  %v1436_v1 = vrot.slane (!%p1842_p11), %v1423_v38, %v1435_v48 }
  0xa1   : > { %1295 = vmatpush1.bf16.msra.mxu0 %v2089_v2  ;;  %1381 = vmatpush1.bf16.msra.mxu1 %v2092_v3  ;;  %v1440_v2 = vrot.slane (!%p1842_p11), %v1423_v38, %v1439_v49  ;;  %v1466_v3 = vrot.slane (!%p1842_p11), %v1453_v39, %v1435_v48 }
  0xa2   : > { %1296 = vmatprep.subr.bf16.mxu0 %v2097_v4  ;;  %1382 = vmatprep.subr.bf16.mxu1 %v2100_v5  ;;  %v1470_v4 = vrot.slane (!%p1842_p11), %v1453_v39, %v1439_v49 }
  0xa5   : > { %1297 = vmatpush1.bf16.msra.mxu0 %v2095_v6  ;;  %1383 = vmatpush1.bf16.msra.mxu1 %v2098_v7 }
  0xa8   : > { %1299 = vmatmul.mubr.bf16.vlgmr.msra.gmra.mrb[0].mxu0 %v2101_v8  ;;  %1385 = vmatmul.mubr.bf16.vlgmr.msra.gmra.mrb[0].mxu1 %v2101_v8 }
 0x17b   : > { %v1300_v13 = vpop.f32.mrb[0].mxu0  ;;  %v1386_v14 = vpop.f32.mrb[0].mxu1  ;;  %1414 = sbr.rel (%p1842_p11) target bundleno = 404 (0x194), region = 71 }
 0x17c   : > { %v1395_v17 = vadd.f32 %v1300_v13, %v423_v9  ;;  %v1397_v18 = vadd.f32 %v1386_v14, %v425_v10  ;;  %v1302_v19 = vpop.f32.mrb[1].mxu0  ;;  %v1388_v20 = vpop.f32.mrb[1].mxu1 }
 0x17d   : > { %v1396_v23 = vadd.f32 %v1302_v19, %v424_v11  ;;  %v1398_v24 = vadd.f32 %v1388_v20, %v426_v12  ;;  %v1304_v25 = vpop.f32.mrb[2].mxu0  ;;  %v1390_v26 = vpop.f32.mrb[2].mxu1 }
 0x17e   : > { %1403 = vst [vmem:[#allocation2] sm:$0xff] %v1395_v17  ;;  %1405 = vst [vmem:[#allocation2 + $0x10] sm:$0xff] %v1397_v18  ;;  %v1399_v27 = vadd.f32 %v1304_v25, %v427_v15  ;;  %v1401_v28 = vadd.f32 %v1390_v26, %v429_v16  ;;  %v1306_v29 = vpop.f32.mrb[3].mxu0  ;;  %v1392_v30 = vpop.f32.mrb[3].mxu1 }
 0x17f   : > { %1404 = vst [vmem:[#allocation2 + $0x8] sm:$0xff] %v1396_v23  ;;  %1406 = vst [vmem:[#allocation2 + $0x18] sm:$0xff] %v1398_v24  ;;  %v1400_v31 = vadd.f32 %v1306_v29, %v428_v21  ;;  %v1402_v32 = vadd.f32 %v1392_v30, %v430_v22 }
 0x180   : > { %1407 = vst [vmem:[#allocation2 + $0x20] sm:$0xff] %v1399_v27  ;;  %1409 = vst [vmem:[#allocation2 + $0x30] sm:$0xff] %v1401_v28 }
 0x181   : > { %1408 = vst [vmem:[#allocation2 + $0x28] sm:$0xff] %v1400_v31  ;;  %1410 = vst [vmem:[#allocation2 + $0x38] sm:$0xff] %v1402_v32 }
 0x185   : > { %v1415_v37 = vld [vmem:[#allocation2] sm:$0xff]  ;;  %v1417_v51 = vld [vmem:[#allocation2 + $0x10] sm:$0xff] }
 0x186   : > { %v1416_v45 = vld [vmem:[#allocation2 + $0x8] sm:$0xff]  ;;  %v1418_v62 = vld [vmem:[#allocation2 + $0x18] sm:$0xff]  ;;  %v1445_v5 = vmul.f32 %v1428_v58, %v1415_v37  ;;  %v1447_v9 = vmul.f32 %v1436_v1, %v1417_v51 }
 0x187   : > { %v1419_v52 = vld [vmem:[#allocation2 + $0x20] sm:$0xff]  ;;  %v1421_v63 = vld [vmem:[#allocation2 + $0x30] sm:$0xff]  ;;  %v1446_v6 = vmul.f32 %v1432_v59, %v1416_v45  ;;  %v1448_v10 = vmul.f32 %v1440_v2, %v1418_v62 }
 0x188   : > { %v1420_v53 = vld [vmem:[#allocation2 + $0x28] sm:$0xff]  ;;  %v1422_v0 = vld [vmem:[#allocation2 + $0x38] sm:$0xff]  ;;  %v1449_v7 = vmul.f32 %v1428_v58, %v1419_v52  ;;  %v1451_v11 = vmul.f32 %v1436_v1, %v1421_v63  ;;  %v1475_v13 = vadd.f32 %v1458_v60, %v1445_v5  ;;  %v1477_v17 = vadd.f32 %v1466_v3, %v1447_v9 }
 0x189   : > { %v1450_v8 = vmul.f32 %v1432_v59, %v1420_v53  ;;  %v1452_v12 = vmul.f32 %v1440_v2, %v1422_v0  ;;  %v1476_v14 = vadd.f32 %v1462_v61, %v1446_v6  ;;  %v1478_v18 = vadd.f32 %v1470_v4, %v1448_v10 }
 0x18a   : > { %v1479_v15 = vadd.f32 %v1458_v60, %v1449_v7  ;;  %v1481_v19 = vadd.f32 %v1466_v3, %v1451_v11  ;;  %v1495_v21 = vadd.f32 %v1487_v40, %v1475_v13  ;;  %v1497_v25 = vadd.f32 %v1489_v42, %v1477_v17 }
 0x18b   : > { %v1480_v16 = vadd.f32 %v1462_v61, %v1450_v8  ;;  %v1482_v20 = vadd.f32 %v1470_v4, %v1452_v12  ;;  %v1496_v22 = vadd.f32 %v1488_v41, %v1476_v14  ;;  %v1498_v26 = vadd.f32 %v1490_v43, %v1478_v18 }
 0x18c   : > { %v1499_v23 = vadd.f32 %v1491_v54, %v1479_v15  ;;  %v1501_v27 = vadd.f32 %v1493_v56, %v1481_v19  ;;  %v1503_v29 = vmax.f32 %v1495_v21, 0.0  ;;  %v1505_v33 = vmax.f32 %v1497_v25, 0.0 }
 0x18d   : > { %v1500_v24 = vadd.f32 %v1492_v55, %v1480_v16  ;;  %v1502_v28 = vadd.f32 %v1494_v57, %v1482_v20  ;;  %v1504_v30 = vmax.f32 %v1496_v22, 0.0  ;;  %v1506_v34 = vmax.f32 %v1498_v26, 0.0 }
 0x18e   : > { %v1507_v31 = vmax.f32 %v1499_v23, 0.0  ;;  %v1509_v35 = vmax.f32 %v1501_v27, 0.0 }
 0x18f   : > { %v1508_v32 = vmax.f32 %v1500_v24, 0.0  ;;  %v1510_v36 = vmax.f32 %v1502_v28, 0.0  ;;  %v1853_v37 = vpack.c.bf16 %v1504_v30, %v1503_v29  ;;  %v1854_v39 = vpack.c.bf16 %v1506_v34, %v1505_v33 }
 0x191   : > { %v1855_v38 = vpack.c.bf16 %v1508_v32, %v1507_v31  ;;  %v1856_v44 = vpack.c.bf16 %v1510_v36, %v1509_v35  ;;  %1535 = vst [vmem:[%s2413_s5] sm:$0xff] %v1853_v37  ;;  %1536 = vst [vmem:[%s2413_s5 + $0x8] sm:$0xff] %v1854_v39 }
 0x193   : > { %1537 = vst [vmem:[%s2413_s5 + $0x10] sm:$0xff] %v1855_v38  ;;  %1538 = vst [vmem:[%s2413_s5 + $0x18] sm:$0xff] %v1856_v44 }
 0x194 PF: > { %s15_s22 = sadd.s32 1, %s2142_s22   ;;  %s2414_s18 = smov %s2130_s19 }
 0x195   : > { %p12_p12 = scmp.ge.s32.totalorder %s15_s22, 11   ;;  %s2415_s19 = smov %s2210_s26 }
 0x196   : > { %s2416_s20 = smov %s2138_s21  ;;  %s2417_s21 = smov %s2419_s23 }
 0x197   :  { %14 = sbr.rel (!%p12_p12) target bundleno = 3 (0x3), region = 118 }

// kernel: base_resnet18_forward.45
= control target key start
LH: loop header
LB: loop body
LE: loop exit
PB: predicated region body
PF: predicated region fallthrough
CT: control target
= control target key end

     0   :  { %vm21_vm0 = vcmask 1041409   ;;  %vm23_vm1 = vcmask 1043459   ;;  %vm25_vm2 = vcmask 1045509   ;;  %vm27_vm3 = vcmask 1047559   ;;  %s55_s0 = inlined_call_operand.vmem [shape: bf16[2,1,512], index: 0, kind: input, shape index: {}]   ;;  %s56_s1 = inlined_call_operand.vmem [shape: f32[2,512], index: 1, kind: output, shape index: {}]  }
   0x1   :  { %v36_v0 = vld [vmem:[%s55_s0] sm:$0xff]  }
   0x2   :  { %v37_v1 = vunpack.c.l.bf16 %v36_v0  ;;  %v38_v2 = vunpack.c.h.bf16 %v36_v0 }
   0x4   :  { %v20_v3 = vrot.slane %v38_v2, 7 }
   0x6   :  { %v22_v4 = vsel %vm21_vm0, %v20_v3, %v37_v1 }
   0x7   :  { %v24_v5 = vsel %vm23_vm1, %v20_v3, %v22_v4 }
   0x8   :  { %v26_v6 = vsel %vm25_vm2, %v20_v3, %v24_v5 }
   0x9   :  { %v28_v7 = vsel %vm27_vm3, %v20_v3, %v26_v6 }
   0xa   :  { %30 = vst [vmem:[%s56_s1] sm:$0xff] %v28_v7 }

// kernel: base_resnet18_forward.43
= control target key start
LH: loop header
LB: loop body
LE: loop exit
PB: predicated region body
PF: predicated region fallthrough
CT: control target
= control target key end

     0   :  { %s2060_s15 = smov 0   ;;  %s2062_s16 = smov 0   ;;  %s2281_s0 = inlined_call_operand.vmem [shape: bf16[16,4608], index: 0, kind: input, shape index: {}]   ;;  %s2282_s1 = inlined_call_operand.vmem [shape: bf16[4608,512], index: 1, kind: input, shape index: {}]   ;;  %s2283_s2 = inlined_call_operand.vmem [shape: f32[1,512], index: 2, kind: input, shape index: {}]   ;;  %s2284_s3 = inlined_call_operand.vmem [shape: f32[1,512], index: 3, kind: input, shape index: {}]   ;;  %s2285_s4 = inlined_call_operand.vmem [shape: bf16[16,512], index: 4, kind: output, shape index: {}]  }
   0x1   :  { %s2064_s17 = smov 0   ;;  %s2066_s18 = smov 0  }
   0x2   :  { %s2068_s19 = smov 0  }
   0x3 LB: > { %s26_s20 = sadd.s32 1, %s2028_s18  ;;  %p49_p1 = scmp.ne.s32.totalorder %s2020_s16, %s2016_s15  ;;  %s2032_s19 = sphi %s2068_s19, %s14_s19   ;;  %s2028_s18 = sphi %s2066_s18, %s2289_s18   ;;  %s2024_s17 = sphi %s2064_s17, %s2288_s17   ;;  %s2020_s16 = sphi %s2062_s16, %s2287_s16   ;;  %s2016_s15 = sphi %s2060_s15, %s2286_s15  }
   0x4   : > { %p27_p0 = scmp.ge.s32.totalorder %s26_s20, 9  ;;  %p50_p2 = scmp.eq.s32.totalorder %s2032_s19, 0 }
   0x5   : > { %s42_s22 = sadd.s32 1, %s2020_s16  ;;  %p1590_p5 = scmp.ge.s32.totalorder %s2032_s19, 9 }
   0x6   : > { %s2291_s20 = smov (%p27_p0, %s26_s20), 0  ;;  %p51_p3 = por %p50_p2, %p49_p1 }
   0x7   : > { %s38_s21 = ssub.s32 %s2028_s18, %s2291_s20  ;;  %199 = sbr.rel (%p1590_p5) target bundleno = 21 (0x15), region = 24 }
   0x8   : > { %p40_p4 = scmp.eq.s32.totalorder %s38_s21, 0 }
   0xa   : > { %s2095_s23 = scalar_select %p40_p4, %s2020_s16, %s42_s22  }
   0xe   : > { %202 = sbr.rel (!%p51_p3) target bundleno = 21 (0x15), region = 28  ;;  %s204_s24 = sand.u32 (%p51_p3), 1, %s2020_s16  }
   0xf   : > { %s1741_s25 = sshll.u32 (%p51_p3), %s2028_s18, 4  ;;  %s1591_s26 = sshll.u32 (%p51_p3), %s204_s24, 5 }
  0x10   : > { %s212_s29 = scalar_lea.vmem (%p51_p3), %s2281_s0, %s1741_s25  ;;  %s206_s30 = scalar_lea.vmem (%p51_p3), [#allocation3], %s1591_s26 }
  0x11   : > { %v225_v0 = vld [vmem:[%s212_s29] sm:$0xff] (%p51_p3)  ;;  %v227_v1 = vld [vmem:[%s212_s29 + $0x8] sm:$0xff] (%p51_p3)  ;;  %v229_v2 = vld [vmem:[%s212_s29 + $0x90] sm:$0xff] (%p51_p3) }
  0x12   : > { %226 = vst [vmem:[%s206_s30] sm:$0xff] (%p51_p3), %v225_v0  ;;  %228 = vst [vmem:[%s206_s30 + $0x8] sm:$0xff] (%p51_p3), %v227_v1  ;;  %v231_v3 = vld [vmem:[%s212_s29 + $0x98] sm:$0xff] (%p51_p3) }
  0x13   : > { %230 = vst [vmem:[%s206_s30 + $0x10] sm:$0xff] (%p51_p3), %v229_v2  ;;  %232 = vst [vmem:[%s206_s30 + $0x18] sm:$0xff] (%p51_p3), %v231_v3 }
  0x15 PF: > { %p1594_p6 = scmp.ge.s32.totalorder %s2032_s19, 1  ;;  %p252_p7 = scmp.lt.s32.totalorder %s2032_s19, 10 }
  0x17   : > { %p253_p8 = pnand %p1594_p6, %p252_p7 }
  0x18   : > { %s259_s5 = sand.u32 (!%p253_p8), 1, %s2016_s15   ;;  %s1596_s6 = sshll.u32 (!%p253_p8), %s2024_s17, 6 }
  0x19   : > { %256 = sbr.rel (%p253_p8) target bundleno = 402 (0x192), region = 55  ;;  %s1595_s7 = sshll.u32 (!%p253_p8), %s259_s5, 5 }
  0x1a   : > { %p311_p9 = scmp.lt.s32.totalorder (!%p253_p8), %s1596_s6, 575  ;;  %s2112_s12 = scalar_lea.vmem (!%p253_p8), [#allocation3], %s1595_s7 }
  0x1b   : > { %p1599_p10 = scmp.ne.s32.totalorder (!%p253_p8), %s2024_s17, 0 }
  0x20   : > { %s2293_s6 = smov (!%p311_p9, %s1596_s6), 575  ;;  %346 = sbr.rel (%p1599_p10) target bundleno = 39 (0x27), region = 63 }
  0x21   : > { %s1742_s8 = sshll.u32 %s2293_s6, 4  ;;  %v2034_v4 = vmov (!%p1599_p10), 0.0  }
  0x22   : > { %s2110_s11 = scalar_lea.vmem %s2282_s1, %s1742_s8  ;;  %347 = vst [vmem:[#allocation2] sm:$0xff] (!%p1599_p10), %v2034_v4  ;;  %348 = vst [vmem:[#allocation2 + $0x8] sm:$0xff] (!%p1599_p10), %v2034_v4 }
  0x23   : > { %349 = vst [vmem:[#allocation2 + $0x10] sm:$0xff] (!%p1599_p10), %v2034_v4  ;;  %350 = vst [vmem:[#allocation2 + $0x18] sm:$0xff] (!%p1599_p10), %v2034_v4 }
  0x24   : > { %351 = vst [vmem:[#allocation2 + $0x20] sm:$0xff] (!%p1599_p10), %v2034_v4  ;;  %352 = vst [vmem:[#allocation2 + $0x28] sm:$0xff] (!%p1599_p10), %v2034_v4 }
  0x25   : > { %353 = vst [vmem:[#allocation2 + $0x30] sm:$0xff] (!%p1599_p10), %v2034_v4  ;;  %354 = vst [vmem:[#allocation2 + $0x38] sm:$0xff] (!%p1599_p10), %v2034_v4 }
  0x27 PF: > { %v1796_v5 = vld [vmem:[%s2110_s11 + $0x4] ss:$16 sps:$4 sm:$0xff]   ;;  %v1798_v6 = vld [vmem:[%s2110_s11 + $0xc] ss:$16 sps:$4 sm:$0xff]   ;;  %v1800_v7 = vld [vmem:[%s2110_s11] ss:$16 sps:$4 sm:$0xff]  }
  0x28   : > { %1155 = vmatprep.subr.bf16.mxu0 %v1796_v5  ;;  %v1801_v8 = vld [vmem:[%s2110_s11 + $0x8] ss:$16 sps:$4 sm:$0xff]   ;;  %1241 = vmatprep.subr.bf16.mxu1 %v1798_v6  ;;  %v1802_v9 = vld [vmem:[%s2110_s11 + $0x24] ss:$16 sps:$4 sm:$0xff]   ;;  %v1804_v10 = vld [vmem:[%s2110_s11 + $0x2c] ss:$16 sps:$4 sm:$0xff]  }
  0x29   : > { %1156 = vmatpush1.bf16.msra.mxu0 %v1800_v7  ;;  %1242 = vmatpush1.bf16.msra.mxu1 %v1801_v8  ;;  %v1806_v11 = vld [vmem:[%s2110_s11 + $0x20] ss:$16 sps:$4 sm:$0xff]   ;;  %v1807_v12 = vld [vmem:[%s2110_s11 + $0x28] ss:$16 sps:$4 sm:$0xff]   ;;  %v1808_v13 = vld [vmem:[%s2110_s11 + $0x44] ss:$16 sps:$4 sm:$0xff]  }
  0x2a   : > { %1157 = vmatprep.subr.bf16.mxu0 %v1802_v9  ;;  %1243 = vmatprep.subr.bf16.mxu1 %v1804_v10  ;;  %v1810_v14 = vld [vmem:[%s2110_s11 + $0x4c] ss:$16 sps:$4 sm:$0xff]   ;;  %v1812_v15 = vld [vmem:[%s2110_s11 + $0x40] ss:$16 sps:$4 sm:$0xff]   ;;  %v1813_v16 = vld [vmem:[%s2110_s11 + $0x48] ss:$16 sps:$4 sm:$0xff]  }
  0x2b   : > { %v1814_v17 = vld [vmem:[%s2110_s11 + $0x64] ss:$16 sps:$4 sm:$0xff]   ;;  %v1816_v18 = vld [vmem:[%s2110_s11 + $0x6c] ss:$16 sps:$4 sm:$0xff]   ;;  %v1818_v19 = vld [vmem:[%s2110_s11 + $0x60] ss:$16 sps:$4 sm:$0xff]  }
  0x2c   : > { %v1819_v20 = vld [vmem:[%s2110_s11 + $0x68] ss:$16 sps:$4 sm:$0xff]   ;;  %v1820_v21 = vld [vmem:[%s2110_s11 + $0x84] ss:$16 sps:$4 sm:$0xff]   ;;  %v1822_v22 = vld [vmem:[%s2110_s11 + $0x8c] ss:$16 sps:$4 sm:$0xff]  }
  0x2d   : > { %1158 = vmatpush1.bf16.msra.mxu0 %v1806_v11  ;;  %1244 = vmatpush1.bf16.msra.mxu1 %v1807_v12  ;;  %v1824_v23 = vld [vmem:[%s2110_s11 + $0x80] ss:$16 sps:$4 sm:$0xff]   ;;  %v1825_v24 = vld [vmem:[%s2110_s11 + $0x88] ss:$16 sps:$4 sm:$0xff]   ;;  %v1826_v25 = vld [vmem:[%s2110_s11 + $0xa4] ss:$16 sps:$4 sm:$0xff]  }
  0x2e   : > { %1159 = vmatprep.subr.bf16.mxu0 %v1808_v13  ;;  %1245 = vmatprep.subr.bf16.mxu1 %v1810_v14  ;;  %v1828_v26 = vld [vmem:[%s2110_s11 + $0xac] ss:$16 sps:$4 sm:$0xff]   ;;  %v1830_v27 = vld [vmem:[%s2110_s11 + $0xa0] ss:$16 sps:$4 sm:$0xff]   ;;  %v1831_v28 = vld [vmem:[%s2110_s11 + $0xa8] ss:$16 sps:$4 sm:$0xff]  }
  0x2f   : > { %v1832_v29 = vld [vmem:[%s2110_s11 + $0xc4] ss:$16 sps:$4 sm:$0xff]   ;;  %v1834_v30 = vld [vmem:[%s2110_s11 + $0xcc] ss:$16 sps:$4 sm:$0xff]   ;;  %v1836_v31 = vld [vmem:[%s2110_s11 + $0xc0] ss:$16 sps:$4 sm:$0xff]  }
  0x30   : > { %v1837_v32 = vld [vmem:[%s2110_s11 + $0xc8] ss:$16 sps:$4 sm:$0xff]   ;;  %v1838_v33 = vld [vmem:[%s2110_s11 + $0xe4] ss:$16 sps:$4 sm:$0xff]   ;;  %v1840_v34 = vld [vmem:[%s2110_s11 + $0xec] ss:$16 sps:$4 sm:$0xff]  }
  0x31   : > { %1160 = vmatpush1.bf16.msra.mxu0 %v1812_v15  ;;  %1246 = vmatpush1.bf16.msra.mxu1 %v1813_v16  ;;  %v1842_v35 = vld [vmem:[%s2110_s11 + $0xe0] ss:$16 sps:$4 sm:$0xff]   ;;  %v1843_v36 = vld [vmem:[%s2110_s11 + $0xe8] ss:$16 sps:$4 sm:$0xff]   ;;  %v1844_v37 = vld [vmem:[%s2110_s11 + $0x104] ss:$16 sps:$4 sm:$0xff]  }
  0x32   : > { %1161 = vmatprep.subr.bf16.mxu0 %v1814_v17  ;;  %1247 = vmatprep.subr.bf16.mxu1 %v1816_v18  ;;  %v1846_v38 = vld [vmem:[%s2110_s11 + $0x10c] ss:$16 sps:$4 sm:$0xff]   ;;  %v1848_v39 = vld [vmem:[%s2110_s11 + $0x100] ss:$16 sps:$4 sm:$0xff]   ;;  %v1849_v40 = vld [vmem:[%s2110_s11 + $0x108] ss:$16 sps:$4 sm:$0xff]  }
  0x33   : > { %v1850_v41 = vld [vmem:[%s2110_s11 + $0x124] ss:$16 sps:$4 sm:$0xff]   ;;  %v1852_v42 = vld [vmem:[%s2110_s11 + $0x12c] ss:$16 sps:$4 sm:$0xff]   ;;  %v1854_v43 = vld [vmem:[%s2110_s11 + $0x120] ss:$16 sps:$4 sm:$0xff]  }
  0x34   : > { %v1855_v44 = vld [vmem:[%s2110_s11 + $0x128] ss:$16 sps:$4 sm:$0xff]   ;;  %v1856_v45 = vld [vmem:[%s2110_s11 + $0x144] ss:$16 sps:$4 sm:$0xff]   ;;  %v1858_v46 = vld [vmem:[%s2110_s11 + $0x14c] ss:$16 sps:$4 sm:$0xff]  }
  0x35   : > { %1162 = vmatpush1.bf16.msra.mxu0 %v1818_v19  ;;  %1248 = vmatpush1.bf16.msra.mxu1 %v1819_v20  ;;  %v1860_v47 = vld [vmem:[%s2110_s11 + $0x140] ss:$16 sps:$4 sm:$0xff]   ;;  %v1861_v48 = vld [vmem:[%s2110_s11 + $0x148] ss:$16 sps:$4 sm:$0xff]   ;;  %v1862_v49 = vld [vmem:[%s2110_s11 + $0x164] ss:$16 sps:$4 sm:$0xff]  }
  0x36   : > { %1163 = vmatprep.subr.bf16.mxu0 %v1820_v21  ;;  %1249 = vmatprep.subr.bf16.mxu1 %v1822_v22  ;;  %v1864_v50 = vld [vmem:[%s2110_s11 + $0x16c] ss:$16 sps:$4 sm:$0xff]   ;;  %v1866_v51 = vld [vmem:[%s2110_s11 + $0x160] ss:$16 sps:$4 sm:$0xff]   ;;  %v1867_v52 = vld [vmem:[%s2110_s11 + $0x168] ss:$16 sps:$4 sm:$0xff]  }
  0x37   : > { %v1894_v53 = vld [vmem:[%s2112_s12 + $0x4] ss:$16 sps:$4 sm:$0xff]   ;;  %v1870_v55 = vld [vmem:[%s2110_s11 + $0x18c] ss:$16 sps:$4 sm:$0xff]   ;;  %v1872_v56 = vld [vmem:[%s2110_s11 + $0x180] ss:$16 sps:$4 sm:$0xff]  }
  0x38   : > { %v1868_v54 = vld [vmem:[%s2110_s11 + $0x184] ss:$16 sps:$4 sm:$0xff]   ;;  %1187 = vmatprep.mubr.bf16.mxu0 %v1894_v53  ;;  %1273 = vmatprep.mubr.bf16.mxu1 %v1894_v53  ;;  %v1873_v57 = vld [vmem:[%s2110_s11 + $0x188] ss:$16 sps:$4 sm:$0xff]   ;;  %v1876_v59 = vld [vmem:[%s2110_s11 + $0x1ac] ss:$16 sps:$4 sm:$0xff]  }
  0x39   : > { %1164 = vmatpush1.bf16.msra.mxu0 %v1824_v23  ;;  %1250 = vmatpush1.bf16.msra.mxu1 %v1825_v24  ;;  %v1874_v58 = vld [vmem:[%s2110_s11 + $0x1a4] ss:$16 sps:$4 sm:$0xff]   ;;  %v1878_v60 = vld [vmem:[%s2110_s11 + $0x1a0] ss:$16 sps:$4 sm:$0xff]   ;;  %v1879_v61 = vld [vmem:[%s2110_s11 + $0x1a8] ss:$16 sps:$4 sm:$0xff]  }
  0x3a   : > { %1165 = vmatprep.subr.bf16.mxu0 %v1826_v25  ;;  %1251 = vmatprep.subr.bf16.mxu1 %v1828_v26  ;;  %v1880_v62 = vld [vmem:[%s2110_s11 + $0x1c4] ss:$16 sps:$4 sm:$0xff]   ;;  %v1882_v63 = vld [vmem:[%s2110_s11 + $0x1cc] ss:$16 sps:$4 sm:$0xff]   ;;  %v1884_v0 = vld [vmem:[%s2110_s11 + $0x1c0] ss:$16 sps:$4 sm:$0xff]  }
  0x3b   : > { %v1885_v1 = vld [vmem:[%s2110_s11 + $0x1c8] ss:$16 sps:$4 sm:$0xff]   ;;  %v1886_v2 = vld [vmem:[%s2110_s11 + $0x1e4] ss:$16 sps:$4 sm:$0xff]   ;;  %v1888_v3 = vld [vmem:[%s2110_s11 + $0x1ec] ss:$16 sps:$4 sm:$0xff]  }
  0x3c   : > { %v1890_v4 = vld [vmem:[%s2110_s11 + $0x1e0] ss:$16 sps:$4 sm:$0xff]   ;;  %v1891_v5 = vld [vmem:[%s2110_s11 + $0x1e8] ss:$16 sps:$4 sm:$0xff]   ;;  %v1897_v6 = vld [vmem:[%s2110_s11 + $0x204] ss:$16 sps:$4 sm:$0xff]  }
  0x3d   : > { %1166 = vmatpush1.bf16.msra.mxu0 %v1830_v27  ;;  %1252 = vmatpush1.bf16.msra.mxu1 %v1831_v28  ;;  %v1900_v7 = vld [vmem:[%s2110_s11 + $0x20c] ss:$16 sps:$4 sm:$0xff]   ;;  %v1892_v8 = vld [vmem:[%s2112_s12] ss:$16 sps:$4 sm:$0xff]   ;;  %v1898_v10 = vld [vmem:[%s2110_s11 + $0x208] ss:$16 sps:$4 sm:$0xff]  }
  0x3e   : > { %1167 = vmatprep.subr.bf16.mxu0 %v1832_v29  ;;  %1253 = vmatprep.subr.bf16.mxu1 %v1834_v30  ;;  %v1895_v9 = vld [vmem:[%s2110_s11 + $0x200] ss:$16 sps:$4 sm:$0xff]   ;;  %v1903_v11 = vld [vmem:[%s2110_s11 + $0x224] ss:$16 sps:$4 sm:$0xff]   ;;  %v1906_v12 = vld [vmem:[%s2110_s11 + $0x22c] ss:$16 sps:$4 sm:$0xff]  }
  0x3f   : > { %v1901_v13 = vld [vmem:[%s2110_s11 + $0x220] ss:$16 sps:$4 sm:$0xff]   ;;  %v1904_v14 = vld [vmem:[%s2110_s11 + $0x228] ss:$16 sps:$4 sm:$0xff]   ;;  %v1909_v15 = vld [vmem:[%s2110_s11 + $0x244] ss:$16 sps:$4 sm:$0xff]  }
  0x40   : > { %v1912_v16 = vld [vmem:[%s2110_s11 + $0x24c] ss:$16 sps:$4 sm:$0xff]   ;;  %v1907_v17 = vld [vmem:[%s2110_s11 + $0x240] ss:$16 sps:$4 sm:$0xff]   ;;  %v1910_v18 = vld [vmem:[%s2110_s11 + $0x248] ss:$16 sps:$4 sm:$0xff]  }
  0x41   : > { %1168 = vmatpush1.bf16.msra.mxu0 %v1836_v31  ;;  %1254 = vmatpush1.bf16.msra.mxu1 %v1837_v32  ;;  %v1915_v19 = vld [vmem:[%s2110_s11 + $0x264] ss:$16 sps:$4 sm:$0xff]   ;;  %v1918_v20 = vld [vmem:[%s2110_s11 + $0x26c] ss:$16 sps:$4 sm:$0xff]   ;;  %v1913_v21 = vld [vmem:[%s2110_s11 + $0x260] ss:$16 sps:$4 sm:$0xff]  }
  0x42   : > { %1169 = vmatprep.subr.bf16.mxu0 %v1838_v33  ;;  %1255 = vmatprep.subr.bf16.mxu1 %v1840_v34  ;;  %v1916_v22 = vld [vmem:[%s2110_s11 + $0x268] ss:$16 sps:$4 sm:$0xff]   ;;  %v1921_v23 = vld [vmem:[%s2110_s11 + $0x284] ss:$16 sps:$4 sm:$0xff]   ;;  %v1924_v24 = vld [vmem:[%s2110_s11 + $0x28c] ss:$16 sps:$4 sm:$0xff]  }
  0x43   : > { %v1919_v25 = vld [vmem:[%s2110_s11 + $0x280] ss:$16 sps:$4 sm:$0xff]   ;;  %v1922_v26 = vld [vmem:[%s2110_s11 + $0x288] ss:$16 sps:$4 sm:$0xff]   ;;  %v1927_v27 = vld [vmem:[%s2110_s11 + $0x2a4] ss:$16 sps:$4 sm:$0xff]  }
  0x44   : > { %v1930_v28 = vld [vmem:[%s2110_s11 + $0x2ac] ss:$16 sps:$4 sm:$0xff]   ;;  %v1925_v29 = vld [vmem:[%s2110_s11 + $0x2a0] ss:$16 sps:$4 sm:$0xff]   ;;  %v1928_v30 = vld [vmem:[%s2110_s11 + $0x2a8] ss:$16 sps:$4 sm:$0xff]  }
  0x45   : > { %1170 = vmatpush1.bf16.msra.mxu0 %v1842_v35  ;;  %1256 = vmatpush1.bf16.msra.mxu1 %v1843_v36  ;;  %v1933_v31 = vld [vmem:[%s2110_s11 + $0x2c4] ss:$16 sps:$4 sm:$0xff]   ;;  %v1936_v32 = vld [vmem:[%s2110_s11 + $0x2cc] ss:$16 sps:$4 sm:$0xff]   ;;  %v1931_v34 = vld [vmem:[%s2110_s11 + $0x2c0] ss:$16 sps:$4 sm:$0xff]  }
  0x46   : > { %1171 = vmatprep.subr.bf16.mxu0 %v1844_v37  ;;  %1257 = vmatprep.subr.bf16.mxu1 %v1846_v38  ;;  %v1993_v33 = vld [vmem:[%s2112_s12 + $0xc] ss:$16 sps:$4 sm:$0xff]   ;;  %v1934_v35 = vld [vmem:[%s2110_s11 + $0x2c8] ss:$16 sps:$4 sm:$0xff]   ;;  %v1939_v36 = vld [vmem:[%s2110_s11 + $0x2e4] ss:$16 sps:$4 sm:$0xff]  }
  0x47   : > { %v1942_v37 = vld [vmem:[%s2110_s11 + $0x2ec] ss:$16 sps:$4 sm:$0xff]   ;;  %v1937_v38 = vld [vmem:[%s2110_s11 + $0x2e0] ss:$16 sps:$4 sm:$0xff]   ;;  %p1732_p11 = scmp.ne.s32.totalorder %s2024_s17, 8 }
  0x48   : > { %v1966_v53 = vld [vmem:[%s2110_s11 + $0x36c] ss:$16 sps:$4 sm:$0xff]  }
  0x49   : > { %1172 = vmatpush1.bf16.msra.mxu0 %v1848_v39  ;;  %1258 = vmatpush1.bf16.msra.mxu1 %v1849_v40  ;;  %v1940_v39 = vld [vmem:[%s2110_s11 + $0x2e8] ss:$16 sps:$4 sm:$0xff]   ;;  %v1945_v40 = vld [vmem:[%s2110_s11 + $0x304] ss:$16 sps:$4 sm:$0xff]  }
  0x4a   : > { %1173 = vmatprep.subr.bf16.mxu0 %v1850_v41  ;;  %1259 = vmatprep.subr.bf16.mxu1 %v1852_v42  ;;  %v1948_v41 = vld [vmem:[%s2110_s11 + $0x30c] ss:$16 sps:$4 sm:$0xff]   ;;  %v1943_v42 = vld [vmem:[%s2110_s11 + $0x300] ss:$16 sps:$4 sm:$0xff]  }
  0x4d   : > { %1174 = vmatpush1.bf16.msra.mxu0 %v1854_v43  ;;  %1260 = vmatpush1.bf16.msra.mxu1 %v1855_v44  ;;  %v1946_v43 = vld [vmem:[%s2110_s11 + $0x308] ss:$16 sps:$4 sm:$0xff]   ;;  %v1951_v44 = vld [vmem:[%s2110_s11 + $0x324] ss:$16 sps:$4 sm:$0xff]  }
  0x4e   : > { %1175 = vmatprep.subr.bf16.mxu0 %v1856_v45  ;;  %1261 = vmatprep.subr.bf16.mxu1 %v1858_v46  ;;  %v1954_v45 = vld [vmem:[%s2110_s11 + $0x32c] ss:$16 sps:$4 sm:$0xff]   ;;  %v1949_v46 = vld [vmem:[%s2110_s11 + $0x320] ss:$16 sps:$4 sm:$0xff]  }
  0x51   : > { %1176 = vmatpush1.bf16.msra.mxu0 %v1860_v47  ;;  %1262 = vmatpush1.bf16.msra.mxu1 %v1861_v48  ;;  %v1952_v47 = vld [vmem:[%s2110_s11 + $0x328] ss:$16 sps:$4 sm:$0xff]   ;;  %v1957_v48 = vld [vmem:[%s2110_s11 + $0x344] ss:$16 sps:$4 sm:$0xff]  }
  0x52   : > { %1177 = vmatprep.subr.bf16.mxu0 %v1862_v49  ;;  %1263 = vmatprep.subr.bf16.mxu1 %v1864_v50  ;;  %v1960_v49 = vld [vmem:[%s2110_s11 + $0x34c] ss:$16 sps:$4 sm:$0xff]   ;;  %v1955_v50 = vld [vmem:[%s2110_s11 + $0x340] ss:$16 sps:$4 sm:$0xff]  }
  0x55   : > { %1178 = vmatpush1.bf16.msra.mxu0 %v1866_v51  ;;  %1264 = vmatpush1.bf16.msra.mxu1 %v1867_v52  ;;  %v1958_v51 = vld [vmem:[%s2110_s11 + $0x348] ss:$16 sps:$4 sm:$0xff]   ;;  %v1963_v52 = vld [vmem:[%s2110_s11 + $0x364] ss:$16 sps:$4 sm:$0xff]  }
  0x56   : > { %1179 = vmatprep.subr.bf16.mxu0 %v1868_v54  ;;  %1265 = vmatprep.subr.bf16.mxu1 %v1870_v55  ;;  %v1961_v54 = vld [vmem:[%s2110_s11 + $0x360] ss:$16 sps:$4 sm:$0xff]   ;;  %v1964_v55 = vld [vmem:[%s2110_s11 + $0x368] ss:$16 sps:$4 sm:$0xff]  }
  0x59   : > { %1180 = vmatpush1.bf16.msra.mxu0 %v1872_v56  ;;  %1266 = vmatpush1.bf16.msra.mxu1 %v1873_v57  ;;  %v1969_v56 = vld [vmem:[%s2110_s11 + $0x384] ss:$16 sps:$4 sm:$0xff]   ;;  %v1972_v57 = vld [vmem:[%s2110_s11 + $0x38c] ss:$16 sps:$4 sm:$0xff]  }
  0x5a   : > { %1181 = vmatprep.subr.bf16.mxu0 %v1874_v58  ;;  %1267 = vmatprep.subr.bf16.mxu1 %v1876_v59  ;;  %v1967_v58 = vld [vmem:[%s2110_s11 + $0x380] ss:$16 sps:$4 sm:$0xff]   ;;  %v1970_v59 = vld [vmem:[%s2110_s11 + $0x388] ss:$16 sps:$4 sm:$0xff]  }
  0x5d   : > { %1182 = vmatpush1.bf16.msra.mxu0 %v1878_v60  ;;  %1268 = vmatpush1.bf16.msra.mxu1 %v1879_v61  ;;  %v1975_v60 = vld [vmem:[%s2110_s11 + $0x3a4] ss:$16 sps:$4 sm:$0xff]   ;;  %v1978_v61 = vld [vmem:[%s2110_s11 + $0x3ac] ss:$16 sps:$4 sm:$0xff]  }
  0x5e   : > { %1183 = vmatprep.subr.bf16.mxu0 %v1880_v62  ;;  %1269 = vmatprep.subr.bf16.mxu1 %v1882_v63  ;;  %v1973_v62 = vld [vmem:[%s2110_s11 + $0x3a0] ss:$16 sps:$4 sm:$0xff]   ;;  %v1976_v63 = vld [vmem:[%s2110_s11 + $0x3a8] ss:$16 sps:$4 sm:$0xff]  }
  0x61   : > { %1184 = vmatpush1.bf16.msra.mxu0 %v1884_v0  ;;  %1270 = vmatpush1.bf16.msra.mxu1 %v1885_v1  ;;  %v1981_v0 = vld [vmem:[%s2110_s11 + $0x3c4] ss:$16 sps:$4 sm:$0xff]   ;;  %v1984_v1 = vld [vmem:[%s2110_s11 + $0x3cc] ss:$16 sps:$4 sm:$0xff]  }
  0x62   : > { %1185 = vmatprep.subr.bf16.mxu0 %v1886_v2  ;;  %1271 = vmatprep.subr.bf16.mxu1 %v1888_v3  ;;  %v1979_v2 = vld [vmem:[%s2110_s11 + $0x3c0] ss:$16 sps:$4 sm:$0xff]   ;;  %v1982_v3 = vld [vmem:[%s2110_s11 + $0x3c8] ss:$16 sps:$4 sm:$0xff]  }
  0x65   : > { %1186 = vmatpush1.bf16.msra.mxu0 %v1890_v4  ;;  %1272 = vmatpush1.bf16.msra.mxu1 %v1891_v5  ;;  %v1987_v4 = vld [vmem:[%s2110_s11 + $0x3e4] ss:$16 sps:$4 sm:$0xff]   ;;  %v1990_v5 = vld [vmem:[%s2110_s11 + $0x3ec] ss:$16 sps:$4 sm:$0xff]  }
  0x66   : > { %1198 = vmatprep.subr.bf16.mxu0 %v1897_v6  ;;  %1284 = vmatprep.subr.bf16.mxu1 %v1900_v7  ;;  %v1985_v6 = vld [vmem:[%s2110_s11 + $0x3e0] ss:$16 sps:$4 sm:$0xff]   ;;  %v1988_v7 = vld [vmem:[%s2110_s11 + $0x3e8] ss:$16 sps:$4 sm:$0xff]  }
  0x68   : > { %1188 = vmatmul.mubr.bf16.vlgmr.msra.gmra.mrb[0].mxu0 %v1892_v8  ;;  %1274 = vmatmul.mubr.bf16.vlgmr.msra.gmra.mrb[0].mxu1 %v1892_v8  ;;  %v1991_v8 = vld [vmem:[%s2112_s12 + $0x8] ss:$16 sps:$4 sm:$0xff]  }
  0x69   : > { %1199 = vmatpush1.bf16.msra.mxu0 %v1895_v9  ;;  %1285 = vmatpush1.bf16.msra.mxu1 %v1898_v10  ;;  %v355_v9 = vld [vmem:[#allocation2] sm:$0xff]  ;;  %v357_v10 = vld [vmem:[#allocation2 + $0x10] sm:$0xff] }
  0x6a   : > { %1200 = vmatprep.subr.bf16.mxu0 %v1903_v11  ;;  %1286 = vmatprep.subr.bf16.mxu1 %v1906_v12  ;;  %v356_v11 = vld [vmem:[#allocation2 + $0x8] sm:$0xff]  ;;  %v358_v12 = vld [vmem:[#allocation2 + $0x18] sm:$0xff] }
  0x6b   : > { %1230 = vmatprep.mubr.bf16.mxu0 %v1993_v33  ;;  %1316 = vmatprep.mubr.bf16.mxu1 %v1993_v33  ;;  %v1357_v33 = vlaneseq (!%p1732_p11) }
  0x6d   : > { %1201 = vmatpush1.bf16.msra.mxu0 %v1901_v13  ;;  %1287 = vmatpush1.bf16.msra.mxu1 %v1904_v14 }
  0x6e   : > { %1202 = vmatprep.subr.bf16.mxu0 %v1909_v15  ;;  %1288 = vmatprep.subr.bf16.mxu1 %v1912_v16  ;;  %v359_v15 = vld [vmem:[#allocation2 + $0x20] sm:$0xff]  ;;  %v361_v16 = vld [vmem:[#allocation2 + $0x30] sm:$0xff] }
  0x71   : > { %1203 = vmatpush1.bf16.msra.mxu0 %v1907_v17  ;;  %1289 = vmatpush1.bf16.msra.mxu1 %v1910_v18 }
  0x72   : > { %1204 = vmatprep.subr.bf16.mxu0 %v1915_v19  ;;  %1290 = vmatprep.subr.bf16.mxu1 %v1918_v20 }
  0x75   : > { %1205 = vmatpush1.bf16.msra.mxu0 %v1913_v21  ;;  %1291 = vmatpush1.bf16.msra.mxu1 %v1916_v22  ;;  %v360_v21 = vld [vmem:[#allocation2 + $0x28] sm:$0xff]  ;;  %v362_v22 = vld [vmem:[#allocation2 + $0x38] sm:$0xff] }
  0x76   : > { %1206 = vmatprep.subr.bf16.mxu0 %v1921_v23  ;;  %1292 = vmatprep.subr.bf16.mxu1 %v1924_v24 }
  0x79   : > { %1207 = vmatpush1.bf16.msra.mxu0 %v1919_v25  ;;  %1293 = vmatpush1.bf16.msra.mxu1 %v1922_v26 }
  0x7a   : > { %1208 = vmatprep.subr.bf16.mxu0 %v1927_v27  ;;  %1294 = vmatprep.subr.bf16.mxu1 %v1930_v28 }
  0x7d   : > { %1209 = vmatpush1.bf16.msra.mxu0 %v1925_v29  ;;  %1295 = vmatpush1.bf16.msra.mxu1 %v1928_v30 }
  0x7e   : > { %1210 = vmatprep.subr.bf16.mxu0 %v1933_v31  ;;  %1296 = vmatprep.subr.bf16.mxu1 %v1936_v32 }
  0x81   : > { %1211 = vmatpush1.bf16.msra.mxu0 %v1931_v34  ;;  %1297 = vmatpush1.bf16.msra.mxu1 %v1934_v35  ;;  %v1358_v34 = vshrl.u32 (!%p1732_p11), %v1357_v33, 7  ;;  %v1355_v35 = vld [vmem:[%s2283_s2] sm:$0xf] (!%p1732_p11) }
  0x82   : > { %1212 = vmatprep.subr.bf16.mxu0 %v1939_v36  ;;  %1298 = vmatprep.subr.bf16.mxu1 %v1942_v37  ;;  %v1385_v36 = vld [vmem:[%s2284_s3] sm:$0xf] (!%p1732_p11) }
  0x85   : > { %1213 = vmatpush1.bf16.msra.mxu0 %v1937_v38  ;;  %1299 = vmatpush1.bf16.msra.mxu1 %v1940_v39  ;;  %v1359_v39 = vsub.s32 (!%p1732_p11), 0, %v1358_v34 }
  0x86   : > { %1214 = vmatprep.subr.bf16.mxu0 %v1945_v40  ;;  %1300 = vmatprep.subr.bf16.mxu1 %v1948_v41  ;;  %v1363_v40 = vsub.s32 (!%p1732_p11), 1, %v1358_v34  ;;  %v1367_v41 = vsub.s32 (!%p1732_p11), 2, %v1358_v34 }
  0x89   : > { %1215 = vmatpush1.bf16.msra.mxu0 %v1943_v42  ;;  %1301 = vmatpush1.bf16.msra.mxu1 %v1946_v43  ;;  %v1371_v42 = vsub.s32 (!%p1732_p11), 3, %v1358_v34 }
  0x8a   : > { %1216 = vmatprep.subr.bf16.mxu0 %v1951_v44  ;;  %1302 = vmatprep.subr.bf16.mxu1 %v1954_v45 }
  0x8d   : > { %1217 = vmatpush1.bf16.msra.mxu0 %v1949_v46  ;;  %1303 = vmatpush1.bf16.msra.mxu1 %v1952_v47  ;;  %v1360_v46 = vrot.slane (!%p1732_p11), %v1355_v35, %v1359_v39  ;;  %v1364_v47 = vrot.slane (!%p1732_p11), %v1355_v35, %v1363_v40 }
  0x8e   : > { %1218 = vmatprep.subr.bf16.mxu0 %v1957_v48  ;;  %1304 = vmatprep.subr.bf16.mxu1 %v1960_v49  ;;  %v1390_v48 = vrot.slane (!%p1732_p11), %v1385_v36, %v1359_v39  ;;  %v1394_v49 = vrot.slane (!%p1732_p11), %v1385_v36, %v1363_v40 }
  0x91   : > { %1219 = vmatpush1.bf16.msra.mxu0 %v1955_v50  ;;  %1305 = vmatpush1.bf16.msra.mxu1 %v1958_v51 }
  0x92   : > { %1220 = vmatprep.subr.bf16.mxu0 %v1963_v52  ;;  %1306 = vmatprep.subr.bf16.mxu1 %v1966_v53  ;;  %v1368_v53 = vrot.slane (!%p1732_p11), %v1355_v35, %v1367_v41 }
  0x95   : > { %1221 = vmatpush1.bf16.msra.mxu0 %v1961_v54  ;;  %1307 = vmatpush1.bf16.msra.mxu1 %v1964_v55  ;;  %v1372_v54 = vrot.slane (!%p1732_p11), %v1355_v35, %v1371_v42  ;;  %v1398_v55 = vrot.slane (!%p1732_p11), %v1385_v36, %v1367_v41 }
  0x96   : > { %1222 = vmatprep.subr.bf16.mxu0 %v1969_v56  ;;  %1308 = vmatprep.subr.bf16.mxu1 %v1972_v57  ;;  %v1402_v56 = vrot.slane (!%p1732_p11), %v1385_v36, %v1371_v42 }
  0x99   : > { %1223 = vmatpush1.bf16.msra.mxu0 %v1967_v58  ;;  %1309 = vmatpush1.bf16.msra.mxu1 %v1970_v59 }
  0x9a   : > { %1224 = vmatprep.subr.bf16.mxu0 %v1975_v60  ;;  %1310 = vmatprep.subr.bf16.mxu1 %v1978_v61 }
  0x9d   : > { %1225 = vmatpush1.bf16.msra.mxu0 %v1973_v62  ;;  %1311 = vmatpush1.bf16.msra.mxu1 %v1976_v63 }
  0x9e   : > { %1226 = vmatprep.subr.bf16.mxu0 %v1981_v0  ;;  %1312 = vmatprep.subr.bf16.mxu1 %v1984_v1 }
  0xa1   : > { %1227 = vmatpush1.bf16.msra.mxu0 %v1979_v2  ;;  %1313 = vmatpush1.bf16.msra.mxu1 %v1982_v3 }
  0xa2   : > { %1228 = vmatprep.subr.bf16.mxu0 %v1987_v4  ;;  %1314 = vmatprep.subr.bf16.mxu1 %v1990_v5 }
  0xa5   : > { %1229 = vmatpush1.bf16.msra.mxu0 %v1985_v6  ;;  %1315 = vmatpush1.bf16.msra.mxu1 %v1988_v7 }
  0xa8   : > { %1231 = vmatmul.mubr.bf16.vlgmr.msra.gmra.mrb[0].mxu0 %v1991_v8  ;;  %1317 = vmatmul.mubr.bf16.vlgmr.msra.gmra.mrb[0].mxu1 %v1991_v8 }
 0x17b   : > { %v1232_v13 = vpop.f32.mrb[0].mxu0  ;;  %v1318_v14 = vpop.f32.mrb[0].mxu1  ;;  %1346 = sbr.rel (%p1732_p11) target bundleno = 402 (0x192), region = 67 }
 0x17c   : > { %v1327_v17 = vadd.f32 %v1232_v13, %v355_v9  ;;  %v1329_v18 = vadd.f32 %v1318_v14, %v357_v10  ;;  %v1234_v19 = vpop.f32.mrb[1].mxu0  ;;  %v1320_v20 = vpop.f32.mrb[1].mxu1 }
 0x17d   : > { %v1328_v23 = vadd.f32 %v1234_v19, %v356_v11  ;;  %v1330_v24 = vadd.f32 %v1320_v20, %v358_v12  ;;  %v1236_v25 = vpop.f32.mrb[2].mxu0  ;;  %v1322_v26 = vpop.f32.mrb[2].mxu1 }
 0x17e   : > { %1335 = vst [vmem:[#allocation2] sm:$0xff] %v1327_v17  ;;  %1337 = vst [vmem:[#allocation2 + $0x10] sm:$0xff] %v1329_v18  ;;  %v1331_v27 = vadd.f32 %v1236_v25, %v359_v15  ;;  %v1333_v28 = vadd.f32 %v1322_v26, %v361_v16  ;;  %v1238_v29 = vpop.f32.mrb[3].mxu0  ;;  %v1324_v30 = vpop.f32.mrb[3].mxu1 }
 0x17f   : > { %1336 = vst [vmem:[#allocation2 + $0x8] sm:$0xff] %v1328_v23  ;;  %1338 = vst [vmem:[#allocation2 + $0x18] sm:$0xff] %v1330_v24  ;;  %v1332_v31 = vadd.f32 %v1238_v29, %v360_v21  ;;  %v1334_v32 = vadd.f32 %v1324_v30, %v362_v22 }
 0x180   : > { %1339 = vst [vmem:[#allocation2 + $0x20] sm:$0xff] %v1331_v27  ;;  %1341 = vst [vmem:[#allocation2 + $0x30] sm:$0xff] %v1333_v28 }
 0x181   : > { %1340 = vst [vmem:[#allocation2 + $0x28] sm:$0xff] %v1332_v31  ;;  %1342 = vst [vmem:[#allocation2 + $0x38] sm:$0xff] %v1334_v32 }
 0x185   : > { %v1347_v37 = vld [vmem:[#allocation2] sm:$0xff]  ;;  %v1349_v43 = vld [vmem:[#allocation2 + $0x10] sm:$0xff] }
 0x186   : > { %v1348_v38 = vld [vmem:[#allocation2 + $0x8] sm:$0xff]  ;;  %v1350_v50 = vld [vmem:[#allocation2 + $0x18] sm:$0xff]  ;;  %v1377_v57 = vmul.f32 %v1360_v46, %v1347_v37  ;;  %v1379_v61 = vmul.f32 %v1368_v53, %v1349_v43 }
 0x187   : > { %v1351_v44 = vld [vmem:[#allocation2 + $0x20] sm:$0xff]  ;;  %v1353_v51 = vld [vmem:[#allocation2 + $0x30] sm:$0xff]  ;;  %v1378_v58 = vmul.f32 %v1364_v47, %v1348_v38  ;;  %v1380_v62 = vmul.f32 %v1372_v54, %v1350_v50 }
 0x188   : > { %v1352_v45 = vld [vmem:[#allocation2 + $0x28] sm:$0xff]  ;;  %v1354_v52 = vld [vmem:[#allocation2 + $0x38] sm:$0xff]  ;;  %v1381_v59 = vmul.f32 %v1360_v46, %v1351_v44  ;;  %v1383_v63 = vmul.f32 %v1368_v53, %v1353_v51  ;;  %v1407_v1 = vadd.f32 %v1390_v48, %v1377_v57  ;;  %v1409_v5 = vadd.f32 %v1398_v55, %v1379_v61 }
 0x189   : > { %v1382_v60 = vmul.f32 %v1364_v47, %v1352_v45  ;;  %v1384_v0 = vmul.f32 %v1372_v54, %v1354_v52  ;;  %v1408_v2 = vadd.f32 %v1394_v49, %v1378_v58  ;;  %v1410_v6 = vadd.f32 %v1402_v56, %v1380_v62 }
 0x18a   : > { %v1411_v3 = vadd.f32 %v1390_v48, %v1381_v59  ;;  %v1413_v7 = vadd.f32 %v1398_v55, %v1383_v63  ;;  %v1415_v9 = vmax.f32 %v1407_v1, 0.0  ;;  %v1417_v13 = vmax.f32 %v1409_v5, 0.0 }
 0x18b   : > { %v1412_v4 = vadd.f32 %v1394_v49, %v1382_v60  ;;  %v1414_v8 = vadd.f32 %v1402_v56, %v1384_v0  ;;  %v1416_v10 = vmax.f32 %v1408_v2, 0.0  ;;  %v1418_v14 = vmax.f32 %v1410_v6, 0.0 }
 0x18c   : > { %v1419_v11 = vmax.f32 %v1411_v3, 0.0  ;;  %v1421_v15 = vmax.f32 %v1413_v7, 0.0 }
 0x18d   : > { %v1420_v12 = vmax.f32 %v1412_v4, 0.0  ;;  %v1422_v16 = vmax.f32 %v1414_v8, 0.0  ;;  %v1743_v17 = vpack.c.bf16 %v1416_v10, %v1415_v9  ;;  %v1744_v19 = vpack.c.bf16 %v1418_v14, %v1417_v13 }
 0x18f   : > { %v1745_v18 = vpack.c.bf16 %v1420_v12, %v1419_v11  ;;  %v1746_v20 = vpack.c.bf16 %v1422_v16, %v1421_v15  ;;  %1447 = vst [vmem:[%s2285_s4] sm:$0xff] %v1743_v17  ;;  %1448 = vst [vmem:[%s2285_s4 + $0x8] sm:$0xff] %v1744_v19 }
 0x191   : > { %1449 = vst [vmem:[%s2285_s4 + $0x10] sm:$0xff] %v1745_v18  ;;  %1450 = vst [vmem:[%s2285_s4 + $0x18] sm:$0xff] %v1746_v20 }
 0x192 PF: > { %s14_s19 = sadd.s32 1, %s2032_s19   ;;  %s2286_s15 = smov %s2020_s16 }
 0x193   : > { %p11_p12 = scmp.ge.s32.totalorder %s14_s19, 11   ;;  %s2287_s16 = smov %s2095_s23 }
 0x194   : > { %s2288_s17 = smov %s2028_s18  ;;  %s2289_s18 = smov %s2291_s20 }
 0x195   :  { %13 = sbr.rel (!%p11_p12) target bundleno = 3 (0x3), region = 111 }

// kernel: base_resnet18_forward.47
= control target key start
LH: loop header
LB: loop body
LE: loop exit
PB: predicated region body
PF: predicated region fallthrough
CT: control target
= control target key end

     0   :  { %vm11_vm0 = vcmask 1041408   ;;  %s95_s0 = inlined_call_operand.vmem [shape: f32[2,128], index: 0, kind: input, shape index: {}]   ;;  %s96_s1 = inlined_call_operand.hbm [shape: f32[2,128], index: 1, kind: output, shape index: {}]  }
   0x1   :  { %v9_v0 = vld [vmem:[%s95_s0] sm:$0x3] }
   0x2   :  { %6 = vsyncpa [#allocation3], 0  ;;  %v10_v1 = vmul.f32 %v9_v0, %v9_v0  ;;  %s69_s8 = smov [#allocation2]  }
   0x3   :  { %s32_s9 = sshll.u32 %s69_s8, 4  ;;  %s33_s9 = int_to_ptr.vmem [resolvable:$true] %s32_s9 }
   0x4   :  { %v12_v2 = vsel %vm11_vm0, %v10_v1, 0.0  ;;  %s45_s0 = scalar_lea.vmem %s33_s9, 32  ;;  %p50_p1 = scmp.lt.s32.totalorder %s33_s9, %s33_s9 }
   0x5   :  { %13 = vadd.xlane.f32.xlu0 %v12_v2  ;;  %p46_p0 = scmp.ne.s32.totalorder %s33_s9, %s45_s0  ;;  %p51_p2 = scmp.lt.s32.totalorder %s45_s0, %s45_s0 }
   0x7   :  { %p52_p3 = por %p51_p2, %p50_p1 }
   0x9   :  { %p53_p4 = pnand %p52_p3, %p46_p0 }
  0x92   :  { %v14_v3 = vpop.xlane.xlu0 %13 }
  0x93   :  { %41 = vrsqrt.f32 %v14_v3  ;;  %vm17_vm1 = vcmp.eq.f32.partialorder %v14_v3, inf  ;;  %v20_v6 = vand.u32 2147483648, %v14_v3  ;;  %vm19_vm2 = vcmp.eq.f32.partialorder %v14_v3, 0.0 }
  0x9d   :  { %v42_v4 = vpop.eup %41 }
  0x9e   :  { %v16_v5 = vmul.f32 %v42_v4, %v14_v3 }
  0xa0   :  { %v18_v7 = vsel %vm17_vm1, %v14_v3, %v16_v5 }
  0xa1   :  { %v21_v8 = vsel %vm19_vm2, %v20_v6, %v18_v7 }
  0xa2   :  { %v22_v9 = vmax.f32 %v21_v8, 1e-12 }
  0xa4   :  { %43 = vrcp.f32 %v22_v9 }
  0xae   :  { %v44_v10 = vpop.eup %43 }
  0xaf   :  { %v24_v11 = vmul.f32 %v44_v10, %v9_v0 }
  0xb1   :  { %25 = vst [vmem:[#allocation2] sm:$0x3] %v24_v11 }
  0xb2   :  { %56 = shalt.err (!%p53_p4)
}
  0xb3   :  { %s57_s12 = scalar_lea.hbm %s96_s1, 32 }
  0xb4   :  { %p58_p5 = scmp.ne.s32.totalorder %s96_s1, %s57_s12  ;;  %p61_p6 = scmp.lt.u32.totalorder %s57_s12, %s96_s1 }
  0xb6   :  { %p63_p7 = pnand %p61_p6, %p58_p5 }
  0xb8   :  { %66 = shalt.err (!%p63_p7)
}
  0xb9   :  { %35 = dma.vmem_to_hbm [thread:$0]  %s33_s9, 32, %s96_s1, [#allocation3]  }
  0xba   :  { %67 = dma.done.wait [#allocation3], 32  }
  0xbb   :  { %68 = vsyncadd [#allocation3], 4294967264 }
  0xbc   :  { %39 = vsyncpa [#allocation3], 1 }

// kernel: base_resnet18_forward.46
= control target key start
LH: loop header
LB: loop body
LE: loop exit
PB: predicated region body
PF: predicated region fallthrough
CT: control target
= control target key end

     0   :  { %s686_s1 = inlined_call_operand.vmem [shape: bf16[512,128], index: 1, kind: input, shape index: {}]   ;;  %s687_s0 = inlined_call_operand.vmem [shape: bf16[16,512], index: 0, kind: input, shape index: {}]   ;;  %s688_s2 = inlined_call_operand.vmem [shape: f32[1,128], index: 2, kind: input, shape index: {}]   ;;  %s689_s3 = inlined_call_operand.vmem [shape: f32[1,128], index: 3, kind: input, shape index: {}]   ;;  %s690_s4 = inlined_call_operand.vmem [shape: f32[16,128], index: 4, kind: output, shape index: {}]  }
   0x1   :  { %v503_v0 = vld [vmem:[%s686_s1 + $0x40] sm:$0xff]   ;;  %v507_v4 = vld [vmem:[%s686_s1 + $0x48] sm:$0xff]   ;;  %v511_v8 = vld [vmem:[%s686_s1 + $0x50] sm:$0xff]  }
   0x2   :  { %v504_v1 = vld [vmem:[%s686_s1 + $0xc0] sm:$0xff]   ;;  %459 = vmatprep.subr.bf16.mxu0 %v503_v0  ;;  %v508_v5 = vld [vmem:[%s686_s1 + $0xc8] sm:$0xff]   ;;  %v512_v9 = vld [vmem:[%s686_s1 + $0xd0] sm:$0xff]  }
   0x3   :  { %v505_v2 = vld [vmem:[%s686_s1] sm:$0xff]   ;;  %481 = vmatprep.subr.bf16.mxu1 %v504_v1  ;;  %v509_v6 = vld [vmem:[%s686_s1 + $0x8] sm:$0xff]   ;;  %v513_v10 = vld [vmem:[%s686_s1 + $0x10] sm:$0xff]  }
   0x4   :  { %v506_v3 = vld [vmem:[%s686_s1 + $0x80] sm:$0xff]   ;;  %460 = vmatpush3.bf16.msra.mxu0 %v505_v2  ;;  %v510_v7 = vld [vmem:[%s686_s1 + $0x88] sm:$0xff]   ;;  %v514_v11 = vld [vmem:[%s686_s1 + $0x90] sm:$0xff]  }
   0x5   :  { %482 = vmatpush3.bf16.msra.mxu1 %v506_v3  ;;  %461 = vmatprep.subr.bf16.mxu0 %v507_v4  ;;  %v515_v12 = vld [vmem:[%s686_s1 + $0x58] sm:$0xff]   ;;  %v519_v16 = vld [vmem:[%s686_s1 + $0x60] sm:$0xff]   ;;  %v523_v20 = vld [vmem:[%s686_s1 + $0x68] sm:$0xff]  }
   0x6   :  { %483 = vmatprep.subr.bf16.mxu1 %v508_v5  ;;  %v516_v13 = vld [vmem:[%s686_s1 + $0xd8] sm:$0xff]   ;;  %v520_v17 = vld [vmem:[%s686_s1 + $0xe0] sm:$0xff]   ;;  %v524_v21 = vld [vmem:[%s686_s1 + $0xe8] sm:$0xff]  }
   0x7   :  { %v517_v14 = vld [vmem:[%s686_s1 + $0x18] sm:$0xff]   ;;  %v521_v18 = vld [vmem:[%s686_s1 + $0x20] sm:$0xff]   ;;  %v525_v22 = vld [vmem:[%s686_s1 + $0x28] sm:$0xff]  }
   0x8   :  { %462 = vmatpush3.bf16.msra.mxu0 %v509_v6  ;;  %v518_v15 = vld [vmem:[%s686_s1 + $0x98] sm:$0xff]   ;;  %v522_v19 = vld [vmem:[%s686_s1 + $0xa0] sm:$0xff]   ;;  %v526_v23 = vld [vmem:[%s686_s1 + $0xa8] sm:$0xff]  }
   0x9   :  { %484 = vmatpush3.bf16.msra.mxu1 %v510_v7  ;;  %463 = vmatprep.subr.bf16.mxu0 %v511_v8  ;;  %v527_v24 = vld [vmem:[%s686_s1 + $0x70] sm:$0xff]   ;;  %v531_v28 = vld [vmem:[%s686_s1 + $0x78] sm:$0xff]   ;;  %v457_v45 = vld [vmem:[%s688_s2] ss:$0 sm:$0xff] }
   0xa   :  { %485 = vmatprep.subr.bf16.mxu1 %v512_v9  ;;  %v528_v25 = vld [vmem:[%s686_s1 + $0xf0] sm:$0xff]   ;;  %v532_v29 = vld [vmem:[%s686_s1 + $0xf8] sm:$0xff]   ;;  %v458_v50 = vld [vmem:[%s689_s3] ss:$0 sm:$0xff] }
   0xb   :  { %v529_v26 = vld [vmem:[%s686_s1 + $0x30] sm:$0xff]   ;;  %v533_v30 = vld [vmem:[%s686_s1 + $0x38] sm:$0xff]  }
   0xc   :  { %464 = vmatpush3.bf16.msra.mxu0 %v513_v10  ;;  %v530_v27 = vld [vmem:[%s686_s1 + $0xb0] sm:$0xff]   ;;  %v534_v31 = vld [vmem:[%s686_s1 + $0xb8] sm:$0xff]  }
   0xd   :  { %486 = vmatpush3.bf16.msra.mxu1 %v514_v11  ;;  %465 = vmatprep.subr.bf16.mxu0 %v515_v12  ;;  %v535_v32 = vld [vmem:[%s687_s0] ss:$16 sps:$4 sm:$0xff]   ;;  %v537_v33 = vld [vmem:[%s687_s0 + $0x4] ss:$16 sps:$4 sm:$0xff]   ;;  %v538_v34 = vld [vmem:[%s687_s0 + $0x8] ss:$16 sps:$4 sm:$0xff]  }
   0xe   :  { %487 = vmatprep.subr.bf16.mxu1 %v516_v13  ;;  %v540_v35 = vld [vmem:[%s687_s0 + $0xc] ss:$16 sps:$4 sm:$0xff]   ;;  %338 = vmatprep.mubr.bf16.mxu0 %v537_v33 }
   0xf   :  { %379 = vmatprep.mubr.bf16.mxu1 %v540_v35 }
  0x10   :  { %466 = vmatpush3.bf16.msra.mxu0 %v517_v14 }
  0x11   :  { %488 = vmatpush3.bf16.msra.mxu1 %v518_v15  ;;  %467 = vmatprep.subr.bf16.mxu0 %v519_v16 }
  0x12   :  { %489 = vmatprep.subr.bf16.mxu1 %v520_v17 }
  0x14   :  { %468 = vmatpush3.bf16.msra.mxu0 %v521_v18 }
  0x15   :  { %490 = vmatpush3.bf16.msra.mxu1 %v522_v19  ;;  %469 = vmatprep.subr.bf16.mxu0 %v523_v20 }
  0x16   :  { %491 = vmatprep.subr.bf16.mxu1 %v524_v21 }
  0x18   :  { %470 = vmatpush3.bf16.msra.mxu0 %v525_v22 }
  0x19   :  { %492 = vmatpush3.bf16.msra.mxu1 %v526_v23  ;;  %471 = vmatprep.subr.bf16.mxu0 %v527_v24 }
  0x1a   :  { %493 = vmatprep.subr.bf16.mxu1 %v528_v25 }
  0x1c   :  { %472 = vmatpush3.bf16.msra.mxu0 %v529_v26 }
  0x1d   :  { %494 = vmatpush3.bf16.msra.mxu1 %v530_v27  ;;  %473 = vmatprep.subr.bf16.mxu0 %v531_v28 }
  0x1e   :  { %495 = vmatprep.subr.bf16.mxu1 %v532_v29 }
  0x20   :  { %474 = vmatpush3.bf16.msra.mxu0 %v533_v30 }
  0x21   :  { %496 = vmatpush3.bf16.msra.mxu1 %v534_v31 }
  0x23   :  { %339 = vmatmul.mubr.bf16.vlgmr.msra.gmra.mrb[0].mxu0 %v535_v32 }
  0x24   :  { %380 = vmatmul.mubr.bf16.vlgmr.msra.gmra.mrb[0].mxu1 %v538_v34 }
  0xf6   :  { %v475_v36 = vpop.f32.mrb[0].mxu0 }
  0xf7   :  { %v497_v37 = vpop.f32.mrb[0].mxu1  ;;  %v476_v38 = vpop.f32.mrb[1].mxu0 }
  0xf8   :  { %v477_v39 = vadd.f32 %v476_v38, %v475_v36  ;;  %v498_v40 = vpop.f32.mrb[1].mxu1  ;;  %v478_v41 = vpop.f32.mrb[2].mxu0 }
  0xf9   :  { %v499_v42 = vadd.f32 %v498_v40, %v497_v37  ;;  %v500_v43 = vpop.f32.mrb[2].mxu1  ;;  %v479_v44 = vpop.f32.mrb[3].mxu0 }
  0xfa   :  { %v480_v46 = vadd.f32 %v479_v44, %v478_v41  ;;  %v501_v47 = vpop.f32.mrb[3].mxu1 }
  0xfb   :  { %v382_v48 = vadd.f32 %v499_v42, %v477_v39  ;;  %v502_v49 = vadd.f32 %v501_v47, %v500_v43 }
  0xfd   :  { %v404_v51 = vmul.f32 %v457_v45, %v382_v48  ;;  %v385_v52 = vadd.f32 %v502_v49, %v480_v46 }
  0xff   :  { %v413_v53 = vadd.f32 %v458_v50, %v404_v51  ;;  %v405_v54 = vmul.f32 %v457_v45, %v385_v52 }
 0x101   :  { %415 = vst [vmem:[%s690_s4] sm:$0xff] %v413_v53  ;;  %v414_v55 = vadd.f32 %v458_v50, %v405_v54 }
 0x103   :  { %416 = vst [vmem:[%s690_s4 + $0x8] sm:$0xff] %v414_v55 }

</bundles_post_ra>
